<compile_context>
chip_gen: v7x
topology: tpu7x:2x2x1
jax: 0.10.0
libtpu: 0.0.40
codegen_flags: <defaults>
</compile_context>

<pallas_src>
import functools
import math

import numpy as np
import jax
import jax.numpy as jnp
from jax import lax
from jax.experimental import pallas as pl
from jax.experimental.pallas import tpu as pltpu

NEG_INF = float(np.finfo(np.float32).min)  # matches torch masked_fill value


def _mm_nt(a, b):
    # a: [m, c], b: [n, c] -> [m, n]  (b logically transposed; f32 MXU accumulation)
    return lax.dot_general(a, b, (((1,), (1,)), ((), ())),
                           preferred_element_type=jnp.float32)


def _attn_kernel(
    k_ref, v_ref, q_ref, tgt_ref, id_ref,
    wk_ref, bk_ref, wv_ref, bv_ref, wq_ref, bq_ref, wo_ref, bo_ref,
    *rest, n_heads, d_k, future_weight, mxu_dtype, return_aw,
):
    if return_aw:
        (cvf_ref, cvb_ref, awfh_ref, awff_ref, awbh_ref, awbf_ref,
         k_scr, v_scr, q_scr) = rest
    else:
        cvf_ref, cvb_ref, k_scr, v_scr, q_scr = rest
        awfh_ref = awff_ref = awbh_ref = awbf_ref = None

    klen = k_ref.shape[2]
    kdim = k_ref.shape[3]
    tq = q_ref.shape[2]
    qdim = q_ref.shape[3]

    # --- K/V projections: once per batch element (first q tile), per head,
    #     written straight into head-major VMEM scratch (no reshape+transpose
    #     relayout of the full [2, klen, adim] tensors). ---
    @pl.when(pl.program_id(1) == 0)
    def _():
        k2d = k_ref[0].reshape(2 * klen, kdim)   # fwd rows then bwd rows
        v2d = v_ref[0].reshape(2 * klen, kdim)
        for h in range(n_heads):
            kh = (_mm_nt(k2d, wk_ref[h]) + bk_ref[h]).reshape(2, klen, d_k).astype(mxu_dtype)
            vh = (_mm_nt(v2d, wv_ref[h]) + bv_ref[h]).reshape(2, klen, d_k).astype(mxu_dtype)
            k_scr[0, h] = kh[0]
            k_scr[1, h] = kh[1]
            v_scr[0, h] = vh[0]
            v_scr[1, h] = vh[1]

    # --- Q projection for this q tile (1/sqrt(d_k) pre-folded into wq/bq). ---
    q2d = q_ref[0].reshape(2 * tq, qdim)
    for h in range(n_heads):
        qh = (_mm_nt(q2d, wq_ref[h]) + bq_ref[h]).reshape(2, tq, d_k).astype(mxu_dtype)
        q_scr[0, h] = qh[0]
        q_scr[1, h] = qh[1]

    # --- Mask predicates (each shared by two pairings); masked_fill semantics. ---
    tgt_is_masked = tgt_ref[0].astype(jnp.int32) == 0    # [tq, klen] bool
    id_is_masked = id_ref[0].astype(jnp.int32) == 0

    wo = wo_ref[...]                                     # [H, d_k, kdim] (mxu dtype)

    def pairing(q_idx, kv_idx, is_masked, aw_ref):
        q = q_scr[q_idx]                                 # [H, tq,   d_k]
        k = k_scr[kv_idx]                                # [H, klen, d_k]
        v = v_scr[kv_idx]                                # [H, klen, d_k]
        e = jnp.einsum("hqd,hkd->hqk", q, k, preferred_element_type=jnp.float32)
        # Replace (not add) masked scores -> fully-masked rows stay uniform, no NaN.
        e = jnp.where(is_masked[None, :, :], NEG_INF, e)
        m = jnp.max(e, axis=-1, keepdims=True)
        p = jnp.exp(e - m)
        s = jnp.sum(p, axis=-1, keepdims=True)
        aw = p * pl.reciprocal(s, approx=True)           # EUP reciprocal (rows sum to ~1)
        aw_m = aw.astype(mxu_dtype)
        if aw_ref is not None:
            if jnp.dtype(aw_ref.dtype) == jnp.dtype(mxu_dtype):
                aw_ref[0] = aw_m                         # reuse the single cast
            else:
                aw_ref[0] = aw.astype(aw_ref.dtype)
        # TODO(synk): dropout on attention weights is identity (eval mode).
        cv = jnp.einsum("hqk,hkd->hqd", aw_m, v, preferred_element_type=jnp.float32)
        # Per-head output projection, accumulated over heads: no head-major ->
        # row-major transpose of the context and no 4*tq context concat.
        out_h = jnp.einsum("hqd,hdk->hqk", cv.astype(mxu_dtype), wo,
                           preferred_element_type=jnp.float32)       # [H, tq, kdim]
        return jnp.sum(out_h, axis=0)                                 # [tq, kdim]

    ctx_fh = pairing(0, 0, tgt_is_masked, awfh_ref)
    ctx_ff = pairing(0, 1, id_is_masked, awff_ref)
    ctx_bh = pairing(1, 1, tgt_is_masked, awbh_ref)
    ctx_bf = pairing(1, 0, id_is_masked, awbf_ref)

    bo = bo_ref[...]                                                  # [1, kdim]
    cvf_ref[0] = ((ctx_fh + bo) + future_weight * jnp.tanh(ctx_ff + bo)).astype(cvf_ref.dtype)
    cvb_ref[0] = ((ctx_bh + bo) + future_weight * jnp.tanh(ctx_bf + bo)).astype(cvb_ref.dtype)


def sync_bidir_mha(key_fwd, value_fwd, query_fwd, key_bwd, value_bwd, query_bwd,
                   tgt_mask, identity_mask, params, n_heads, future_weight=0.1,
                   *, q_tile=None, mxu_dtype=jnp.bfloat16, aw_dtype=jnp.bfloat16,
                   return_aw=True):
    B, klen, kdim = key_fwd.shape
    _, qlen, qdim = query_fwd.shape
    adim = params["w_key"].shape[0]
    odim = params["w_out"].shape[0]           # == kdim in the module
    assert adim % n_heads == 0
    d_k = adim // n_heads
    inv_scale = 1.0 / math.sqrt(d_k)

    mxu_b = jnp.dtype(mxu_dtype).itemsize
    aw_b = jnp.dtype(aw_dtype).itemsize

    # ----- per-generation VMEM budget (85% of physical capacity) -----
    try:
        vmem_cap = int(pltpu.get_tpu_info().vmem_capacity_bytes)
    except Exception:
        vmem_cap = 64 << 20                   # conservative fallback (v7x-sized)
    vmem_budget = int(vmem_cap * 0.85)        # headroom for compiler-internal scratch

    def _est_bytes(qt, mask_b):
        blk_in = (2 * 2 * klen * kdim + 2 * qt * qdim) * mxu_b + 2 * qt * klen * mask_b
        w_b = (2 * adim * kdim + adim * qdim + adim * odim) * mxu_b + (3 * adim + odim) * 4
        blk_out = 2 * qt * odim * 4 + (4 * n_heads * qt * klen * aw_b if return_aw else 0)
        scratch = (2 * 2 * n_heads * klen * d_k + 2 * n_heads * qt * d_k) * mxu_b
        return 2 * (blk_in + w_b + blk_out) + scratch   # 2x: double-buffered blocks

    if q_tile is None:
        q_tile = qlen if qlen <= 256 else (256 if qlen % 256 == 0 else
                                           (128 if qlen % 128 == 0 else qlen))
        # shrink the q tile until the estimated footprint fits the budget
        while (_est_bytes(q_tile, 1) + (8 << 20) > vmem_budget
               and q_tile % 64 == 0 and qlen % (q_tile // 2) == 0):
            q_tile //= 2
    assert qlen % q_tile == 0, "qlen must be divisible by q_tile"
    assert q_tile == qlen or q_tile % 32 == 0, "q_tile must be a multiple of 32 (or == qlen)"
    n_qt = qlen // q_tile

    # masks: int8 when block constraints allow (4x less HBM DMA than int32)
    mask_dtype = jnp.int8 if (q_tile == qlen or q_tile % 32 == 0) else jnp.int32
    mask_b = jnp.dtype(mask_dtype).itemsize
    vmem_limit = int(min(vmem_budget, max(_est_bytes(q_tile, mask_b) + (8 << 20), 32 << 20)))

    # ----- wrapper-side layout / dtype prep (done once by XLA, not per tile) -----
    f32 = jnp.float32

    def head_w(w, scale=1.0):
        return (jnp.asarray(w, f32) * scale).reshape(n_heads, d_k, w.shape[1]).astype(mxu_dtype)

    def head_b(b, scale=1.0):
        return (jnp.asarray(b, f32) * scale).reshape(n_heads, 1, d_k)

    wk = head_w(params["w_key"])
    bk = head_b(params["b_key"])
    wv = head_w(params["w_value"])
    bv = head_b(params["b_value"])
    wq = head_w(params["w_query"], inv_scale)            # fold 1/sqrt(d_k) into Q proj
    bq = head_b(params["b_query"], inv_scale)
    wo = (jnp.asarray(params["w_out"], f32)
          .reshape(odim, n_heads, d_k).transpose(1, 2, 0).astype(mxu_dtype))  # [H, d_k, odim]
    bo = jnp.asarray(params["b_out"], f32).reshape(1, odim)

    k_in = jnp.stack([key_fwd, key_bwd], axis=1).astype(mxu_dtype)    # [B, 2, klen, kdim]
    v_in = jnp.stack([value_fwd, value_bwd], axis=1).astype(mxu_dtype)
    q_in = jnp.stack([query_fwd, query_bwd], axis=1).astype(mxu_dtype)
    tgt_m = tgt_mask.astype(mask_dtype)
    id_m = identity_mask.astype(mask_dtype)

    kernel = functools.partial(
        _attn_kernel, n_heads=n_heads, d_k=d_k, future_weight=future_weight,
        mxu_dtype=mxu_dtype, return_aw=return_aw)

    kv_spec = pl.BlockSpec((1, 2, klen, kdim), lambda b, q: (b, 0, 0, 0))   # constant over q
    q_spec = pl.BlockSpec((1, 2, q_tile, qdim), lambda b, q: (b, 0, q, 0))
    mask_spec = pl.BlockSpec((1, q_tile, klen), lambda b, q: (b, q, 0))

    def w_spec(a):
        nd = a.ndim
        return pl.BlockSpec(a.shape, lambda b, q: (0,) * nd)

    in_specs = [kv_spec, kv_spec, q_spec, mask_spec, mask_spec,
                w_spec(wk), w_spec(bk), w_spec(wv), w_spec(bv),
                w_spec(wq), w_spec(bq), w_spec(wo), w_spec(bo)]

    cv_spec = pl.BlockSpec((1, q_tile, odim), lambda b, q: (b, q, 0))
    aw_spec = pl.BlockSpec((1, n_heads, q_tile, klen), lambda b, q: (b, 0, q, 0))
    cv_shape = jax.ShapeDtypeStruct((B, qlen, odim), jnp.float32)
    aw_shape = jax.ShapeDtypeStruct((B, n_heads, qlen, klen), aw_dtype)
    if return_aw:
        out_shape = (cv_shape, cv_shape, aw_shape, aw_shape, aw_shape, aw_shape)
        out_specs = (cv_spec, cv_spec, aw_spec, aw_spec, aw_spec, aw_spec)
    else:
        out_shape = (cv_shape, cv_shape)
        out_specs = (cv_spec, cv_spec)

    return pl.pallas_call(
        kernel,
        out_shape=out_shape,
        grid_spec=pltpu.PrefetchScalarGridSpec(
            num_scalar_prefetch=0,
            grid=(B, n_qt),
            in_specs=in_specs,
            out_specs=out_specs,
            scratch_shapes=[
                pltpu.VMEM((2, n_heads, klen, d_k), mxu_dtype),    # cached K heads (fwd/bwd)
                pltpu.VMEM((2, n_heads, klen, d_k), mxu_dtype),    # cached V heads (fwd/bwd)
                pltpu.VMEM((2, n_heads, q_tile, d_k), mxu_dtype),  # Q heads for this tile
            ],
        ),
        # NOTE: the K/V scratch init on q-tile 0 requires the q axis to stay
        # sequential on one core -> it must remain "arbitrary".
        compiler_params=pltpu.CompilerParams(
            dimension_semantics=("parallel", "arbitrary"),
            vmem_limit_bytes=vmem_limit,
        ),
    )(k_in, v_in, q_in, tgt_m, id_m, wk, bk, wv, bv, wq, bq, wo, bo)


def reference(key_fwd, value_fwd, query_fwd, key_bwd, value_bwd, query_bwd,
              tgt_mask, identity_mask, params, n_heads, future_weight=0.1):
    B, klen, kdim = key_fwd.shape
    qlen = query_fwd.shape[1]
    adim = params["w_key"].shape[0]
    d_k = adim // n_heads
    scale = math.sqrt(d_k)

    def lin(x, W, b):
        return jnp.einsum("bld,ad->bla", x, W) + b.reshape(-1)

    def heads(x):
        return x.reshape(B, -1, n_heads, d_k).transpose(0, 2, 1, 3)

    Kf = heads(lin(key_fwd, params["w_key"], params["b_key"]))
    Vf = heads(lin(value_fwd, params["w_value"], params["b_value"]))
    Qf = heads(lin(query_fwd, params["w_query"], params["b_query"]))
    Kb = heads(lin(key_bwd, params["w_key"], params["b_key"]))
    Vb = heads(lin(value_bwd, params["w_value"], params["b_value"]))
    Qb = heads(lin(query_bwd, params["w_query"], params["b_query"]))

    tgt = tgt_mask[:, None]
    idm = identity_mask[:, None]

    def scores(Q, K):
        return jnp.einsum("bhqd,bhkd->bhqk", Q, K) / scale

    def msoftmax(e, m):
        e = jnp.where(m == 0, NEG_INF, e)
        return jax.nn.softmax(e, axis=-1)

    aw_fh = msoftmax(scores(Qf, Kf), tgt)
    aw_ff = msoftmax(scores(Qf, Kb), idm)
    aw_bh = msoftmax(scores(Qb, Kb), tgt)
    aw_bf = msoftmax(scores(Qb, Kf), idm)

    def ctx(aw, V):
        c = jnp.einsum("bhqk,bhkd->bhqd", aw, V)
        c = c.transpose(0, 2, 1, 3).reshape(B, qlen, adim)
        return jnp.einsum("bla,ka->blk", c, params["w_out"]) + params["b_out"].reshape(-1)

    cv_fh = ctx(aw_fh, Vf)
    cv_ff = ctx(aw_ff, Vb)
    cv_bh = ctx(aw_bh, Vb)
    cv_bf = ctx(aw_bf, Vf)

    cv_fwd = cv_fh + future_weight * jnp.tanh(cv_ff)
    cv_bwd = cv_bh + future_weight * jnp.tanh(cv_bf)
    return cv_fwd, cv_bwd, aw_fh, aw_ff, aw_bh, aw_bf


if __name__ == "__main__":
    B, klen, qlen = 2, 64, 64
    kdim = qdim = 32
    adim = 32
    n_heads = 4
    future_weight = 0.1

    root = jax.random.PRNGKey(0)
    ks = jax.random.split(root, 10)

    key_fwd = jax.random.normal(ks[0], (B, klen, kdim), jnp.float32)
    value_fwd = jax.random.normal(ks[1], (B, klen, kdim), jnp.float32)
    query_fwd = jax.random.normal(ks[2], (B, qlen, qdim), jnp.float32)
    key_bwd = jax.random.normal(ks[3], (B, klen, kdim), jnp.float32)
    value_bwd = jax.random.normal(ks[4], (B, klen, kdim), jnp.float32)
    query_bwd = jax.random.normal(ks[5], (B, qlen, qdim), jnp.float32)

    # causal target mask and "not-self" identity mask (0 == masked)
    tgt_mask = jnp.broadcast_to(
        jnp.tril(jnp.ones((qlen, klen), jnp.int32)), (B, qlen, klen)).astype(jnp.int32)
    identity_mask = jnp.broadcast_to(
        (1 - jnp.eye(qlen, klen, dtype=jnp.int32)), (B, qlen, klen)).astype(jnp.int32)

    def xavier(k, shape):
        limit = 1.0 / math.sqrt(shape[1])
        return jax.random.uniform(k, shape, jnp.float32, -limit, limit)

    params = {
        "w_key": xavier(ks[6], (adim, kdim)),
        "b_key": 0.01 * jnp.ones((1, adim), jnp.float32),
        "w_value": xavier(ks[7], (adim, kdim)),
        "b_value": 0.02 * jnp.ones((1, adim), jnp.float32),
        "w_query": xavier(ks[8], (adim, qdim)),
        "b_query": 0.03 * jnp.ones((1, adim), jnp.float32),
        "w_out": xavier(ks[9], (kdim, adim)),
        "b_out": 0.04 * jnp.ones((1, kdim), jnp.float32),
    }

    args = (key_fwd, value_fwd, query_fwd, key_bwd, value_bwd, query_bwd,
            tgt_mask, identity_mask, params, n_heads, future_weight)

    refs = jax.block_until_ready(reference(*args))
    names = ["cv_fwd", "cv_bwd", "aw_fwd_h", "aw_fwd_f", "aw_bwd_h", "aw_bwd_f"]

    def check(outs, which, tol, tag):
        for name, o, r in zip(which, outs, refs):
            assert o.shape == r.shape, (name, o.shape, r.shape)
            err = float(jnp.max(jnp.abs(o.astype(jnp.float32) - r)))
            assert err < tol, f"{name} ({tag}) mismatch: max abs err {err}"

    # 1) f32 MXU path with f32 attention weights (tight tolerance).
    outs = jax.block_until_ready(
        sync_bidir_mha(*args, q_tile=32, mxu_dtype=jnp.float32, aw_dtype=jnp.float32))
    check(outs, names, 1e-2, "f32")

    # 2) Default perf path: bf16 MXU inputs, bf16 attention weights (loose tolerance).
    outs_bf = jax.block_until_ready(sync_bidir_mha(*args, q_tile=32))
    check(outs_bf, names, 2e-1, "bf16")

    # 3) cv-only variant (attention-weight writeback elided).
    cv_only = jax.block_until_ready(
        sync_bidir_mha(*args, q_tile=32, mxu_dtype=jnp.float32, aw_dtype=jnp.float32,
                       return_aw=False))
    check(cv_only, names[:2], 1e-2, "cv-only")

    print("KERNEL_OK")
</pallas_src>

<mosaic_0001>
module attributes {stable_mosaic.version = 11 : i64} {
  func.func @_attn_kernel(%arg0: i32, %arg1: i32, %arg2: memref<1x2x64x32xf32, #tpu.memory_space<vmem>>, %arg3: memref<1x2x64x32xf32, #tpu.memory_space<vmem>>, %arg4: memref<1x2x32x32xf32, #tpu.memory_space<vmem>>, %arg5: memref<1x32x64xi8, #tpu.memory_space<vmem>>, %arg6: memref<1x32x64xi8, #tpu.memory_space<vmem>>, %arg7: memref<4x8x32xf32, #tpu.memory_space<vmem>>, %arg8: memref<4x1x8xf32, #tpu.memory_space<vmem>>, %arg9: memref<4x8x32xf32, #tpu.memory_space<vmem>>, %arg10: memref<4x1x8xf32, #tpu.memory_space<vmem>>, %arg11: memref<4x8x32xf32, #tpu.memory_space<vmem>>, %arg12: memref<4x1x8xf32, #tpu.memory_space<vmem>>, %arg13: memref<4x8x32xf32, #tpu.memory_space<vmem>>, %arg14: memref<1x32xf32, #tpu.memory_space<vmem>>, %arg15: memref<1x32x32xf32, #tpu.memory_space<vmem>>, %arg16: memref<1x32x32xf32, #tpu.memory_space<vmem>>, %arg17: memref<1x4x32x64xf32, #tpu.memory_space<vmem>>, %arg18: memref<1x4x32x64xf32, #tpu.memory_space<vmem>>, %arg19: memref<1x4x32x64xf32, #tpu.memory_space<vmem>>, %arg20: memref<1x4x32x64xf32, #tpu.memory_space<vmem>>, %arg21: memref<2x4x64x8xf32, #tpu.memory_space<vmem>>, %arg22: memref<2x4x64x8xf32, #tpu.memory_space<vmem>>, %arg23: memref<2x4x32x8xf32, #tpu.memory_space<vmem>>) attributes {dimension_semantics = [#tpu.dimension_semantics<parallel>, #tpu.dimension_semantics<arbitrary>], iteration_bounds = array<i64: 2, 2>, scalar_prefetch = 0 : i64, scratch_operands = 3 : i64, tpu.core_type = #tpu.core_type<tc>, window_params = [{transform_indices = @transform_0, window_bounds = array<i64: 1, 2, 64, 32>}, {transform_indices = @transform_1, window_bounds = array<i64: 1, 2, 64, 32>}, {transform_indices = @transform_2, window_bounds = array<i64: 1, 2, 32, 32>}, {transform_indices = @transform_3, window_bounds = array<i64: 1, 32, 64>}, {transform_indices = @transform_4, window_bounds = array<i64: 1, 32, 64>}, {pipeline_mode = #tpu.pipeline_mode<synchronous>, transform_indices = @transform_5, window_bounds = array<i64: 4, 8, 32>}, {pipeline_mode = #tpu.pipeline_mode<synchronous>, transform_indices = @transform_6, window_bounds = array<i64: 4, 1, 8>}, {pipeline_mode = #tpu.pipeline_mode<synchronous>, transform_indices = @transform_7, window_bounds = array<i64: 4, 8, 32>}, {pipeline_mode = #tpu.pipeline_mode<synchronous>, transform_indices = @transform_8, window_bounds = array<i64: 4, 1, 8>}, {pipeline_mode = #tpu.pipeline_mode<synchronous>, transform_indices = @transform_9, window_bounds = array<i64: 4, 8, 32>}, {pipeline_mode = #tpu.pipeline_mode<synchronous>, transform_indices = @transform_10, window_bounds = array<i64: 4, 1, 8>}, {pipeline_mode = #tpu.pipeline_mode<synchronous>, transform_indices = @transform_11, window_bounds = array<i64: 4, 8, 32>}, {pipeline_mode = #tpu.pipeline_mode<synchronous>, transform_indices = @transform_12, window_bounds = array<i64: 1, 32>}, {transform_indices = @transform_13, window_bounds = array<i64: 1, 32, 32>}, {transform_indices = @transform_14, window_bounds = array<i64: 1, 32, 32>}, {transform_indices = @transform_15, window_bounds = array<i64: 1, 4, 32, 64>}, {transform_indices = @transform_16, window_bounds = array<i64: 1, 4, 32, 64>}, {transform_indices = @transform_17, window_bounds = array<i64: 1, 4, 32, 64>}, {transform_indices = @transform_18, window_bounds = array<i64: 1, 4, 32, 64>}]} {
    %c0_i32 = arith.constant 0 : i32
    %0 = arith.cmpi eq, %arg1, %c0_i32 : i32
    %1 = arith.extui %0 : i1 to i32
    %c0_i32_0 = arith.constant 0 : i32
    %2 = arith.cmpi ne, %1, %c0_i32_0 : i32
    scf.if %2 {
      %c0_173 = arith.constant 0 : index
      %c0_174 = arith.constant 0 : index
      %c0_175 = arith.constant 0 : index
      %c0_176 = arith.constant 0 : index
      %224 = vector.load %arg2[%c0_173, %c0_174, %c0_175, %c0_176] : memref<1x2x64x32xf32, #tpu.memory_space<vmem>>, vector<1x2x64x32xf32>
      %225 = vector.shape_cast %224 : vector<1x2x64x32xf32> to vector<2x64x32xf32>
      %226 = vector.shape_cast %225 : vector<2x64x32xf32> to vector<128x32xf32>
      %c0_177 = arith.constant 0 : index
      %c0_178 = arith.constant 0 : index
      %c0_179 = arith.constant 0 : index
      %c0_180 = arith.constant 0 : index
      %227 = vector.load %arg3[%c0_177, %c0_178, %c0_179, %c0_180] : memref<1x2x64x32xf32, #tpu.memory_space<vmem>>, vector<1x2x64x32xf32>
      %228 = vector.shape_cast %227 : vector<1x2x64x32xf32> to vector<2x64x32xf32>
      %229 = vector.shape_cast %228 : vector<2x64x32xf32> to vector<128x32xf32>
      %c0_181 = arith.constant 0 : index
      %c0_182 = arith.constant 0 : index
      %c0_183 = arith.constant 0 : index
      %230 = vector.load %arg7[%c0_181, %c0_182, %c0_183] : memref<4x8x32xf32, #tpu.memory_space<vmem>>, vector<1x8x32xf32>
      %231 = vector.shape_cast %230 : vector<1x8x32xf32> to vector<8x32xf32>
      %cst_184 = arith.constant dense<0.000000e+00> : vector<128x8xf32>
      %232 = tpu.matmul %226, %231, %cst_184 {dimension_numbers = #tpu.dot_dimension_numbers<[1], [1], [0], [0], [0, 0, 1, 0], [], []>} : vector<128x32xf32>, vector<8x32xf32>, vector<128x8xf32> -> vector<128x8xf32>
      %c0_185 = arith.constant 0 : index
      %c0_186 = arith.constant 0 : index
      %c0_187 = arith.constant 0 : index
      %233 = vector.load %arg8[%c0_185, %c0_186, %c0_187] : memref<4x1x8xf32, #tpu.memory_space<vmem>>, vector<1x1x8xf32>
      %234 = vector.shape_cast %233 : vector<1x1x8xf32> to vector<1x8xf32>
      %235 = vector.broadcast %234 : vector<1x8xf32> to vector<128x8xf32>
      %236 = arith.addf %232, %235 : vector<128x8xf32>
      %237 = vector.shape_cast %236 : vector<128x8xf32> to vector<2x64x8xf32>
      %c0_188 = arith.constant 0 : index
      %c0_189 = arith.constant 0 : index
      %c0_190 = arith.constant 0 : index
      %238 = vector.load %arg9[%c0_188, %c0_189, %c0_190] : memref<4x8x32xf32, #tpu.memory_space<vmem>>, vector<1x8x32xf32>
      %239 = vector.shape_cast %238 : vector<1x8x32xf32> to vector<8x32xf32>
      %cst_191 = arith.constant dense<0.000000e+00> : vector<128x8xf32>
      %240 = tpu.matmul %229, %239, %cst_191 {dimension_numbers = #tpu.dot_dimension_numbers<[1], [1], [0], [0], [0, 0, 1, 0], [], []>} : vector<128x32xf32>, vector<8x32xf32>, vector<128x8xf32> -> vector<128x8xf32>
      %c0_192 = arith.constant 0 : index
      %c0_193 = arith.constant 0 : index
      %c0_194 = arith.constant 0 : index
      %241 = vector.load %arg10[%c0_192, %c0_193, %c0_194] : memref<4x1x8xf32, #tpu.memory_space<vmem>>, vector<1x1x8xf32>
      %242 = vector.shape_cast %241 : vector<1x1x8xf32> to vector<1x8xf32>
      %243 = vector.broadcast %242 : vector<1x8xf32> to vector<128x8xf32>
      %244 = arith.addf %240, %243 : vector<128x8xf32>
      %245 = vector.shape_cast %244 : vector<128x8xf32> to vector<2x64x8xf32>
      %246 = vector.extract_strided_slice %237 {offsets = [0, 0, 0], sizes = [1, 64, 8], strides = [1, 1, 1]} : vector<2x64x8xf32> to vector<1x64x8xf32>
      %247 = vector.shape_cast %246 : vector<1x64x8xf32> to vector<64x8xf32>
      %c0_195 = arith.constant 0 : index
      %c0_196 = arith.constant 0 : index
      %c0_197 = arith.constant 0 : index
      %c0_198 = arith.constant 0 : index
      %248 = vector.load %arg21[%c0_195, %c0_196, %c0_197, %c0_198] : memref<2x4x64x8xf32, #tpu.memory_space<vmem>>, vector<1x1x64x8xf32>
      %249 = vector.shape_cast %248 : vector<1x1x64x8xf32> to vector<64x8xf32>
      %250 = vector.shape_cast %247 : vector<64x8xf32> to vector<1x1x64x8xf32>
      tpu.vector_store %arg21[%c0_195, %c0_196, %c0_197, %c0_198], %250 {strides = array<i32>} : memref<2x4x64x8xf32, #tpu.memory_space<vmem>>, vector<1x1x64x8xf32>,
      %251 = vector.extract_strided_slice %237 {offsets = [1, 0, 0], sizes = [1, 64, 8], strides = [1, 1, 1]} : vector<2x64x8xf32> to vector<1x64x8xf32>
      %252 = vector.shape_cast %251 : vector<1x64x8xf32> to vector<64x8xf32>
      %c1_199 = arith.constant 1 : index
      %c0_200 = arith.constant 0 : index
      %c0_201 = arith.constant 0 : index
      %c0_202 = arith.constant 0 : index
      %253 = vector.load %arg21[%c1_199, %c0_200, %c0_201, %c0_202] : memref<2x4x64x8xf32, #tpu.memory_space<vmem>>, vector<1x1x64x8xf32>
      %254 = vector.shape_cast %253 : vector<1x1x64x8xf32> to vector<64x8xf32>
      %255 = vector.shape_cast %252 : vector<64x8xf32> to vector<1x1x64x8xf32>
      tpu.vector_store %arg21[%c1_199, %c0_200, %c0_201, %c0_202], %255 {strides = array<i32>} : memref<2x4x64x8xf32, #tpu.memory_space<vmem>>, vector<1x1x64x8xf32>,
      %256 = vector.extract_strided_slice %245 {offsets = [0, 0, 0], sizes = [1, 64, 8], strides = [1, 1, 1]} : vector<2x64x8xf32> to vector<1x64x8xf32>
      %257 = vector.shape_cast %256 : vector<1x64x8xf32> to vector<64x8xf32>
      %c0_203 = arith.constant 0 : index
      %c0_204 = arith.constant 0 : index
      %c0_205 = arith.constant 0 : index
      %c0_206 = arith.constant 0 : index
      %258 = vector.load %arg22[%c0_203, %c0_204, %c0_205, %c0_206] : memref<2x4x64x8xf32, #tpu.memory_space<vmem>>, vector<1x1x64x8xf32>
      %259 = vector.shape_cast %258 : vector<1x1x64x8xf32> to vector<64x8xf32>
      %260 = vector.shape_cast %257 : vector<64x8xf32> to vector<1x1x64x8xf32>
      tpu.vector_store %arg22[%c0_203, %c0_204, %c0_205, %c0_206], %260 {strides = array<i32>} : memref<2x4x64x8xf32, #tpu.memory_space<vmem>>, vector<1x1x64x8xf32>,
      %261 = vector.extract_strided_slice %245 {offsets = [1, 0, 0], sizes = [1, 64, 8], strides = [1, 1, 1]} : vector<2x64x8xf32> to vector<1x64x8xf32>
      %262 = vector.shape_cast %261 : vector<1x64x8xf32> to vector<64x8xf32>
      %c1_207 = arith.constant 1 : index
      %c0_208 = arith.constant 0 : index
      %c0_209 = arith.constant 0 : index
      %c0_210 = arith.constant 0 : index
      %263 = vector.load %arg22[%c1_207, %c0_208, %c0_209, %c0_210] : memref<2x4x64x8xf32, #tpu.memory_space<vmem>>, vector<1x1x64x8xf32>
      %264 = vector.shape_cast %263 : vector<1x1x64x8xf32> to vector<64x8xf32>
      %265 = vector.shape_cast %262 : vector<64x8xf32> to vector<1x1x64x8xf32>
      tpu.vector_store %arg22[%c1_207, %c0_208, %c0_209, %c0_210], %265 {strides = array<i32>} : memref<2x4x64x8xf32, #tpu.memory_space<vmem>>, vector<1x1x64x8xf32>,
      %c1_211 = arith.constant 1 : index
      %c0_212 = arith.constant 0 : index
      %c0_213 = arith.constant 0 : index
      %266 = vector.load %arg7[%c1_211, %c0_212, %c0_213] : memref<4x8x32xf32, #tpu.memory_space<vmem>>, vector<1x8x32xf32>
      %267 = vector.shape_cast %266 : vector<1x8x32xf32> to vector<8x32xf32>
      %cst_214 = arith.constant dense<0.000000e+00> : vector<128x8xf32>
      %268 = tpu.matmul %226, %267, %cst_214 {dimension_numbers = #tpu.dot_dimension_numbers<[1], [1], [0], [0], [0, 0, 1, 0], [], []>} : vector<128x32xf32>, vector<8x32xf32>, vector<128x8xf32> -> vector<128x8xf32>
      %c1_215 = arith.constant 1 : index
      %c0_216 = arith.constant 0 : index
      %c0_217 = arith.constant 0 : index
      %269 = vector.load %arg8[%c1_215, %c0_216, %c0_217] : memref<4x1x8xf32, #tpu.memory_space<vmem>>, vector<1x1x8xf32>
      %270 = vector.shape_cast %269 : vector<1x1x8xf32> to vector<1x8xf32>
      %271 = vector.broadcast %270 : vector<1x8xf32> to vector<128x8xf32>
      %272 = arith.addf %268, %271 : vector<128x8xf32>
      %273 = vector.shape_cast %272 : vector<128x8xf32> to vector<2x64x8xf32>
      %c1_218 = arith.constant 1 : index
      %c0_219 = arith.constant 0 : index
      %c0_220 = arith.constant 0 : index
      %274 = vector.load %arg9[%c1_218, %c0_219, %c0_220] : memref<4x8x32xf32, #tpu.memory_space<vmem>>, vector<1x8x32xf32>
      %275 = vector.shape_cast %274 : vector<1x8x32xf32> to vector<8x32xf32>
      %cst_221 = arith.constant dense<0.000000e+00> : vector<128x8xf32>
      %276 = tpu.matmul %229, %275, %cst_221 {dimension_numbers = #tpu.dot_dimension_numbers<[1], [1], [0], [0], [0, 0, 1, 0], [], []>} : vector<128x32xf32>, vector<8x32xf32>, vector<128x8xf32> -> vector<128x8xf32>
      %c1_222 = arith.constant 1 : index
      %c0_223 = arith.constant 0 : index
      %c0_224 = arith.constant 0 : index
      %277 = vector.load %arg10[%c1_222, %c0_223, %c0_224] : memref<4x1x8xf32, #tpu.memory_space<vmem>>, vector<1x1x8xf32>
      %278 = vector.shape_cast %277 : vector<1x1x8xf32> to vector<1x8xf32>
      %279 = vector.broadcast %278 : vector<1x8xf32> to vector<128x8xf32>
      %280 = arith.addf %276, %279 : vector<128x8xf32>
      %281 = vector.shape_cast %280 : vector<128x8xf32> to vector<2x64x8xf32>
      %282 = vector.extract_strided_slice %273 {offsets = [0, 0, 0], sizes = [1, 64, 8], strides = [1, 1, 1]} : vector<2x64x8xf32> to vector<1x64x8xf32>
      %283 = vector.shape_cast %282 : vector<1x64x8xf32> to vector<64x8xf32>
      %c0_225 = arith.constant 0 : index
      %c1_226 = arith.constant 1 : index
      %c0_227 = arith.constant 0 : index
      %c0_228 = arith.constant 0 : index
      %284 = vector.load %arg21[%c0_225, %c1_226, %c0_227, %c0_228] : memref<2x4x64x8xf32, #tpu.memory_space<vmem>>, vector<1x1x64x8xf32>
      %285 = vector.shape_cast %284 : vector<1x1x64x8xf32> to vector<64x8xf32>
      %286 = vector.shape_cast %283 : vector<64x8xf32> to vector<1x1x64x8xf32>
      tpu.vector_store %arg21[%c0_225, %c1_226, %c0_227, %c0_228], %286 {strides = array<i32>} : memref<2x4x64x8xf32, #tpu.memory_space<vmem>>, vector<1x1x64x8xf32>,
      %287 = vector.extract_strided_slice %273 {offsets = [1, 0, 0], sizes = [1, 64, 8], strides = [1, 1, 1]} : vector<2x64x8xf32> to vector<1x64x8xf32>
      %288 = vector.shape_cast %287 : vector<1x64x8xf32> to vector<64x8xf32>
      %c1_229 = arith.constant 1 : index
      %c1_230 = arith.constant 1 : index
      %c0_231 = arith.constant 0 : index
      %c0_232 = arith.constant 0 : index
      %289 = vector.load %arg21[%c1_229, %c1_230, %c0_231, %c0_232] : memref<2x4x64x8xf32, #tpu.memory_space<vmem>>, vector<1x1x64x8xf32>
      %290 = vector.shape_cast %289 : vector<1x1x64x8xf32> to vector<64x8xf32>
      %291 = vector.shape_cast %288 : vector<64x8xf32> to vector<1x1x64x8xf32>
      tpu.vector_store %arg21[%c1_229, %c1_230, %c0_231, %c0_232], %291 {strides = array<i32>} : memref<2x4x64x8xf32, #tpu.memory_space<vmem>>, vector<1x1x64x8xf32>,
      %292 = vector.extract_strided_slice %281 {offsets = [0, 0, 0], sizes = [1, 64, 8], strides = [1, 1, 1]} : vector<2x64x8xf32> to vector<1x64x8xf32>
      %293 = vector.shape_cast %292 : vector<1x64x8xf32> to vector<64x8xf32>
      %c0_233 = arith.constant 0 : index
      %c1_234 = arith.constant 1 : index
      %c0_235 = arith.constant 0 : index
      %c0_236 = arith.constant 0 : index
      %294 = vector.load %arg22[%c0_233, %c1_234, %c0_235, %c0_236] : memref<2x4x64x8xf32, #tpu.memory_space<vmem>>, vector<1x1x64x8xf32>
      %295 = vector.shape_cast %294 : vector<1x1x64x8xf32> to vector<64x8xf32>
      %296 = vector.shape_cast %293 : vector<64x8xf32> to vector<1x1x64x8xf32>
      tpu.vector_store %arg22[%c0_233, %c1_234, %c0_235, %c0_236], %296 {strides = array<i32>} : memref<2x4x64x8xf32, #tpu.memory_space<vmem>>, vector<1x1x64x8xf32>,
      %297 = vector.extract_strided_slice %281 {offsets = [1, 0, 0], sizes = [1, 64, 8], strides = [1, 1, 1]} : vector<2x64x8xf32> to vector<1x64x8xf32>
      %298 = vector.shape_cast %297 : vector<1x64x8xf32> to vector<64x8xf32>
      %c1_237 = arith.constant 1 : index
      %c1_238 = arith.constant 1 : index
      %c0_239 = arith.constant 0 : index
      %c0_240 = arith.constant 0 : index
      %299 = vector.load %arg22[%c1_237, %c1_238, %c0_239, %c0_240] : memref<2x4x64x8xf32, #tpu.memory_space<vmem>>, vector<1x1x64x8xf32>
      %300 = vector.shape_cast %299 : vector<1x1x64x8xf32> to vector<64x8xf32>
      %301 = vector.shape_cast %298 : vector<64x8xf32> to vector<1x1x64x8xf32>
      tpu.vector_store %arg22[%c1_237, %c1_238, %c0_239, %c0_240], %301 {strides = array<i32>} : memref<2x4x64x8xf32, #tpu.memory_space<vmem>>, vector<1x1x64x8xf32>,
      %c2_241 = arith.constant 2 : index
      %c0_242 = arith.constant 0 : index
      %c0_243 = arith.constant 0 : index
      %302 = vector.load %arg7[%c2_241, %c0_242, %c0_243] : memref<4x8x32xf32, #tpu.memory_space<vmem>>, vector<1x8x32xf32>
      %303 = vector.shape_cast %302 : vector<1x8x32xf32> to vector<8x32xf32>
      %cst_244 = arith.constant dense<0.000000e+00> : vector<128x8xf32>
      %304 = tpu.matmul %226, %303, %cst_244 {dimension_numbers = #tpu.dot_dimension_numbers<[1], [1], [0], [0], [0, 0, 1, 0], [], []>} : vector<128x32xf32>, vector<8x32xf32>, vector<128x8xf32> -> vector<128x8xf32>
      %c2_245 = arith.constant 2 : index
      %c0_246 = arith.constant 0 : index
      %c0_247 = arith.constant 0 : index
      %305 = vector.load %arg8[%c2_245, %c0_246, %c0_247] : memref<4x1x8xf32, #tpu.memory_space<vmem>>, vector<1x1x8xf32>
      %306 = vector.shape_cast %305 : vector<1x1x8xf32> to vector<1x8xf32>
      %307 = vector.broadcast %306 : vector<1x8xf32> to vector<128x8xf32>
      %308 = arith.addf %304, %307 : vector<128x8xf32>
      %309 = vector.shape_cast %308 : vector<128x8xf32> to vector<2x64x8xf32>
      %c2_248 = arith.constant 2 : index
      %c0_249 = arith.constant 0 : index
      %c0_250 = arith.constant 0 : index
      %310 = vector.load %arg9[%c2_248, %c0_249, %c0_250] : memref<4x8x32xf32, #tpu.memory_space<vmem>>, vector<1x8x32xf32>
      %311 = vector.shape_cast %310 : vector<1x8x32xf32> to vector<8x32xf32>
      %cst_251 = arith.constant dense<0.000000e+00> : vector<128x8xf32>
      %312 = tpu.matmul %229, %311, %cst_251 {dimension_numbers = #tpu.dot_dimension_numbers<[1], [1], [0], [0], [0, 0, 1, 0], [], []>} : vector<128x32xf32>, vector<8x32xf32>, vector<128x8xf32> -> vector<128x8xf32>
      %c2_252 = arith.constant 2 : index
      %c0_253 = arith.constant 0 : index
      %c0_254 = arith.constant 0 : index
      %313 = vector.load %arg10[%c2_252, %c0_253, %c0_254] : memref<4x1x8xf32, #tpu.memory_space<vmem>>, vector<1x1x8xf32>
      %314 = vector.shape_cast %313 : vector<1x1x8xf32> to vector<1x8xf32>
      %315 = vector.broadcast %314 : vector<1x8xf32> to vector<128x8xf32>
      %316 = arith.addf %312, %315 : vector<128x8xf32>
      %317 = vector.shape_cast %316 : vector<128x8xf32> to vector<2x64x8xf32>
      %318 = vector.extract_strided_slice %309 {offsets = [0, 0, 0], sizes = [1, 64, 8], strides = [1, 1, 1]} : vector<2x64x8xf32> to vector<1x64x8xf32>
      %319 = vector.shape_cast %318 : vector<1x64x8xf32> to vector<64x8xf32>
      %c0_255 = arith.constant 0 : index
      %c2_256 = arith.constant 2 : index
      %c0_257 = arith.constant 0 : index
      %c0_258 = arith.constant 0 : index
      %320 = vector.load %arg21[%c0_255, %c2_256, %c0_257, %c0_258] : memref<2x4x64x8xf32, #tpu.memory_space<vmem>>, vector<1x1x64x8xf32>
      %321 = vector.shape_cast %320 : vector<1x1x64x8xf32> to vector<64x8xf32>
      %322 = vector.shape_cast %319 : vector<64x8xf32> to vector<1x1x64x8xf32>
      tpu.vector_store %arg21[%c0_255, %c2_256, %c0_257, %c0_258], %322 {strides = array<i32>} : memref<2x4x64x8xf32, #tpu.memory_space<vmem>>, vector<1x1x64x8xf32>,
      %323 = vector.extract_strided_slice %309 {offsets = [1, 0, 0], sizes = [1, 64, 8], strides = [1, 1, 1]} : vector<2x64x8xf32> to vector<1x64x8xf32>
      %324 = vector.shape_cast %323 : vector<1x64x8xf32> to vector<64x8xf32>
      %c1_259 = arith.constant 1 : index
      %c2_260 = arith.constant 2 : index
      %c0_261 = arith.constant 0 : index
      %c0_262 = arith.constant 0 : index
      %325 = vector.load %arg21[%c1_259, %c2_260, %c0_261, %c0_262] : memref<2x4x64x8xf32, #tpu.memory_space<vmem>>, vector<1x1x64x8xf32>
      %326 = vector.shape_cast %325 : vector<1x1x64x8xf32> to vector<64x8xf32>
      %327 = vector.shape_cast %324 : vector<64x8xf32> to vector<1x1x64x8xf32>
      tpu.vector_store %arg21[%c1_259, %c2_260, %c0_261, %c0_262], %327 {strides = array<i32>} : memref<2x4x64x8xf32, #tpu.memory_space<vmem>>, vector<1x1x64x8xf32>,
      %328 = vector.extract_strided_slice %317 {offsets = [0, 0, 0], sizes = [1, 64, 8], strides = [1, 1, 1]} : vector<2x64x8xf32> to vector<1x64x8xf32>
      %329 = vector.shape_cast %328 : vector<1x64x8xf32> to vector<64x8xf32>
      %c0_263 = arith.constant 0 : index
      %c2_264 = arith.constant 2 : index
      %c0_265 = arith.constant 0 : index
      %c0_266 = arith.constant 0 : index
      %330 = vector.load %arg22[%c0_263, %c2_264, %c0_265, %c0_266] : memref<2x4x64x8xf32, #tpu.memory_space<vmem>>, vector<1x1x64x8xf32>
      %331 = vector.shape_cast %330 : vector<1x1x64x8xf32> to vector<64x8xf32>
      %332 = vector.shape_cast %329 : vector<64x8xf32> to vector<1x1x64x8xf32>
      tpu.vector_store %arg22[%c0_263, %c2_264, %c0_265, %c0_266], %332 {strides = array<i32>} : memref<2x4x64x8xf32, #tpu.memory_space<vmem>>, vector<1x1x64x8xf32>,
      %333 = vector.extract_strided_slice %317 {offsets = [1, 0, 0], sizes = [1, 64, 8], strides = [1, 1, 1]} : vector<2x64x8xf32> to vector<1x64x8xf32>
      %334 = vector.shape_cast %333 : vector<1x64x8xf32> to vector<64x8xf32>
      %c1_267 = arith.constant 1 : index
      %c2_268 = arith.constant 2 : index
      %c0_269 = arith.constant 0 : index
      %c0_270 = arith.constant 0 : index
      %335 = vector.load %arg22[%c1_267, %c2_268, %c0_269, %c0_270] : memref<2x4x64x8xf32, #tpu.memory_space<vmem>>, vector<1x1x64x8xf32>
      %336 = vector.shape_cast %335 : vector<1x1x64x8xf32> to vector<64x8xf32>
      %337 = vector.shape_cast %334 : vector<64x8xf32> to vector<1x1x64x8xf32>
      tpu.vector_store %arg22[%c1_267, %c2_268, %c0_269, %c0_270], %337 {strides = array<i32>} : memref<2x4x64x8xf32, #tpu.memory_space<vmem>>, vector<1x1x64x8xf32>,
      %c3_271 = arith.constant 3 : index
      %c0_272 = arith.constant 0 : index
      %c0_273 = arith.constant 0 : index
      %338 = vector.load %arg7[%c3_271, %c0_272, %c0_273] : memref<4x8x32xf32, #tpu.memory_space<vmem>>, vector<1x8x32xf32>
      %339 = vector.shape_cast %338 : vector<1x8x32xf32> to vector<8x32xf32>
      %cst_274 = arith.constant dense<0.000000e+00> : vector<128x8xf32>
      %340 = tpu.matmul %226, %339, %cst_274 {dimension_numbers = #tpu.dot_dimension_numbers<[1], [1], [0], [0], [0, 0, 1, 0], [], []>} : vector<128x32xf32>, vector<8x32xf32>, vector<128x8xf32> -> vector<128x8xf32>
      %c3_275 = arith.constant 3 : index
      %c0_276 = arith.constant 0 : index
      %c0_277 = arith.constant 0 : index
      %341 = vector.load %arg8[%c3_275, %c0_276, %c0_277] : memref<4x1x8xf32, #tpu.memory_space<vmem>>, vector<1x1x8xf32>
      %342 = vector.shape_cast %341 : vector<1x1x8xf32> to vector<1x8xf32>
      %343 = vector.broadcast %342 : vector<1x8xf32> to vector<128x8xf32>
      %344 = arith.addf %340, %343 : vector<128x8xf32>
      %345 = vector.shape_cast %344 : vector<128x8xf32> to vector<2x64x8xf32>
      %c3_278 = arith.constant 3 : index
      %c0_279 = arith.constant 0 : index
      %c0_280 = arith.constant 0 : index
      %346 = vector.load %arg9[%c3_278, %c0_279, %c0_280] : memref<4x8x32xf32, #tpu.memory_space<vmem>>, vector<1x8x32xf32>
      %347 = vector.shape_cast %346 : vector<1x8x32xf32> to vector<8x32xf32>
      %cst_281 = arith.constant dense<0.000000e+00> : vector<128x8xf32>
      %348 = tpu.matmul %229, %347, %cst_281 {dimension_numbers = #tpu.dot_dimension_numbers<[1], [1], [0], [0], [0, 0, 1, 0], [], []>} : vector<128x32xf32>, vector<8x32xf32>, vector<128x8xf32> -> vector<128x8xf32>
      %c3_282 = arith.constant 3 : index
      %c0_283 = arith.constant 0 : index
      %c0_284 = arith.constant 0 : index
      %349 = vector.load %arg10[%c3_282, %c0_283, %c0_284] : memref<4x1x8xf32, #tpu.memory_space<vmem>>, vector<1x1x8xf32>
      %350 = vector.shape_cast %349 : vector<1x1x8xf32> to vector<1x8xf32>
      %351 = vector.broadcast %350 : vector<1x8xf32> to vector<128x8xf32>
      %352 = arith.addf %348, %351 : vector<128x8xf32>
      %353 = vector.shape_cast %352 : vector<128x8xf32> to vector<2x64x8xf32>
      %354 = vector.extract_strided_slice %345 {offsets = [0, 0, 0], sizes = [1, 64, 8], strides = [1, 1, 1]} : vector<2x64x8xf32> to vector<1x64x8xf32>
      %355 = vector.shape_cast %354 : vector<1x64x8xf32> to vector<64x8xf32>
      %c0_285 = arith.constant 0 : index
      %c3_286 = arith.constant 3 : index
      %c0_287 = arith.constant 0 : index
      %c0_288 = arith.constant 0 : index
      %356 = vector.load %arg21[%c0_285, %c3_286, %c0_287, %c0_288] : memref<2x4x64x8xf32, #tpu.memory_space<vmem>>, vector<1x1x64x8xf32>
      %357 = vector.shape_cast %356 : vector<1x1x64x8xf32> to vector<64x8xf32>
      %358 = vector.shape_cast %355 : vector<64x8xf32> to vector<1x1x64x8xf32>
      tpu.vector_store %arg21[%c0_285, %c3_286, %c0_287, %c0_288], %358 {strides = array<i32>} : memref<2x4x64x8xf32, #tpu.memory_space<vmem>>, vector<1x1x64x8xf32>,
      %359 = vector.extract_strided_slice %345 {offsets = [1, 0, 0], sizes = [1, 64, 8], strides = [1, 1, 1]} : vector<2x64x8xf32> to vector<1x64x8xf32>
      %360 = vector.shape_cast %359 : vector<1x64x8xf32> to vector<64x8xf32>
      %c1_289 = arith.constant 1 : index
      %c3_290 = arith.constant 3 : index
      %c0_291 = arith.constant 0 : index
      %c0_292 = arith.constant 0 : index
      %361 = vector.load %arg21[%c1_289, %c3_290, %c0_291, %c0_292] : memref<2x4x64x8xf32, #tpu.memory_space<vmem>>, vector<1x1x64x8xf32>
      %362 = vector.shape_cast %361 : vector<1x1x64x8xf32> to vector<64x8xf32>
      %363 = vector.shape_cast %360 : vector<64x8xf32> to vector<1x1x64x8xf32>
      tpu.vector_store %arg21[%c1_289, %c3_290, %c0_291, %c0_292], %363 {strides = array<i32>} : memref<2x4x64x8xf32, #tpu.memory_space<vmem>>, vector<1x1x64x8xf32>,
      %364 = vector.extract_strided_slice %353 {offsets = [0, 0, 0], sizes = [1, 64, 8], strides = [1, 1, 1]} : vector<2x64x8xf32> to vector<1x64x8xf32>
      %365 = vector.shape_cast %364 : vector<1x64x8xf32> to vector<64x8xf32>
      %c0_293 = arith.constant 0 : index
      %c3_294 = arith.constant 3 : index
      %c0_295 = arith.constant 0 : index
      %c0_296 = arith.constant 0 : index
      %366 = vector.load %arg22[%c0_293, %c3_294, %c0_295, %c0_296] : memref<2x4x64x8xf32, #tpu.memory_space<vmem>>, vector<1x1x64x8xf32>
      %367 = vector.shape_cast %366 : vector<1x1x64x8xf32> to vector<64x8xf32>
      %368 = vector.shape_cast %365 : vector<64x8xf32> to vector<1x1x64x8xf32>
      tpu.vector_store %arg22[%c0_293, %c3_294, %c0_295, %c0_296], %368 {strides = array<i32>} : memref<2x4x64x8xf32, #tpu.memory_space<vmem>>, vector<1x1x64x8xf32>,
      %369 = vector.extract_strided_slice %353 {offsets = [1, 0, 0], sizes = [1, 64, 8], strides = [1, 1, 1]} : vector<2x64x8xf32> to vector<1x64x8xf32>
      %370 = vector.shape_cast %369 : vector<1x64x8xf32> to vector<64x8xf32>
      %c1_297 = arith.constant 1 : index
      %c3_298 = arith.constant 3 : index
      %c0_299 = arith.constant 0 : index
      %c0_300 = arith.constant 0 : index
      %371 = vector.load %arg22[%c1_297, %c3_298, %c0_299, %c0_300] : memref<2x4x64x8xf32, #tpu.memory_space<vmem>>, vector<1x1x64x8xf32>
      %372 = vector.shape_cast %371 : vector<1x1x64x8xf32> to vector<64x8xf32>
      %373 = vector.shape_cast %370 : vector<64x8xf32> to vector<1x1x64x8xf32>
      tpu.vector_store %arg22[%c1_297, %c3_298, %c0_299, %c0_300], %373 {strides = array<i32>} : memref<2x4x64x8xf32, #tpu.memory_space<vmem>>, vector<1x1x64x8xf32>,
    } else {
    }
    %c0 = arith.constant 0 : index
    %c0_1 = arith.constant 0 : index
    %c0_2 = arith.constant 0 : index
    %c0_3 = arith.constant 0 : index
    %3 = vector.load %arg4[%c0, %c0_1, %c0_2, %c0_3] : memref<1x2x32x32xf32, #tpu.memory_space<vmem>>, vector<1x2x32x32xf32>
    %4 = vector.shape_cast %3 : vector<1x2x32x32xf32> to vector<2x32x32xf32>
    %5 = vector.shape_cast %4 : vector<2x32x32xf32> to vector<64x32xf32>
    %c0_4 = arith.constant 0 : index
    %c0_5 = arith.constant 0 : index
    %c0_6 = arith.constant 0 : index
    %6 = vector.load %arg11[%c0_4, %c0_5, %c0_6] : memref<4x8x32xf32, #tpu.memory_space<vmem>>, vector<1x8x32xf32>
    %7 = vector.shape_cast %6 : vector<1x8x32xf32> to vector<8x32xf32>
    %cst = arith.constant dense<0.000000e+00> : vector<64x8xf32>
    %8 = tpu.matmul %5, %7, %cst {dimension_numbers = #tpu.dot_dimension_numbers<[1], [1], [0], [0], [0, 0, 1, 0], [], []>} : vector<64x32xf32>, vector<8x32xf32>, vector<64x8xf32> -> vector<64x8xf32>
    %c0_7 = arith.constant 0 : index
    %c0_8 = arith.constant 0 : index
    %c0_9 = arith.constant 0 : index
    %9 = vector.load %arg12[%c0_7, %c0_8, %c0_9] : memref<4x1x8xf32, #tpu.memory_space<vmem>>, vector<1x1x8xf32>
    %10 = vector.shape_cast %9 : vector<1x1x8xf32> to vector<1x8xf32>
    %11 = vector.broadcast %10 : vector<1x8xf32> to vector<64x8xf32>
    %12 = arith.addf %8, %11 : vector<64x8xf32>
    %13 = vector.shape_cast %12 : vector<64x8xf32> to vector<2x32x8xf32>
    %14 = vector.extract_strided_slice %13 {offsets = [0, 0, 0], sizes = [1, 32, 8], strides = [1, 1, 1]} : vector<2x32x8xf32> to vector<1x32x8xf32>
    %15 = vector.shape_cast %14 : vector<1x32x8xf32> to vector<32x8xf32>
    %c0_10 = arith.constant 0 : index
    %c0_11 = arith.constant 0 : index
    %c0_12 = arith.constant 0 : index
    %c0_13 = arith.constant 0 : index
    %16 = vector.load %arg23[%c0_10, %c0_11, %c0_12, %c0_13] : memref<2x4x32x8xf32, #tpu.memory_space<vmem>>, vector<1x1x32x8xf32>
    %17 = vector.shape_cast %16 : vector<1x1x32x8xf32> to vector<32x8xf32>
    %18 = vector.shape_cast %15 : vector<32x8xf32> to vector<1x1x32x8xf32>
    tpu.vector_store %arg23[%c0_10, %c0_11, %c0_12, %c0_13], %18 {strides = array<i32>} : memref<2x4x32x8xf32, #tpu.memory_space<vmem>>, vector<1x1x32x8xf32>,
    %19 = vector.extract_strided_slice %13 {offsets = [1, 0, 0], sizes = [1, 32, 8], strides = [1, 1, 1]} : vector<2x32x8xf32> to vector<1x32x8xf32>
    %20 = vector.shape_cast %19 : vector<1x32x8xf32> to vector<32x8xf32>
    %c1 = arith.constant 1 : index
    %c0_14 = arith.constant 0 : index
    %c0_15 = arith.constant 0 : index
    %c0_16 = arith.constant 0 : index
    %21 = vector.load %arg23[%c1, %c0_14, %c0_15, %c0_16] : memref<2x4x32x8xf32, #tpu.memory_space<vmem>>, vector<1x1x32x8xf32>
    %22 = vector.shape_cast %21 : vector<1x1x32x8xf32> to vector<32x8xf32>
    %23 = vector.shape_cast %20 : vector<32x8xf32> to vector<1x1x32x8xf32>
    tpu.vector_store %arg23[%c1, %c0_14, %c0_15, %c0_16], %23 {strides = array<i32>} : memref<2x4x32x8xf32, #tpu.memory_space<vmem>>, vector<1x1x32x8xf32>,
    %c1_17 = arith.constant 1 : index
    %c0_18 = arith.constant 0 : index
    %c0_19 = arith.constant 0 : index
    %24 = vector.load %arg11[%c1_17, %c0_18, %c0_19] : memref<4x8x32xf32, #tpu.memory_space<vmem>>, vector<1x8x32xf32>
    %25 = vector.shape_cast %24 : vector<1x8x32xf32> to vector<8x32xf32>
    %cst_20 = arith.constant dense<0.000000e+00> : vector<64x8xf32>
    %26 = tpu.matmul %5, %25, %cst_20 {dimension_numbers = #tpu.dot_dimension_numbers<[1], [1], [0], [0], [0, 0, 1, 0], [], []>} : vector<64x32xf32>, vector<8x32xf32>, vector<64x8xf32> -> vector<64x8xf32>
    %c1_21 = arith.constant 1 : index
    %c0_22 = arith.constant 0 : index
    %c0_23 = arith.constant 0 : index
    %27 = vector.load %arg12[%c1_21, %c0_22, %c0_23] : memref<4x1x8xf32, #tpu.memory_space<vmem>>, vector<1x1x8xf32>
    %28 = vector.shape_cast %27 : vector<1x1x8xf32> to vector<1x8xf32>
    %29 = vector.broadcast %28 : vector<1x8xf32> to vector<64x8xf32>
    %30 = arith.addf %26, %29 : vector<64x8xf32>
    %31 = vector.shape_cast %30 : vector<64x8xf32> to vector<2x32x8xf32>
    %32 = vector.extract_strided_slice %31 {offsets = [0, 0, 0], sizes = [1, 32, 8], strides = [1, 1, 1]} : vector<2x32x8xf32> to vector<1x32x8xf32>
    %33 = vector.shape_cast %32 : vector<1x32x8xf32> to vector<32x8xf32>
    %c0_24 = arith.constant 0 : index
    %c1_25 = arith.constant 1 : index
    %c0_26 = arith.constant 0 : index
    %c0_27 = arith.constant 0 : index
    %34 = vector.load %arg23[%c0_24, %c1_25, %c0_26, %c0_27] : memref<2x4x32x8xf32, #tpu.memory_space<vmem>>, vector<1x1x32x8xf32>
    %35 = vector.shape_cast %34 : vector<1x1x32x8xf32> to vector<32x8xf32>
    %36 = vector.shape_cast %33 : vector<32x8xf32> to vector<1x1x32x8xf32>
    tpu.vector_store %arg23[%c0_24, %c1_25, %c0_26, %c0_27], %36 {strides = array<i32>} : memref<2x4x32x8xf32, #tpu.memory_space<vmem>>, vector<1x1x32x8xf32>,
    %37 = vector.extract_strided_slice %31 {offsets = [1, 0, 0], sizes = [1, 32, 8], strides = [1, 1, 1]} : vector<2x32x8xf32> to vector<1x32x8xf32>
    %38 = vector.shape_cast %37 : vector<1x32x8xf32> to vector<32x8xf32>
    %c1_28 = arith.constant 1 : index
    %c1_29 = arith.constant 1 : index
    %c0_30 = arith.constant 0 : index
    %c0_31 = arith.constant 0 : index
    %39 = vector.load %arg23[%c1_28, %c1_29, %c0_30, %c0_31] : memref<2x4x32x8xf32, #tpu.memory_space<vmem>>, vector<1x1x32x8xf32>
    %40 = vector.shape_cast %39 : vector<1x1x32x8xf32> to vector<32x8xf32>
    %41 = vector.shape_cast %38 : vector<32x8xf32> to vector<1x1x32x8xf32>
    tpu.vector_store %arg23[%c1_28, %c1_29, %c0_30, %c0_31], %41 {strides = array<i32>} : memref<2x4x32x8xf32, #tpu.memory_space<vmem>>, vector<1x1x32x8xf32>,
    %c2 = arith.constant 2 : index
    %c0_32 = arith.constant 0 : index
    %c0_33 = arith.constant 0 : index
    %42 = vector.load %arg11[%c2, %c0_32, %c0_33] : memref<4x8x32xf32, #tpu.memory_space<vmem>>, vector<1x8x32xf32>
    %43 = vector.shape_cast %42 : vector<1x8x32xf32> to vector<8x32xf32>
    %cst_34 = arith.constant dense<0.000000e+00> : vector<64x8xf32>
    %44 = tpu.matmul %5, %43, %cst_34 {dimension_numbers = #tpu.dot_dimension_numbers<[1], [1], [0], [0], [0, 0, 1, 0], [], []>} : vector<64x32xf32>, vector<8x32xf32>, vector<64x8xf32> -> vector<64x8xf32>
    %c2_35 = arith.constant 2 : index
    %c0_36 = arith.constant 0 : index
    %c0_37 = arith.constant 0 : index
    %45 = vector.load %arg12[%c2_35, %c0_36, %c0_37] : memref<4x1x8xf32, #tpu.memory_space<vmem>>, vector<1x1x8xf32>
    %46 = vector.shape_cast %45 : vector<1x1x8xf32> to vector<1x8xf32>
    %47 = vector.broadcast %46 : vector<1x8xf32> to vector<64x8xf32>
    %48 = arith.addf %44, %47 : vector<64x8xf32>
    %49 = vector.shape_cast %48 : vector<64x8xf32> to vector<2x32x8xf32>
    %50 = vector.extract_strided_slice %49 {offsets = [0, 0, 0], sizes = [1, 32, 8], strides = [1, 1, 1]} : vector<2x32x8xf32> to vector<1x32x8xf32>
    %51 = vector.shape_cast %50 : vector<1x32x8xf32> to vector<32x8xf32>
    %c0_38 = arith.constant 0 : index
    %c2_39 = arith.constant 2 : index
    %c0_40 = arith.constant 0 : index
    %c0_41 = arith.constant 0 : index
    %52 = vector.load %arg23[%c0_38, %c2_39, %c0_40, %c0_41] : memref<2x4x32x8xf32, #tpu.memory_space<vmem>>, vector<1x1x32x8xf32>
    %53 = vector.shape_cast %52 : vector<1x1x32x8xf32> to vector<32x8xf32>
    %54 = vector.shape_cast %51 : vector<32x8xf32> to vector<1x1x32x8xf32>
    tpu.vector_store %arg23[%c0_38, %c2_39, %c0_40, %c0_41], %54 {strides = array<i32>} : memref<2x4x32x8xf32, #tpu.memory_space<vmem>>, vector<1x1x32x8xf32>,
    %55 = vector.extract_strided_slice %49 {offsets = [1, 0, 0], sizes = [1, 32, 8], strides = [1, 1, 1]} : vector<2x32x8xf32> to vector<1x32x8xf32>
    %56 = vector.shape_cast %55 : vector<1x32x8xf32> to vector<32x8xf32>
    %c1_42 = arith.constant 1 : index
    %c2_43 = arith.constant 2 : index
    %c0_44 = arith.constant 0 : index
    %c0_45 = arith.constant 0 : index
    %57 = vector.load %arg23[%c1_42, %c2_43, %c0_44, %c0_45] : memref<2x4x32x8xf32, #tpu.memory_space<vmem>>, vector<1x1x32x8xf32>
    %58 = vector.shape_cast %57 : vector<1x1x32x8xf32> to vector<32x8xf32>
    %59 = vector.shape_cast %56 : vector<32x8xf32> to vector<1x1x32x8xf32>
    tpu.vector_store %arg23[%c1_42, %c2_43, %c0_44, %c0_45], %59 {strides = array<i32>} : memref<2x4x32x8xf32, #tpu.memory_space<vmem>>, vector<1x1x32x8xf32>,
    %c3 = arith.constant 3 : index
    %c0_46 = arith.constant 0 : index
    %c0_47 = arith.constant 0 : index
    %60 = vector.load %arg11[%c3, %c0_46, %c0_47] : memref<4x8x32xf32, #tpu.memory_space<vmem>>, vector<1x8x32xf32>
    %61 = vector.shape_cast %60 : vector<1x8x32xf32> to vector<8x32xf32>
    %cst_48 = arith.constant dense<0.000000e+00> : vector<64x8xf32>
    %62 = tpu.matmul %5, %61, %cst_48 {dimension_numbers = #tpu.dot_dimension_numbers<[1], [1], [0], [0], [0, 0, 1, 0], [], []>} : vector<64x32xf32>, vector<8x32xf32>, vector<64x8xf32> -> vector<64x8xf32>
    %c3_49 = arith.constant 3 : index
    %c0_50 = arith.constant 0 : index
    %c0_51 = arith.constant 0 : index
    %63 = vector.load %arg12[%c3_49, %c0_50, %c0_51] : memref<4x1x8xf32, #tpu.memory_space<vmem>>, vector<1x1x8xf32>
    %64 = vector.shape_cast %63 : vector<1x1x8xf32> to vector<1x8xf32>
    %65 = vector.broadcast %64 : vector<1x8xf32> to vector<64x8xf32>
    %66 = arith.addf %62, %65 : vector<64x8xf32>
    %67 = vector.shape_cast %66 : vector<64x8xf32> to vector<2x32x8xf32>
    %68 = vector.extract_strided_slice %67 {offsets = [0, 0, 0], sizes = [1, 32, 8], strides = [1, 1, 1]} : vector<2x32x8xf32> to vector<1x32x8xf32>
    %69 = vector.shape_cast %68 : vector<1x32x8xf32> to vector<32x8xf32>
    %c0_52 = arith.constant 0 : index
    %c3_53 = arith.constant 3 : index
    %c0_54 = arith.constant 0 : index
    %c0_55 = arith.constant 0 : index
    %70 = vector.load %arg23[%c0_52, %c3_53, %c0_54, %c0_55] : memref<2x4x32x8xf32, #tpu.memory_space<vmem>>, vector<1x1x32x8xf32>
    %71 = vector.shape_cast %70 : vector<1x1x32x8xf32> to vector<32x8xf32>
    %72 = vector.shape_cast %69 : vector<32x8xf32> to vector<1x1x32x8xf32>
    tpu.vector_store %arg23[%c0_52, %c3_53, %c0_54, %c0_55], %72 {strides = array<i32>} : memref<2x4x32x8xf32, #tpu.memory_space<vmem>>, vector<1x1x32x8xf32>,
    %73 = vector.extract_strided_slice %67 {offsets = [1, 0, 0], sizes = [1, 32, 8], strides = [1, 1, 1]} : vector<2x32x8xf32> to vector<1x32x8xf32>
    %74 = vector.shape_cast %73 : vector<1x32x8xf32> to vector<32x8xf32>
    %c1_56 = arith.constant 1 : index
    %c3_57 = arith.constant 3 : index
    %c0_58 = arith.constant 0 : index
    %c0_59 = arith.constant 0 : index
    %75 = vector.load %arg23[%c1_56, %c3_57, %c0_58, %c0_59] : memref<2x4x32x8xf32, #tpu.memory_space<vmem>>, vector<1x1x32x8xf32>
    %76 = vector.shape_cast %75 : vector<1x1x32x8xf32> to vector<32x8xf32>
    %77 = vector.shape_cast %74 : vector<32x8xf32> to vector<1x1x32x8xf32>
    tpu.vector_store %arg23[%c1_56, %c3_57, %c0_58, %c0_59], %77 {strides = array<i32>} : memref<2x4x32x8xf32, #tpu.memory_space<vmem>>, vector<1x1x32x8xf32>,
    %c0_60 = arith.constant 0 : index
    %c0_61 = arith.constant 0 : index
    %c0_62 = arith.constant 0 : index
    %78 = vector.load %arg5[%c0_60, %c0_61, %c0_62] : memref<1x32x64xi8, #tpu.memory_space<vmem>>, vector<1x32x64xi8>
    %79 = vector.shape_cast %78 : vector<1x32x64xi8> to vector<32x64xi8>
    %80 = arith.extsi %79 : vector<32x64xi8> to vector<32x64xi32>
    %c0_i32_63 = arith.constant 0 : i32
    %81 = vector.broadcast %c0_i32_63 : i32 to vector<32x64xi32>
    %82 = arith.cmpi eq, %80, %81 : vector<32x64xi32>
    %c0_64 = arith.constant 0 : index
    %c0_65 = arith.constant 0 : index
    %c0_66 = arith.constant 0 : index
    %83 = vector.load %arg6[%c0_64, %c0_65, %c0_66] : memref<1x32x64xi8, #tpu.memory_space<vmem>>, vector<1x32x64xi8>
    %84 = vector.shape_cast %83 : vector<1x32x64xi8> to vector<32x64xi8>
    %85 = arith.extsi %84 : vector<32x64xi8> to vector<32x64xi32>
    %c0_i32_67 = arith.constant 0 : i32
    %86 = vector.broadcast %c0_i32_67 : i32 to vector<32x64xi32>
    %87 = arith.cmpi eq, %85, %86 : vector<32x64xi32>
    %c0_68 = arith.constant 0 : index
    %c0_69 = arith.constant 0 : index
    %c0_70 = arith.constant 0 : index
    %88 = vector.load %arg13[%c0_68, %c0_69, %c0_70] : memref<4x8x32xf32, #tpu.memory_space<vmem>>, vector<4x8x32xf32>
    %c0_71 = arith.constant 0 : index
    %c0_72 = arith.constant 0 : index
    %c0_73 = arith.constant 0 : index
    %c0_74 = arith.constant 0 : index
    %89 = vector.load %arg23[%c0_71, %c0_72, %c0_73, %c0_74] : memref<2x4x32x8xf32, #tpu.memory_space<vmem>>, vector<1x4x32x8xf32>
    %90 = vector.shape_cast %89 : vector<1x4x32x8xf32> to vector<4x32x8xf32>
    %c0_75 = arith.constant 0 : index
    %c0_76 = arith.constant 0 : index
    %c0_77 = arith.constant 0 : index
    %c0_78 = arith.constant 0 : index
    %91 = vector.load %arg21[%c0_75, %c0_76, %c0_77, %c0_78] : memref<2x4x64x8xf32, #tpu.memory_space<vmem>>, vector<1x4x64x8xf32>
    %92 = vector.shape_cast %91 : vector<1x4x64x8xf32> to vector<4x64x8xf32>
    %c0_79 = arith.constant 0 : index
    %c0_80 = arith.constant 0 : index
    %c0_81 = arith.constant 0 : index
    %c0_82 = arith.constant 0 : index
    %93 = vector.load %arg22[%c0_79, %c0_80, %c0_81, %c0_82] : memref<2x4x64x8xf32, #tpu.memory_space<vmem>>, vector<1x4x64x8xf32>
    %94 = vector.shape_cast %93 : vector<1x4x64x8xf32> to vector<4x64x8xf32>
    "tpu.trace_start"() <{level = 10 : i32, message = "hqd,hkd->hqk"}> : () -> ()
    %cst_83 = arith.constant dense<0.000000e+00> : vector<4x32x64xf32>
    %95 = tpu.matmul %90, %92, %cst_83 {dimension_numbers = #tpu.dot_dimension_numbers<[2], [2], [1], [1], [0, 0, 0, 1, 1, 1], [0], [0]>} : vector<4x32x8xf32>, vector<4x64x8xf32>, vector<4x32x64xf32> -> vector<4x32x64xf32>
    "tpu.trace_stop"() : () -> ()
    %96 = vector.shape_cast %82 : vector<32x64xi1> to vector<1x32x64xi1>
    %cst_84 = arith.constant -3.40282347E+38 : f32
    %97 = vector.shape_cast %96 : vector<1x32x64xi1> to vector<1x32x64xi1>
    %98 = vector.broadcast %97 : vector<1x32x64xi1> to vector<4x32x64xi1>
    %99 = vector.broadcast %cst_84 : f32 to vector<4x32x64xf32>
    %100 = arith.select %98, %99, %95 : vector<4x32x64xi1>, vector<4x32x64xf32>
    %cst_85 = arith.constant dense<0xFF800000> : vector<4x32xf32>
    %101 = vector.multi_reduction <maximumf>, %100, %cst_85 [2] : vector<4x32x64xf32> to vector<4x32xf32>
    %102 = vector.shape_cast %101 : vector<4x32xf32> to vector<4x32x1xf32>
    %103 = vector.broadcast %102 : vector<4x32x1xf32> to vector<4x32x64xf32>
    %104 = arith.subf %100, %103 : vector<4x32x64xf32>
    %105 = math.exp %104 : vector<4x32x64xf32>
    %cst_86 = arith.constant dense<0.000000e+00> : vector<4x32xf32>
    %106 = vector.multi_reduction <add>, %105, %cst_86 [2] : vector<4x32x64xf32> to vector<4x32xf32>
    %107 = vector.shape_cast %106 : vector<4x32xf32> to vector<4x32x1xf32>
    %108 = tpu.reciprocal %107 {approx = true} : vector<4x32x1xf32> -> vector<4x32x1xf32>
    %109 = vector.broadcast %108 : vector<4x32x1xf32> to vector<4x32x64xf32>
    %110 = arith.mulf %105, %109 : vector<4x32x64xf32>
    %c0_87 = arith.constant 0 : index
    %c0_88 = arith.constant 0 : index
    %c0_89 = arith.constant 0 : index
    %c0_90 = arith.constant 0 : index
    %111 = vector.load %arg17[%c0_87, %c0_88, %c0_89, %c0_90] : memref<1x4x32x64xf32, #tpu.memory_space<vmem>>, vector<1x4x32x64xf32>
    %112 = vector.shape_cast %111 : vector<1x4x32x64xf32> to vector<4x32x64xf32>
    %113 = vector.shape_cast %110 : vector<4x32x64xf32> to vector<1x4x32x64xf32>
    tpu.vector_store %arg17[%c0_87, %c0_88, %c0_89, %c0_90], %113 {strides = array<i32>} : memref<1x4x32x64xf32, #tpu.memory_space<vmem>>, vector<1x4x32x64xf32>,
    "tpu.trace_start"() <{level = 10 : i32, message = "hqk,hkd->hqd"}> : () -> ()
    %cst_91 = arith.constant dense<0.000000e+00> : vector<4x32x8xf32>
    %114 = tpu.matmul %110, %94, %cst_91 {dimension_numbers = #tpu.dot_dimension_numbers<[2], [1], [1], [2], [0, 0, 0, 1, 1, 2], [0], [0]>} : vector<4x32x64xf32>, vector<4x64x8xf32>, vector<4x32x8xf32> -> vector<4x32x8xf32>
    "tpu.trace_stop"() : () -> ()
    "tpu.trace_start"() <{level = 10 : i32, message = "hqd,hdk->hqk"}> : () -> ()
    %cst_92 = arith.constant dense<0.000000e+00> : vector<4x32x32xf32>
    %115 = tpu.matmul %114, %88, %cst_92 {dimension_numbers = #tpu.dot_dimension_numbers<[2], [1], [1], [2], [0, 0, 0, 1, 1, 2], [0], [0]>} : vector<4x32x8xf32>, vector<4x8x32xf32>, vector<4x32x32xf32> -> vector<4x32x32xf32>
    "tpu.trace_stop"() : () -> ()
    %cst_93 = arith.constant dense<0.000000e+00> : vector<32x32xf32>
    %116 = vector.multi_reduction <add>, %115, %cst_93 [0] : vector<4x32x32xf32> to vector<32x32xf32>
    %c0_94 = arith.constant 0 : index
    %c0_95 = arith.constant 0 : index
    %c0_96 = arith.constant 0 : index
    %c0_97 = arith.constant 0 : index
    %117 = vector.load %arg23[%c0_94, %c0_95, %c0_96, %c0_97] : memref<2x4x32x8xf32, #tpu.memory_space<vmem>>, vector<1x4x32x8xf32>
    %118 = vector.shape_cast %117 : vector<1x4x32x8xf32> to vector<4x32x8xf32>
    %c1_98 = arith.constant 1 : index
    %c0_99 = arith.constant 0 : index
    %c0_100 = arith.constant 0 : index
    %c0_101 = arith.constant 0 : index
    %119 = vector.load %arg21[%c1_98, %c0_99, %c0_100, %c0_101] : memref<2x4x64x8xf32, #tpu.memory_space<vmem>>, vector<1x4x64x8xf32>
    %120 = vector.shape_cast %119 : vector<1x4x64x8xf32> to vector<4x64x8xf32>
    %c1_102 = arith.constant 1 : index
    %c0_103 = arith.constant 0 : index
    %c0_104 = arith.constant 0 : index
    %c0_105 = arith.constant 0 : index
    %121 = vector.load %arg22[%c1_102, %c0_103, %c0_104, %c0_105] : memref<2x4x64x8xf32, #tpu.memory_space<vmem>>, vector<1x4x64x8xf32>
    %122 = vector.shape_cast %121 : vector<1x4x64x8xf32> to vector<4x64x8xf32>
    "tpu.trace_start"() <{level = 10 : i32, message = "hqd,hkd->hqk"}> : () -> ()
    %cst_106 = arith.constant dense<0.000000e+00> : vector<4x32x64xf32>
    %123 = tpu.matmul %118, %120, %cst_106 {dimension_numbers = #tpu.dot_dimension_numbers<[2], [2], [1], [1], [0, 0, 0, 1, 1, 1], [0], [0]>} : vector<4x32x8xf32>, vector<4x64x8xf32>, vector<4x32x64xf32> -> vector<4x32x64xf32>
    "tpu.trace_stop"() : () -> ()
    %124 = vector.shape_cast %87 : vector<32x64xi1> to vector<1x32x64xi1>
    %cst_107 = arith.constant -3.40282347E+38 : f32
    %125 = vector.shape_cast %124 : vector<1x32x64xi1> to vector<1x32x64xi1>
    %126 = vector.broadcast %125 : vector<1x32x64xi1> to vector<4x32x64xi1>
    %127 = vector.broadcast %cst_107 : f32 to vector<4x32x64xf32>
    %128 = arith.select %126, %127, %123 : vector<4x32x64xi1>, vector<4x32x64xf32>
    %cst_108 = arith.constant dense<0xFF800000> : vector<4x32xf32>
    %129 = vector.multi_reduction <maximumf>, %128, %cst_108 [2] : vector<4x32x64xf32> to vector<4x32xf32>
    %130 = vector.shape_cast %129 : vector<4x32xf32> to vector<4x32x1xf32>
    %131 = vector.broadcast %130 : vector<4x32x1xf32> to vector<4x32x64xf32>
    %132 = arith.subf %128, %131 : vector<4x32x64xf32>
    %133 = math.exp %132 : vector<4x32x64xf32>
    %cst_109 = arith.constant dense<0.000000e+00> : vector<4x32xf32>
    %134 = vector.multi_reduction <add>, %133, %cst_109 [2] : vector<4x32x64xf32> to vector<4x32xf32>
    %135 = vector.shape_cast %134 : vector<4x32xf32> to vector<4x32x1xf32>
    %136 = tpu.reciprocal %135 {approx = true} : vector<4x32x1xf32> -> vector<4x32x1xf32>
    %137 = vector.broadcast %136 : vector<4x32x1xf32> to vector<4x32x64xf32>
    %138 = arith.mulf %133, %137 : vector<4x32x64xf32>
    %c0_110 = arith.constant 0 : index
    %c0_111 = arith.constant 0 : index
    %c0_112 = arith.constant 0 : index
    %c0_113 = arith.constant 0 : index
    %139 = vector.load %arg18[%c0_110, %c0_111, %c0_112, %c0_113] : memref<1x4x32x64xf32, #tpu.memory_space<vmem>>, vector<1x4x32x64xf32>
    %140 = vector.shape_cast %139 : vector<1x4x32x64xf32> to vector<4x32x64xf32>
    %141 = vector.shape_cast %138 : vector<4x32x64xf32> to vector<1x4x32x64xf32>
    tpu.vector_store %arg18[%c0_110, %c0_111, %c0_112, %c0_113], %141 {strides = array<i32>} : memref<1x4x32x64xf32, #tpu.memory_space<vmem>>, vector<1x4x32x64xf32>,
    "tpu.trace_start"() <{level = 10 : i32, message = "hqk,hkd->hqd"}> : () -> ()
    %cst_114 = arith.constant dense<0.000000e+00> : vector<4x32x8xf32>
    %142 = tpu.matmul %138, %122, %cst_114 {dimension_numbers = #tpu.dot_dimension_numbers<[2], [1], [1], [2], [0, 0, 0, 1, 1, 2], [0], [0]>} : vector<4x32x64xf32>, vector<4x64x8xf32>, vector<4x32x8xf32> -> vector<4x32x8xf32>
    "tpu.trace_stop"() : () -> ()
    "tpu.trace_start"() <{level = 10 : i32, message = "hqd,hdk->hqk"}> : () -> ()
    %cst_115 = arith.constant dense<0.000000e+00> : vector<4x32x32xf32>
    %143 = tpu.matmul %142, %88, %cst_115 {dimension_numbers = #tpu.dot_dimension_numbers<[2], [1], [1], [2], [0, 0, 0, 1, 1, 2], [0], [0]>} : vector<4x32x8xf32>, vector<4x8x32xf32>, vector<4x32x32xf32> -> vector<4x32x32xf32>
    "tpu.trace_stop"() : () -> ()
    %cst_116 = arith.constant dense<0.000000e+00> : vector<32x32xf32>
    %144 = vector.multi_reduction <add>, %143, %cst_116 [0] : vector<4x32x32xf32> to vector<32x32xf32>
    %c1_117 = arith.constant 1 : index
    %c0_118 = arith.constant 0 : index
    %c0_119 = arith.constant 0 : index
    %c0_120 = arith.constant 0 : index
    %145 = vector.load %arg23[%c1_117, %c0_118, %c0_119, %c0_120] : memref<2x4x32x8xf32, #tpu.memory_space<vmem>>, vector<1x4x32x8xf32>
    %146 = vector.shape_cast %145 : vector<1x4x32x8xf32> to vector<4x32x8xf32>
    %c1_121 = arith.constant 1 : index
    %c0_122 = arith.constant 0 : index
    %c0_123 = arith.constant 0 : index
    %c0_124 = arith.constant 0 : index
    %147 = vector.load %arg21[%c1_121, %c0_122, %c0_123, %c0_124] : memref<2x4x64x8xf32, #tpu.memory_space<vmem>>, vector<1x4x64x8xf32>
    %148 = vector.shape_cast %147 : vector<1x4x64x8xf32> to vector<4x64x8xf32>
    %c1_125 = arith.constant 1 : index
    %c0_126 = arith.constant 0 : index
    %c0_127 = arith.constant 0 : index
    %c0_128 = arith.constant 0 : index
    %149 = vector.load %arg22[%c1_125, %c0_126, %c0_127, %c0_128] : memref<2x4x64x8xf32, #tpu.memory_space<vmem>>, vector<1x4x64x8xf32>
    %150 = vector.shape_cast %149 : vector<1x4x64x8xf32> to vector<4x64x8xf32>
    "tpu.trace_start"() <{level = 10 : i32, message = "hqd,hkd->hqk"}> : () -> ()
    %cst_129 = arith.constant dense<0.000000e+00> : vector<4x32x64xf32>
    %151 = tpu.matmul %146, %148, %cst_129 {dimension_numbers = #tpu.dot_dimension_numbers<[2], [2], [1], [1], [0, 0, 0, 1, 1, 1], [0], [0]>} : vector<4x32x8xf32>, vector<4x64x8xf32>, vector<4x32x64xf32> -> vector<4x32x64xf32>
    "tpu.trace_stop"() : () -> ()
    %152 = vector.shape_cast %82 : vector<32x64xi1> to vector<1x32x64xi1>
    %cst_130 = arith.constant -3.40282347E+38 : f32
    %153 = vector.shape_cast %152 : vector<1x32x64xi1> to vector<1x32x64xi1>
    %154 = vector.broadcast %153 : vector<1x32x64xi1> to vector<4x32x64xi1>
    %155 = vector.broadcast %cst_130 : f32 to vector<4x32x64xf32>
    %156 = arith.select %154, %155, %151 : vector<4x32x64xi1>, vector<4x32x64xf32>
    %cst_131 = arith.constant dense<0xFF800000> : vector<4x32xf32>
    %157 = vector.multi_reduction <maximumf>, %156, %cst_131 [2] : vector<4x32x64xf32> to vector<4x32xf32>
    %158 = vector.shape_cast %157 : vector<4x32xf32> to vector<4x32x1xf32>
    %159 = vector.broadcast %158 : vector<4x32x1xf32> to vector<4x32x64xf32>
    %160 = arith.subf %156, %159 : vector<4x32x64xf32>
    %161 = math.exp %160 : vector<4x32x64xf32>
    %cst_132 = arith.constant dense<0.000000e+00> : vector<4x32xf32>
    %162 = vector.multi_reduction <add>, %161, %cst_132 [2] : vector<4x32x64xf32> to vector<4x32xf32>
    %163 = vector.shape_cast %162 : vector<4x32xf32> to vector<4x32x1xf32>
    %164 = tpu.reciprocal %163 {approx = true} : vector<4x32x1xf32> -> vector<4x32x1xf32>
    %165 = vector.broadcast %164 : vector<4x32x1xf32> to vector<4x32x64xf32>
    %166 = arith.mulf %161, %165 : vector<4x32x64xf32>
    %c0_133 = arith.constant 0 : index
    %c0_134 = arith.constant 0 : index
    %c0_135 = arith.constant 0 : index
    %c0_136 = arith.constant 0 : index
    %167 = vector.load %arg19[%c0_133, %c0_134, %c0_135, %c0_136] : memref<1x4x32x64xf32, #tpu.memory_space<vmem>>, vector<1x4x32x64xf32>
    %168 = vector.shape_cast %167 : vector<1x4x32x64xf32> to vector<4x32x64xf32>
    %169 = vector.shape_cast %166 : vector<4x32x64xf32> to vector<1x4x32x64xf32>
    tpu.vector_store %arg19[%c0_133, %c0_134, %c0_135, %c0_136], %169 {strides = array<i32>} : memref<1x4x32x64xf32, #tpu.memory_space<vmem>>, vector<1x4x32x64xf32>,
    "tpu.trace_start"() <{level = 10 : i32, message = "hqk,hkd->hqd"}> : () -> ()
    %cst_137 = arith.constant dense<0.000000e+00> : vector<4x32x8xf32>
    %170 = tpu.matmul %166, %150, %cst_137 {dimension_numbers = #tpu.dot_dimension_numbers<[2], [1], [1], [2], [0, 0, 0, 1, 1, 2], [0], [0]>} : vector<4x32x64xf32>, vector<4x64x8xf32>, vector<4x32x8xf32> -> vector<4x32x8xf32>
    "tpu.trace_stop"() : () -> ()
    "tpu.trace_start"() <{level = 10 : i32, message = "hqd,hdk->hqk"}> : () -> ()
    %cst_138 = arith.constant dense<0.000000e+00> : vector<4x32x32xf32>
    %171 = tpu.matmul %170, %88, %cst_138 {dimension_numbers = #tpu.dot_dimension_numbers<[2], [1], [1], [2], [0, 0, 0, 1, 1, 2], [0], [0]>} : vector<4x32x8xf32>, vector<4x8x32xf32>, vector<4x32x32xf32> -> vector<4x32x32xf32>
    "tpu.trace_stop"() : () -> ()
    %cst_139 = arith.constant dense<0.000000e+00> : vector<32x32xf32>
    %172 = vector.multi_reduction <add>, %171, %cst_139 [0] : vector<4x32x32xf32> to vector<32x32xf32>
    %c1_140 = arith.constant 1 : index
    %c0_141 = arith.constant 0 : index
    %c0_142 = arith.constant 0 : index
    %c0_143 = arith.constant 0 : index
    %173 = vector.load %arg23[%c1_140, %c0_141, %c0_142, %c0_143] : memref<2x4x32x8xf32, #tpu.memory_space<vmem>>, vector<1x4x32x8xf32>
    %174 = vector.shape_cast %173 : vector<1x4x32x8xf32> to vector<4x32x8xf32>
    %c0_144 = arith.constant 0 : index
    %c0_145 = arith.constant 0 : index
    %c0_146 = arith.constant 0 : index
    %c0_147 = arith.constant 0 : index
    %175 = vector.load %arg21[%c0_144, %c0_145, %c0_146, %c0_147] : memref<2x4x64x8xf32, #tpu.memory_space<vmem>>, vector<1x4x64x8xf32>
    %176 = vector.shape_cast %175 : vector<1x4x64x8xf32> to vector<4x64x8xf32>
    %c0_148 = arith.constant 0 : index
    %c0_149 = arith.constant 0 : index
    %c0_150 = arith.constant 0 : index
    %c0_151 = arith.constant 0 : index
    %177 = vector.load %arg22[%c0_148, %c0_149, %c0_150, %c0_151] : memref<2x4x64x8xf32, #tpu.memory_space<vmem>>, vector<1x4x64x8xf32>
    %178 = vector.shape_cast %177 : vector<1x4x64x8xf32> to vector<4x64x8xf32>
    "tpu.trace_start"() <{level = 10 : i32, message = "hqd,hkd->hqk"}> : () -> ()
    %cst_152 = arith.constant dense<0.000000e+00> : vector<4x32x64xf32>
    %179 = tpu.matmul %174, %176, %cst_152 {dimension_numbers = #tpu.dot_dimension_numbers<[2], [2], [1], [1], [0, 0, 0, 1, 1, 1], [0], [0]>} : vector<4x32x8xf32>, vector<4x64x8xf32>, vector<4x32x64xf32> -> vector<4x32x64xf32>
    "tpu.trace_stop"() : () -> ()
    %180 = vector.shape_cast %87 : vector<32x64xi1> to vector<1x32x64xi1>
    %cst_153 = arith.constant -3.40282347E+38 : f32
    %181 = vector.shape_cast %180 : vector<1x32x64xi1> to vector<1x32x64xi1>
    %182 = vector.broadcast %181 : vector<1x32x64xi1> to vector<4x32x64xi1>
    %183 = vector.broadcast %cst_153 : f32 to vector<4x32x64xf32>
    %184 = arith.select %182, %183, %179 : vector<4x32x64xi1>, vector<4x32x64xf32>
    %cst_154 = arith.constant dense<0xFF800000> : vector<4x32xf32>
    %185 = vector.multi_reduction <maximumf>, %184, %cst_154 [2] : vector<4x32x64xf32> to vector<4x32xf32>
    %186 = vector.shape_cast %185 : vector<4x32xf32> to vector<4x32x1xf32>
    %187 = vector.broadcast %186 : vector<4x32x1xf32> to vector<4x32x64xf32>
    %188 = arith.subf %184, %187 : vector<4x32x64xf32>
    %189 = math.exp %188 : vector<4x32x64xf32>
    %cst_155 = arith.constant dense<0.000000e+00> : vector<4x32xf32>
    %190 = vector.multi_reduction <add>, %189, %cst_155 [2] : vector<4x32x64xf32> to vector<4x32xf32>
    %191 = vector.shape_cast %190 : vector<4x32xf32> to vector<4x32x1xf32>
    %192 = tpu.reciprocal %191 {approx = true} : vector<4x32x1xf32> -> vector<4x32x1xf32>
    %193 = vector.broadcast %192 : vector<4x32x1xf32> to vector<4x32x64xf32>
    %194 = arith.mulf %189, %193 : vector<4x32x64xf32>
    %c0_156 = arith.constant 0 : index
    %c0_157 = arith.constant 0 : index
    %c0_158 = arith.constant 0 : index
    %c0_159 = arith.constant 0 : index
    %195 = vector.load %arg20[%c0_156, %c0_157, %c0_158, %c0_159] : memref<1x4x32x64xf32, #tpu.memory_space<vmem>>, vector<1x4x32x64xf32>
    %196 = vector.shape_cast %195 : vector<1x4x32x64xf32> to vector<4x32x64xf32>
    %197 = vector.shape_cast %194 : vector<4x32x64xf32> to vector<1x4x32x64xf32>
    tpu.vector_store %arg20[%c0_156, %c0_157, %c0_158, %c0_159], %197 {strides = array<i32>} : memref<1x4x32x64xf32, #tpu.memory_space<vmem>>, vector<1x4x32x64xf32>,
    "tpu.trace_start"() <{level = 10 : i32, message = "hqk,hkd->hqd"}> : () -> ()
    %cst_160 = arith.constant dense<0.000000e+00> : vector<4x32x8xf32>
    %198 = tpu.matmul %194, %178, %cst_160 {dimension_numbers = #tpu.dot_dimension_numbers<[2], [1], [1], [2], [0, 0, 0, 1, 1, 2], [0], [0]>} : vector<4x32x64xf32>, vector<4x64x8xf32>, vector<4x32x8xf32> -> vector<4x32x8xf32>
    "tpu.trace_stop"() : () -> ()
    "tpu.trace_start"() <{level = 10 : i32, message = "hqd,hdk->hqk"}> : () -> ()
    %cst_161 = arith.constant dense<0.000000e+00> : vector<4x32x32xf32>
    %199 = tpu.matmul %198, %88, %cst_161 {dimension_numbers = #tpu.dot_dimension_numbers<[2], [1], [1], [2], [0, 0, 0, 1, 1, 2], [0], [0]>} : vector<4x32x8xf32>, vector<4x8x32xf32>, vector<4x32x32xf32> -> vector<4x32x32xf32>
    "tpu.trace_stop"() : () -> ()
    %cst_162 = arith.constant dense<0.000000e+00> : vector<32x32xf32>
    %200 = vector.multi_reduction <add>, %199, %cst_162 [0] : vector<4x32x32xf32> to vector<32x32xf32>
    %c0_163 = arith.constant 0 : index
    %c0_164 = arith.constant 0 : index
    %201 = vector.load %arg14[%c0_163, %c0_164] : memref<1x32xf32, #tpu.memory_space<vmem>>, vector<1x32xf32>
    %202 = vector.broadcast %201 : vector<1x32xf32> to vector<32x32xf32>
    %203 = arith.addf %116, %202 : vector<32x32xf32>
    %204 = vector.broadcast %201 : vector<1x32xf32> to vector<32x32xf32>
    %205 = arith.addf %144, %204 : vector<32x32xf32>
    %206 = math.tanh %205 : vector<32x32xf32>
    %cst_165 = arith.constant 1.000000e-01 : f32
    %207 = vector.broadcast %cst_165 : f32 to vector<32x32xf32>
    %208 = arith.mulf %207, %206 : vector<32x32xf32>
    %209 = arith.addf %203, %208 : vector<32x32xf32>
    %c0_166 = arith.constant 0 : index
    %c0_167 = arith.constant 0 : index
    %c0_168 = arith.constant 0 : index
    %210 = vector.load %arg15[%c0_166, %c0_167, %c0_168] : memref<1x32x32xf32, #tpu.memory_space<vmem>>, vector<1x32x32xf32>
    %211 = vector.shape_cast %210 : vector<1x32x32xf32> to vector<32x32xf32>
    %212 = vector.shape_cast %209 : vector<32x32xf32> to vector<1x32x32xf32>
    tpu.vector_store %arg15[%c0_166, %c0_167, %c0_168], %212 {strides = array<i32>} : memref<1x32x32xf32, #tpu.memory_space<vmem>>, vector<1x32x32xf32>,
    %213 = vector.broadcast %201 : vector<1x32xf32> to vector<32x32xf32>
    %214 = arith.addf %172, %213 : vector<32x32xf32>
    %215 = vector.broadcast %201 : vector<1x32xf32> to vector<32x32xf32>
    %216 = arith.addf %200, %215 : vector<32x32xf32>
    %217 = math.tanh %216 : vector<32x32xf32>
    %cst_169 = arith.constant 1.000000e-01 : f32
    %218 = vector.broadcast %cst_169 : f32 to vector<32x32xf32>
    %219 = arith.mulf %218, %217 : vector<32x32xf32>
    %220 = arith.addf %214, %219 : vector<32x32xf32>
    %c0_170 = arith.constant 0 : index
    %c0_171 = arith.constant 0 : index
    %c0_172 = arith.constant 0 : index
    %221 = vector.load %arg16[%c0_170, %c0_171, %c0_172] : memref<1x32x32xf32, #tpu.memory_space<vmem>>, vector<1x32x32xf32>
    %222 = vector.shape_cast %221 : vector<1x32x32xf32> to vector<32x32xf32>
    %223 = vector.shape_cast %220 : vector<32x32xf32> to vector<1x32x32xf32>
    tpu.vector_store %arg16[%c0_170, %c0_171, %c0_172], %223 {strides = array<i32>} : memref<1x32x32xf32, #tpu.memory_space<vmem>>, vector<1x32x32xf32>,
    return
  }
  func.func @transform_0(%arg0: i32, %arg1: i32) -> (i32, i32, i32, i32) {
    %c0_i32 = arith.constant 0 : i32
    %c0_i32_0 = arith.constant 0 : i32
    %c0_i32_1 = arith.constant 0 : i32
    %c0_i32_2 = arith.constant 0 : i32
    return %arg0, %c0_i32, %c0_i32_0, %c0_i32_1 : i32, i32, i32, i32
  }
  func.func @transform_1(%arg0: i32, %arg1: i32) -> (i32, i32, i32, i32) {
    %c0_i32 = arith.constant 0 : i32
    %c0_i32_0 = arith.constant 0 : i32
    %c0_i32_1 = arith.constant 0 : i32
    %c0_i32_2 = arith.constant 0 : i32
    return %arg0, %c0_i32, %c0_i32_0, %c0_i32_1 : i32, i32, i32, i32
  }
  func.func @transform_2(%arg0: i32, %arg1: i32) -> (i32, i32, i32, i32) {
    %c0_i32 = arith.constant 0 : i32
    %c0_i32_0 = arith.constant 0 : i32
    %c0_i32_1 = arith.constant 0 : i32
    return %arg0, %c0_i32, %arg1, %c0_i32_0 : i32, i32, i32, i32
  }
  func.func @transform_3(%arg0: i32, %arg1: i32) -> (i32, i32, i32) {
    %c0_i32 = arith.constant 0 : i32
    %c0_i32_0 = arith.constant 0 : i32
    return %arg0, %arg1, %c0_i32 : i32, i32, i32
  }
  func.func @transform_4(%arg0: i32, %arg1: i32) -> (i32, i32, i32) {
    %c0_i32 = arith.constant 0 : i32
    %c0_i32_0 = arith.constant 0 : i32
    return %arg0, %arg1, %c0_i32 : i32, i32, i32
  }
  func.func @transform_5(%arg0: i32, %arg1: i32) -> (i32, i32, i32) {
    %c0_i32 = arith.constant 0 : i32
    %c0_i32_0 = arith.constant 0 : i32
    %c0_i32_1 = arith.constant 0 : i32
    %c0_i32_2 = arith.constant 0 : i32
    return %c0_i32, %c0_i32_0, %c0_i32_1 : i32, i32, i32
  }
  func.func @transform_6(%arg0: i32, %arg1: i32) -> (i32, i32, i32) {
    %c0_i32 = arith.constant 0 : i32
    %c0_i32_0 = arith.constant 0 : i32
    %c0_i32_1 = arith.constant 0 : i32
    %c0_i32_2 = arith.constant 0 : i32
    return %c0_i32, %c0_i32_0, %c0_i32_1 : i32, i32, i32
  }
  func.func @transform_7(%arg0: i32, %arg1: i32) -> (i32, i32, i32) {
    %c0_i32 = arith.constant 0 : i32
    %c0_i32_0 = arith.constant 0 : i32
    %c0_i32_1 = arith.constant 0 : i32
    %c0_i32_2 = arith.constant 0 : i32
    return %c0_i32, %c0_i32_0, %c0_i32_1 : i32, i32, i32
  }
  func.func @transform_8(%arg0: i32, %arg1: i32) -> (i32, i32, i32) {
    %c0_i32 = arith.constant 0 : i32
    %c0_i32_0 = arith.constant 0 : i32
    %c0_i32_1 = arith.constant 0 : i32
    %c0_i32_2 = arith.constant 0 : i32
    return %c0_i32, %c0_i32_0, %c0_i32_1 : i32, i32, i32
  }
  func.func @transform_9(%arg0: i32, %arg1: i32) -> (i32, i32, i32) {
    %c0_i32 = arith.constant 0 : i32
    %c0_i32_0 = arith.constant 0 : i32
    %c0_i32_1 = arith.constant 0 : i32
    %c0_i32_2 = arith.constant 0 : i32
    return %c0_i32, %c0_i32_0, %c0_i32_1 : i32, i32, i32
  }
  func.func @transform_10(%arg0: i32, %arg1: i32) -> (i32, i32, i32) {
    %c0_i32 = arith.constant 0 : i32
    %c0_i32_0 = arith.constant 0 : i32
    %c0_i32_1 = arith.constant 0 : i32
    %c0_i32_2 = arith.constant 0 : i32
    return %c0_i32, %c0_i32_0, %c0_i32_1 : i32, i32, i32
  }
  func.func @transform_11(%arg0: i32, %arg1: i32) -> (i32, i32, i32) {
    %c0_i32 = arith.constant 0 : i32
    %c0_i32_0 = arith.constant 0 : i32
    %c0_i32_1 = arith.constant 0 : i32
    %c0_i32_2 = arith.constant 0 : i32
    return %c0_i32, %c0_i32_0, %c0_i32_1 : i32, i32, i32
  }
  func.func @transform_12(%arg0: i32, %arg1: i32) -> (i32, i32) {
    %c0_i32 = arith.constant 0 : i32
    %c0_i32_0 = arith.constant 0 : i32
    %c0_i32_1 = arith.constant 0 : i32
    return %c0_i32, %c0_i32_0 : i32, i32
  }
  func.func @transform_13(%arg0: i32, %arg1: i32) -> (i32, i32, i32) {
    %c0_i32 = arith.constant 0 : i32
    %c0_i32_0 = arith.constant 0 : i32
    return %arg0, %arg1, %c0_i32 : i32, i32, i32
  }
  func.func @transform_14(%arg0: i32, %arg1: i32) -> (i32, i32, i32) {
    %c0_i32 = arith.constant 0 : i32
    %c0_i32_0 = arith.constant 0 : i32
    return %arg0, %arg1, %c0_i32 : i32, i32, i32
  }
  func.func @transform_15(%arg0: i32, %arg1: i32) -> (i32, i32, i32, i32) {
    %c0_i32 = arith.constant 0 : i32
    %c0_i32_0 = arith.constant 0 : i32
    %c0_i32_1 = arith.constant 0 : i32
    return %arg0, %c0_i32, %arg1, %c0_i32_0 : i32, i32, i32, i32
  }
  func.func @transform_16(%arg0: i32, %arg1: i32) -> (i32, i32, i32, i32) {
    %c0_i32 = arith.constant 0 : i32
    %c0_i32_0 = arith.constant 0 : i32
    %c0_i32_1 = arith.constant 0 : i32
    return %arg0, %c0_i32, %arg1, %c0_i32_0 : i32, i32, i32, i32
  }
  func.func @transform_17(%arg0: i32, %arg1: i32) -> (i32, i32, i32, i32) {
    %c0_i32 = arith.constant 0 : i32
    %c0_i32_0 = arith.constant 0 : i32
    %c0_i32_1 = arith.constant 0 : i32
    return %arg0, %c0_i32, %arg1, %c0_i32_0 : i32, i32, i32, i32
  }
  func.func @transform_18(%arg0: i32, %arg1: i32) -> (i32, i32, i32, i32) {
    %c0_i32 = arith.constant 0 : i32
    %c0_i32_0 = arith.constant 0 : i32
    %c0_i32_1 = arith.constant 0 : i32
    return %arg0, %c0_i32, %arg1, %c0_i32_0 : i32, i32, i32, i32
  }
}

</mosaic_0001>

<bundles_post_ra>
// kernel: tpu_custom_call.1
= control target key start
LH: loop header
LB: loop body
LE: loop exit
PB: predicated region body
PF: predicated region fallthrough
CT: control target
= control target key end

     0   :  { %s16100_s0 = inlined_call_operand.vmem [shape: f32[2,2,64,32], index: 0, kind: input, shape index: {}]   ;;  %s16101_s1 = inlined_call_operand.vmem [shape: f32[2,2,64,32], index: 1, kind: input, shape index: {}]   ;;  %s16102_s2 = inlined_call_operand.vmem [shape: f32[2,2,64,32], index: 2, kind: input, shape index: {}]   ;;  %s16103_s3 = inlined_call_operand.vmem [shape: s8[2,64,64], index: 3, kind: input, shape index: {}]   ;;  %s16104_s4 = inlined_call_operand.vmem [shape: s8[2,64,64], index: 4, kind: input, shape index: {}]   ;;  %s16105_s5 = inlined_call_operand.vmem [shape: f32[4,8,32], index: 5, kind: input, shape index: {}]   ;;  %s16106_s6 = inlined_call_operand.vmem [shape: f32[4,1,8], index: 6, kind: input, shape index: {}]   ;;  %s16107_s7 = inlined_call_operand.vmem [shape: f32[4,8,32], index: 7, kind: input, shape index: {}]   ;;  %s16108_s8 = inlined_call_operand.vmem [shape: f32[4,1,8], index: 8, kind: input, shape index: {}]   ;;  %s16109_s9 = inlined_call_operand.vmem [shape: f32[4,8,32], index: 9, kind: input, shape index: {}]   ;;  %s16110_s10 = inlined_call_operand.vmem [shape: f32[4,1,8], index: 10, kind: input, shape index: {}]   ;;  %s16111_s11 = inlined_call_operand.vmem [shape: f32[4,8,32], index: 11, kind: input, shape index: {}]   ;;  %s16112_s12 = inlined_call_operand.vmem [shape: f32[1,32], index: 12, kind: input, shape index: {}]   ;;  %s16113_s13 = inlined_call_operand.vmem [shape: f32[2,64,32], index: 13, kind: output, shape index: {0}]   ;;  %s16114_s14 = inlined_call_operand.vmem [shape: f32[2,64,32], index: 14, kind: output, shape index: {1}]   ;;  %s16115_s15 = inlined_call_operand.hbm [shape: f32[2,4,64,64], index: 15, kind: output, shape index: {2}]   ;;  %s16116_s16 = inlined_call_operand.hbm [shape: f32[2,4,64,64], index: 16, kind: output, shape index: {3}]   ;;  %s16117_s17 = inlined_call_operand.hbm [shape: f32[2,4,64,64], index: 17, kind: output, shape index: {4}]   ;;  %s16118_s18 = inlined_call_operand.hbm [shape: f32[2,4,64,64], index: 18, kind: output, shape index: {5}]  }
   0x1   :  { %16141 = sst [smem:[#allocation37_spill]] %s16100_s0 }
   0x2   :  { %16142 = sst [smem:[#allocation38_spill]] %s16101_s1 }
   0x3   :  { %16143 = sst [smem:[#allocation39_spill]] %s16102_s2 }
   0x4   :  { %16144 = sst [smem:[#allocation40_spill]] %s16103_s3 }
   0x5   :  { %16145 = sst [smem:[#allocation41_spill]] %s16109_s9 }
   0x6   :  { %16146 = sst [smem:[#allocation42_spill]] %s16110_s10 }
   0x7   :  { %16147 = sst [smem:[#allocation43_spill]] %s16111_s11 }
   0x8   :  { %16148 = sst [smem:[#allocation44_spill]] %s16112_s12 }
   0x9   :  { %16149 = sst [smem:[#allocation45_spill]] %s16115_s15 }
   0xa   :  { %16150 = sst [smem:[#allocation46_spill]] %s16116_s16 }
   0xb   :  { %16151 = sst [smem:[#allocation47_spill]] %s16117_s17 }
   0xc   :  { %16152 = sst [smem:[#allocation48_spill]] %s16118_s18 }
   0xd   :  { %24 = vsyncpa [#allocation7], 0 }
   0xe   :  { %26 = vsyncpa [#allocation7 + $0x1], 0 }
   0xf   :  { %27 = vsyncpa [#allocation9], 0 }
  0x10   :  { %29 = vsyncpa [#allocation9 + $0x1], 0 }
  0x11   :  { %30 = vsyncpa [#allocation12], 0 }
  0x12   :  { %32 = vsyncpa [#allocation12 + $0x1], 0  ;;  %s13441_s27 = smov 0   ;;  %s13443_s28 = smov 0  }
  0x13   :  { %s13445_s29 = smov 0   ;;  %s13447_s30 = smov 0  }
  0x14   :  { %s13449_s0 = smov 0   ;;  %s13451_s19 = smov 0  }
  0x15   :  { %s13453_s1 = smov 0   ;;  %s13455_s20 = smov 0  }
  0x16 LB: > { %16153 = sst [smem:[#allocation24_spill]] %s13288_s27  ;;  %s16121_s21 = sadd.s32 4294967295, %s13316_s20   ;;  %s13316_s20 = sphi %s13455_s20, %s38_s20   ;;  %s13312_s1 = sphi %s13453_s1, %s16220_s1   ;;  %s13308_s19 = sphi %s13451_s19, %s16219_s19   ;;  %s13304_s0 = sphi %s13449_s0, %s16218_s0   ;;  %s13300_s30 = sphi %s13447_s30, %s16217_s30   ;;  %s13296_s29 = sphi %s13445_s29, %s16216_s29   ;;  %s13292_s28 = sphi %s13443_s28, %s16215_s28   ;;  %s13288_s27 = sphi %s13441_s27, %s16214_s27  }
  0x17   : > { %16154 = sst [smem:[#allocation25_spill]] %s13292_s28  ;;  %s16120_s22 = sadd.s32 4294967294, %s13316_s20  }
  0x18   : > { %16155 = sst [smem:[#allocation26_spill]] %s13296_s29  ;;  %s47_s2 = sadd.s32 1, %s13308_s19 }
  0x19   : > { %16156 = sst [smem:[#allocation27_spill]] %s13304_s0  ;;  %p48_p0 = scmp.ge.s32.totalorder %s47_s2, 2 }
  0x1a   : > { %16157 = sst [smem:[#allocation28_spill]] %s13308_s19  ;;  %s50_s23 = sadd.s32 1, %s13312_s1 }
  0x1b   : > { %16158 = sst [smem:[#allocation29_spill]] %s13312_s1  ;;  %p118_p1 = scmp.ne.s32.totalorder %s13296_s29, %s13292_s28 }
  0x1c   : > { %16159 = sst [smem:[#allocation30_spill]] %s13316_s20  ;;  %p119_p2 = scmp.eq.s32.totalorder %s13316_s20, 0 }
  0x1d   : > { %s16222_s2 = smov (%p48_p0, %s47_s2), 0  ;;  %s16224_s23 = smov (!%p48_p0, %s50_s23), %s13312_s1 }
  0x1e   : > { %16160 = sst [smem:[#allocation31_spill]] %s16222_s2  ;;  %s107_s24 = ssub.s32 %s13308_s19, %s16222_s2 }
  0x1f   : > { %p13493_p3 = por %p119_p2, %p118_p1  ;;  %p52_p4 = scmp.ge.s32.totalorder %s16224_s23, 2 }
  0x20   : > { %p430_p5 = scmp.eq.s32.totalorder %s16121_s21, 3  ;;  %p435_p6 = scmp.ne.s32.totalorder %s13292_s28, %s13288_s27 }
  0x21   : > { %p436_p7 = scmp.eq.s32.totalorder %s16120_s22, 3  ;;  %s16226_s23 = smov (%p52_p4, %s16224_s23), 0 }
  0x22   : > { %16162 = sst [smem:[#allocation32_spill]] %s16226_s23  ;;  %p13505_p8 = por %p430_p5, %p118_p1 }
  0x23   : > { %p13509_p9 = por %p436_p7, %p435_p6  ;;  %s106_s2 = ssub.s32 %s13312_s1, %s16226_s23 }
  0x24   : > { %s16163_s26 = scalar_select %p13505_p8, 1, 0 }
  0x25   : > { %s16165_s18 = scalar_select %p13509_p9, 1, 0 }
  0x26   : > { %16164 = sst [smem:[#allocation33_spill]] %s16163_s26  ;;  %s108_s17 = sor.u32 %s107_s24, %s106_s2 }
  0x27   : > { %16166 = sst [smem:[#allocation34_spill]] %s16165_s18  ;;  %s111_s16 = sadd.s32 1, %s13296_s29 }
  0x28   : > { %p109_p10 = scmp.eq.s32.totalorder %s108_s17, 0  ;;  %p9872_p11 = scmp.ge.s32.totalorder %s13316_s20, 4 }
  0x2a   : > { %s13517_s15 = scalar_select %p109_p10, %s13296_s29, %s111_s16  }
  0x2b   : > { %560 = sbr.rel (%p9872_p11) target bundleno = 64 (0x40), region = 48 }
  0x2c   : > { %16167 = sst [smem:[#allocation35_spill]] %s13517_s15 }
  0x32   : > { %579 = sbr.rel (!%p13493_p3) target bundleno = 64 (0x40), region = 60  ;;  %s581_s22 = sand.u32 (%p13493_p3), 1, %s13296_s29  }
  0x33   : > { %s9874_s21 = sshll.u32 (%p13493_p3), %s13308_s19, 2  ;;  %s9873_s27 = sshll.u32 (%p13493_p3), %s581_s22, 6 }
  0x34   : > { %s9875_s26 = sshll.u32 (%p13493_p3), %s13312_s1, 4  ;;  %s16168_s17 = sld [smem:[#allocation39_spill]] (%p13493_p3) }
  0x35   : > { %s586_s18 = sadd.s32 (%p13493_p3), %s9875_s26, %s9874_s21  ;;  %s583_s15 = scalar_lea.vmem (%p13493_p3), [#allocation5], %s9873_s27 }
  0x36   : > { %s9876_s23 = sshll.u32 (%p13493_p3), %s586_s18, 3 }
  0x3a   : > { %s588_s16 = scalar_lea.vmem %s16168_s17, %s9876_s23 }
  0x3b   : > { %v630_v0 = vld [vmem:[%s588_s16] sm:$0xff]  ;;  %v632_v1 = vld [vmem:[%s588_s16 + $0x8] sm:$0xff]  ;;  %v634_v2 = vld [vmem:[%s588_s16 + $0x10] sm:$0xff] }
  0x3c   : > { %631 = vst [vmem:[%s583_s15] sm:$0xff] %v630_v0  ;;  %633 = vst [vmem:[%s583_s15 + $0x8] sm:$0xff] %v632_v1  ;;  %v636_v3 = vld [vmem:[%s588_s16 + $0x18] sm:$0xff]  ;;  %v638_v4 = vld [vmem:[%s588_s16 + $0x40] sm:$0xff] }
  0x3d   : > { %635 = vst [vmem:[%s583_s15 + $0x10] sm:$0xff] %v634_v2  ;;  %v640_v5 = vld [vmem:[%s588_s16 + $0x48] sm:$0xff]  ;;  %637 = vst [vmem:[%s583_s15 + $0x18] sm:$0xff] %v636_v3  ;;  %v642_v6 = vld [vmem:[%s588_s16 + $0x50] sm:$0xff] }
  0x3e   : > { %639 = vst [vmem:[%s583_s15 + $0x20] sm:$0xff] %v638_v4  ;;  %641 = vst [vmem:[%s583_s15 + $0x28] sm:$0xff] %v640_v5  ;;  %v644_v7 = vld [vmem:[%s588_s16 + $0x58] sm:$0xff] }
  0x3f   : > { %643 = vst [vmem:[%s583_s15 + $0x30] sm:$0xff] %v642_v6  ;;  %645 = vst [vmem:[%s583_s15 + $0x38] sm:$0xff] %v644_v7 }
  0x40 PF: > { %p9877_p12 = scmp.ge.s32.totalorder %s13316_s20, 1  ;;  %p672_p13 = scmp.lt.s32.totalorder %s13316_s20, 5 }
  0x42   : > { %p673_p0 = pnand %p9877_p12, %p672_p13 }
  0x44   : > { %676 = sbr.rel (%p673_p0) target bundleno = 4155 (0x103b), region = 106 }
  0x4b   : > { %s13531_s18 = sand.u32 1, %s13292_s28   ;;  %p791_p1 = scmp.lt.s32.totalorder %s13304_s0, 1 }
  0x4c   : > { %16169 = sst [smem:[#allocation36_spill]] %s13531_s18  ;;  %s9878_s15 = sshll.u32 %s13531_s18, 6 }
  0x4d   : > { %s9879_s27 = sshll.u32 %s13531_s18, 7  ;;  %p804_p2 = scmp.lt.s32.totalorder %s13300_s30, 1 }
  0x4e   : > { %s792_s21 = scalar_select %p791_p1, %s13304_s0, 1 }
  0x4f   : > { %s805_s22 = scalar_select %p804_p2, %s13300_s30, 1 }
  0x50   : > { %s10439_s23 = sshll.u32 %s792_s21, 7  ;;  %s9887_s25 = sshll.u32 %s792_s21, 1 }
  0x51   : > { %s16170_s24 = sld [smem:[#allocation37_spill]]  ;;  %s16171_s19 = sld [smem:[#allocation38_spill]] }
  0x52   : > { %s807_s28 = sadd.s32 %s9887_s25, %s805_s22  ;;  %s13550_s20 = sshll.u32 %s13300_s30, 2 }
  0x53   : > { %s9888_s18 = sshll.u32 %s807_s28, 3  ;;  %p821_p3 = scmp.lt.s32.totalorder %s13550_s20, 7 }
  0x54   : > { %s16172_s3 = sld [smem:[#allocation40_spill]]  ;;  %s13574_s0 = scalar_lea.vmem [#allocation5], %s9878_s15 }
  0x55   : > { %s822_s1 = scalar_select %p821_p3, %s13550_s20, 7 }
  0x56   : > { %s13580_s26 = scalar_lea.vmem [#allocation10], %s9879_s27  ;;  %p9897_p4 = scmp.ne.s32.totalorder %s13300_s30, 0 }
  0x57   : > { %s13542_s17 = scalar_lea.vmem %s16170_s24, %s10439_s23  ;;  %s13547_s29 = scalar_lea.vmem %s16171_s19, %s10439_s23  ;;  %v878_v8 = vld [vmem:[%s16105_s5] sm:$0xff] (!%p9897_p4)  ;;  %vm886_vm0 = vcmask (!%p9897_p4), 261120   ;;  %v9934_v14 = vld [vmem:[%s16105_s5 + $0x8] sm:$0xff] (!%p9897_p4)  ;;  %v9974_v26 = vld [vmem:[%s16105_s5 + $0x10] sm:$0xff] (!%p9897_p4)  ;;  %vm1287_vm1 = vcmask (!%p9897_p4), 64512  }
  0x58   : > { %s13561_s24 = scalar_lea.vmem %s16104_s4, %s9888_s18  ;;  %s9892_s19 = sshll.u32 %s792_s21, 3  ;;  %v1083_v9 = vld [vmem:[%s16107_s7] sm:$0xff] (!%p9897_p4)  ;;  %11077 = vmatprep.subr.msk.mxu0 (!%p9897_p4), %vm886_vm0, %v878_v8  ;;  %v13600_v12 = vld [vmem:[%s13542_s17 + $0x8] sm:$0xff] (!%p9897_p4)  ;;  %v13620_v16 = vld [vmem:[%s13542_s17 + $0x10] sm:$0xff] (!%p9897_p4) }
  0x59   : > { %s824_s23 = sadd.s32 %s9892_s19, %s822_s1  ;;  %s13582_s21 = scalar_lea.vmem [#allocation11], %s9879_s27  ;;  %v13592_v10 = vld [vmem:[%s13542_s17] sm:$0xff] (!%p9897_p4)  ;;  %11103 = vmatprep.subr.msk.mxu1 (!%p9897_p4), %vm886_vm0, %v1083_v9  ;;  %11078 = vmatpush3.xpose.msk.msra.mxu0 (!%p9897_p4), %vm886_vm0, %v878_v8  ;;  %v13605_v13 = vld [vmem:[%s13547_s29 + $0x8] sm:$0xff] (!%p9897_p4)  ;;  %v13623_v17 = vld [vmem:[%s13547_s29 + $0x10] sm:$0xff] (!%p9897_p4) }
  0x5a   : > { %s13556_s11 = scalar_lea.vmem %s16172_s3, %s9888_s18  ;;  %s9893_s22 = sshll.u32 %s824_s23, 3  ;;  %v13597_v11 = vld [vmem:[%s13547_s29] sm:$0xff] (!%p9897_p4)  ;;  %11104 = vmatpush3.xpose.msk.msra.mxu1 (!%p9897_p4), %vm886_vm0, %v1083_v9  ;;  %v9954_v15 = vld [vmem:[%s16107_s7 + $0x8] sm:$0xff] (!%p9897_p4)  ;;  %11079 = vmatprep.mubr.msk.f32.mxu0 (!%p9897_p4), %vm886_vm0, %v13592_v10  ;;  %v13632_v18 = vld [vmem:[%s13542_s17 + $0x18] sm:$0xff] (!%p9897_p4) }
  0x5b   : > { %s13567_s10 = scalar_lea.vmem %s16113_s13, %s9893_s22  ;;  %s13572_s12 = scalar_lea.vmem %s16114_s14, %s9893_s22  ;;  %11105 = vmatprep.mubr.msk.f32.mxu1 (!%p9897_p4), %vm886_vm0, %v13597_v11  ;;  %11129 = vmatprep.subr.msk.mxu0 (!%p9897_p4), %vm886_vm0, %v9934_v14  ;;  %v13635_v19 = vld [vmem:[%s13547_s29 + $0x18] sm:$0xff] (!%p9897_p4)  ;;  %v13642_v20 = vld [vmem:[%s13542_s17 + $0x20] sm:$0xff] (!%p9897_p4)  ;;  %v13656_v22 = vld [vmem:[%s13542_s17 + $0x28] sm:$0xff] (!%p9897_p4) }
  0x5c   : > { %s13576_s3 = scalar_lea.vmem [#allocation6], %s9879_s27  ;;  %s13578_s18 = scalar_lea.vmem [#allocation8], %s9879_s27  ;;  %11155 = vmatprep.subr.msk.mxu1 (!%p9897_p4), %vm886_vm0, %v9954_v15  ;;  %11080 = vmatmul.mubr.msk.f32.vlgmr.msra.gmra.mrb[0].mxu0 (!%p9897_p4), %vm886_vm0, %v13600_v12  ;;  %v13645_v21 = vld [vmem:[%s13547_s29 + $0x20] sm:$0xff] (!%p9897_p4)  ;;  %v13659_v23 = vld [vmem:[%s13547_s29 + $0x28] sm:$0xff] (!%p9897_p4)  ;;  %v13662_v24 = vld [vmem:[%s13542_s17 + $0x30] sm:$0xff] (!%p9897_p4) }
  0x5d   : > { %845 = sbr.rel (%p9897_p4) target bundleno = 433 (0x1b1), region = 114  ;;  %11106 = vmatmul.mubr.msk.f32.vlgmr.msra.gmra.mrb[0].mxu1 (!%p9897_p4), %vm886_vm0, %v13605_v13  ;;  %11130 = vmatpush3.xpose.msk.msra.mxu0 (!%p9897_p4), %vm886_vm0, %v9934_v14  ;;  %v13665_v25 = vld [vmem:[%s13547_s29 + $0x30] sm:$0xff] (!%p9897_p4)  ;;  %v13682_v28 = vld [vmem:[%s13542_s17 + $0x38] sm:$0xff] (!%p9897_p4)  ;;  %v13688_v30 = vld [vmem:[%s13542_s17 + $0x40] sm:$0xff] (!%p9897_p4) }
  0x5e   : > { %11156 = vmatpush3.xpose.msk.msra.mxu1 (!%p9897_p4), %vm886_vm0, %v9954_v15  ;;  %11082 = vmatprep.mubr.msk.f32.mxu0 (!%p9897_p4), %vm886_vm0, %v13620_v16  ;;  %v9994_v27 = vld [vmem:[%s16107_s7 + $0x10] sm:$0xff] (!%p9897_p4)  ;;  %v13685_v29 = vld [vmem:[%s13547_s29 + $0x38] sm:$0xff] (!%p9897_p4)  ;;  %v13691_v31 = vld [vmem:[%s13547_s29 + $0x40] sm:$0xff] (!%p9897_p4) }
  0x5f   : > { %11108 = vmatprep.mubr.msk.f32.mxu1 (!%p9897_p4), %vm886_vm0, %v13623_v17  ;;  %11181 = vmatprep.subr.msk.mxu0 (!%p9897_p4), %vm886_vm0, %v9974_v26  ;;  %v13704_v32 = vld [vmem:[%s13542_s17 + $0x48] sm:$0xff] (!%p9897_p4)  ;;  %v13710_v34 = vld [vmem:[%s13542_s17 + $0x50] sm:$0xff] (!%p9897_p4)  ;;  %v13724_v36 = vld [vmem:[%s13542_s17 + $0x58] sm:$0xff] (!%p9897_p4) }
  0x60   : > { %11083 = vmatmul.mubr.msk.f32.gmra.mrb[2].mxu0 (!%p9897_p4), %vm886_vm0, %v13632_v18  ;;  %11207 = vmatprep.subr.msk.mxu1 (!%p9897_p4), %vm886_vm0, %v9994_v27  ;;  %v13707_v33 = vld [vmem:[%s13547_s29 + $0x48] sm:$0xff] (!%p9897_p4)  ;;  %v13713_v35 = vld [vmem:[%s13547_s29 + $0x50] sm:$0xff] (!%p9897_p4)  ;;  %v13727_v37 = vld [vmem:[%s13547_s29 + $0x58] sm:$0xff] (!%p9897_p4) }
  0x61   : > { %11109 = vmatmul.mubr.msk.f32.gmra.mrb[2].mxu1 (!%p9897_p4), %vm886_vm0, %v13635_v19  ;;  %11085 = vmatprep.mubr.msk.f32.mxu0 (!%p9897_p4), %vm886_vm0, %v13642_v20  ;;  %v13730_v38 = vld [vmem:[%s13542_s17 + $0x60] sm:$0xff] (!%p9897_p4)  ;;  %v13744_v40 = vld [vmem:[%s13542_s17 + $0x68] sm:$0xff] (!%p9897_p4)  ;;  %v13750_v42 = vld [vmem:[%s13542_s17 + $0x70] sm:$0xff] (!%p9897_p4) }
  0x62   : > { %11111 = vmatprep.mubr.msk.f32.mxu1 (!%p9897_p4), %vm886_vm0, %v13645_v21  ;;  %v13733_v39 = vld [vmem:[%s13547_s29 + $0x60] sm:$0xff] (!%p9897_p4)  ;;  %v13747_v41 = vld [vmem:[%s13547_s29 + $0x68] sm:$0xff] (!%p9897_p4)  ;;  %v13753_v43 = vld [vmem:[%s13547_s29 + $0x70] sm:$0xff] (!%p9897_p4) }
  0x63   : > { %v13764_v44 = vld [vmem:[%s13542_s17 + $0x78] sm:$0xff] (!%p9897_p4)  ;;  %v13980_v48 = vld [vmem:[%s16106_s6] ss:$0 sm:$0xff] (!%p9897_p4) }
  0x64   : > { %11086 = vmatmul.mubr.msk.f32.gmra.mrb[4].mxu0 %vm886_vm0, %v13656_v22  ;;  %v13767_v45 = vld [vmem:[%s13547_s29 + $0x78] sm:$0xff]  ;;  %v13985_v49 = vld [vmem:[%s16108_s8] ss:$0 sm:$0xff] }
  0x65   : > { %11112 = vmatmul.mubr.msk.f32.gmra.mrb[4].mxu1 %vm886_vm0, %v13659_v23  ;;  %11088 = vmatprep.mubr.msk.f32.mxu0 %vm886_vm0, %v13662_v24  ;;  %v10014_v46 = vld [vmem:[%s16105_s5 + $0x18] sm:$0xff] }
  0x66   : > { %11114 = vmatprep.mubr.msk.f32.mxu1 %vm886_vm0, %v13665_v25  ;;  %v10034_v47 = vld [vmem:[%s16107_s7 + $0x18] sm:$0xff] }
  0x68   : > { %11089 = vmatmul.mubr.msk.f32.gmra.mrb[6].mxu0 %vm886_vm0, %v13682_v28 }
  0x69   : > { %11115 = vmatmul.mubr.msk.f32.gmra.mrb[6].mxu1 %vm886_vm0, %v13685_v29  ;;  %11091 = vmatprep.mubr.msk.f32.mxu0 %vm886_vm0, %v13688_v30 }
  0x6a   : > { %11117 = vmatprep.mubr.msk.f32.mxu1 %vm886_vm0, %v13691_v31 }
  0x6c   : > { %11092 = vmatmul.mubr.msk.f32.gmra.mrb[8].mxu0 %vm886_vm0, %v13704_v32 }
  0x6d   : > { %11118 = vmatmul.mubr.msk.f32.gmra.mrb[8].mxu1 %vm886_vm0, %v13707_v33  ;;  %11094 = vmatprep.mubr.msk.f32.mxu0 %vm886_vm0, %v13710_v34 }
  0x6e   : > { %11120 = vmatprep.mubr.msk.f32.mxu1 %vm886_vm0, %v13713_v35 }
  0x70   : > { %11095 = vmatmul.mubr.msk.f32.gmra.mrb[10].mxu0 %vm886_vm0, %v13724_v36 }
  0x71   : > { %11121 = vmatmul.mubr.msk.f32.gmra.mrb[10].mxu1 %vm886_vm0, %v13727_v37  ;;  %11097 = vmatprep.mubr.msk.f32.mxu0 %vm886_vm0, %v13730_v38 }
  0x72   : > { %11123 = vmatprep.mubr.msk.f32.mxu1 %vm886_vm0, %v13733_v39 }
  0x74   : > { %11098 = vmatmul.mubr.msk.f32.gmra.mrb[12].mxu0 %vm886_vm0, %v13744_v40 }
  0x75   : > { %11124 = vmatmul.mubr.msk.f32.gmra.mrb[12].mxu1 %vm886_vm0, %v13747_v41  ;;  %11100 = vmatprep.mubr.msk.f32.mxu0 %vm886_vm0, %v13750_v42 }
  0x76   : > { %11126 = vmatprep.mubr.msk.f32.mxu1 %vm886_vm0, %v13753_v43 }
  0x78   : > { %11101 = vmatmul.mubr.msk.f32.gmra.mrb[14].mxu0 %vm886_vm0, %v13764_v44 }
  0x79   : > { %11127 = vmatmul.mubr.msk.f32.gmra.mrb[14].mxu1 %vm886_vm0, %v13767_v45  ;;  %11131 = vmatprep.mubr.msk.f32.mxu0 %vm886_vm0, %v13592_v10 }
  0x7a   : > { %11157 = vmatprep.mubr.msk.f32.mxu1 %vm886_vm0, %v13597_v11 }
  0x7c   : > { %11132 = vmatmul.mubr.msk.f32.vlgmr.msra.gmra.mrb[16].mxu0 %vm886_vm0, %v13600_v12 }
  0x7d   : > { %11158 = vmatmul.mubr.msk.f32.vlgmr.msra.gmra.mrb[16].mxu1 %vm886_vm0, %v13605_v13  ;;  %11182 = vmatpush3.xpose.msk.msra.mxu0 %vm886_vm0, %v9974_v26 }
  0x7e   : > { %11208 = vmatpush3.xpose.msk.msra.mxu1 %vm886_vm0, %v9994_v27  ;;  %11134 = vmatprep.mubr.msk.f32.mxu0 %vm886_vm0, %v13620_v16 }
  0x7f   : > { %11160 = vmatprep.mubr.msk.f32.mxu1 %vm886_vm0, %v13623_v17  ;;  %11233 = vmatprep.subr.msk.mxu0 %vm886_vm0, %v10014_v46 }
  0x80   : > { %11259 = vmatprep.subr.msk.mxu1 %vm886_vm0, %v10034_v47  ;;  %11135 = vmatmul.mubr.msk.f32.gmra.mrb[18].mxu0 %vm886_vm0, %v13632_v18 }
  0x81   : > { %11161 = vmatmul.mubr.msk.f32.gmra.mrb[18].mxu1 %vm886_vm0, %v13635_v19  ;;  %11137 = vmatprep.mubr.msk.f32.mxu0 %vm886_vm0, %v13642_v20 }
  0x82   : > { %11163 = vmatprep.mubr.msk.f32.mxu1 %vm886_vm0, %v13645_v21 }
  0x84   : > { %11138 = vmatmul.mubr.msk.f32.gmra.mrb[20].mxu0 %vm886_vm0, %v13656_v22 }
  0x85   : > { %11164 = vmatmul.mubr.msk.f32.gmra.mrb[20].mxu1 %vm886_vm0, %v13659_v23  ;;  %11140 = vmatprep.mubr.msk.f32.mxu0 %vm886_vm0, %v13662_v24 }
  0x86   : > { %11166 = vmatprep.mubr.msk.f32.mxu1 %vm886_vm0, %v13665_v25 }
  0x88   : > { %11141 = vmatmul.mubr.msk.f32.gmra.mrb[22].mxu0 %vm886_vm0, %v13682_v28 }
  0x89   : > { %11167 = vmatmul.mubr.msk.f32.gmra.mrb[22].mxu1 %vm886_vm0, %v13685_v29  ;;  %11143 = vmatprep.mubr.msk.f32.mxu0 %vm886_vm0, %v13688_v30 }
  0x8a   : > { %11169 = vmatprep.mubr.msk.f32.mxu1 %vm886_vm0, %v13691_v31 }
  0x8c   : > { %11144 = vmatmul.mubr.msk.f32.gmra.mrb[24].mxu0 %vm886_vm0, %v13704_v32 }
  0x8d   : > { %11170 = vmatmul.mubr.msk.f32.gmra.mrb[24].mxu1 %vm886_vm0, %v13707_v33  ;;  %11146 = vmatprep.mubr.msk.f32.mxu0 %vm886_vm0, %v13710_v34 }
  0x8e   : > { %11172 = vmatprep.mubr.msk.f32.mxu1 %vm886_vm0, %v13713_v35 }
  0x90   : > { %11147 = vmatmul.mubr.msk.f32.gmra.mrb[26].mxu0 %vm886_vm0, %v13724_v36 }
  0x91   : > { %11173 = vmatmul.mubr.msk.f32.gmra.mrb[26].mxu1 %vm886_vm0, %v13727_v37  ;;  %11149 = vmatprep.mubr.msk.f32.mxu0 %vm886_vm0, %v13730_v38 }
  0x92   : > { %11175 = vmatprep.mubr.msk.f32.mxu1 %vm886_vm0, %v13733_v39 }
  0x94   : > { %11150 = vmatmul.mubr.msk.f32.gmra.mrb[28].mxu0 %vm886_vm0, %v13744_v40 }
  0x95   : > { %11176 = vmatmul.mubr.msk.f32.gmra.mrb[28].mxu1 %vm886_vm0, %v13747_v41  ;;  %11152 = vmatprep.mubr.msk.f32.mxu0 %vm886_vm0, %v13750_v42 }
  0x96   : > { %11178 = vmatprep.mubr.msk.f32.mxu1 %vm886_vm0, %v13753_v43 }
  0x98   : > { %11153 = vmatmul.mubr.msk.f32.gmra.mrb[30].mxu0 %vm886_vm0, %v13764_v44 }
  0x99   : > { %11179 = vmatmul.mubr.msk.f32.gmra.mrb[30].mxu1 %vm886_vm0, %v13767_v45  ;;  %11183 = vmatprep.mubr.msk.f32.mxu0 %vm886_vm0, %v13592_v10 }
  0x9a   : > { %11209 = vmatprep.mubr.msk.f32.mxu1 %vm886_vm0, %v13597_v11 }
  0x9c   : > { %11184 = vmatmul.mubr.msk.f32.vlgmr.msra.gmra.mrb[32].mxu0 %vm886_vm0, %v13600_v12 }
  0x9d   : > { %11210 = vmatmul.mubr.msk.f32.vlgmr.msra.gmra.mrb[32].mxu1 %vm886_vm0, %v13605_v13  ;;  %11234 = vmatpush3.xpose.msk.msra.mxu0 %vm886_vm0, %v10014_v46 }
  0x9e   : > { %11260 = vmatpush3.xpose.msk.msra.mxu1 %vm886_vm0, %v10034_v47  ;;  %11186 = vmatprep.mubr.msk.f32.mxu0 %vm886_vm0, %v13620_v16 }
  0x9f   : > { %11212 = vmatprep.mubr.msk.f32.mxu1 %vm886_vm0, %v13623_v17 }
  0xa0   : > { %11187 = vmatmul.mubr.msk.f32.gmra.mrb[34].mxu0 %vm886_vm0, %v13632_v18 }
  0xa1   : > { %11213 = vmatmul.mubr.msk.f32.gmra.mrb[34].mxu1 %vm886_vm0, %v13635_v19  ;;  %11189 = vmatprep.mubr.msk.f32.mxu0 %vm886_vm0, %v13642_v20 }
  0xa2   : > { %11215 = vmatprep.mubr.msk.f32.mxu1 %vm886_vm0, %v13645_v21 }
  0xa4   : > { %11190 = vmatmul.mubr.msk.f32.gmra.mrb[36].mxu0 %vm886_vm0, %v13656_v22 }
  0xa5   : > { %11216 = vmatmul.mubr.msk.f32.gmra.mrb[36].mxu1 %vm886_vm0, %v13659_v23  ;;  %11192 = vmatprep.mubr.msk.f32.mxu0 %vm886_vm0, %v13662_v24 }
  0xa6   : > { %11218 = vmatprep.mubr.msk.f32.mxu1 %vm886_vm0, %v13665_v25 }
  0xa8   : > { %11193 = vmatmul.mubr.msk.f32.gmra.mrb[38].mxu0 %vm886_vm0, %v13682_v28 }
  0xa9   : > { %11219 = vmatmul.mubr.msk.f32.gmra.mrb[38].mxu1 %vm886_vm0, %v13685_v29  ;;  %11195 = vmatprep.mubr.msk.f32.mxu0 %vm886_vm0, %v13688_v30 }
  0xaa   : > { %11221 = vmatprep.mubr.msk.f32.mxu1 %vm886_vm0, %v13691_v31 }
  0xac   : > { %11196 = vmatmul.mubr.msk.f32.gmra.mrb[40].mxu0 %vm886_vm0, %v13704_v32 }
  0xad   : > { %11222 = vmatmul.mubr.msk.f32.gmra.mrb[40].mxu1 %vm886_vm0, %v13707_v33  ;;  %11198 = vmatprep.mubr.msk.f32.mxu0 %vm886_vm0, %v13710_v34 }
  0xae   : > { %11224 = vmatprep.mubr.msk.f32.mxu1 %vm886_vm0, %v13713_v35 }
  0xb0   : > { %11199 = vmatmul.mubr.msk.f32.gmra.mrb[42].mxu0 %vm886_vm0, %v13724_v36 }
  0xb1   : > { %11225 = vmatmul.mubr.msk.f32.gmra.mrb[42].mxu1 %vm886_vm0, %v13727_v37  ;;  %11201 = vmatprep.mubr.msk.f32.mxu0 %vm886_vm0, %v13730_v38 }
  0xb2   : > { %11227 = vmatprep.mubr.msk.f32.mxu1 %vm886_vm0, %v13733_v39 }
  0xb4   : > { %11202 = vmatmul.mubr.msk.f32.gmra.mrb[44].mxu0 %vm886_vm0, %v13744_v40 }
  0xb5   : > { %11228 = vmatmul.mubr.msk.f32.gmra.mrb[44].mxu1 %vm886_vm0, %v13747_v41  ;;  %11204 = vmatprep.mubr.msk.f32.mxu0 %vm886_vm0, %v13750_v42 }
  0xb6   : > { %11230 = vmatprep.mubr.msk.f32.mxu1 %vm886_vm0, %v13753_v43 }
  0xb8   : > { %11205 = vmatmul.mubr.msk.f32.gmra.mrb[46].mxu0 %vm886_vm0, %v13764_v44 }
  0xb9   : > { %11231 = vmatmul.mubr.msk.f32.gmra.mrb[46].mxu1 %vm886_vm0, %v13767_v45  ;;  %11235 = vmatprep.mubr.msk.f32.mxu0 %vm886_vm0, %v13592_v10 }
  0xba   : > { %11261 = vmatprep.mubr.msk.f32.mxu1 %vm886_vm0, %v13597_v11 }
  0xbc   : > { %11236 = vmatmul.mubr.msk.f32.vlgmr.msra.gmra.mrb[48].mxu0 %vm886_vm0, %v13600_v12 }
  0xbd   : > { %11262 = vmatmul.mubr.msk.f32.vlgmr.msra.gmra.mrb[48].mxu1 %vm886_vm0, %v13605_v13  ;;  %11238 = vmatprep.mubr.msk.f32.mxu0 %vm886_vm0, %v13620_v16 }
  0xbe   : > { %11264 = vmatprep.mubr.msk.f32.mxu1 %vm886_vm0, %v13623_v17 }
  0xc0   : > { %11239 = vmatmul.mubr.msk.f32.gmra.mrb[50].mxu0 %vm886_vm0, %v13632_v18 }
  0xc1   : > { %11265 = vmatmul.mubr.msk.f32.gmra.mrb[50].mxu1 %vm886_vm0, %v13635_v19  ;;  %11241 = vmatprep.mubr.msk.f32.mxu0 %vm886_vm0, %v13642_v20 }
  0xc2   : > { %11267 = vmatprep.mubr.msk.f32.mxu1 %vm886_vm0, %v13645_v21 }
  0xc4   : > { %11242 = vmatmul.mubr.msk.f32.gmra.mrb[52].mxu0 %vm886_vm0, %v13656_v22 }
  0xc5   : > { %11268 = vmatmul.mubr.msk.f32.gmra.mrb[52].mxu1 %vm886_vm0, %v13659_v23  ;;  %11244 = vmatprep.mubr.msk.f32.mxu0 %vm886_vm0, %v13662_v24 }
  0xc6   : > { %11270 = vmatprep.mubr.msk.f32.mxu1 %vm886_vm0, %v13665_v25 }
  0xc8   : > { %11245 = vmatmul.mubr.msk.f32.gmra.mrb[54].mxu0 %vm886_vm0, %v13682_v28 }
  0xc9   : > { %11271 = vmatmul.mubr.msk.f32.gmra.mrb[54].mxu1 %vm886_vm0, %v13685_v29  ;;  %11247 = vmatprep.mubr.msk.f32.mxu0 %vm886_vm0, %v13688_v30 }
  0xca   : > { %11273 = vmatprep.mubr.msk.f32.mxu1 %vm886_vm0, %v13691_v31 }
  0xcc   : > { %11248 = vmatmul.mubr.msk.f32.gmra.mrb[56].mxu0 %vm886_vm0, %v13704_v32 }
  0xcd   : > { %11274 = vmatmul.mubr.msk.f32.gmra.mrb[56].mxu1 %vm886_vm0, %v13707_v33  ;;  %11250 = vmatprep.mubr.msk.f32.mxu0 %vm886_vm0, %v13710_v34 }
  0xce   : > { %11276 = vmatprep.mubr.msk.f32.mxu1 %vm886_vm0, %v13713_v35 }
  0xd0   : > { %11251 = vmatmul.mubr.msk.f32.gmra.mrb[58].mxu0 %vm886_vm0, %v13724_v36 }
  0xd1   : > { %11277 = vmatmul.mubr.msk.f32.gmra.mrb[58].mxu1 %vm886_vm0, %v13727_v37  ;;  %11253 = vmatprep.mubr.msk.f32.mxu0 %vm886_vm0, %v13730_v38 }
  0xd2   : > { %11279 = vmatprep.mubr.msk.f32.mxu1 %vm886_vm0, %v13733_v39 }
  0xd4   : > { %11254 = vmatmul.mubr.msk.f32.gmra.mrb[60].mxu0 %vm886_vm0, %v13744_v40 }
  0xd5   : > { %11280 = vmatmul.mubr.msk.f32.gmra.mrb[60].mxu1 %vm886_vm0, %v13747_v41  ;;  %11256 = vmatprep.mubr.msk.f32.mxu0 %vm886_vm0, %v13750_v42 }
  0xd6   : > { %11282 = vmatprep.mubr.msk.f32.mxu1 %vm886_vm0, %v13753_v43 }
  0xd8   : > { %11257 = vmatmul.mubr.msk.f32.gmra.mrb[62].mxu0 %vm886_vm0, %v13764_v44 }
  0xd9   : > { %11283 = vmatmul.mubr.msk.f32.gmra.mrb[62].mxu1 %vm886_vm0, %v13767_v45 }
 0x12f   : > { %v11081_v50 = vpop.f32.mrb[0].mxu0 }
 0x130   : > { %v11107_v51 = vpop.f32.mrb[0].mxu1  ;;  %v1010_v52 = vadd.f32 %v11081_v50, %v13980_v48  ;;  %v1004_v54 = vpop.f32.mrb[1].mxu0 }
 0x131   : > { %v1214_v53 = vadd.f32 %v11107_v51, %v13985_v49  ;;  %v1208_v55 = vpop.f32.mrb[1].mxu1  ;;  %v1005_v56 = vadd.f32 %v13980_v48, %v1004_v54 }
 0x132   : > { %v1209_v57 = vadd.f32 %v13985_v49, %v1208_v55  ;;  %1289 = vst.msk [vmem:[#allocation2 + $0x8] sm:$0xff] %vm1287_vm1, %v1010_v52  ;;  %v14050_v52 = vld [vmem:[%s16106_s6 + $0x1] ss:$0 sm:$0xff] }
 0x133   : > { %1306 = vst.msk [vmem:[#allocation3 + $0x8] sm:$0xff] %vm1287_vm1, %v1214_v53  ;;  %1288 = vst.msk [vmem:[#allocation2] sm:$0xff] %vm1287_vm1, %v1005_v56  ;;  %v11084_v58 = vpop.f32.mrb[2].mxu0  ;;  %v14055_v53 = vld [vmem:[%s16108_s8 + $0x1] ss:$0 sm:$0xff] }
 0x134   : > { %1305 = vst.msk [vmem:[#allocation3] sm:$0xff] %vm1287_vm1, %v1209_v57  ;;  %v11110_v59 = vpop.f32.mrb[2].mxu1  ;;  %v1020_v60 = vadd.f32 %v11084_v58, %v13980_v48  ;;  %v1014_v62 = vpop.f32.mrb[3].mxu0 }
 0x135   : > { %v1224_v61 = vadd.f32 %v11110_v59, %v13985_v49  ;;  %v1218_v63 = vpop.f32.mrb[3].mxu1  ;;  %v1015_v0 = vadd.f32 %v13980_v48, %v1014_v62 }
 0x136   : > { %v1219_v1 = vadd.f32 %v13985_v49, %v1218_v63  ;;  %1291 = vst.msk [vmem:[#allocation2 + $0x18] sm:$0xff] %vm1287_vm1, %v1020_v60 }
 0x137   : > { %1308 = vst.msk [vmem:[#allocation3 + $0x18] sm:$0xff] %vm1287_vm1, %v1224_v61  ;;  %1290 = vst.msk [vmem:[#allocation2 + $0x10] sm:$0xff] %vm1287_vm1, %v1015_v0  ;;  %v11087_v2 = vpop.f32.mrb[4].mxu0 }
 0x138   : > { %1307 = vst.msk [vmem:[#allocation3 + $0x10] sm:$0xff] %vm1287_vm1, %v1219_v1  ;;  %v11113_v3 = vpop.f32.mrb[4].mxu1  ;;  %v1030_v4 = vadd.f32 %v11087_v2, %v13980_v48  ;;  %v1024_v6 = vpop.f32.mrb[5].mxu0 }
 0x139   : > { %v1234_v5 = vadd.f32 %v11113_v3, %v13985_v49  ;;  %v1228_v7 = vpop.f32.mrb[5].mxu1  ;;  %v1025_v8 = vadd.f32 %v13980_v48, %v1024_v6 }
 0x13a   : > { %v1229_v9 = vadd.f32 %v13985_v49, %v1228_v7  ;;  %1293 = vst.msk [vmem:[#allocation2 + $0x28] sm:$0xff] %vm1287_vm1, %v1030_v4 }
 0x13b   : > { %1310 = vst.msk [vmem:[#allocation3 + $0x28] sm:$0xff] %vm1287_vm1, %v1234_v5  ;;  %1292 = vst.msk [vmem:[#allocation2 + $0x20] sm:$0xff] %vm1287_vm1, %v1025_v8  ;;  %v11090_v10 = vpop.f32.mrb[6].mxu0 }
 0x13c   : > { %1309 = vst.msk [vmem:[#allocation3 + $0x20] sm:$0xff] %vm1287_vm1, %v1229_v9  ;;  %v11116_v11 = vpop.f32.mrb[6].mxu1  ;;  %v1040_v12 = vadd.f32 %v11090_v10, %v13980_v48  ;;  %v1034_v14 = vpop.f32.mrb[7].mxu0 }
 0x13d   : > { %v1244_v13 = vadd.f32 %v11116_v11, %v13985_v49  ;;  %v1238_v15 = vpop.f32.mrb[7].mxu1  ;;  %v1035_v16 = vadd.f32 %v13980_v48, %v1034_v14 }
 0x13e   : > { %v1239_v17 = vadd.f32 %v13985_v49, %v1238_v15  ;;  %1295 = vst.msk [vmem:[#allocation2 + $0x38] sm:$0xff] %vm1287_vm1, %v1040_v12 }
 0x13f   : > { %1312 = vst.msk [vmem:[#allocation3 + $0x38] sm:$0xff] %vm1287_vm1, %v1244_v13  ;;  %1294 = vst.msk [vmem:[#allocation2 + $0x30] sm:$0xff] %vm1287_vm1, %v1035_v16  ;;  %v11093_v18 = vpop.f32.mrb[8].mxu0 }
 0x140   : > { %1311 = vst.msk [vmem:[#allocation3 + $0x30] sm:$0xff] %vm1287_vm1, %v1239_v17  ;;  %v11119_v19 = vpop.f32.mrb[8].mxu1  ;;  %v1050_v20 = vadd.f32 %v11093_v18, %v13980_v48  ;;  %v1044_v22 = vpop.f32.mrb[9].mxu0 }
 0x141   : > { %v1254_v21 = vadd.f32 %v11119_v19, %v13985_v49  ;;  %v1248_v23 = vpop.f32.mrb[9].mxu1  ;;  %v1045_v24 = vadd.f32 %v13980_v48, %v1044_v22 }
 0x142   : > { %v1249_v25 = vadd.f32 %v13985_v49, %v1248_v23  ;;  %1298 = vst.msk [vmem:[#allocation2 + $0x108] sm:$0xff] %vm1287_vm1, %v1050_v20 }
 0x143   : > { %1315 = vst.msk [vmem:[#allocation3 + $0x108] sm:$0xff] %vm1287_vm1, %v1254_v21  ;;  %1297 = vst.msk [vmem:[#allocation2 + $0x100] sm:$0xff] %vm1287_vm1, %v1045_v24  ;;  %v11096_v26 = vpop.f32.mrb[10].mxu0 }
 0x144   : > { %1314 = vst.msk [vmem:[#allocation3 + $0x100] sm:$0xff] %vm1287_vm1, %v1249_v25  ;;  %v11122_v27 = vpop.f32.mrb[10].mxu1  ;;  %v1060_v28 = vadd.f32 %v11096_v26, %v13980_v48  ;;  %v1054_v30 = vpop.f32.mrb[11].mxu0 }
 0x145   : > { %v1264_v29 = vadd.f32 %v11122_v27, %v13985_v49  ;;  %v1258_v31 = vpop.f32.mrb[11].mxu1  ;;  %v1055_v32 = vadd.f32 %v13980_v48, %v1054_v30 }
 0x146   : > { %v1259_v33 = vadd.f32 %v13985_v49, %v1258_v31  ;;  %1300 = vst.msk [vmem:[#allocation2 + $0x118] sm:$0xff] %vm1287_vm1, %v1060_v28 }
 0x147   : > { %1317 = vst.msk [vmem:[#allocation3 + $0x118] sm:$0xff] %vm1287_vm1, %v1264_v29  ;;  %1299 = vst.msk [vmem:[#allocation2 + $0x110] sm:$0xff] %vm1287_vm1, %v1055_v32  ;;  %v11099_v34 = vpop.f32.mrb[12].mxu0 }
 0x148   : > { %1316 = vst.msk [vmem:[#allocation3 + $0x110] sm:$0xff] %vm1287_vm1, %v1259_v33  ;;  %v11125_v35 = vpop.f32.mrb[12].mxu1  ;;  %v1070_v36 = vadd.f32 %v11099_v34, %v13980_v48  ;;  %v1064_v38 = vpop.f32.mrb[13].mxu0 }
 0x149   : > { %v1274_v37 = vadd.f32 %v11125_v35, %v13985_v49  ;;  %v1268_v39 = vpop.f32.mrb[13].mxu1  ;;  %v1065_v40 = vadd.f32 %v13980_v48, %v1064_v38 }
 0x14a   : > { %v1269_v41 = vadd.f32 %v13985_v49, %v1268_v39  ;;  %1302 = vst.msk [vmem:[#allocation2 + $0x128] sm:$0xff] %vm1287_vm1, %v1070_v36 }
 0x14b   : > { %1319 = vst.msk [vmem:[#allocation3 + $0x128] sm:$0xff] %vm1287_vm1, %v1274_v37  ;;  %1301 = vst.msk [vmem:[#allocation2 + $0x120] sm:$0xff] %vm1287_vm1, %v1065_v40  ;;  %v11102_v42 = vpop.f32.mrb[14].mxu0 }
 0x14c   : > { %1318 = vst.msk [vmem:[#allocation3 + $0x120] sm:$0xff] %vm1287_vm1, %v1269_v41  ;;  %v11128_v43 = vpop.f32.mrb[14].mxu1  ;;  %v1080_v44 = vadd.f32 %v11102_v42, %v13980_v48  ;;  %v1074_v46 = vpop.f32.mrb[15].mxu0 }
 0x14d   : > { %v1284_v45 = vadd.f32 %v11128_v43, %v13985_v49  ;;  %v1278_v47 = vpop.f32.mrb[15].mxu1  ;;  %v1075_v50 = vadd.f32 %v13980_v48, %v1074_v46 }
 0x14e   : > { %v1279_v51 = vadd.f32 %v13985_v49, %v1278_v47  ;;  %1304 = vst.msk [vmem:[#allocation2 + $0x138] sm:$0xff] %vm1287_vm1, %v1080_v44 }
 0x14f   : > { %1321 = vst.msk [vmem:[#allocation3 + $0x138] sm:$0xff] %vm1287_vm1, %v1284_v45  ;;  %1303 = vst.msk [vmem:[#allocation2 + $0x130] sm:$0xff] %vm1287_vm1, %v1075_v50  ;;  %v11133_v48 = vpop.f32.mrb[16].mxu0 }
 0x150   : > { %1320 = vst.msk [vmem:[#allocation3 + $0x130] sm:$0xff] %vm1287_vm1, %v1279_v51  ;;  %v11159_v49 = vpop.f32.mrb[16].mxu1  ;;  %v1407_v54 = vadd.f32 %v11133_v48, %v14050_v52  ;;  %v1401_v56 = vpop.f32.mrb[17].mxu0 }
 0x151   : > { %v1565_v55 = vadd.f32 %v11159_v49, %v14055_v53  ;;  %v1559_v57 = vpop.f32.mrb[17].mxu1  ;;  %v1402_v58 = vadd.f32 %v14050_v52, %v1401_v56 }
 0x152   : > { %v1560_v59 = vadd.f32 %v14055_v53, %v1559_v57  ;;  %1640 = vst.msk [vmem:[#allocation2 + $0x48] sm:$0xff] %vm1287_vm1, %v1407_v54  ;;  %v14124_v54 = vld [vmem:[%s16106_s6 + $0x2] ss:$0 sm:$0xff] }
 0x153   : > { %1658 = vst.msk [vmem:[#allocation3 + $0x48] sm:$0xff] %vm1287_vm1, %v1565_v55  ;;  %1639 = vst.msk [vmem:[#allocation2 + $0x40] sm:$0xff] %vm1287_vm1, %v1402_v58  ;;  %v11136_v60 = vpop.f32.mrb[18].mxu0  ;;  %v14129_v55 = vld [vmem:[%s16108_s8 + $0x2] ss:$0 sm:$0xff] }
 0x154   : > { %1657 = vst.msk [vmem:[#allocation3 + $0x40] sm:$0xff] %vm1287_vm1, %v1560_v59  ;;  %v11162_v61 = vpop.f32.mrb[18].mxu1  ;;  %v1417_v62 = vadd.f32 %v11136_v60, %v14050_v52  ;;  %v1411_v0 = vpop.f32.mrb[19].mxu0 }
 0x155   : > { %v1575_v63 = vadd.f32 %v11162_v61, %v14055_v53  ;;  %v1569_v1 = vpop.f32.mrb[19].mxu1  ;;  %v1412_v2 = vadd.f32 %v14050_v52, %v1411_v0 }
 0x156   : > { %v1570_v3 = vadd.f32 %v14055_v53, %v1569_v1  ;;  %1642 = vst.msk [vmem:[#allocation2 + $0x58] sm:$0xff] %vm1287_vm1, %v1417_v62 }
 0x157   : > { %1660 = vst.msk [vmem:[#allocation3 + $0x58] sm:$0xff] %vm1287_vm1, %v1575_v63  ;;  %1641 = vst.msk [vmem:[#allocation2 + $0x50] sm:$0xff] %vm1287_vm1, %v1412_v2  ;;  %v11139_v4 = vpop.f32.mrb[20].mxu0 }
 0x158   : > { %1659 = vst.msk [vmem:[#allocation3 + $0x50] sm:$0xff] %vm1287_vm1, %v1570_v3  ;;  %v11165_v5 = vpop.f32.mrb[20].mxu1  ;;  %v1427_v6 = vadd.f32 %v11139_v4, %v14050_v52  ;;  %v1421_v8 = vpop.f32.mrb[21].mxu0 }
 0x159   : > { %v1585_v7 = vadd.f32 %v11165_v5, %v14055_v53  ;;  %v1579_v9 = vpop.f32.mrb[21].mxu1  ;;  %v1422_v10 = vadd.f32 %v14050_v52, %v1421_v8 }
 0x15a   : > { %v1580_v11 = vadd.f32 %v14055_v53, %v1579_v9  ;;  %1644 = vst.msk [vmem:[#allocation2 + $0x68] sm:$0xff] %vm1287_vm1, %v1427_v6 }
 0x15b   : > { %1662 = vst.msk [vmem:[#allocation3 + $0x68] sm:$0xff] %vm1287_vm1, %v1585_v7  ;;  %1643 = vst.msk [vmem:[#allocation2 + $0x60] sm:$0xff] %vm1287_vm1, %v1422_v10  ;;  %v11142_v12 = vpop.f32.mrb[22].mxu0 }
 0x15c   : > { %1661 = vst.msk [vmem:[#allocation3 + $0x60] sm:$0xff] %vm1287_vm1, %v1580_v11  ;;  %v11168_v13 = vpop.f32.mrb[22].mxu1  ;;  %v1437_v14 = vadd.f32 %v11142_v12, %v14050_v52  ;;  %v1431_v16 = vpop.f32.mrb[23].mxu0 }
 0x15d   : > { %v1595_v15 = vadd.f32 %v11168_v13, %v14055_v53  ;;  %v1589_v17 = vpop.f32.mrb[23].mxu1  ;;  %v1432_v18 = vadd.f32 %v14050_v52, %v1431_v16 }
 0x15e   : > { %v1590_v19 = vadd.f32 %v14055_v53, %v1589_v17  ;;  %1646 = vst.msk [vmem:[#allocation2 + $0x78] sm:$0xff] %vm1287_vm1, %v1437_v14 }
 0x15f   : > { %1664 = vst.msk [vmem:[#allocation3 + $0x78] sm:$0xff] %vm1287_vm1, %v1595_v15  ;;  %1645 = vst.msk [vmem:[#allocation2 + $0x70] sm:$0xff] %vm1287_vm1, %v1432_v18  ;;  %v11145_v20 = vpop.f32.mrb[24].mxu0 }
 0x160   : > { %1663 = vst.msk [vmem:[#allocation3 + $0x70] sm:$0xff] %vm1287_vm1, %v1590_v19  ;;  %v11171_v21 = vpop.f32.mrb[24].mxu1  ;;  %v1447_v22 = vadd.f32 %v11145_v20, %v14050_v52  ;;  %v1441_v24 = vpop.f32.mrb[25].mxu0 }
 0x161   : > { %v1605_v23 = vadd.f32 %v11171_v21, %v14055_v53  ;;  %v1599_v25 = vpop.f32.mrb[25].mxu1  ;;  %v1442_v26 = vadd.f32 %v14050_v52, %v1441_v24 }
 0x162   : > { %v1600_v27 = vadd.f32 %v14055_v53, %v1599_v25  ;;  %1649 = vst.msk [vmem:[#allocation2 + $0x148] sm:$0xff] %vm1287_vm1, %v1447_v22 }
 0x163   : > { %1667 = vst.msk [vmem:[#allocation3 + $0x148] sm:$0xff] %vm1287_vm1, %v1605_v23  ;;  %1648 = vst.msk [vmem:[#allocation2 + $0x140] sm:$0xff] %vm1287_vm1, %v1442_v26  ;;  %v11148_v28 = vpop.f32.mrb[26].mxu0 }
 0x164   : > { %1666 = vst.msk [vmem:[#allocation3 + $0x140] sm:$0xff] %vm1287_vm1, %v1600_v27  ;;  %v11174_v29 = vpop.f32.mrb[26].mxu1  ;;  %v1457_v30 = vadd.f32 %v11148_v28, %v14050_v52  ;;  %v1451_v32 = vpop.f32.mrb[27].mxu0 }
 0x165   : > { %v1615_v31 = vadd.f32 %v11174_v29, %v14055_v53  ;;  %v1609_v33 = vpop.f32.mrb[27].mxu1  ;;  %v1452_v34 = vadd.f32 %v14050_v52, %v1451_v32 }
 0x166   : > { %v1610_v35 = vadd.f32 %v14055_v53, %v1609_v33  ;;  %1651 = vst.msk [vmem:[#allocation2 + $0x158] sm:$0xff] %vm1287_vm1, %v1457_v30 }
 0x167   : > { %1669 = vst.msk [vmem:[#allocation3 + $0x158] sm:$0xff] %vm1287_vm1, %v1615_v31  ;;  %1650 = vst.msk [vmem:[#allocation2 + $0x150] sm:$0xff] %vm1287_vm1, %v1452_v34  ;;  %v11151_v36 = vpop.f32.mrb[28].mxu0 }
 0x168   : > { %1668 = vst.msk [vmem:[#allocation3 + $0x150] sm:$0xff] %vm1287_vm1, %v1610_v35  ;;  %v11177_v37 = vpop.f32.mrb[28].mxu1  ;;  %v1467_v38 = vadd.f32 %v11151_v36, %v14050_v52  ;;  %v1461_v40 = vpop.f32.mrb[29].mxu0 }
 0x169   : > { %v1625_v39 = vadd.f32 %v11177_v37, %v14055_v53  ;;  %v1619_v41 = vpop.f32.mrb[29].mxu1  ;;  %v1462_v42 = vadd.f32 %v14050_v52, %v1461_v40 }
 0x16a   : > { %v1620_v43 = vadd.f32 %v14055_v53, %v1619_v41  ;;  %1653 = vst.msk [vmem:[#allocation2 + $0x168] sm:$0xff] %vm1287_vm1, %v1467_v38 }
 0x16b   : > { %1671 = vst.msk [vmem:[#allocation3 + $0x168] sm:$0xff] %vm1287_vm1, %v1625_v39  ;;  %1652 = vst.msk [vmem:[#allocation2 + $0x160] sm:$0xff] %vm1287_vm1, %v1462_v42  ;;  %v11154_v44 = vpop.f32.mrb[30].mxu0 }
 0x16c   : > { %1670 = vst.msk [vmem:[#allocation3 + $0x160] sm:$0xff] %vm1287_vm1, %v1620_v43  ;;  %v11180_v45 = vpop.f32.mrb[30].mxu1  ;;  %v1477_v46 = vadd.f32 %v11154_v44, %v14050_v52  ;;  %v1471_v50 = vpop.f32.mrb[31].mxu0 }
 0x16d   : > { %v1635_v47 = vadd.f32 %v11180_v45, %v14055_v53  ;;  %v1629_v51 = vpop.f32.mrb[31].mxu1  ;;  %v1472_v48 = vadd.f32 %v14050_v52, %v1471_v50 }
 0x16e   : > { %v1630_v49 = vadd.f32 %v14055_v53, %v1629_v51  ;;  %1655 = vst.msk [vmem:[#allocation2 + $0x178] sm:$0xff] %vm1287_vm1, %v1477_v46 }
 0x16f   : > { %1673 = vst.msk [vmem:[#allocation3 + $0x178] sm:$0xff] %vm1287_vm1, %v1635_v47  ;;  %1654 = vst.msk [vmem:[#allocation2 + $0x170] sm:$0xff] %vm1287_vm1, %v1472_v48  ;;  %v11185_v52 = vpop.f32.mrb[32].mxu0 }
 0x170   : > { %1672 = vst.msk [vmem:[#allocation3 + $0x170] sm:$0xff] %vm1287_vm1, %v1630_v49  ;;  %v11211_v53 = vpop.f32.mrb[32].mxu1  ;;  %v1759_v56 = vadd.f32 %v11185_v52, %v14124_v54  ;;  %v1753_v58 = vpop.f32.mrb[33].mxu0 }
 0x171   : > { %v1917_v57 = vadd.f32 %v11211_v53, %v14129_v55  ;;  %v1911_v59 = vpop.f32.mrb[33].mxu1  ;;  %v1754_v60 = vadd.f32 %v14124_v54, %v1753_v58 }
 0x172   : > { %v1912_v61 = vadd.f32 %v14129_v55, %v1911_v59  ;;  %1992 = vst.msk [vmem:[#allocation2 + $0x88] sm:$0xff] %vm1287_vm1, %v1759_v56  ;;  %v14198_v56 = vld [vmem:[%s16106_s6 + $0x3] ss:$0 sm:$0xff] }
 0x173   : > { %2010 = vst.msk [vmem:[#allocation3 + $0x88] sm:$0xff] %vm1287_vm1, %v1917_v57  ;;  %1991 = vst.msk [vmem:[#allocation2 + $0x80] sm:$0xff] %vm1287_vm1, %v1754_v60  ;;  %v11188_v62 = vpop.f32.mrb[34].mxu0  ;;  %v14203_v57 = vld [vmem:[%s16108_s8 + $0x3] ss:$0 sm:$0xff] }
 0x174   : > { %2009 = vst.msk [vmem:[#allocation3 + $0x80] sm:$0xff] %vm1287_vm1, %v1912_v61  ;;  %v11214_v63 = vpop.f32.mrb[34].mxu1  ;;  %v1769_v0 = vadd.f32 %v11188_v62, %v14124_v54  ;;  %v1763_v2 = vpop.f32.mrb[35].mxu0 }
 0x175   : > { %v1927_v1 = vadd.f32 %v11214_v63, %v14129_v55  ;;  %v1921_v3 = vpop.f32.mrb[35].mxu1  ;;  %v1764_v4 = vadd.f32 %v14124_v54, %v1763_v2 }
 0x176   : > { %v1922_v5 = vadd.f32 %v14129_v55, %v1921_v3  ;;  %1994 = vst.msk [vmem:[#allocation2 + $0x98] sm:$0xff] %vm1287_vm1, %v1769_v0 }
 0x177   : > { %2012 = vst.msk [vmem:[#allocation3 + $0x98] sm:$0xff] %vm1287_vm1, %v1927_v1  ;;  %1993 = vst.msk [vmem:[#allocation2 + $0x90] sm:$0xff] %vm1287_vm1, %v1764_v4  ;;  %v11191_v6 = vpop.f32.mrb[36].mxu0 }
 0x178   : > { %2011 = vst.msk [vmem:[#allocation3 + $0x90] sm:$0xff] %vm1287_vm1, %v1922_v5  ;;  %v11217_v7 = vpop.f32.mrb[36].mxu1  ;;  %v1779_v8 = vadd.f32 %v11191_v6, %v14124_v54  ;;  %v1773_v10 = vpop.f32.mrb[37].mxu0 }
 0x179   : > { %v1937_v9 = vadd.f32 %v11217_v7, %v14129_v55  ;;  %v1931_v11 = vpop.f32.mrb[37].mxu1  ;;  %v1774_v12 = vadd.f32 %v14124_v54, %v1773_v10 }
 0x17a   : > { %v1932_v13 = vadd.f32 %v14129_v55, %v1931_v11  ;;  %1996 = vst.msk [vmem:[#allocation2 + $0xa8] sm:$0xff] %vm1287_vm1, %v1779_v8 }
 0x17b   : > { %2014 = vst.msk [vmem:[#allocation3 + $0xa8] sm:$0xff] %vm1287_vm1, %v1937_v9  ;;  %1995 = vst.msk [vmem:[#allocation2 + $0xa0] sm:$0xff] %vm1287_vm1, %v1774_v12  ;;  %v11194_v14 = vpop.f32.mrb[38].mxu0 }
 0x17c   : > { %2013 = vst.msk [vmem:[#allocation3 + $0xa0] sm:$0xff] %vm1287_vm1, %v1932_v13  ;;  %v11220_v15 = vpop.f32.mrb[38].mxu1  ;;  %v1789_v16 = vadd.f32 %v11194_v14, %v14124_v54  ;;  %v1783_v18 = vpop.f32.mrb[39].mxu0 }
 0x17d   : > { %v1947_v17 = vadd.f32 %v11220_v15, %v14129_v55  ;;  %v1941_v19 = vpop.f32.mrb[39].mxu1  ;;  %v1784_v20 = vadd.f32 %v14124_v54, %v1783_v18 }
 0x17e   : > { %v1942_v21 = vadd.f32 %v14129_v55, %v1941_v19  ;;  %1998 = vst.msk [vmem:[#allocation2 + $0xb8] sm:$0xff] %vm1287_vm1, %v1789_v16 }
 0x17f   : > { %2016 = vst.msk [vmem:[#allocation3 + $0xb8] sm:$0xff] %vm1287_vm1, %v1947_v17  ;;  %1997 = vst.msk [vmem:[#allocation2 + $0xb0] sm:$0xff] %vm1287_vm1, %v1784_v20  ;;  %v11197_v22 = vpop.f32.mrb[40].mxu0 }
 0x180   : > { %2015 = vst.msk [vmem:[#allocation3 + $0xb0] sm:$0xff] %vm1287_vm1, %v1942_v21  ;;  %v11223_v23 = vpop.f32.mrb[40].mxu1  ;;  %v1799_v24 = vadd.f32 %v11197_v22, %v14124_v54  ;;  %v1793_v26 = vpop.f32.mrb[41].mxu0 }
 0x181   : > { %v1957_v25 = vadd.f32 %v11223_v23, %v14129_v55  ;;  %v1951_v27 = vpop.f32.mrb[41].mxu1  ;;  %v1794_v28 = vadd.f32 %v14124_v54, %v1793_v26 }
 0x182   : > { %v1952_v29 = vadd.f32 %v14129_v55, %v1951_v27  ;;  %2001 = vst.msk [vmem:[#allocation2 + $0x188] sm:$0xff] %vm1287_vm1, %v1799_v24 }
 0x183   : > { %2019 = vst.msk [vmem:[#allocation3 + $0x188] sm:$0xff] %vm1287_vm1, %v1957_v25  ;;  %2000 = vst.msk [vmem:[#allocation2 + $0x180] sm:$0xff] %vm1287_vm1, %v1794_v28  ;;  %v11200_v30 = vpop.f32.mrb[42].mxu0 }
 0x184   : > { %2018 = vst.msk [vmem:[#allocation3 + $0x180] sm:$0xff] %vm1287_vm1, %v1952_v29  ;;  %v11226_v31 = vpop.f32.mrb[42].mxu1  ;;  %v1809_v32 = vadd.f32 %v11200_v30, %v14124_v54  ;;  %v1803_v34 = vpop.f32.mrb[43].mxu0 }
 0x185   : > { %v1967_v33 = vadd.f32 %v11226_v31, %v14129_v55  ;;  %v1961_v35 = vpop.f32.mrb[43].mxu1  ;;  %v1804_v36 = vadd.f32 %v14124_v54, %v1803_v34 }
 0x186   : > { %v1962_v37 = vadd.f32 %v14129_v55, %v1961_v35  ;;  %2003 = vst.msk [vmem:[#allocation2 + $0x198] sm:$0xff] %vm1287_vm1, %v1809_v32 }
 0x187   : > { %2021 = vst.msk [vmem:[#allocation3 + $0x198] sm:$0xff] %vm1287_vm1, %v1967_v33  ;;  %2002 = vst.msk [vmem:[#allocation2 + $0x190] sm:$0xff] %vm1287_vm1, %v1804_v36  ;;  %v11203_v38 = vpop.f32.mrb[44].mxu0 }
 0x188   : > { %2020 = vst.msk [vmem:[#allocation3 + $0x190] sm:$0xff] %vm1287_vm1, %v1962_v37  ;;  %v11229_v39 = vpop.f32.mrb[44].mxu1  ;;  %v1819_v40 = vadd.f32 %v11203_v38, %v14124_v54  ;;  %v1813_v42 = vpop.f32.mrb[45].mxu0 }
 0x189   : > { %v1977_v41 = vadd.f32 %v11229_v39, %v14129_v55  ;;  %v1971_v43 = vpop.f32.mrb[45].mxu1  ;;  %v1814_v44 = vadd.f32 %v14124_v54, %v1813_v42 }
 0x18a   : > { %v1972_v45 = vadd.f32 %v14129_v55, %v1971_v43  ;;  %2005 = vst.msk [vmem:[#allocation2 + $0x1a8] sm:$0xff] %vm1287_vm1, %v1819_v40 }
 0x18b   : > { %2023 = vst.msk [vmem:[#allocation3 + $0x1a8] sm:$0xff] %vm1287_vm1, %v1977_v41  ;;  %2004 = vst.msk [vmem:[#allocation2 + $0x1a0] sm:$0xff] %vm1287_vm1, %v1814_v44  ;;  %v11206_v46 = vpop.f32.mrb[46].mxu0 }
 0x18c   : > { %2022 = vst.msk [vmem:[#allocation3 + $0x1a0] sm:$0xff] %vm1287_vm1, %v1972_v45  ;;  %v11232_v47 = vpop.f32.mrb[46].mxu1  ;;  %v1829_v50 = vadd.f32 %v11206_v46, %v14124_v54  ;;  %v1823_v48 = vpop.f32.mrb[47].mxu0 }
 0x18d   : > { %v1987_v51 = vadd.f32 %v11232_v47, %v14129_v55  ;;  %v1981_v49 = vpop.f32.mrb[47].mxu1  ;;  %v1824_v52 = vadd.f32 %v14124_v54, %v1823_v48 }
 0x18e   : > { %v1982_v53 = vadd.f32 %v14129_v55, %v1981_v49  ;;  %2007 = vst.msk [vmem:[#allocation2 + $0x1b8] sm:$0xff] %vm1287_vm1, %v1829_v50 }
 0x18f   : > { %2025 = vst.msk [vmem:[#allocation3 + $0x1b8] sm:$0xff] %vm1287_vm1, %v1987_v51  ;;  %2006 = vst.msk [vmem:[#allocation2 + $0x1b0] sm:$0xff] %vm1287_vm1, %v1824_v52  ;;  %v11237_v54 = vpop.f32.mrb[48].mxu0 }
 0x190   : > { %2024 = vst.msk [vmem:[#allocation3 + $0x1b0] sm:$0xff] %vm1287_vm1, %v1982_v53  ;;  %v11263_v55 = vpop.f32.mrb[48].mxu1  ;;  %v2111_v58 = vadd.f32 %v11237_v54, %v14198_v56  ;;  %v2105_v60 = vpop.f32.mrb[49].mxu0 }
 0x191   : > { %v2269_v59 = vadd.f32 %v11263_v55, %v14203_v57  ;;  %v2263_v61 = vpop.f32.mrb[49].mxu1  ;;  %v2106_v62 = vadd.f32 %v14198_v56, %v2105_v60 }
 0x192   : > { %v2264_v63 = vadd.f32 %v14203_v57, %v2263_v61  ;;  %2344 = vst.msk [vmem:[#allocation2 + $0xc8] sm:$0xff] %vm1287_vm1, %v2111_v58 }
 0x193   : > { %2362 = vst.msk [vmem:[#allocation3 + $0xc8] sm:$0xff] %vm1287_vm1, %v2269_v59  ;;  %2343 = vst.msk [vmem:[#allocation2 + $0xc0] sm:$0xff] %vm1287_vm1, %v2106_v62  ;;  %v11240_v0 = vpop.f32.mrb[50].mxu0 }
 0x194   : > { %2361 = vst.msk [vmem:[#allocation3 + $0xc0] sm:$0xff] %vm1287_vm1, %v2264_v63  ;;  %v11266_v1 = vpop.f32.mrb[50].mxu1  ;;  %v2121_v2 = vadd.f32 %v11240_v0, %v14198_v56  ;;  %v2115_v4 = vpop.f32.mrb[51].mxu0 }
 0x195   : > { %v2279_v3 = vadd.f32 %v11266_v1, %v14203_v57  ;;  %v2273_v5 = vpop.f32.mrb[51].mxu1  ;;  %v2116_v6 = vadd.f32 %v14198_v56, %v2115_v4 }
 0x196   : > { %v2274_v7 = vadd.f32 %v14203_v57, %v2273_v5  ;;  %2346 = vst.msk [vmem:[#allocation2 + $0xd8] sm:$0xff] %vm1287_vm1, %v2121_v2 }
 0x197   : > { %2364 = vst.msk [vmem:[#allocation3 + $0xd8] sm:$0xff] %vm1287_vm1, %v2279_v3  ;;  %2345 = vst.msk [vmem:[#allocation2 + $0xd0] sm:$0xff] %vm1287_vm1, %v2116_v6  ;;  %v11243_v8 = vpop.f32.mrb[52].mxu0 }
 0x198   : > { %2363 = vst.msk [vmem:[#allocation3 + $0xd0] sm:$0xff] %vm1287_vm1, %v2274_v7  ;;  %v11269_v9 = vpop.f32.mrb[52].mxu1  ;;  %v2131_v10 = vadd.f32 %v11243_v8, %v14198_v56  ;;  %v2125_v12 = vpop.f32.mrb[53].mxu0 }
 0x199   : > { %v2289_v11 = vadd.f32 %v11269_v9, %v14203_v57  ;;  %v2283_v13 = vpop.f32.mrb[53].mxu1  ;;  %v2126_v14 = vadd.f32 %v14198_v56, %v2125_v12 }
 0x19a   : > { %v2284_v15 = vadd.f32 %v14203_v57, %v2283_v13  ;;  %2348 = vst.msk [vmem:[#allocation2 + $0xe8] sm:$0xff] %vm1287_vm1, %v2131_v10 }
 0x19b   : > { %2366 = vst.msk [vmem:[#allocation3 + $0xe8] sm:$0xff] %vm1287_vm1, %v2289_v11  ;;  %2347 = vst.msk [vmem:[#allocation2 + $0xe0] sm:$0xff] %vm1287_vm1, %v2126_v14  ;;  %v11246_v16 = vpop.f32.mrb[54].mxu0 }
 0x19c   : > { %2365 = vst.msk [vmem:[#allocation3 + $0xe0] sm:$0xff] %vm1287_vm1, %v2284_v15  ;;  %v11272_v17 = vpop.f32.mrb[54].mxu1  ;;  %v2141_v18 = vadd.f32 %v11246_v16, %v14198_v56  ;;  %v2135_v20 = vpop.f32.mrb[55].mxu0 }
 0x19d   : > { %v2299_v19 = vadd.f32 %v11272_v17, %v14203_v57  ;;  %v2293_v21 = vpop.f32.mrb[55].mxu1  ;;  %v2136_v22 = vadd.f32 %v14198_v56, %v2135_v20 }
 0x19e   : > { %v2294_v23 = vadd.f32 %v14203_v57, %v2293_v21  ;;  %2350 = vst.msk [vmem:[#allocation2 + $0xf8] sm:$0xff] %vm1287_vm1, %v2141_v18 }
 0x19f   : > { %2368 = vst.msk [vmem:[#allocation3 + $0xf8] sm:$0xff] %vm1287_vm1, %v2299_v19  ;;  %2349 = vst.msk [vmem:[#allocation2 + $0xf0] sm:$0xff] %vm1287_vm1, %v2136_v22  ;;  %v11249_v24 = vpop.f32.mrb[56].mxu0 }
 0x1a0   : > { %2367 = vst.msk [vmem:[#allocation3 + $0xf0] sm:$0xff] %vm1287_vm1, %v2294_v23  ;;  %v11275_v25 = vpop.f32.mrb[56].mxu1  ;;  %v2151_v26 = vadd.f32 %v11249_v24, %v14198_v56  ;;  %v2145_v28 = vpop.f32.mrb[57].mxu0 }
 0x1a1   : > { %v2309_v27 = vadd.f32 %v11275_v25, %v14203_v57  ;;  %v2303_v29 = vpop.f32.mrb[57].mxu1  ;;  %v2146_v30 = vadd.f32 %v14198_v56, %v2145_v28 }
 0x1a2   : > { %v2304_v31 = vadd.f32 %v14203_v57, %v2303_v29  ;;  %2353 = vst.msk [vmem:[#allocation2 + $0x1c8] sm:$0xff] %vm1287_vm1, %v2151_v26 }
 0x1a3   : > { %2371 = vst.msk [vmem:[#allocation3 + $0x1c8] sm:$0xff] %vm1287_vm1, %v2309_v27  ;;  %2352 = vst.msk [vmem:[#allocation2 + $0x1c0] sm:$0xff] %vm1287_vm1, %v2146_v30  ;;  %v11252_v32 = vpop.f32.mrb[58].mxu0 }
 0x1a4   : > { %2370 = vst.msk [vmem:[#allocation3 + $0x1c0] sm:$0xff] %vm1287_vm1, %v2304_v31  ;;  %v11278_v33 = vpop.f32.mrb[58].mxu1  ;;  %v2161_v34 = vadd.f32 %v11252_v32, %v14198_v56  ;;  %v2155_v36 = vpop.f32.mrb[59].mxu0 }
 0x1a5   : > { %v2319_v35 = vadd.f32 %v11278_v33, %v14203_v57  ;;  %v2313_v37 = vpop.f32.mrb[59].mxu1  ;;  %v2156_v38 = vadd.f32 %v14198_v56, %v2155_v36 }
 0x1a6   : > { %v2314_v39 = vadd.f32 %v14203_v57, %v2313_v37  ;;  %2355 = vst.msk [vmem:[#allocation2 + $0x1d8] sm:$0xff] %vm1287_vm1, %v2161_v34 }
 0x1a7   : > { %2373 = vst.msk [vmem:[#allocation3 + $0x1d8] sm:$0xff] %vm1287_vm1, %v2319_v35  ;;  %2354 = vst.msk [vmem:[#allocation2 + $0x1d0] sm:$0xff] %vm1287_vm1, %v2156_v38  ;;  %v11255_v40 = vpop.f32.mrb[60].mxu0 }
 0x1a8   : > { %2372 = vst.msk [vmem:[#allocation3 + $0x1d0] sm:$0xff] %vm1287_vm1, %v2314_v39  ;;  %v11281_v41 = vpop.f32.mrb[60].mxu1  ;;  %v2171_v42 = vadd.f32 %v11255_v40, %v14198_v56  ;;  %v2165_v44 = vpop.f32.mrb[61].mxu0 }
 0x1a9   : > { %v2329_v43 = vadd.f32 %v11281_v41, %v14203_v57  ;;  %v2323_v45 = vpop.f32.mrb[61].mxu1  ;;  %v2166_v46 = vadd.f32 %v14198_v56, %v2165_v44 }
 0x1aa   : > { %v2324_v47 = vadd.f32 %v14203_v57, %v2323_v45  ;;  %2357 = vst.msk [vmem:[#allocation2 + $0x1e8] sm:$0xff] %vm1287_vm1, %v2171_v42 }
 0x1ab   : > { %2375 = vst.msk [vmem:[#allocation3 + $0x1e8] sm:$0xff] %vm1287_vm1, %v2329_v43  ;;  %2356 = vst.msk [vmem:[#allocation2 + $0x1e0] sm:$0xff] %vm1287_vm1, %v2166_v46  ;;  %v11258_v50 = vpop.f32.mrb[62].mxu0 }
 0x1ac   : > { %2374 = vst.msk [vmem:[#allocation3 + $0x1e0] sm:$0xff] %vm1287_vm1, %v2324_v47  ;;  %v11284_v51 = vpop.f32.mrb[62].mxu1  ;;  %v2181_v48 = vadd.f32 %v11258_v50, %v14198_v56  ;;  %v2175_v52 = vpop.f32.mrb[63].mxu0 }
 0x1ad   : > { %v2339_v49 = vadd.f32 %v11284_v51, %v14203_v57  ;;  %v2333_v53 = vpop.f32.mrb[63].mxu1  ;;  %v2176_v54 = vadd.f32 %v14198_v56, %v2175_v52 }
 0x1ae   : > { %v2334_v55 = vadd.f32 %v14203_v57, %v2333_v53  ;;  %2359 = vst.msk [vmem:[#allocation2 + $0x1f8] sm:$0xff] %vm1287_vm1, %v2181_v48 }
 0x1af   : > { %2377 = vst.msk [vmem:[#allocation3 + $0x1f8] sm:$0xff] %vm1287_vm1, %v2339_v49  ;;  %2358 = vst.msk [vmem:[#allocation2 + $0x1f0] sm:$0xff] %vm1287_vm1, %v2176_v54 }
 0x1b0   : > { %2376 = vst.msk [vmem:[#allocation3 + $0x1f0] sm:$0xff] %vm1287_vm1, %v2334_v55 }
 0x1b1 PF: > { %s16173_s19 = sld [smem:[#allocation41_spill]]  ;;  %vm2394_vm2 = vcmask 261120   ;;  %v2378_v57 = vld [vmem:[%s13574_s0] sm:$0xff]  ;;  %v2379_v59 = vld [vmem:[%s13574_s0 + $0x8] sm:$0xff]  ;;  %vm2527_vm3 = vcmask 64512   ;;  %v2380_v62 = vld [vmem:[%s13574_s0 + $0x10] sm:$0xff] }
 0x1b2   : > { %11287 = vmatprep.mubr.msk.f32.mxu0 %vm2394_vm2, %v2378_v57  ;;  %11301 = vmatprep.mubr.msk.f32.mxu1 %vm2394_vm2, %v2378_v57  ;;  %v2959_v63 = vld [vmem:[#allocation2] sm:$0xff]  ;;  %v2960_v0 = vld [vmem:[#allocation2 + $0x8] sm:$0xff]  ;;  %vm14300_vm4 = vmpackc.low %vm2527_vm3, %vm2527_vm3  ;;  %s16177_s1 = sld [smem:[#allocation42_spill]]  ;;  %vm3531_vm7 = vcmask 523264   ;;  %s16187_s28 = sld [smem:[#allocation43_spill]] }
 0x1b3   : > { %v12173_v1 = vpack.c.bf16 %v2960_v0, %v2959_v63  ;;  %v2967_v3 = vld [vmem:[#allocation2 + $0x40] sm:$0xff]  ;;  %v2968_v4 = vld [vmem:[#allocation2 + $0x48] sm:$0xff]  ;;  %v2381_v5 = vld [vmem:[%s13574_s0 + $0x18] sm:$0xff]  ;;  %s16197_s2 = sld [smem:[#allocation44_spill]]  ;;  %s16198_s15 = sld [smem:[#allocation30_spill]] }
 0x1b4   : > { %v12197_v6 = vpack.c.bf16 %v2968_v4, %v2967_v3  ;;  %v2382_v7 = vld [vmem:[%s13574_s0 + $0x20] sm:$0xff]  ;;  %v2383_v8 = vld [vmem:[%s13574_s0 + $0x28] sm:$0xff]  ;;  %v2384_v9 = vld [vmem:[%s13574_s0 + $0x30] sm:$0xff]  ;;  %s16200_s22 = sld [smem:[#allocation36_spill]] }
 0x1b5   : > { %v2385_v10 = vld [vmem:[%s13574_s0 + $0x38] sm:$0xff]  ;;  %v2961_v11 = vld [vmem:[#allocation2 + $0x10] sm:$0xff]  ;;  %v2963_v17 = vld [vmem:[#allocation2 + $0x20] sm:$0xff] }
 0x1b6   : > { %v2962_v12 = vld [vmem:[#allocation2 + $0x18] sm:$0xff]  ;;  %v2969_v13 = vld [vmem:[#allocation2 + $0x50] sm:$0xff]  ;;  %v2964_v18 = vld [vmem:[#allocation2 + $0x28] sm:$0xff] }
 0x1b7   : > { %s16174_s23 = smov %s16173_s19  ;;  %v2386_v58 = vld [vmem:[%s16173_s19] sm:$0xff]  ;;  %v2970_v14 = vld [vmem:[#allocation2 + $0x58] sm:$0xff]  ;;  %v12179_v15 = vpack.c.bf16 %v2962_v12, %v2961_v11  ;;  %v2972_v20 = vld [vmem:[#allocation2 + $0x68] sm:$0xff]  ;;  %v12185_v21 = vpack.c.bf16 %v2964_v18, %v2963_v17 }
 0x1b8   : > { %v10064_v56 = vld [vmem:[%s16174_s23 + $0x8] sm:$0xff]  ;;  %11285 = vmatprep.subr.msk.mxu0 %vm2394_vm2, %v2386_v58  ;;  %v10076_v60 = vld [vmem:[%s16174_s23 + $0x10] sm:$0xff]  ;;  %v10088_v61 = vld [vmem:[%s16174_s23 + $0x18] sm:$0xff]  ;;  %v12203_v16 = vpack.c.bf16 %v2970_v14, %v2969_v13  ;;  %s16178_s9 = smov %s16177_s1  ;;  %s16188_s17 = smov %s16187_s28 }
 0x1b9   : > { %11299 = vmatprep.subr.msk.mxu1 %vm2394_vm2, %v10064_v56  ;;  %11286 = vmatpush3.xpose.msk.msra.mxu0 %vm2394_vm2, %v2386_v58  ;;  %v2971_v19 = vld [vmem:[#allocation2 + $0x60] sm:$0xff]  ;;  %v2965_v23 = vld [vmem:[#allocation2 + $0x30] sm:$0xff]  ;;  %v2966_v24 = vld [vmem:[#allocation2 + $0x38] sm:$0xff]  ;;  %s16199_s30 = sadd.s32 4294967295, %s16198_s15  }
 0x1ba   : > { %11300 = vmatpush3.xpose.msk.msra.mxu1 %vm2394_vm2, %v10064_v56  ;;  %11313 = vmatprep.subr.msk.mxu0 %vm2394_vm2, %v10076_v60  ;;  %v12209_v22 = vpack.c.bf16 %v2972_v20, %v2971_v19  ;;  %v12191_v25 = vpack.c.bf16 %v2966_v24, %v2965_v23  ;;  %v2973_v26 = vld [vmem:[#allocation2 + $0x70] sm:$0xff]  ;;  %v2974_v27 = vld [vmem:[#allocation2 + $0x78] sm:$0xff]  ;;  %v2975_v29 = vld [vmem:[#allocation2 + $0x80] sm:$0xff]  ;;  %s9340_s25 = scalar_lea.sflag [#allocation7], %s16200_s22 }
 0x1bb   : > { %11327 = vmatprep.subr.msk.mxu1 %vm2394_vm2, %v10088_v61  ;;  %v12215_v28 = vpack.c.bf16 %v2974_v27, %v2973_v26  ;;  %v2976_v30 = vld [vmem:[#allocation2 + $0x88] sm:$0xff]  ;;  %v2983_v32 = vld [vmem:[#allocation2 + $0xc0] sm:$0xff]  ;;  %v2977_v53 = vld [vmem:[#allocation2 + $0x90] sm:$0xff] }
 0x1bc   : > { %11288 = vmatmul.mubr.msk.f32.vlgmr.msra.gmra.mrb[0].mxu0 %vm2394_vm2, %v2379_v59  ;;  %v14371_v31 = vpack.c.bf16 %v2976_v30, %v2975_v29  ;;  %v2984_v33 = vld [vmem:[#allocation2 + $0xc8] sm:$0xff]  ;;  %v14381_v35 = vld [vmem:[%s16177_s1] ss:$0 sm:$0xff]  ;;  %v14386_v36 = vld [vmem:[%s16178_s9 + $0x1] ss:$0 sm:$0xff] }
 0x1bd   : > { %11302 = vmatmul.mubr.msk.f32.vlgmr.msra.gmra.mrb[0].mxu1 %vm2394_vm2, %v2379_v59  ;;  %11290 = vmatprep.mubr.msk.f32.mxu0 %vm2394_vm2, %v2380_v62  ;;  %v12245_v34 = vpack.c.bf16 %v2984_v33, %v2983_v32  ;;  %v2978_v54 = vld [vmem:[#allocation2 + $0x98] sm:$0xff]  ;;  %v2985_v55 = vld [vmem:[#allocation2 + $0xd0] sm:$0xff]  ;;  %v14421_v13 = vld [vmem:[%s16178_s9 + $0x2] ss:$0 sm:$0xff] }
 0x1be   : > { %11304 = vmatprep.mubr.msk.f32.mxu1 %vm2394_vm2, %v2380_v62  ;;  %11314 = vmatpush3.xpose.msk.msra.mxu0 %vm2394_vm2, %v10076_v60  ;;  %v2986_v58 = vld [vmem:[#allocation2 + $0xd8] sm:$0xff]  ;;  %v14433_v19 = vld [vmem:[%s16178_s9 + $0x3] ss:$0 sm:$0xff]  ;;  %v2980_v23 = vld [vmem:[#allocation2 + $0xa8] sm:$0xff] }
 0x1bf   : > { %11328 = vmatpush3.xpose.msk.msra.mxu1 %vm2394_vm2, %v10088_v61  ;;  %12175 = vmatprep.subr.msk.bf16.mxu0 %vm14300_vm4, %v12173_v1  ;;  %v2987_v24 = vld [vmem:[#allocation2 + $0xe0] sm:$0xff] }
 0x1c0   : > { %12199 = vmatprep.subr.msk.bf16.mxu1 %vm14300_vm4, %v12197_v6  ;;  %11291 = vmatmul.mubr.msk.f32.gmra.mrb[2].mxu0 %vm2394_vm2, %v2381_v5 }
 0x1c1   : > { %11305 = vmatmul.mubr.msk.f32.gmra.mrb[2].mxu1 %vm2394_vm2, %v2381_v5  ;;  %11293 = vmatprep.mubr.msk.f32.mxu0 %vm2394_vm2, %v2382_v7 }
 0x1c2   : > { %11307 = vmatprep.mubr.msk.f32.mxu1 %vm2394_vm2, %v2382_v7 }
 0x1c4   : > { %11294 = vmatmul.mubr.msk.f32.gmra.mrb[4].mxu0 %vm2394_vm2, %v2383_v8 }
 0x1c5   : > { %11308 = vmatmul.mubr.msk.f32.gmra.mrb[4].mxu1 %vm2394_vm2, %v2383_v8  ;;  %11296 = vmatprep.mubr.msk.f32.mxu0 %vm2394_vm2, %v2384_v9 }
 0x1c6   : > { %11310 = vmatprep.mubr.msk.f32.mxu1 %vm2394_vm2, %v2384_v9 }
 0x1c8   : > { %11297 = vmatmul.mubr.msk.f32.gmra.mrb[6].mxu0 %vm2394_vm2, %v2385_v10 }
 0x1c9   : > { %11311 = vmatmul.mubr.msk.f32.gmra.mrb[6].mxu1 %vm2394_vm2, %v2385_v10  ;;  %11315 = vmatprep.mubr.msk.f32.mxu0 %vm2394_vm2, %v2378_v57 }
 0x1ca   : > { %11329 = vmatprep.mubr.msk.f32.mxu1 %vm2394_vm2, %v2378_v57 }
 0x1cc   : > { %11316 = vmatmul.mubr.msk.f32.vlgmr.msra.gmra.mrb[8].mxu0 %vm2394_vm2, %v2379_v59 }
 0x1cd   : > { %11330 = vmatmul.mubr.msk.f32.vlgmr.msra.gmra.mrb[8].mxu1 %vm2394_vm2, %v2379_v59  ;;  %11318 = vmatprep.mubr.msk.f32.mxu0 %vm2394_vm2, %v2380_v62 }
 0x1ce   : > { %11332 = vmatprep.mubr.msk.f32.mxu1 %vm2394_vm2, %v2380_v62  ;;  %12178 = vmatpush3.bf16.xpose.msk.msra.mxu0 %vm14300_vm4, %v12173_v1 }
 0x1cf   : > { %12202 = vmatpush3.bf16.xpose.msk.msra.mxu1 %vm14300_vm4, %v12197_v6  ;;  %12181 = vmatprep.subr.msk.bf16.mxu0 %vm14300_vm4, %v12179_v15  ;;  %v12251_v6 = vpack.c.bf16 %v2986_v58, %v2985_v55 }
 0x1d0   : > { %12205 = vmatprep.subr.msk.bf16.mxu1 %vm14300_vm4, %v12203_v16  ;;  %11319 = vmatmul.mubr.msk.f32.gmra.mrb[10].mxu0 %vm2394_vm2, %v2381_v5 }
 0x1d1   : > { %11333 = vmatmul.mubr.msk.f32.gmra.mrb[10].mxu1 %vm2394_vm2, %v2381_v5  ;;  %11321 = vmatprep.mubr.msk.f32.mxu0 %vm2394_vm2, %v2382_v7  ;;  %v12227_v5 = vpack.c.bf16 %v2978_v54, %v2977_v53 }
 0x1d2   : > { %11335 = vmatprep.mubr.msk.f32.mxu1 %vm2394_vm2, %v2382_v7 }
 0x1d4   : > { %11322 = vmatmul.mubr.msk.f32.gmra.mrb[12].mxu0 %vm2394_vm2, %v2383_v8 }
 0x1d5   : > { %11336 = vmatmul.mubr.msk.f32.gmra.mrb[12].mxu1 %vm2394_vm2, %v2383_v8  ;;  %11324 = vmatprep.mubr.msk.f32.mxu0 %vm2394_vm2, %v2384_v9 }
 0x1d6   : > { %11338 = vmatprep.mubr.msk.f32.mxu1 %vm2394_vm2, %v2384_v9  ;;  %12184 = vmatpush3.bf16.xpose.msk.msra.mxu0 %vm14300_vm4, %v12179_v15 }
 0x1d7   : > { %12208 = vmatpush3.bf16.xpose.msk.msra.mxu1 %vm14300_vm4, %v12203_v16  ;;  %12187 = vmatprep.subr.msk.bf16.mxu0 %vm14300_vm4, %v12185_v21 }
 0x1d8   : > { %12211 = vmatprep.subr.msk.bf16.mxu1 %vm14300_vm4, %v12209_v22  ;;  %11325 = vmatmul.mubr.msk.f32.gmra.mrb[14].mxu0 %vm2394_vm2, %v2385_v10 }
 0x1d9   : > { %11339 = vmatmul.mubr.msk.f32.gmra.mrb[14].mxu1 %vm2394_vm2, %v2385_v10 }
 0x1de   : > { %12190 = vmatpush3.bf16.xpose.msk.msra.mxu0 %vm14300_vm4, %v12185_v21 }
 0x1df   : > { %12214 = vmatpush3.bf16.xpose.msk.msra.mxu1 %vm14300_vm4, %v12209_v22  ;;  %12193 = vmatprep.subr.msk.bf16.mxu0 %vm14300_vm4, %v12191_v25  ;;  %v2979_v22 = vld [vmem:[#allocation2 + $0xa0] sm:$0xff] }
 0x1e0   : > { %12217 = vmatprep.subr.msk.bf16.mxu1 %vm14300_vm4, %v12215_v28 }
 0x1e6   : > { %12196 = vmatpush3.bf16.xpose.msk.msra.mxu0 %vm14300_vm4, %v12191_v25  ;;  %v2988_v25 = vld [vmem:[#allocation2 + $0xe8] sm:$0xff] }
 0x1e7   : > { %12220 = vmatpush3.bf16.xpose.msk.msra.mxu1 %vm14300_vm4, %v12215_v28  ;;  %12223 = vmatprep.subr.msk.bf16.mxu0 %vm14300_vm4, %v14371_v31 }
 0x1e8   : > { %12247 = vmatprep.subr.msk.bf16.mxu1 %vm14300_vm4, %v12245_v34 }
 0x28f   : > { %v11289_v37 = vpop.f32.mrb[0].mxu0 }
 0x290   : > { %v11303_v38 = vpop.f32.mrb[0].mxu1  ;;  %v2494_v39 = vadd.f32 %v11289_v37, %v14381_v35  ;;  %v2488_v41 = vpop.f32.mrb[1].mxu0 }
 0x291   : > { %v2622_v40 = vadd.f32 %v11303_v38, %v14386_v36  ;;  %v2616_v42 = vpop.f32.mrb[1].mxu1  ;;  %v2489_v43 = vadd.f32 %v14381_v35, %v2488_v41 }
 0x292   : > { %v2617_v44 = vadd.f32 %v14386_v36, %v2616_v42  ;;  %2529 = vst.msk [vmem:[#allocation4 + $0x8] sm:$0xff] %vm2527_vm3, %v2494_v39 }
 0x293   : > { %2657 = vst.msk [vmem:[#allocation4 + $0x28] sm:$0xff] %vm2527_vm3, %v2622_v40  ;;  %2528 = vst.msk [vmem:[#allocation4] sm:$0xff] %vm2527_vm3, %v2489_v43  ;;  %v11292_v45 = vpop.f32.mrb[2].mxu0 }
 0x294   : > { %2656 = vst.msk [vmem:[#allocation4 + $0x20] sm:$0xff] %vm2527_vm3, %v2617_v44  ;;  %v11306_v46 = vpop.f32.mrb[2].mxu1  ;;  %v2504_v47 = vadd.f32 %v11292_v45, %v14381_v35  ;;  %v2498_v50 = vpop.f32.mrb[3].mxu0  ;;  %v2981_v44 = vld [vmem:[#allocation2 + $0xb0] sm:$0xff]  ;;  %v2982_v45 = vld [vmem:[#allocation2 + $0xb8] sm:$0xff] }
 0x295   : > { %v2632_v51 = vadd.f32 %v11306_v46, %v14386_v36  ;;  %v2626_v48 = vpop.f32.mrb[3].mxu1  ;;  %v2499_v49 = vadd.f32 %v14381_v35, %v2498_v50  ;;  %v2989_v46 = vld [vmem:[#allocation2 + $0xf0] sm:$0xff]  ;;  %v12239_v58 = vpack.c.bf16 %v2982_v45, %v2981_v44 }
 0x296   : > { %v2627_v52 = vadd.f32 %v14386_v36, %v2626_v48  ;;  %2531 = vst.msk [vmem:[#allocation4 + $0x18] sm:$0xff] %vm2527_vm3, %v2504_v47  ;;  %v2990_v47 = vld [vmem:[#allocation2 + $0xf8] sm:$0xff] }
 0x297   : > { %2659 = vst.msk [vmem:[#allocation4 + $0x38] sm:$0xff] %vm2527_vm3, %v2632_v51  ;;  %2530 = vst.msk [vmem:[#allocation4 + $0x10] sm:$0xff] %vm2527_vm3, %v2499_v49  ;;  %v11295_v56 = vpop.f32.mrb[4].mxu0 }
 0x298   : > { %2658 = vst.msk [vmem:[#allocation4 + $0x30] sm:$0xff] %vm2527_vm3, %v2627_v52  ;;  %v11309_v57 = vpop.f32.mrb[4].mxu1  ;;  %v2514_v59 = vadd.f32 %v11295_v56, %v14381_v35  ;;  %v2508_v60 = vpop.f32.mrb[5].mxu0  ;;  %v12263_v56 = vpack.c.bf16 %v2990_v47, %v2989_v46 }
 0x299   : > { %v2642_v61 = vadd.f32 %v11309_v57, %v14386_v36  ;;  %v2636_v62 = vpop.f32.mrb[5].mxu1  ;;  %v2509_v0 = vadd.f32 %v14381_v35, %v2508_v60  ;;  %v2944_v7 = vld [vmem:[#allocation4 + $0x8] sm:$0xff] }
 0x29a   : > { %v2948_v63 = vld [vmem:[#allocation4 + $0x28] sm:$0xff]  ;;  %v2637_v1 = vadd.f32 %v14386_v36, %v2636_v62  ;;  %v2943_v3 = vld [vmem:[#allocation4] sm:$0xff]  ;;  %2534 = vst.msk [vmem:[#allocation4 + $0x88] sm:$0xff] %vm2527_vm3, %v2514_v59 }
 0x29b   : > { %v2947_v4 = vld [vmem:[#allocation4 + $0x20] sm:$0xff]  ;;  %2662 = vst.msk [vmem:[#allocation4 + $0xa8] sm:$0xff] %vm2527_vm3, %v2642_v61  ;;  %11357 = vmatprep.mubr.msk.f32.mxu0 %vm2527_vm3, %v2943_v3  ;;  %2533 = vst.msk [vmem:[#allocation4 + $0x80] sm:$0xff] %vm2527_vm3, %v2509_v0  ;;  %v11298_v8 = vpop.f32.mrb[6].mxu0 }
 0x29c   : > { %11379 = vmatprep.mubr.msk.f32.mxu1 %vm2527_vm3, %v2947_v4  ;;  %2661 = vst.msk [vmem:[#allocation4 + $0xa0] sm:$0xff] %vm2527_vm3, %v2637_v1  ;;  %v11312_v9 = vpop.f32.mrb[6].mxu1  ;;  %11358 = vmatmul.mubr.msk.f32.vlgmr.msra.gmra.mrb[16].mxu0 %vm2527_vm3, %v2944_v7  ;;  %v2524_v10 = vadd.f32 %v11298_v8, %v14381_v35  ;;  %v2518_v11 = vpop.f32.mrb[7].mxu0 }
 0x29d   : > { %11380 = vmatmul.mubr.msk.f32.vlgmr.msra.gmra.mrb[16].mxu1 %vm2527_vm3, %v2948_v63  ;;  %v2652_v12 = vadd.f32 %v11312_v9, %v14386_v36  ;;  %v2646_v14 = vpop.f32.mrb[7].mxu1  ;;  %12226 = vmatpush3.bf16.xpose.msk.msra.mxu0 %vm14300_vm4, %v14371_v31  ;;  %v2946_v15 = vld [vmem:[#allocation4 + $0x18] sm:$0xff]  ;;  %v2519_v17 = vadd.f32 %v14381_v35, %v2518_v11  ;;  %v12257_v35 = vpack.c.bf16 %v2988_v25, %v2987_v24  ;;  %v2921_v11 = vld [vmem:[%s13556_s11] sm:$0xff] }
 0x29e   : > { %12250 = vmatpush3.bf16.xpose.msk.msra.mxu1 %vm14300_vm4, %v12245_v34  ;;  %v2950_v16 = vld [vmem:[#allocation4 + $0x38] sm:$0xff]  ;;  %v2647_v18 = vadd.f32 %v14386_v36, %v2646_v14  ;;  %v2945_v20 = vld [vmem:[#allocation4 + $0x10] sm:$0xff]  ;;  %12229 = vmatprep.subr.msk.bf16.mxu0 %vm14300_vm4, %v12227_v5  ;;  %2536 = vst.msk [vmem:[#allocation4 + $0x98] sm:$0xff] %vm2527_vm3, %v2524_v10  ;;  %v12233_v34 = vpack.c.bf16 %v2980_v23, %v2979_v22  ;;  %v6162_v25 = vld [vmem:[#allocation3 + $0x100] sm:$0xff] }
 0x29f   : > { %12253 = vmatprep.subr.msk.bf16.mxu1 %vm14300_vm4, %v12251_v6  ;;  %v2949_v21 = vld [vmem:[#allocation4 + $0x30] sm:$0xff]  ;;  %2664 = vst.msk [vmem:[#allocation4 + $0xb8] sm:$0xff] %vm2527_vm3, %v2652_v12  ;;  %11360 = vmatprep.mubr.msk.f32.mxu0 %vm2527_vm3, %v2945_v20  ;;  %2535 = vst.msk [vmem:[#allocation4 + $0x90] sm:$0xff] %vm2527_vm3, %v2519_v17  ;;  %v11317_v26 = vpop.f32.mrb[8].mxu0  ;;  %v2923_v12 = vunpack.c.1.s8 %v2921_v11  ;;  %v2924_v17 = vunpack.c.2.s8 %v2921_v11 }
 0x2a0   : > { %11382 = vmatprep.mubr.msk.f32.mxu1 %vm2527_vm3, %v2949_v21  ;;  %2663 = vst.msk [vmem:[#allocation4 + $0xb0] sm:$0xff] %vm2527_vm3, %v2647_v18  ;;  %v11331_v27 = vpop.f32.mrb[8].mxu1  ;;  %11361 = vmatmul.mubr.msk.f32.gmra.mrb[18].mxu0 %vm2527_vm3, %v2946_v15  ;;  %v2750_v28 = vadd.f32 %v11317_v26, %v14421_v13  ;;  %v2744_v29 = vpop.f32.mrb[9].mxu0  ;;  %v2925_v15 = vunpack.c.3.s8 %v2921_v11 }
 0x2a1   : > { %11383 = vmatmul.mubr.msk.f32.gmra.mrb[18].mxu1 %vm2527_vm3, %v2950_v16  ;;  %v2878_v30 = vadd.f32 %v11331_v27, %v14433_v19  ;;  %v2872_v31 = vpop.f32.mrb[9].mxu1  ;;  %v2745_v32 = vadd.f32 %v14421_v13, %v2744_v29  ;;  %vm14511_vm5 = vcmp.eq.s32.totalorder %v2923_v12, 0  ;;  %vm14539_vm9 = vcmp.eq.s32.totalorder %v2924_v17, 0 }
 0x2a2   : > { %v2873_v33 = vadd.f32 %v14433_v19, %v2872_v31  ;;  %2785 = vst.msk [vmem:[#allocation4 + $0x48] sm:$0xff] %vm2527_vm3, %v2750_v28  ;;  %vm14529_vm8 = vcmp.eq.s32.totalorder %v2925_v15, 0 }
 0x2a3   : > { %2913 = vst.msk [vmem:[#allocation4 + $0x68] sm:$0xff] %vm2527_vm3, %v2878_v30  ;;  %2784 = vst.msk [vmem:[#allocation4 + $0x40] sm:$0xff] %vm2527_vm3, %v2745_v32  ;;  %v11320_v36 = vpop.f32.mrb[10].mxu0 }
 0x2a4   : > { %2912 = vst.msk [vmem:[#allocation4 + $0x60] sm:$0xff] %vm2527_vm3, %v2873_v33  ;;  %v11334_v37 = vpop.f32.mrb[10].mxu1  ;;  %v2760_v38 = vadd.f32 %v11320_v36, %v14421_v13  ;;  %v2754_v39 = vpop.f32.mrb[11].mxu0 }
 0x2a5   : > { %v2888_v40 = vadd.f32 %v11334_v37, %v14433_v19  ;;  %v2882_v41 = vpop.f32.mrb[11].mxu1  ;;  %12232 = vmatpush3.bf16.xpose.msk.msra.mxu0 %vm14300_vm4, %v12227_v5  ;;  %v2755_v42 = vadd.f32 %v14421_v13, %v2754_v39 }
 0x2a6   : > { %12256 = vmatpush3.bf16.xpose.msk.msra.mxu1 %vm14300_vm4, %v12251_v6  ;;  %v2883_v43 = vadd.f32 %v14433_v19, %v2882_v41  ;;  %12235 = vmatprep.subr.msk.bf16.mxu0 %vm14300_vm4, %v12233_v34  ;;  %2787 = vst.msk [vmem:[#allocation4 + $0x58] sm:$0xff] %vm2527_vm3, %v2760_v38 }
 0x2a7   : > { %12259 = vmatprep.subr.msk.bf16.mxu1 %vm14300_vm4, %v12257_v35  ;;  %2915 = vst.msk [vmem:[#allocation4 + $0x78] sm:$0xff] %vm2527_vm3, %v2888_v40  ;;  %2786 = vst.msk [vmem:[#allocation4 + $0x50] sm:$0xff] %vm2527_vm3, %v2755_v42  ;;  %v11323_v50 = vpop.f32.mrb[12].mxu0 }
 0x2a8   : > { %2914 = vst.msk [vmem:[#allocation4 + $0x70] sm:$0xff] %vm2527_vm3, %v2883_v43  ;;  %v11337_v51 = vpop.f32.mrb[12].mxu1  ;;  %v2770_v48 = vadd.f32 %v11323_v50, %v14421_v13  ;;  %v2764_v49 = vpop.f32.mrb[13].mxu0 }
 0x2a9   : > { %v2898_v52 = vadd.f32 %v11337_v51, %v14433_v19  ;;  %v2892_v53 = vpop.f32.mrb[13].mxu1  ;;  %v2765_v54 = vadd.f32 %v14421_v13, %v2764_v49  ;;  %v2952_v8 = vld [vmem:[#allocation4 + $0x48] sm:$0xff] }
 0x2aa   : > { %v2893_v55 = vadd.f32 %v14433_v19, %v2892_v53  ;;  %v2951_v57 = vld [vmem:[#allocation4 + $0x40] sm:$0xff]  ;;  %2790 = vst.msk [vmem:[#allocation4 + $0xc8] sm:$0xff] %vm2527_vm3, %v2770_v48  ;;  %v2956_v5 = vld [vmem:[#allocation4 + $0x68] sm:$0xff] }
 0x2ab   : > { %v2955_v59 = vld [vmem:[#allocation4 + $0x60] sm:$0xff]  ;;  %2918 = vst.msk [vmem:[#allocation4 + $0xe8] sm:$0xff] %vm2527_vm3, %v2898_v52  ;;  %11401 = vmatprep.mubr.msk.f32.mxu0 %vm2527_vm3, %v2951_v57  ;;  %2789 = vst.msk [vmem:[#allocation4 + $0xc0] sm:$0xff] %vm2527_vm3, %v2765_v54  ;;  %v11326_v60 = vpop.f32.mrb[14].mxu0 }
 0x2ac   : > { %11423 = vmatprep.mubr.msk.f32.mxu1 %vm2527_vm3, %v2955_v59  ;;  %2917 = vst.msk [vmem:[#allocation4 + $0xe0] sm:$0xff] %vm2527_vm3, %v2893_v55  ;;  %v11340_v61 = vpop.f32.mrb[14].mxu1  ;;  %v2780_v62 = vadd.f32 %v11326_v60, %v14421_v13  ;;  %v2774_v63 = vpop.f32.mrb[15].mxu0 }
 0x2ad   : > { %v2908_v0 = vadd.f32 %v11340_v61, %v14433_v19  ;;  %v2902_v1 = vpop.f32.mrb[15].mxu1  ;;  %12238 = vmatpush3.bf16.xpose.msk.msra.mxu0 %vm14300_vm4, %v12233_v34  ;;  %v2775_v3 = vadd.f32 %v14421_v13, %v2774_v63  ;;  %v14504_v9 = vld [vmem:[#allocation4 + $0x58] sm:$0xff]  ;;  %v2922_v13 = vunpack.c.0.s8 %v2921_v11 }
 0x2ae   : > { %12262 = vmatpush3.bf16.xpose.msk.msra.mxu1 %vm14300_vm4, %v12257_v35  ;;  %v2903_v4 = vadd.f32 %v14433_v19, %v2902_v1  ;;  %12241 = vmatprep.subr.msk.bf16.mxu0 %vm14300_vm4, %v12239_v58  ;;  %2792 = vst.msk [vmem:[#allocation4 + $0xd8] sm:$0xff] %vm2527_vm3, %v2780_v62  ;;  %v2953_v6 = vld [vmem:[#allocation4 + $0x50] sm:$0xff]  ;;  %v2958_v10 = vld [vmem:[#allocation4 + $0x78] sm:$0xff] }
 0x2af   : > { %12265 = vmatprep.subr.msk.bf16.mxu1 %vm14300_vm4, %v12263_v56  ;;  %2920 = vst.msk [vmem:[#allocation4 + $0xf8] sm:$0xff] %vm2527_vm3, %v2908_v0  ;;  %2791 = vst.msk [vmem:[#allocation4 + $0xd0] sm:$0xff] %vm2527_vm3, %v2775_v3  ;;  %v2957_v7 = vld [vmem:[#allocation4 + $0x70] sm:$0xff]  ;;  %vm14515_vm6 = vcmp.eq.s32.totalorder %v2922_v13, 0 }
 0x2b0   : > { %2919 = vst.msk [vmem:[#allocation4 + $0xf0] sm:$0xff] %vm2527_vm3, %v2903_v4 }
 0x2b5   : > { %12244 = vmatpush3.bf16.xpose.msk.msra.mxu0 %vm14300_vm4, %v12239_v58 }
 0x2b6   : > { %12268 = vmatpush3.bf16.xpose.msk.msra.mxu1 %vm14300_vm4, %v12263_v56 }
 0x2bc   : > { %11402 = vmatmul.mubr.msk.f32.vlgmr.msra.gmra.mrb[20].mxu0 %vm2527_vm3, %v2952_v8 }
 0x2bd   : > { %11424 = vmatmul.mubr.msk.f32.vlgmr.msra.gmra.mrb[20].mxu1 %vm2527_vm3, %v2956_v5  ;;  %11404 = vmatprep.mubr.msk.f32.mxu0 %vm2527_vm3, %v2953_v6 }
 0x2be   : > { %11426 = vmatprep.mubr.msk.f32.mxu1 %vm2527_vm3, %v2957_v7 }
 0x2c0   : > { %11405 = vmatmul.mubr.msk.f32.gmra.mrb[22].mxu0 %vm2527_vm3, %v14504_v9 }
 0x2c1   : > { %11427 = vmatmul.mubr.msk.f32.gmra.mrb[22].mxu1 %vm2527_vm3, %v2958_v10 }
 0x36f   : > { %v11359_v18 = vpop.f32.mrb[16].mxu0 }
 0x370   : > { %v11381_v19 = vpop.f32.mrb[16].mxu1  ;;  %v3125_v21 = vpop.f32.mrb[17].mxu0  ;;  %v14545_v29 = vsel %vm14511_vm5, -3.4028235e+38, %v11359_v18 }
 0x371   : > { %v14521_v20 = vsel %vm14511_vm5, -3.4028235e+38, %v11381_v19  ;;  %v3246_v22 = vpop.f32.mrb[17].mxu1  ;;  %v14525_v23 = vsel %vm14515_vm6, -3.4028235e+38, %v3125_v21  ;;  %v3535_v37 = vsel %vm3531_vm7, %v14545_v29, -inf }
 0x372   : > { %v3547_v24 = vsel %vm3531_vm7, %v14521_v20, -inf  ;;  %v14535_v26 = vsel %vm14515_vm6, -3.4028235e+38, %v3246_v22  ;;  %v3532_v27 = vsel %vm3531_vm7, %v14525_v23, -inf }
 0x373   : > { %3548 = vmax.xlane.f32.xlu1 %v3547_v24  ;;  %3533 = vmax.xlane.f32.xlu0 %v3532_v27  ;;  %v11362_v30 = vpop.f32.mrb[18].mxu0  ;;  %v3544_v35 = vsel %vm3531_vm7, %v14535_v26, -inf }
 0x374   : > { %v11384_v31 = vpop.f32.mrb[18].mxu1  ;;  %v14549_v32 = vsel %vm14529_vm8, -3.4028235e+38, %v11362_v30  ;;  %v3135_v33 = vpop.f32.mrb[19].mxu0 }
 0x375   : > { %v3256_v34 = vpop.f32.mrb[19].mxu1  ;;  %v14555_v36 = vsel %vm14539_vm9, -3.4028235e+38, %v3135_v33  ;;  %v3541_v38 = vsel %vm3531_vm7, %v14549_v32, -inf  ;;  %v14563_v39 = vsel %vm14529_vm8, -3.4028235e+38, %v11384_v31 }
 0x376   : > { %v3538_v40 = vsel %vm3531_vm7, %v14555_v36, -inf  ;;  %v14569_v41 = vsel %vm14539_vm9, -3.4028235e+38, %v3256_v34  ;;  %v3553_v42 = vsel %vm3531_vm7, %v14563_v39, -inf }
 0x377   : > { %3545 = vmax.xlane.f32.xlu1 %v3544_v35  ;;  %3536 = vmax.xlane.f32.xlu0 %v3535_v37  ;;  %v3550_v43 = vsel %vm3531_vm7, %v14569_v41, -inf }
 0x37b   : > { %3542 = vmax.xlane.f32.xlu1 %v3541_v38  ;;  %3539 = vmax.xlane.f32.xlu0 %v3538_v40 }
 0x37f   : > { %3554 = vmax.xlane.f32.xlu1 %v3553_v42  ;;  %3551 = vmax.xlane.f32.xlu0 %v3550_v43 }
 0x38f   : > { %v11403_v44 = vpop.f32.mrb[20].mxu0 }
 0x390   : > { %v11425_v45 = vpop.f32.mrb[20].mxu1  ;;  %v14577_v46 = vsel %vm14511_vm5, -3.4028235e+38, %v11403_v44  ;;  %v3367_v47 = vpop.f32.mrb[21].mxu0 }
 0x391   : > { %v3488_v50 = vpop.f32.mrb[21].mxu1  ;;  %v14581_v51 = vsel %vm14515_vm6, -3.4028235e+38, %v3367_v47  ;;  %v3559_v48 = vsel %vm3531_vm7, %v14577_v46, -inf  ;;  %v14587_v49 = vsel %vm14511_vm5, -3.4028235e+38, %v11425_v45 }
 0x392   : > { %3560 = vmax.xlane.f32.xlu1 %v3559_v48  ;;  %v3556_v52 = vsel %vm3531_vm7, %v14581_v51, -inf  ;;  %v14593_v53 = vsel %vm14515_vm6, -3.4028235e+38, %v3488_v50  ;;  %v3571_v59 = vsel %vm3531_vm7, %v14587_v49, -inf }
 0x393   : > { %3557 = vmax.xlane.f32.xlu0 %v3556_v52  ;;  %v11406_v54 = vpop.f32.mrb[22].mxu0  ;;  %v3568_v61 = vsel %vm3531_vm7, %v14593_v53, -inf  ;;  %v2991_v52 = vld [vmem:[#allocation3] sm:$0xff] }
 0x394   : > { %v11428_v55 = vpop.f32.mrb[22].mxu1  ;;  %v14597_v58 = vsel %vm14529_vm8, -3.4028235e+38, %v11406_v54  ;;  %v3377_v56 = vpop.f32.mrb[23].mxu0  ;;  %v2992_v54 = vld [vmem:[#allocation3 + $0x8] sm:$0xff] }
 0x395   : > { %v3498_v57 = vpop.f32.mrb[23].mxu1  ;;  %v14603_v60 = vsel %vm14539_vm9, -3.4028235e+38, %v3377_v56  ;;  %v3565_v62 = vsel %vm3531_vm7, %v14597_v58, -inf  ;;  %v14611_v63 = vsel %vm14529_vm8, -3.4028235e+38, %v11428_v55  ;;  %v12269_v56 = vpack.c.bf16 %v2992_v54, %v2991_v52 }
 0x396   : > { %3572 = vmax.xlane.f32.xlu1 %v3571_v59  ;;  %v3562_v0 = vsel %vm3531_vm7, %v14603_v60, -inf  ;;  %v14617_v1 = vsel %vm14539_vm9, -3.4028235e+38, %v3498_v57  ;;  %v3577_v3 = vsel %vm3531_vm7, %v14611_v63, -inf }
 0x397   : > { %3569 = vmax.xlane.f32.xlu0 %v3568_v61  ;;  %v3574_v4 = vsel %vm3531_vm7, %v14617_v1, -inf  ;;  %12270 = vmatprep.subr.bf16.mxu0 %v12269_v56 }
 0x398   : > { %12272 = vmatpush3.bf16.msra.mxu0 %v12269_v56 }
 0x39a   : > { %3566 = vmax.xlane.f32.xlu1 %v3565_v62 }
 0x39b   : > { %3563 = vmax.xlane.f32.xlu0 %v3562_v0 }
 0x39e   : > { %3578 = vmax.xlane.f32.xlu1 %v3577_v3  ;;  %v2993_v3 = vld [vmem:[#allocation3 + $0x10] sm:$0xff] }
 0x39f   : > { %3575 = vmax.xlane.f32.xlu0 %v3574_v4  ;;  %v2994_v4 = vld [vmem:[#allocation3 + $0x18] sm:$0xff] }
 0x400   : > { %v3549_v5 = vpop.xlane.xlu1 %3548  ;;  %v3534_v6 = vpop.xlane.xlu0 %3533 }
 0x401   : > { %v3580_v7 = vsub.f32 %v14525_v23, %v3534_v6  ;;  %v3585_v8 = vsub.f32 %v14521_v20, %v3549_v5  ;;  %v2999_v5 = vld [vmem:[#allocation3 + $0x40] sm:$0xff] }
 0x403   : > { %v3596_v10 = vmul.f32 1.442695, %v3580_v7  ;;  %v3606_v18 = vmul.f32 1.442695, %v3585_v8  ;;  %v12273_v8 = vpack.c.bf16 %v2994_v4, %v2993_v3 }
 0x404   : > { %v3546_v11 = vpop.xlane.xlu1 %3545  ;;  %v3537_v13 = vpop.xlane.xlu0 %3536 }
 0x405   : > { %v3584_v12 = vsub.f32 %v14535_v26, %v3546_v11  ;;  %12951 = vpow2.f32 %v3596_v10  ;;  %v3581_v15 = vsub.f32 %v14545_v29, %v3537_v13  ;;  %v3000_v10 = vld [vmem:[#allocation3 + $0x48] sm:$0xff]  ;;  %12274 = vmatprep.subr.bf16.mxu0 %v12273_v8 }
 0x406   : > { %12276 = vmatpush3.bf16.msra.mxu0 %v12273_v8 }
 0x407   : > { %v3604_v17 = vmul.f32 1.442695, %v3584_v12  ;;  %v3598_v19 = vmul.f32 1.442695, %v3581_v15  ;;  %v12285_v12 = vpack.c.bf16 %v3000_v10, %v2999_v5  ;;  %v2995_v15 = vld [vmem:[#allocation3 + $0x20] sm:$0xff] }
 0x408   : > { %v3543_v21 = vpop.xlane.xlu1 %3542  ;;  %v3540_v24 = vpop.xlane.xlu0 %3539  ;;  %v3007_v5 = vld [vmem:[#allocation3 + $0x80] sm:$0xff] }
 0x409   : > { %12953 = vpow2.f32 %v3604_v17  ;;  %v3583_v22 = vsub.f32 %v14549_v32, %v3543_v21  ;;  %v3582_v23 = vsub.f32 %v14555_v36, %v3540_v24  ;;  %12286 = vmatprep.subr.bf16.mxu1 %v12285_v12  ;;  %v2996_v17 = vld [vmem:[#allocation3 + $0x28] sm:$0xff]  ;;  %v3002_v24 = vld [vmem:[#allocation3 + $0x58] sm:$0xff] }
 0x40a   : > { %12955 = vpow2.f32 %v3598_v19  ;;  %12288 = vmatpush3.bf16.msra.mxu1 %v12285_v12  ;;  %v3015_v12 = vld [vmem:[#allocation3 + $0xc0] sm:$0xff] }
 0x40b   : > { %12957 = vpow2.f32 %v3606_v18  ;;  %v3602_v20 = vmul.f32 1.442695, %v3583_v22  ;;  %v3600_v27 = vmul.f32 1.442695, %v3582_v23  ;;  %v3001_v18 = vld [vmem:[#allocation3 + $0x50] sm:$0xff]  ;;  %v12277_v22 = vpack.c.bf16 %v2996_v17, %v2995_v15 }
 0x40c   : > { %v3555_v30 = vpop.xlane.xlu1 %3554  ;;  %v3552_v31 = vpop.xlane.xlu0 %3551 }
 0x40d   : > { %v3587_v26 = vsub.f32 %v14563_v39, %v3555_v30  ;;  %12959 = vpow2.f32 %v3600_v27  ;;  %v3586_v29 = vsub.f32 %v14569_v41, %v3552_v31  ;;  %12278 = vmatprep.subr.bf16.mxu0 %v12277_v22  ;;  %v2997_v30 = vld [vmem:[#allocation3 + $0x30] sm:$0xff]  ;;  %v3003_v31 = vld [vmem:[#allocation3 + $0x60] sm:$0xff] }
 0x40e   : > { %12961 = vpow2.f32 %v3602_v20  ;;  %v12289_v20 = vpack.c.bf16 %v3002_v24, %v3001_v18  ;;  %12280 = vmatpush3.bf16.msra.mxu0 %v12277_v22 }
 0x40f   : > { %v14631_v33 = vpop.eup %12951  ;;  %v3610_v34 = vmul.f32 1.442695, %v3587_v26  ;;  %v3608_v35 = vmul.f32 1.442695, %v3586_v29  ;;  %v2998_v26 = vld [vmem:[#allocation3 + $0x38] sm:$0xff] }
 0x410   : > { %v3628_v32 = vsel %vm3531_vm7, %v14631_v33, 0.0  ;;  %12290 = vmatprep.subr.bf16.mxu1 %v12289_v20 }
 0x411   : > { %12963 = vpow2.f32 %v3608_v35  ;;  %3629 = vadd.xlane.f32.xlu0 %v3628_v32  ;;  %12292 = vmatpush3.bf16.msra.mxu1 %v12289_v20  ;;  %v12281_v35 = vpack.c.bf16 %v2998_v26, %v2997_v30  ;;  %v3004_v32 = vld [vmem:[#allocation3 + $0x68] sm:$0xff]  ;;  %v3009_v20 = vld [vmem:[#allocation3 + $0x90] sm:$0xff] }
 0x412   : > { %12965 = vpow2.f32 %v3610_v34 }
 0x413   : > { %v14635_v36 = vpop.eup %12953  ;;  %12282 = vmatprep.subr.bf16.mxu0 %v12281_v35 }
 0x414   : > { %v14637_v37 = vpop.eup %12955  ;;  %v3640_v38 = vsel %vm3531_vm7, %v14635_v36, 0.0  ;;  %12284 = vmatpush3.bf16.msra.mxu0 %v12281_v35  ;;  %v3012_v35 = vld [vmem:[#allocation3 + $0xa8] sm:$0xff] }
 0x415   : > { %v3631_v39 = vsel %vm3531_vm7, %v14637_v37, 0.0  ;;  %v14643_v40 = vpop.eup %12957  ;;  %3641 = vadd.xlane.f32.xlu0 %v3640_v38 }
 0x416   : > { %3632 = vadd.xlane.f32.xlu1 %v3631_v39  ;;  %v3643_v42 = vsel %vm3531_vm7, %v14643_v40, 0.0  ;;  %v12293_v39 = vpack.c.bf16 %v3004_v32, %v3003_v31  ;;  %v3017_v32 = vld [vmem:[#allocation3 + $0xd0] sm:$0xff] }
 0x417   : > { %v14645_v41 = vpop.eup %12959 }
 0x418   : > { %v3634_v43 = vsel %vm3531_vm7, %v14645_v41, 0.0  ;;  %v14651_v44 = vpop.eup %12961  ;;  %12294 = vmatprep.subr.bf16.mxu1 %v12293_v39 }
 0x419   : > { %3635 = vadd.xlane.f32.xlu0 %v3634_v43  ;;  %v3637_v47 = vsel %vm3531_vm7, %v14651_v44, 0.0  ;;  %12296 = vmatpush3.bf16.msra.mxu1 %v12293_v39 }
 0x41a   : > { %3644 = vadd.xlane.f32.xlu1 %v3643_v42 }
 0x41b   : > { %v14653_v45 = vpop.eup %12963 }
 0x41c   : > { %v3646_v50 = vsel %vm3531_vm7, %v14653_v45, 0.0  ;;  %v14659_v48 = vpop.eup %12965 }
 0x41d   : > { %3647 = vadd.xlane.f32.xlu0 %v3646_v50  ;;  %v3649_v61 = vsel %vm3531_vm7, %v14659_v48, 0.0  ;;  %v3006_v50 = vld [vmem:[#allocation3 + $0x78] sm:$0xff] }
 0x41e   : > { %3638 = vadd.xlane.f32.xlu1 %v3637_v47  ;;  %v3005_v47 = vld [vmem:[#allocation3 + $0x70] sm:$0xff] }
 0x41f   : > { %v3561_v55 = vpop.xlane.xlu1 %3560 }
 0x420   : > { %v3589_v57 = vsub.f32 %v14577_v46, %v3561_v55  ;;  %v3558_v59 = vpop.xlane.xlu0 %3557 }
 0x421   : > { %v3588_v62 = vsub.f32 %v14581_v51, %v3558_v59 }
 0x422   : > { %3650 = vadd.xlane.f32.xlu1 %v3649_v61  ;;  %v3614_v0 = vmul.f32 1.442695, %v3589_v57 }
 0x423   : > { %v3612_v6 = vmul.f32 1.442695, %v3588_v62  ;;  %v3573_v7 = vpop.xlane.xlu1 %3572 }
 0x424   : > { %12967 = vpow2.f32 %v3614_v0  ;;  %v3593_v46 = vsub.f32 %v14587_v49, %v3573_v7  ;;  %v3570_v11 = vpop.xlane.xlu0 %3569 }
 0x425   : > { %12969 = vpow2.f32 %v3612_v6  ;;  %v3592_v13 = vsub.f32 %v14593_v53, %v3570_v11  ;;  %v3008_v6 = vld [vmem:[#allocation3 + $0x88] sm:$0xff] }
 0x426   : > { %v3622_v51 = vmul.f32 1.442695, %v3593_v46  ;;  %v12301_v8 = vpack.c.bf16 %v3008_v6, %v3007_v5 }
 0x427   : > { %v3620_v19 = vmul.f32 1.442695, %v3592_v13  ;;  %v3567_v21 = vpop.xlane.xlu1 %3566  ;;  %v3016_v13 = vld [vmem:[#allocation3 + $0xc8] sm:$0xff] }
 0x428   : > { %12971 = vpow2.f32 %v3622_v51  ;;  %v3591_v49 = vsub.f32 %v14597_v58, %v3567_v21  ;;  %v3564_v23 = vpop.xlane.xlu0 %3563  ;;  %12302 = vmatprep.subr.bf16.mxu0 %v12301_v8  ;;  %v12317_v51 = vpack.c.bf16 %v3016_v13, %v3015_v12 }
 0x429   : > { %12973 = vpow2.f32 %v3620_v19  ;;  %v3590_v53 = vsub.f32 %v14603_v60, %v3564_v23 }
 0x42a   : > { %v3618_v27 = vmul.f32 1.442695, %v3591_v49 }
 0x42b   : > { %v3616_v29 = vmul.f32 1.442695, %v3590_v53  ;;  %v3579_v34 = vpop.xlane.xlu1 %3578  ;;  %v3010_v53 = vld [vmem:[#allocation3 + $0x98] sm:$0xff] }
 0x42c   : > { %12975 = vpow2.f32 %v3618_v27  ;;  %v3595_v58 = vsub.f32 %v14611_v63, %v3579_v34  ;;  %v3576_v38 = vpop.xlane.xlu0 %3575  ;;  %v12297_v63 = vpack.c.bf16 %v3006_v50, %v3005_v47  ;;  %v3013_v47 = vld [vmem:[#allocation3 + $0xb0] sm:$0xff]  ;;  %v3014_v50 = vld [vmem:[#allocation3 + $0xb8] sm:$0xff] }
 0x42d   : > { %12977 = vpow2.f32 %v3616_v29  ;;  %v3594_v60 = vsub.f32 %v14617_v1, %v3576_v38  ;;  %v12305_v29 = vpack.c.bf16 %v3010_v53, %v3009_v20 }
 0x42e   : > { %v14671_v42 = vpop.eup %12967  ;;  %v3626_v43 = vmul.f32 1.442695, %v3595_v58  ;;  %12298 = vmatprep.subr.bf16.mxu1 %v12297_v63  ;;  %v3018_v58 = vld [vmem:[#allocation3 + $0xd8] sm:$0xff] }
 0x42f   : > { %v14673_v52 = vpop.eup %12969  ;;  %v3624_v54 = vmul.f32 1.442695, %v3594_v60  ;;  %v3655_v55 = vsel %vm3531_vm7, %v14671_v42, 0.0  ;;  %12300 = vmatpush3.bf16.msra.mxu1 %v12297_v63 }
 0x430   : > { %12979 = vpow2.f32 %v3626_v43  ;;  %3656 = vadd.xlane.f32.xlu1 %v3655_v55  ;;  %v3652_v1 = vsel %vm3531_vm7, %v14673_v52, 0.0  ;;  %12318 = vmatprep.subr.bf16.mxu1 %v12317_v51  ;;  %v12321_v43 = vpack.c.bf16 %v3018_v58, %v3017_v32  ;;  %v3020_v55 = vld [vmem:[#allocation3 + $0xe8] sm:$0xff] }
 0x431   : > { %12981 = vpow2.f32 %v3624_v54  ;;  %3653 = vadd.xlane.f32.xlu0 %v3652_v1  ;;  %v3019_v54 = vld [vmem:[#allocation3 + $0xe0] sm:$0xff]  ;;  %v12313_v1 = vpack.c.bf16 %v3014_v50, %v3013_v47  ;;  %v4548_v47 = vld [vmem:[#allocation2 + $0x118] sm:$0xff] }
 0x432   : > { %v14679_v56 = vpop.eup %12971 }
 0x433   : > { %v14681_v57 = vpop.eup %12973  ;;  %v3667_v59 = vsel %vm3531_vm7, %v14679_v56, 0.0 }
 0x434   : > { %3668 = vadd.xlane.f32.xlu1 %v3667_v59  ;;  %v3664_v61 = vsel %vm3531_vm7, %v14681_v57, 0.0 }
 0x435   : > { %3665 = vadd.xlane.f32.xlu0 %v3664_v61  ;;  %v12325_v61 = vpack.c.bf16 %v3020_v55, %v3019_v54 }
 0x436   : > { %v14687_v62 = vpop.eup %12975 }
 0x437   : > { %v14689_v0 = vpop.eup %12977  ;;  %v3661_v3 = vsel %vm3531_vm7, %v14687_v62, 0.0 }
 0x438   : > { %3662 = vadd.xlane.f32.xlu1 %v3661_v3  ;;  %v3658_v4 = vsel %vm3531_vm7, %v14689_v0, 0.0  ;;  %v3021_v3 = vld [vmem:[#allocation3 + $0xf0] sm:$0xff] }
 0x439   : > { %3659 = vadd.xlane.f32.xlu0 %v3658_v4  ;;  %v3022_v4 = vld [vmem:[#allocation3 + $0xf8] sm:$0xff] }
 0x43a   : > { %v14695_v7 = vpop.eup %12979 }
 0x43b   : > { %v14697_v10 = vpop.eup %12981  ;;  %v3673_v46 = vsel %vm3531_vm7, %v14695_v7, 0.0 }
 0x43c   : > { %3674 = vadd.xlane.f32.xlu1 %v3673_v46  ;;  %v3670_v11 = vsel %vm3531_vm7, %v14697_v10, 0.0 }
 0x43d   : > { %3671 = vadd.xlane.f32.xlu0 %v3670_v11 }
 0x49e   : > { %v3630_v15 = vpop.xlane.xlu0 %3629 }
 0x49f   : > { %12983 = vrcp.f32 %v3630_v15 }
 0x4a2   : > { %v3642_v18 = vpop.xlane.xlu0 %3641 }
 0x4a3   : > { %v3633_v17 = vpop.xlane.xlu1 %3632 }
 0x4a4   : > { %12985 = vrcp.f32 %v3633_v17 }
 0x4a5   : > { %12987 = vrcp.f32 %v3642_v18 }
 0x4a6   : > { %v3636_v21 = vpop.xlane.xlu0 %3635 }
 0x4a7   : > { %v3645_v19 = vpop.xlane.xlu1 %3644 }
 0x4a8   : > { %12989 = vrcp.f32 %v3645_v19 }
 0x4a9   : > { %12991 = vrcp.f32 %v3636_v21  ;;  %v12984_v22 = vpop.eup %12983 }
 0x4aa   : > { %v3648_v49 = vpop.xlane.xlu0 %3647  ;;  %v3692_v23 = vmul.f32 %v12984_v22, %v14631_v33  ;;  %v3011_v33 = vld [vmem:[#allocation3 + $0xa0] sm:$0xff] }
 0x4ab   : > { %v3639_v24 = vpop.xlane.xlu1 %3638 }
 0x4ac   : > { %12993 = vrcp.f32 %v3639_v24  ;;  %3708 = vst.msk [vmem:[%s13576_s3] sm:$0xff] %vm3531_vm7, %v3692_v23  ;;  %11445 = vmatprep.mubr.msk.f32.mxu0 %vm3531_vm7, %v3692_v23 }
 0x4ad   : > { %12995 = vrcp.f32 %v3648_v49 }
 0x4ae   : > { %v12986_v27 = vpop.eup %12985 }
 0x4af   : > { %v12988_v30 = vpop.eup %12987  ;;  %v3693_v26 = vmul.f32 %v12986_v27, %v14637_v37  ;;  %v3651_v31 = vpop.xlane.xlu1 %3650 }
 0x4b0   : > { %12997 = vrcp.f32 %v3651_v31  ;;  %v3696_v34 = vmul.f32 %v12988_v30, %v14635_v36  ;;  %v12309_v36 = vpack.c.bf16 %v3012_v35, %v3011_v33  ;;  %v4545_v30 = vld [vmem:[#allocation2 + $0x100] sm:$0xff]  ;;  %v4554_v35 = vld [vmem:[#allocation2 + $0x148] sm:$0xff] }
 0x4b1   : > { %3709 = vst.msk [vmem:[%s13576_s3 + $0x8] sm:$0xff] %vm3531_vm7, %v3693_v26  ;;  %11446 = vmatmul.mubr.msk.f32.vlgmr.msra.gmra.mrb[24].mxu0 %vm3531_vm7, %v3693_v26  ;;  %v4546_v26 = vld [vmem:[#allocation2 + $0x108] sm:$0xff]  ;;  %v4553_v33 = vld [vmem:[#allocation2 + $0x140] sm:$0xff] }
 0x4b2   : > { %v12990_v38 = vpop.eup %12989  ;;  %3712 = vst.msk [vmem:[%s13576_s3 + $0x20] sm:$0xff] %vm3531_vm7, %v3696_v34  ;;  %11467 = vmatprep.mubr.msk.f32.mxu1 %vm3531_vm7, %v3696_v34  ;;  %12304 = vmatpush3.bf16.msra.mxu0 %v12301_v8  ;;  %v12333_v34 = vpack.c.bf16 %v4546_v26, %v4545_v30  ;;  %v4531_v30 = vld [vmem:[#allocation4 + $0x18] sm:$0xff] }
 0x4b3   : > { %v12992_v37 = vpop.eup %12991  ;;  %v3697_v39 = vmul.f32 %v12990_v38, %v14643_v40  ;;  %12306 = vmatprep.subr.bf16.mxu0 %v12305_v29  ;;  %v12357_v38 = vpack.c.bf16 %v4554_v35, %v4553_v33  ;;  %v13223_v33 = vld [vmem:[#allocation4 + $0x40] sm:$0xff] }
 0x4b4   : > { %v3694_v60 = vmul.f32 %v12992_v37, %v14645_v41 }
 0x4b5   : > { %3713 = vst.msk [vmem:[%s13576_s3 + $0x28] sm:$0xff] %vm3531_vm7, %v3697_v39  ;;  %11468 = vmatmul.mubr.msk.f32.vlgmr.msra.gmra.mrb[24].mxu1 %vm3531_vm7, %v3697_v39 }
 0x4b6   : > { %v12994_v63 = vpop.eup %12993  ;;  %3710 = vst.msk [vmem:[%s13576_s3 + $0x10] sm:$0xff] %vm3531_vm7, %v3694_v60  ;;  %11448 = vmatprep.mubr.msk.f32.mxu0 %vm3531_vm7, %v3694_v60  ;;  %12308 = vmatpush3.bf16.msra.mxu0 %v12305_v29 }
 0x4b7   : > { %v12996_v40 = vpop.eup %12995  ;;  %v3695_v41 = vmul.f32 %v12994_v63, %v14651_v44  ;;  %12320 = vmatpush3.bf16.msra.mxu1 %v12317_v51  ;;  %12310 = vmatprep.subr.bf16.mxu0 %v12309_v36  ;;  %v4555_v63 = vld [vmem:[#allocation2 + $0x150] sm:$0xff] }
 0x4b8   : > { %v3698_v59 = vmul.f32 %v12996_v40, %v14653_v45  ;;  %12322 = vmatprep.subr.bf16.mxu1 %v12321_v43  ;;  %v12329_v45 = vpack.c.bf16 %v3022_v4, %v3021_v3  ;;  %v4556_v40 = vld [vmem:[#allocation2 + $0x158] sm:$0xff]  ;;  %v4550_v3 = vld [vmem:[#allocation2 + $0x128] sm:$0xff] }
 0x4b9   : > { %3711 = vst.msk [vmem:[%s13576_s3 + $0x18] sm:$0xff] %vm3531_vm7, %v3695_v41  ;;  %11449 = vmatmul.mubr.msk.f32.gmra.mrb[26].mxu0 %vm3531_vm7, %v3695_v41 }
 0x4ba   : > { %v12998_v5 = vpop.eup %12997  ;;  %3714 = vst.msk [vmem:[%s13576_s3 + $0x30] sm:$0xff] %vm3531_vm7, %v3698_v59  ;;  %11470 = vmatprep.mubr.msk.f32.mxu1 %vm3531_vm7, %v3698_v59  ;;  %12312 = vmatpush3.bf16.msra.mxu0 %v12309_v36  ;;  %v12363_v59 = vpack.c.bf16 %v4556_v40, %v4555_v63  ;;  %v13226_v63 = vld [vmem:[#allocation4 + $0x50] sm:$0xff]  ;;  %v4541_v40 = vld [vmem:[#allocation4 + $0x68] sm:$0xff] }
 0x4bb   : > { %v3699_v44 = vmul.f32 %v12998_v5, %v14659_v48  ;;  %12324 = vmatpush3.bf16.msra.mxu1 %v12321_v43  ;;  %12314 = vmatprep.subr.bf16.mxu0 %v12313_v1  ;;  %v4547_v43 = vld [vmem:[#allocation2 + $0x110] sm:$0xff] }
 0x4bc   : > { %12326 = vmatprep.subr.bf16.mxu1 %v12325_v61  ;;  %v12339_v55 = vpack.c.bf16 %v4548_v47, %v4547_v43  ;;  %v4575_v47 = vld [vmem:[#allocation2 + $0x1f0] sm:$0xff] }
 0x4bd   : > { %3715 = vst.msk [vmem:[%s13576_s3 + $0x38] sm:$0xff] %vm3531_vm7, %v3699_v44  ;;  %11471 = vmatmul.mubr.msk.f32.gmra.mrb[26].mxu1 %vm3531_vm7, %v3699_v44  ;;  %v3657_v6 = vpop.xlane.xlu1 %3656 }
 0x4be   : > { %12316 = vmatpush3.bf16.msra.mxu0 %v12313_v1  ;;  %12999 = vrcp.f32 %v3657_v6  ;;  %v3654_v8 = vpop.xlane.xlu0 %3653  ;;  %v4558_v6 = vld [vmem:[#allocation2 + $0x168] sm:$0xff] }
 0x4bf   : > { %12328 = vmatpush3.bf16.msra.mxu1 %v12325_v61  ;;  %13001 = vrcp.f32 %v3654_v8  ;;  %v4549_v61 = vld [vmem:[#allocation2 + $0x120] sm:$0xff] }
 0x4c0   : > { %12330 = vmatprep.subr.bf16.mxu1 %v12329_v45  ;;  %v12345_v44 = vpack.c.bf16 %v4550_v3, %v4549_v61  ;;  %v4528_v8 = vld [vmem:[#allocation4] sm:$0xff] }
 0x4c1   : > { %v3669_v46 = vpop.xlane.xlu1 %3668 }
 0x4c2   : > { %13003 = vrcp.f32 %v3669_v46  ;;  %v3666_v11 = vpop.xlane.xlu0 %3665 }
 0x4c3   : > { %12332 = vmatpush3.bf16.msra.mxu1 %v12329_v45  ;;  %13005 = vrcp.f32 %v3666_v11  ;;  %v4557_v45 = vld [vmem:[#allocation2 + $0x160] sm:$0xff] }
 0x4c5   : > { %v3663_v48 = vpop.xlane.xlu1 %3662 }
 0x4c6   : > { %13007 = vrcp.f32 %v3663_v48  ;;  %v3660_v12 = vpop.xlane.xlu0 %3659  ;;  %v12369_v48 = vpack.c.bf16 %v4558_v6, %v4557_v45 }
 0x4c7   : > { %13009 = vrcp.f32 %v3660_v12  ;;  %v4551_v12 = vld [vmem:[#allocation2 + $0x130] sm:$0xff] }
 0x4c8   : > { %v13000_v13 = vpop.eup %12999 }
 0x4c9   : > { %v13002_v51 = vpop.eup %13001  ;;  %v3701_v15 = vmul.f32 %v13000_v13, %v14671_v42  ;;  %v3675_v17 = vpop.xlane.xlu1 %3674  ;;  %v4552_v13 = vld [vmem:[#allocation2 + $0x138] sm:$0xff] }
 0x4ca   : > { %13011 = vrcp.f32 %v3675_v17  ;;  %v3672_v18 = vpop.xlane.xlu0 %3671  ;;  %v3700_v19 = vmul.f32 %v13002_v51, %v14673_v52  ;;  %v4532_v51 = vld [vmem:[#allocation4 + $0x20] sm:$0xff]  ;;  %v4559_v17 = vld [vmem:[#allocation2 + $0x170] sm:$0xff] }
 0x4cb   : > { %3717 = vst.msk [vmem:[%s13576_s3 + $0x48] sm:$0xff] %vm3531_vm7, %v3701_v15  ;;  %13013 = vrcp.f32 %v3672_v18  ;;  %v4560_v18 = vld [vmem:[#allocation2 + $0x178] sm:$0xff] }
 0x4cc   : > { %v13004_v21 = vpop.eup %13003  ;;  %3716 = vst.msk [vmem:[%s13576_s3 + $0x40] sm:$0xff] %vm3531_vm7, %v3700_v19  ;;  %11489 = vmatprep.mubr.msk.f32.mxu0 %vm3531_vm7, %v3700_v19  ;;  %v12375_v19 = vpack.c.bf16 %v4560_v18, %v4559_v17 }
 0x4cd   : > { %v13006_v22 = vpop.eup %13005  ;;  %v3705_v24 = vmul.f32 %v13004_v21, %v14679_v56  ;;  %11490 = vmatmul.mubr.msk.f32.vlgmr.msra.gmra.mrb[28].mxu0 %vm3531_vm7, %v3701_v15  ;;  %v12351_v15 = vpack.c.bf16 %v4552_v13, %v4551_v12  ;;  %v4561_v21 = vld [vmem:[#allocation2 + $0x180] sm:$0xff] }
 0x4ce   : > { %v3704_v42 = vmul.f32 %v13006_v22, %v14681_v57  ;;  %v4562_v22 = vld [vmem:[#allocation2 + $0x188] sm:$0xff] }
 0x4cf   : > { %3721 = vst.msk [vmem:[%s13576_s3 + $0x68] sm:$0xff] %vm3531_vm7, %v3705_v24 }
 0x4d0   : > { %v13008_v52 = vpop.eup %13007  ;;  %3720 = vst.msk [vmem:[%s13576_s3 + $0x60] sm:$0xff] %vm3531_vm7, %v3704_v42  ;;  %11511 = vmatprep.mubr.msk.f32.mxu1 %vm3531_vm7, %v3704_v42  ;;  %v4569_v42 = vld [vmem:[#allocation2 + $0x1c0] sm:$0xff] }
 0x4d1   : > { %v13010_v49 = vpop.eup %13009  ;;  %11512 = vmatmul.mubr.msk.f32.vlgmr.msra.gmra.mrb[28].mxu1 %vm3531_vm7, %v3705_v24  ;;  %v3703_v23 = vmul.f32 %v13008_v52, %v14687_v62  ;;  %v14770_v62 = vld [vmem:[%s16187_s28] sm:$0xff]  ;;  %v12381_v24 = vpack.c.bf16 %v4562_v22, %v4561_v21  ;;  %v4570_v52 = vld [vmem:[#allocation2 + $0x1c8] sm:$0xff] }
 0x4d2   : > { %v3702_v56 = vmul.f32 %v13010_v49, %v14689_v0  ;;  %11517 = vmatprep.subr.mxu0 %v14770_v62  ;;  %v14777_v0 = vld [vmem:[%s16188_s17 + $0x8] sm:$0xff]  ;;  %v12405_v49 = vpack.c.bf16 %v4570_v52, %v4569_v42 }
 0x4d3   : > { %3719 = vst.msk [vmem:[%s13576_s3 + $0x58] sm:$0xff] %vm3531_vm7, %v3703_v23  ;;  %11518 = vmatpush3.msra.mxu0 %v14770_v62  ;;  %11525 = vmatprep.subr.mxu1 %v14777_v0 }
 0x4d4   : > { %v13012_v20 = vpop.eup %13011  ;;  %3718 = vst.msk [vmem:[%s13576_s3 + $0x50] sm:$0xff] %vm3531_vm7, %v3702_v56  ;;  %11492 = vmatprep.mubr.msk.f32.mxu0 %vm3531_vm7, %v3702_v56  ;;  %11526 = vmatpush3.msra.mxu1 %v14777_v0  ;;  %v4564_v56 = vld [vmem:[#allocation2 + $0x198] sm:$0xff] }
 0x4d5   : > { %v13014_v57 = vpop.eup %13013  ;;  %11493 = vmatmul.mubr.msk.f32.gmra.mrb[30].mxu0 %vm3531_vm7, %v3703_v23  ;;  %v3707_v53 = vmul.f32 %v13012_v20, %v14695_v7  ;;  %v2941_v7 = vld [vmem:[%s16188_s17 + $0x10] sm:$0xff] }
 0x4d6   : > { %v3706_v27 = vmul.f32 %v13014_v57, %v14697_v10  ;;  %v2942_v10 = vld [vmem:[%s16188_s17 + $0x18] sm:$0xff]  ;;  %11533 = vmatprep.subr.mxu0 %v2941_v7  ;;  %v4563_v23 = vld [vmem:[#allocation2 + $0x190] sm:$0xff]  ;;  %v4529_v57 = vld [vmem:[#allocation4 + $0x8] sm:$0xff] }
 0x4d7   : > { %3723 = vst.msk [vmem:[%s13576_s3 + $0x78] sm:$0xff] %vm3531_vm7, %v3707_v53  ;;  %11541 = vmatprep.subr.mxu1 %v2942_v10  ;;  %v12387_v20 = vpack.c.bf16 %v4564_v56, %v4563_v23 }
 0x4d8   : > { %3722 = vst.msk [vmem:[%s13576_s3 + $0x70] sm:$0xff] %vm3531_vm7, %v3706_v27  ;;  %11514 = vmatprep.mubr.msk.f32.mxu1 %vm3531_vm7, %v3706_v27  ;;  %v4571_v27 = vld [vmem:[#allocation2 + $0x1d0] sm:$0xff] }
 0x4d9   : > { %11515 = vmatmul.mubr.msk.f32.gmra.mrb[30].mxu1 %vm3531_vm7, %v3707_v53  ;;  %v4530_v53 = vld [vmem:[#allocation4 + $0x10] sm:$0xff] }
 0x584   : > { %v11447_v31 = vpop.f32.mrb[24].mxu0 }
 0x585   : > { %v3802_v29 = vpop.f32.mrb[25].mxu0 }
 0x586   : > { %11519 = vmatprep.mubr.msk.f32.mxu0 %vm2527_vm3, %v3802_v29  ;;  %v4566_v29 = vld [vmem:[#allocation2 + $0x1a8] sm:$0xff] }
 0x587   : > { %11520 = vmatmul.mubr.msk.f32.vlgmr.msra.gmra.mrb[32].mxu0 %vm2527_vm3, %v11447_v31  ;;  %v4565_v31 = vld [vmem:[#allocation2 + $0x1a0] sm:$0xff] }
 0x588   : > { %v11469_v32 = vpop.f32.mrb[24].mxu1  ;;  %11534 = vmatpush3.msra.mxu0 %v2941_v7  ;;  %v4572_v7 = vld [vmem:[#allocation2 + $0x1d8] sm:$0xff]  ;;  %v12393_v35 = vpack.c.bf16 %v4566_v29, %v4565_v31 }
 0x589   : > { %v3899_v58 = vpop.f32.mrb[25].mxu1  ;;  %12335 = vmatprep.subr.msk.bf16.mxu0 %vm14300_vm4, %v12333_v34  ;;  %v12411_v26 = vpack.c.bf16 %v4572_v7, %v4571_v27 }
 0x58a   : > { %11527 = vmatprep.mubr.msk.f32.mxu1 %vm2527_vm3, %v3899_v58  ;;  %v4573_v58 = vld [vmem:[#allocation2 + $0x1e0] sm:$0xff] }
 0x58b   : > { %11528 = vmatmul.mubr.msk.f32.vlgmr.msra.gmra.mrb[32].mxu1 %vm2527_vm3, %v11469_v32  ;;  %v4535_v32 = vld [vmem:[#allocation4 + $0x38] sm:$0xff] }
 0x58c   : > { %v11450_v37 = vpop.f32.mrb[26].mxu0  ;;  %11542 = vmatpush3.msra.mxu1 %v2942_v10  ;;  %v4533_v10 = vld [vmem:[#allocation4 + $0x28] sm:$0xff] }
 0x58d   : > { %v3812_v39 = vpop.f32.mrb[27].mxu0  ;;  %12359 = vmatprep.subr.msk.bf16.mxu1 %vm14300_vm4, %v12357_v38 }
 0x58e   : > { %11522 = vmatprep.mubr.msk.f32.mxu0 %vm2527_vm3, %v3812_v39 }
 0x58f   : > { %11523 = vmatmul.mubr.msk.f32.gmra.mrb[34].mxu0 %vm2527_vm3, %v11450_v37  ;;  %v13224_v37 = vld [vmem:[#allocation4 + $0x60] sm:$0xff] }
 0x590   : > { %v11472_v36 = vpop.f32.mrb[26].mxu1 }
 0x591   : > { %v3909_v60 = vpop.f32.mrb[27].mxu1 }
 0x592   : > { %11530 = vmatprep.mubr.msk.f32.mxu1 %vm2527_vm3, %v3909_v60  ;;  %v4568_v60 = vld [vmem:[#allocation2 + $0x1b8] sm:$0xff] }
 0x593   : > { %11531 = vmatmul.mubr.msk.f32.gmra.mrb[34].mxu1 %vm2527_vm3, %v11472_v36  ;;  %v4567_v36 = vld [vmem:[#allocation2 + $0x1b0] sm:$0xff] }
 0x594   : > { %v12399_v43 = vpack.c.bf16 %v4568_v60, %v4567_v36 }
 0x5a0   : > { %v11491_v50 = vpop.f32.mrb[28].mxu0 }
 0x5a1   : > { %v3996_v54 = vpop.f32.mrb[29].mxu0 }
 0x5a2   : > { %11535 = vmatprep.mubr.msk.f32.mxu0 %vm2527_vm3, %v3996_v54 }
 0x5a3   : > { %11536 = vmatmul.mubr.msk.f32.vlgmr.msra.gmra.mrb[36].mxu0 %vm2527_vm3, %v11491_v50  ;;  %v4576_v50 = vld [vmem:[#allocation2 + $0x1f8] sm:$0xff] }
 0x5a4   : > { %12338 = vmatpush3.bf16.xpose.msk.msra.mxu0 %vm14300_vm4, %v12333_v34  ;;  %v11513_v41 = vpop.f32.mrb[28].mxu1  ;;  %v4534_v34 = vld [vmem:[#allocation4 + $0x30] sm:$0xff]  ;;  %v12423_v54 = vpack.c.bf16 %v4576_v50, %v4575_v47 }
 0x5a5   : > { %v4093_v1 = vpop.f32.mrb[29].mxu1  ;;  %12341 = vmatprep.subr.msk.bf16.mxu0 %vm14300_vm4, %v12339_v55 }
 0x5a6   : > { %11543 = vmatprep.mubr.msk.f32.mxu1 %vm2527_vm3, %v4093_v1  ;;  %v13228_v1 = vld [vmem:[#allocation4 + $0x78] sm:$0xff] }
 0x5a7   : > { %11544 = vmatmul.mubr.msk.f32.vlgmr.msra.gmra.mrb[36].mxu1 %vm2527_vm3, %v11513_v41  ;;  %v13227_v41 = vld [vmem:[#allocation4 + $0x70] sm:$0xff] }
 0x5a8   : > { %12362 = vmatpush3.bf16.xpose.msk.msra.mxu1 %vm14300_vm4, %v12357_v38  ;;  %v11494_v4 = vpop.f32.mrb[30].mxu0  ;;  %v4574_v38 = vld [vmem:[#allocation2 + $0x1e8] sm:$0xff] }
 0x5a9   : > { %v4006_v5 = vpop.f32.mrb[31].mxu0  ;;  %12365 = vmatprep.subr.msk.bf16.mxu1 %vm14300_vm4, %v12363_v59  ;;  %v12417_v39 = vpack.c.bf16 %v4574_v38, %v4573_v58 }
 0x5aa   : > { %11538 = vmatprep.mubr.msk.f32.mxu0 %vm2527_vm3, %v4006_v5 }
 0x5ab   : > { %11539 = vmatmul.mubr.msk.f32.gmra.mrb[38].mxu0 %vm2527_vm3, %v11494_v4 }
 0x5ac   : > { %12344 = vmatpush3.bf16.xpose.msk.msra.mxu0 %vm14300_vm4, %v12339_v55  ;;  %v11516_v46 = vpop.f32.mrb[30].mxu1  ;;  %11565 = vmatprep.mubr.msk.f32.mxu0 %vm2527_vm3, %v4528_v8  ;;  %v13225_v55 = vld [vmem:[#allocation4 + $0x48] sm:$0xff] }
 0x5ad   : > { %v4103_v11 = vpop.f32.mrb[31].mxu1  ;;  %12347 = vmatprep.subr.msk.bf16.mxu0 %vm14300_vm4, %v12345_v44 }
 0x5ae   : > { %11546 = vmatprep.mubr.msk.f32.mxu1 %vm2527_vm3, %v4103_v11 }
 0x5af   : > { %11547 = vmatmul.mubr.msk.f32.gmra.mrb[38].mxu1 %vm2527_vm3, %v11516_v46 }
 0x5b0   : > { %12368 = vmatpush3.bf16.xpose.msk.msra.mxu1 %vm14300_vm4, %v12363_v59  ;;  %11587 = vmatprep.mubr.msk.f32.mxu1 %vm2527_vm3, %v4532_v51 }
 0x5b1   : > { %12371 = vmatprep.subr.msk.bf16.mxu1 %vm14300_vm4, %v12369_v48 }
 0x5b4   : > { %12350 = vmatpush3.bf16.xpose.msk.msra.mxu0 %vm14300_vm4, %v12345_v44 }
 0x5b5   : > { %12353 = vmatprep.subr.msk.bf16.mxu0 %vm14300_vm4, %v12351_v15 }
 0x5b8   : > { %12374 = vmatpush3.bf16.xpose.msk.msra.mxu1 %vm14300_vm4, %v12369_v48 }
 0x5b9   : > { %12377 = vmatprep.subr.msk.bf16.mxu1 %vm14300_vm4, %v12375_v19 }
 0x5bc   : > { %12356 = vmatpush3.bf16.xpose.msk.msra.mxu0 %vm14300_vm4, %v12351_v15 }
 0x5bd   : > { %12383 = vmatprep.subr.msk.bf16.mxu0 %vm14300_vm4, %v12381_v24 }
 0x5c0   : > { %12380 = vmatpush3.bf16.xpose.msk.msra.mxu1 %vm14300_vm4, %v12375_v19 }
 0x5c1   : > { %12407 = vmatprep.subr.msk.bf16.mxu1 %vm14300_vm4, %v12405_v49 }
 0x5c3   : > { %11566 = vmatmul.mubr.msk.f32.vlgmr.msra.gmra.mrb[40].mxu0 %vm2527_vm3, %v4529_v57 }
 0x5c4   : > { %11568 = vmatprep.mubr.msk.f32.mxu0 %vm2527_vm3, %v4530_v53  ;;  %12386 = vmatpush3.bf16.xpose.msk.msra.mxu0 %vm14300_vm4, %v12381_v24 }
 0x5c5   : > { %12389 = vmatprep.subr.msk.bf16.mxu0 %vm14300_vm4, %v12387_v20 }
 0x5c7   : > { %11569 = vmatmul.mubr.msk.f32.gmra.mrb[42].mxu0 %vm2527_vm3, %v4531_v30  ;;  %11588 = vmatmul.mubr.msk.f32.vlgmr.msra.gmra.mrb[40].mxu1 %vm2527_vm3, %v4533_v10 }
 0x5c8   : > { %11590 = vmatprep.mubr.msk.f32.mxu1 %vm2527_vm3, %v4534_v34  ;;  %11609 = vmatprep.mubr.msk.f32.mxu0 %vm2527_vm3, %v13223_v33 }
 0x5c9   : > { %12410 = vmatpush3.bf16.xpose.msk.msra.mxu1 %vm14300_vm4, %v12405_v49 }
 0x5ca   : > { %12413 = vmatprep.subr.msk.bf16.mxu1 %vm14300_vm4, %v12411_v26 }
 0x5cb   : > { %11591 = vmatmul.mubr.msk.f32.gmra.mrb[42].mxu1 %vm2527_vm3, %v4535_v32 }
 0x5cc   : > { %12392 = vmatpush3.bf16.xpose.msk.msra.mxu0 %vm14300_vm4, %v12387_v20  ;;  %11631 = vmatprep.mubr.msk.f32.mxu1 %vm2527_vm3, %v13224_v37  ;;  %v2930_v37 = vld [vmem:[%s13561_s24] sm:$0xff]  ;;  %s15948_s24 = sand.u32 1, %s16199_s30  }
 0x5cd   : > { %12395 = vmatprep.subr.msk.bf16.mxu0 %vm14300_vm4, %v12393_v35  ;;  %v2931_v36 = vunpack.c.0.s8 %v2930_v37  ;;  %v2934_v50 = vunpack.c.3.s8 %v2930_v37 }
 0x5cf   : > { %vm14913_vm11 = vcmp.eq.s32.totalorder %v2931_v36, 0  ;;  %vm14929_vm12 = vcmp.eq.s32.totalorder %v2934_v50, 0  ;;  %v4578_v50 = vld [vmem:[#allocation3 + $0x100] sm:$0xff] }
 0x5d1   : > { %12416 = vmatpush3.bf16.xpose.msk.msra.mxu1 %vm14300_vm4, %v12411_v26 }
 0x5d2   : > { %12419 = vmatprep.subr.msk.bf16.mxu1 %vm14300_vm4, %v12417_v39 }
 0x5d4   : > { %12398 = vmatpush3.bf16.xpose.msk.msra.mxu0 %vm14300_vm4, %v12393_v35 }
 0x5d5   : > { %12401 = vmatprep.subr.msk.bf16.mxu0 %vm14300_vm4, %v12399_v43 }
 0x5d9   : > { %12422 = vmatpush3.bf16.xpose.msk.msra.mxu1 %vm14300_vm4, %v12417_v39  ;;  %v2932_v39 = vunpack.c.1.s8 %v2930_v37 }
 0x5da   : > { %12425 = vmatprep.subr.msk.bf16.mxu1 %vm14300_vm4, %v12423_v54 }
 0x5db   : > { %vm14909_vm10 = vcmp.eq.s32.totalorder %v2932_v39, 0 }
 0x5dc   : > { %12404 = vmatpush3.bf16.xpose.msk.msra.mxu0 %vm14300_vm4, %v12399_v43 }
 0x5e1   : > { %12428 = vmatpush3.bf16.xpose.msk.msra.mxu1 %vm14300_vm4, %v12423_v54 }
 0x5e3   : > { %11610 = vmatmul.mubr.msk.f32.vlgmr.msra.gmra.mrb[44].mxu0 %vm2527_vm3, %v13225_v55 }
 0x5e4   : > { %11612 = vmatprep.mubr.msk.f32.mxu0 %vm2527_vm3, %v13226_v63  ;;  %v2933_v63 = vunpack.c.2.s8 %v2930_v37 }
 0x5e6   : > { %vm14937_vm13 = vcmp.eq.s32.totalorder %v2933_v63, 0 }
 0x5e7   : > { %11613 = vmatmul.mubr.msk.f32.gmra.mrb[46].mxu0 %vm2527_vm3, %v14504_v9 }
 0x5e8   : > { %11632 = vmatmul.mubr.msk.f32.vlgmr.msra.gmra.mrb[44].mxu1 %vm2527_vm3, %v4541_v40 }
 0x5e9   : > { %11634 = vmatprep.mubr.msk.f32.mxu1 %vm2527_vm3, %v13227_v41 }
 0x5ec   : > { %11635 = vmatmul.mubr.msk.f32.gmra.mrb[46].mxu1 %vm2527_vm3, %v13228_v1 }
 0x65a   : > { %v11521_v59 = vpop.f32.mrb[32].mxu0 }
 0x65b   : > { %v4190_v61 = vpop.f32.mrb[33].mxu0  ;;  %v4507_v4 = vsel %vm2394_vm2, %v11521_v59, 0.0 }
 0x65c   : > { %v4500_v45 = vsel %vm2394_vm2, %v4190_v61, 0.0 }
 0x65e   : > { %v11529_v3 = vpop.f32.mrb[32].mxu1 }
 0x65f   : > { %v4508_v5 = vsel %vm2394_vm2, %v11529_v3, 0.0  ;;  %v4287_v44 = vpop.f32.mrb[33].mxu1 }
 0x660   : > { %v4509_v9 = vadd.f32 %v4508_v5, %v4507_v4  ;;  %v4501_v6 = vsel %vm2394_vm2, %v4287_v44, 0.0 }
 0x661   : > { %v4502_v8 = vadd.f32 %v4501_v6, %v4500_v45 }
 0x662   : > { %v11524_v46 = vpop.f32.mrb[34].mxu0 }
 0x663   : > { %v4200_v11 = vpop.f32.mrb[35].mxu0  ;;  %v4521_v12 = vsel %vm2394_vm2, %v11524_v46, 0.0 }
 0x664   : > { %v4514_v15 = vsel %vm2394_vm2, %v4200_v11, 0.0 }
 0x666   : > { %v11532_v48 = vpop.f32.mrb[34].mxu1 }
 0x667   : > { %v4522_v13 = vsel %vm2394_vm2, %v11532_v48, 0.0  ;;  %v4297_v51 = vpop.f32.mrb[35].mxu1 }
 0x668   : > { %v4523_v17 = vadd.f32 %v4522_v13, %v4521_v12  ;;  %v4515_v18 = vsel %vm2394_vm2, %v4297_v51, 0.0 }
 0x669   : > { %v4516_v19 = vadd.f32 %v4515_v18, %v4514_v15 }
 0x676   : > { %v11537_v21 = vpop.f32.mrb[36].mxu0 }
 0x677   : > { %v4510_v22 = vsel %vm2394_vm2, %v11537_v21, 0.0  ;;  %v4384_v24 = vpop.f32.mrb[37].mxu0 }
 0x678   : > { %v4511_v42 = vadd.f32 %v4510_v22, %v4509_v9  ;;  %v4503_v52 = vsel %vm2394_vm2, %v4384_v24, 0.0 }
 0x679   : > { %v4504_v49 = vadd.f32 %v4503_v52, %v4502_v8 }
 0x67a   : > { %v11545_v23 = vpop.f32.mrb[36].mxu1 }
 0x67b   : > { %v4512_v56 = vsel %vm2394_vm2, %v11545_v23, 0.0  ;;  %v4481_v20 = vpop.f32.mrb[37].mxu1 }
 0x67c   : > { %v14895_v57 = vadd.f32 %v4512_v56, %v4511_v42  ;;  %v4505_v53 = vsel %vm2394_vm2, %v4481_v20, 0.0 }
 0x67d   : > { %v14898_v27 = vadd.f32 %v4505_v53, %v4504_v49 }
 0x67e   : > { %v11540_v7 = vpop.f32.mrb[38].mxu0 }
 0x67f   : > { %v4524_v10 = vsel %vm2394_vm2, %v11540_v7, 0.0  ;;  %v4394_v30 = vpop.f32.mrb[39].mxu0 }
 0x680   : > { %v4525_v26 = vadd.f32 %v4524_v10, %v4523_v17  ;;  %v4517_v31 = vsel %vm2394_vm2, %v4394_v30, 0.0 }
 0x681   : > { %v4518_v29 = vadd.f32 %v4517_v31, %v4516_v19 }
 0x682   : > { %v11548_v34 = vpop.f32.mrb[38].mxu1 }
 0x683   : > { %v4526_v33 = vsel %vm2394_vm2, %v11548_v34, 0.0  ;;  %v4491_v35 = vpop.f32.mrb[39].mxu1 }
 0x684   : > { %v14903_v32 = vadd.f32 %v4526_v33, %v4525_v26  ;;  %v4519_v58 = vsel %vm2394_vm2, %v4491_v35, 0.0 }
 0x685   : > { %v14906_v38 = vadd.f32 %v4519_v58, %v4518_v29 }
 0x696   : > { %v11567_v47 = vpop.f32.mrb[40].mxu0 }
 0x697   : > { %v14919_v54 = vsel %vm14909_vm10, -3.4028235e+38, %v11567_v47  ;;  %v4712_v55 = vpop.f32.mrb[41].mxu0 }
 0x698   : > { %v14923_v40 = vsel %vm14913_vm11, -3.4028235e+38, %v4712_v55  ;;  %v5121_v41 = vsel %vm3531_vm7, %v14919_v54, -inf  ;;  %v4579_v55 = vld [vmem:[#allocation3 + $0x108] sm:$0xff] }
 0x699   : > { %5122 = vmax.xlane.f32.xlu1 %v5121_v41  ;;  %v5118_v1 = vsel %vm3531_vm7, %v14923_v40, -inf  ;;  %v12429_v63 = vpack.c.bf16 %v4579_v55, %v4578_v50 }
 0x69a   : > { %5119 = vmax.xlane.f32.xlu0 %v5118_v1  ;;  %v11570_v61 = vpop.f32.mrb[42].mxu0  ;;  %v11589_v3 = vpop.f32.mrb[40].mxu1 }
 0x69b   : > { %v14935_v4 = vsel %vm14909_vm10, -3.4028235e+38, %v11589_v3  ;;  %v4722_v44 = vpop.f32.mrb[43].mxu0  ;;  %v4833_v45 = vpop.f32.mrb[41].mxu1  ;;  %v14949_v8 = vsel %vm14929_vm12, -3.4028235e+38, %v11570_v61  ;;  %12430 = vmatprep.subr.bf16.mxu0 %v12429_v63 }
 0x69c   : > { %v14943_v9 = vsel %vm14913_vm11, -3.4028235e+38, %v4833_v45  ;;  %v5133_v6 = vsel %vm3531_vm7, %v14935_v4, -inf  ;;  %v14955_v11 = vsel %vm14937_vm13, -3.4028235e+38, %v4722_v44  ;;  %v5127_v13 = vsel %vm3531_vm7, %v14949_v8, -inf  ;;  %12432 = vmatpush3.bf16.msra.mxu0 %v12429_v63 }
 0x69d   : > { %5134 = vmax.xlane.f32.xlu1 %v5133_v6  ;;  %v5130_v46 = vsel %vm3531_vm7, %v14943_v9, -inf  ;;  %v5124_v15 = vsel %vm3531_vm7, %v14955_v11, -inf }
 0x69e   : > { %5131 = vmax.xlane.f32.xlu0 %v5130_v46  ;;  %v11592_v48 = vpop.f32.mrb[42].mxu1 }
 0x69f   : > { %v4843_v12 = vpop.f32.mrb[43].mxu1  ;;  %v14961_v51 = vsel %vm14929_vm12, -3.4028235e+38, %v11592_v48 }
 0x6a0   : > { %v14967_v17 = vsel %vm14937_vm13, -3.4028235e+38, %v4843_v12  ;;  %v5139_v18 = vsel %vm3531_vm7, %v14961_v51, -inf }
 0x6a1   : > { %5128 = vmax.xlane.f32.xlu1 %v5127_v13  ;;  %v5136_v19 = vsel %vm3531_vm7, %v14967_v17, -inf }
 0x6a2   : > { %5125 = vmax.xlane.f32.xlu0 %v5124_v15 }
 0x6a5   : > { %5140 = vmax.xlane.f32.xlu1 %v5139_v18 }
 0x6a6   : > { %5137 = vmax.xlane.f32.xlu0 %v5136_v19 }
 0x6b6   : > { %v11611_v21 = vpop.f32.mrb[44].mxu0 }
 0x6b7   : > { %v14975_v22 = vsel %vm14909_vm10, -3.4028235e+38, %v11611_v21  ;;  %v4954_v24 = vpop.f32.mrb[45].mxu0 }
 0x6b8   : > { %v14979_v42 = vsel %vm14913_vm11, -3.4028235e+38, %v4954_v24  ;;  %v5145_v52 = vsel %vm3531_vm7, %v14975_v22, -inf }
 0x6b9   : > { %5146 = vmax.xlane.f32.xlu1 %v5145_v52  ;;  %v5142_v49 = vsel %vm3531_vm7, %v14979_v42, -inf }
 0x6ba   : > { %v11614_v23 = vpop.f32.mrb[46].mxu0  ;;  %5143 = vmax.xlane.f32.xlu0 %v5142_v49 }
 0x6bb   : > { %v11633_v56 = vpop.f32.mrb[44].mxu1  ;;  %v4964_v20 = vpop.f32.mrb[47].mxu0  ;;  %v14997_v26 = vsel %vm14929_vm12, -3.4028235e+38, %v11614_v23 }
 0x6bc   : > { %v14987_v53 = vsel %vm14909_vm10, -3.4028235e+38, %v11633_v56  ;;  %v5075_v7 = vpop.f32.mrb[45].mxu1  ;;  %v15003_v29 = vsel %vm14937_vm13, -3.4028235e+38, %v4964_v20  ;;  %v5151_v35 = vsel %vm3531_vm7, %v14997_v26, -inf }
 0x6bd   : > { %v14991_v10 = vsel %vm14913_vm11, -3.4028235e+38, %v5075_v7  ;;  %v5157_v30 = vsel %vm3531_vm7, %v14987_v53, -inf  ;;  %v5148_v37 = vsel %vm3531_vm7, %v15003_v29, -inf }
 0x6be   : > { %5158 = vmax.xlane.f32.xlu1 %v5157_v30  ;;  %v5154_v31 = vsel %vm3531_vm7, %v14991_v10, -inf }
 0x6bf   : > { %5155 = vmax.xlane.f32.xlu0 %v5154_v31  ;;  %v11636_v34 = vpop.f32.mrb[46].mxu1 }
 0x6c0   : > { %v5085_v33 = vpop.f32.mrb[47].mxu1  ;;  %v15009_v58 = vsel %vm14929_vm12, -3.4028235e+38, %v11636_v34 }
 0x6c1   : > { %v15015_v39 = vsel %vm14937_vm13, -3.4028235e+38, %v5085_v33  ;;  %v5163_v36 = vsel %vm3531_vm7, %v15009_v58, -inf }
 0x6c2   : > { %5152 = vmax.xlane.f32.xlu1 %v5151_v35  ;;  %v5160_v47 = vsel %vm3531_vm7, %v15015_v39, -inf }
 0x6c3   : > { %5149 = vmax.xlane.f32.xlu0 %v5148_v37 }
 0x6c6   : > { %5164 = vmax.xlane.f32.xlu1 %v5163_v36 }
 0x6c7   : > { %5161 = vmax.xlane.f32.xlu0 %v5160_v47 }
 0x726   : > { %v5123_v41 = vpop.xlane.xlu1 %5122 }
 0x727   : > { %v5167_v1 = vsub.f32 %v14919_v54, %v5123_v41  ;;  %v5120_v61 = vpop.xlane.xlu0 %5119  ;;  %v4580_v41 = vld [vmem:[#allocation3 + $0x110] sm:$0xff] }
 0x728   : > { %v5166_v3 = vsub.f32 %v14923_v40, %v5120_v61  ;;  %v4586_v61 = vld [vmem:[#allocation3 + $0x140] sm:$0xff] }
 0x729   : > { %v5184_v44 = vmul.f32 1.442695, %v5167_v1  ;;  %v4581_v1 = vld [vmem:[#allocation3 + $0x118] sm:$0xff] }
 0x72a   : > { %v5182_v45 = vmul.f32 1.442695, %v5166_v3  ;;  %v5135_v6 = vpop.xlane.xlu1 %5134 }
 0x72b   : > { %13015 = vpow2.f32 %v5184_v44  ;;  %v5171_v46 = vsub.f32 %v14935_v4, %v5135_v6  ;;  %v5132_v48 = vpop.xlane.xlu0 %5131  ;;  %v4587_v6 = vld [vmem:[#allocation3 + $0x148] sm:$0xff] }
 0x72c   : > { %13017 = vpow2.f32 %v5182_v45  ;;  %v5170_v12 = vsub.f32 %v14943_v9, %v5132_v48  ;;  %v12433_v45 = vpack.c.bf16 %v4581_v1, %v4580_v41  ;;  %v12445_v48 = vpack.c.bf16 %v4587_v6, %v4586_v61 }
 0x72d   : > { %v5192_v13 = vmul.f32 1.442695, %v5171_v46 }
 0x72e   : > { %v5190_v15 = vmul.f32 1.442695, %v5170_v12  ;;  %v5129_v18 = vpop.xlane.xlu1 %5128  ;;  %12434 = vmatprep.subr.bf16.mxu0 %v12433_v45  ;;  %12446 = vmatprep.subr.bf16.mxu1 %v12445_v48 }
 0x72f   : > { %13019 = vpow2.f32 %v5192_v13  ;;  %v5169_v19 = vsub.f32 %v14949_v8, %v5129_v18  ;;  %v5126_v54 = vpop.xlane.xlu0 %5125  ;;  %12436 = vmatpush3.bf16.msra.mxu0 %v12433_v45  ;;  %v4583_v18 = vld [vmem:[#allocation3 + $0x128] sm:$0xff]  ;;  %12448 = vmatpush3.bf16.msra.mxu1 %v12445_v48 }
 0x730   : > { %13021 = vpow2.f32 %v5190_v15  ;;  %v5168_v40 = vsub.f32 %v14955_v11, %v5126_v54  ;;  %v4582_v15 = vld [vmem:[#allocation3 + $0x120] sm:$0xff] }
 0x731   : > { %v5188_v21 = vmul.f32 1.442695, %v5169_v19  ;;  %v4588_v19 = vld [vmem:[#allocation3 + $0x150] sm:$0xff] }
 0x732   : > { %v5186_v24 = vmul.f32 1.442695, %v5168_v40  ;;  %v5141_v52 = vpop.xlane.xlu1 %5140  ;;  %v12437_v40 = vpack.c.bf16 %v4583_v18, %v4582_v15 }
 0x733   : > { %13023 = vpow2.f32 %v5188_v21  ;;  %v5173_v4 = vsub.f32 %v14961_v51, %v5141_v52  ;;  %v5138_v49 = vpop.xlane.xlu0 %5137  ;;  %v4589_v21 = vld [vmem:[#allocation3 + $0x158] sm:$0xff] }
 0x734   : > { %13025 = vpow2.f32 %v5186_v24  ;;  %v5172_v9 = vsub.f32 %v14967_v17, %v5138_v49  ;;  %v12449_v52 = vpack.c.bf16 %v4589_v21, %v4588_v19  ;;  %12438 = vmatprep.subr.bf16.mxu0 %v12437_v40  ;;  %v4584_v49 = vld [vmem:[#allocation3 + $0x130] sm:$0xff]  ;;  %v4595_v21 = vld [vmem:[#allocation3 + $0x188] sm:$0xff] }
 0x735   : > { %v15029_v23 = vpop.eup %13015  ;;  %v5196_v56 = vmul.f32 1.442695, %v5173_v4  ;;  %12440 = vmatpush3.bf16.msra.mxu0 %v12437_v40  ;;  %v4594_v40 = vld [vmem:[#allocation3 + $0x180] sm:$0xff] }
 0x736   : > { %v15031_v20 = vpop.eup %13017  ;;  %v5194_v8 = vmul.f32 1.442695, %v5172_v9  ;;  %v5217_v7 = vsel %vm3531_vm7, %v15029_v23, 0.0  ;;  %12450 = vmatprep.subr.bf16.mxu1 %v12449_v52  ;;  %v4585_v9 = vld [vmem:[#allocation3 + $0x138] sm:$0xff] }
 0x737   : > { %13027 = vpow2.f32 %v5196_v56  ;;  %5218 = vadd.xlane.f32.xlu1 %v5217_v7  ;;  %v5214_v11 = vsel %vm3531_vm7, %v15031_v20, 0.0  ;;  %v4590_v56 = vld [vmem:[#allocation3 + $0x160] sm:$0xff]  ;;  %12452 = vmatpush3.bf16.msra.mxu1 %v12449_v52 }
 0x738   : > { %13029 = vpow2.f32 %v5194_v8  ;;  %5215 = vadd.xlane.f32.xlu0 %v5214_v11  ;;  %v12441_v11 = vpack.c.bf16 %v4585_v9, %v4584_v49  ;;  %v4602_v49 = vld [vmem:[#allocation3 + $0x1c0] sm:$0xff]  ;;  %v4603_v9 = vld [vmem:[#allocation3 + $0x1c8] sm:$0xff] }
 0x739   : > { %v15037_v51 = vpop.eup %13019 }
 0x73a   : > { %v15039_v30 = vpop.eup %13021  ;;  %v5229_v17 = vsel %vm3531_vm7, %v15037_v51, 0.0  ;;  %12442 = vmatprep.subr.bf16.mxu0 %v12441_v11 }
 0x73b   : > { %5230 = vadd.xlane.f32.xlu1 %v5229_v17  ;;  %v5226_v31 = vsel %vm3531_vm7, %v15039_v30, 0.0  ;;  %v4591_v17 = vld [vmem:[#allocation3 + $0x168] sm:$0xff]  ;;  %12444 = vmatpush3.bf16.msra.mxu0 %v12441_v11 }
 0x73c   : > { %5227 = vadd.xlane.f32.xlu0 %v5226_v31 }
 0x73d   : > { %v15045_v34 = vpop.eup %13023 }
 0x73e   : > { %v15047_v33 = vpop.eup %13025  ;;  %v5223_v35 = vsel %vm3531_vm7, %v15045_v34, 0.0 }
 0x73f   : > { %5224 = vadd.xlane.f32.xlu1 %v5223_v35  ;;  %v5220_v37 = vsel %vm3531_vm7, %v15047_v33, 0.0  ;;  %v12453_v35 = vpack.c.bf16 %v4591_v17, %v4590_v56  ;;  %v12477_v56 = vpack.c.bf16 %v4603_v9, %v4602_v49 }
 0x740   : > { %5221 = vadd.xlane.f32.xlu0 %v5220_v37 }
 0x741   : > { %v15053_v36 = vpop.eup %13027  ;;  %12454 = vmatprep.subr.bf16.mxu1 %v12453_v35 }
 0x742   : > { %v15055_v47 = vpop.eup %13029  ;;  %v5235_v50 = vsel %vm3531_vm7, %v15053_v36, 0.0  ;;  %12456 = vmatpush3.bf16.msra.mxu1 %v12453_v35 }
 0x743   : > { %5236 = vadd.xlane.f32.xlu1 %v5235_v50  ;;  %v5232_v55 = vsel %vm3531_vm7, %v15055_v47, 0.0  ;;  %v4592_v50 = vld [vmem:[#allocation3 + $0x170] sm:$0xff] }
 0x744   : > { %5233 = vadd.xlane.f32.xlu0 %v5232_v55  ;;  %v4593_v55 = vld [vmem:[#allocation3 + $0x178] sm:$0xff] }
 0x745   : > { %v12457_v1 = vpack.c.bf16 %v4593_v55, %v4592_v50 }
 0x746   : > { %v5147_v63 = vpop.xlane.xlu1 %5146 }
 0x747   : > { %v5175_v3 = vsub.f32 %v14975_v22, %v5147_v63  ;;  %v5144_v44 = vpop.xlane.xlu0 %5143  ;;  %12458 = vmatprep.subr.bf16.mxu1 %v12457_v1 }
 0x748   : > { %v5174_v46 = vsub.f32 %v14979_v42, %v5144_v44  ;;  %12460 = vmatpush3.bf16.msra.mxu1 %v12457_v1 }
 0x749   : > { %v5200_v12 = vmul.f32 1.442695, %v5175_v3  ;;  %12478 = vmatprep.subr.bf16.mxu1 %v12477_v56 }
 0x74a   : > { %v5198_v13 = vmul.f32 1.442695, %v5174_v46 }
 0x74b   : > { %13031 = vpow2.f32 %v5200_v12  ;;  %v5159_v54 = vpop.xlane.xlu1 %5158 }
 0x74c   : > { %13033 = vpow2.f32 %v5198_v13  ;;  %v5179_v22 = vsub.f32 %v14987_v53, %v5159_v54  ;;  %v5156_v24 = vpop.xlane.xlu0 %5155 }
 0x74d   : > { %v5178_v42 = vsub.f32 %v14991_v10, %v5156_v24 }
 0x74e   : > { %v5208_v4 = vmul.f32 1.442695, %v5179_v22  ;;  %v12461_v22 = vpack.c.bf16 %v4595_v21, %v4594_v40  ;;  %v4601_v40 = vld [vmem:[#allocation3 + $0x1b8] sm:$0xff]  ;;  %v4607_v21 = vld [vmem:[#allocation3 + $0x1e8] sm:$0xff] }
 0x74f   : > { %v5206_v8 = vmul.f32 1.442695, %v5178_v42  ;;  %v5153_v7 = vpop.xlane.xlu1 %5152 }
 0x750   : > { %13035 = vpow2.f32 %v5208_v4  ;;  %v5177_v31 = vsub.f32 %v14997_v26, %v5153_v7  ;;  %v5150_v53 = vpop.xlane.xlu0 %5149  ;;  %12462 = vmatprep.subr.bf16.mxu0 %v12461_v22 }
 0x751   : > { %13037 = vpow2.f32 %v5206_v8  ;;  %v5176_v10 = vsub.f32 %v15003_v29, %v5150_v53 }
 0x752   : > { %v5204_v37 = vmul.f32 1.442695, %v5177_v31 }
 0x753   : > { %v5202_v63 = vmul.f32 1.442695, %v5176_v10  ;;  %v5165_v41 = vpop.xlane.xlu1 %5164  ;;  %v4596_v10 = vld [vmem:[#allocation3 + $0x190] sm:$0xff] }
 0x754   : > { %13039 = vpow2.f32 %v5204_v37  ;;  %v5181_v61 = vsub.f32 %v15009_v58, %v5165_v41  ;;  %v5162_v3 = vpop.xlane.xlu0 %5161  ;;  %v4597_v37 = vld [vmem:[#allocation3 + $0x198] sm:$0xff] }
 0x755   : > { %v15068_v26 = vpop.eup %13031  ;;  %13041 = vpow2.f32 %v5202_v63  ;;  %v5180_v44 = vsub.f32 %v15015_v39, %v5162_v3  ;;  %v4598_v3 = vld [vmem:[#allocation3 + $0x1a0] sm:$0xff] }
 0x756   : > { %v15071_v29 = vpop.eup %13033  ;;  %v5212_v45 = vmul.f32 1.442695, %v5181_v61  ;;  %v5241_v6 = vsel %vm3531_vm7, %v15068_v26, 0.0  ;;  %v12465_v61 = vpack.c.bf16 %v4597_v37, %v4596_v10 }
 0x757   : > { %v5210_v46 = vmul.f32 1.442695, %v5180_v44  ;;  %5242 = vadd.xlane.f32.xlu1 %v5241_v6  ;;  %v5238_v48 = vsel %vm3531_vm7, %v15071_v29, 0.0  ;;  %v4604_v6 = vld [vmem:[#allocation3 + $0x1d0] sm:$0xff] }
 0x758   : > { %13043 = vpow2.f32 %v5212_v45  ;;  %5239 = vadd.xlane.f32.xlu0 %v5238_v48  ;;  %v4599_v45 = vld [vmem:[#allocation3 + $0x1a8] sm:$0xff] }
 0x759   : > { %13045 = vpow2.f32 %v5210_v46 }
 0x75a   : > { %v15077_v58 = vpop.eup %13035 }
 0x75b   : > { %v15079_v12 = vpop.eup %13037  ;;  %v5253_v39 = vsel %vm3531_vm7, %v15077_v58, 0.0 }
 0x75c   : > { %5254 = vadd.xlane.f32.xlu1 %v5253_v39  ;;  %v5250_v13 = vsel %vm3531_vm7, %v15079_v12, 0.0  ;;  %v12469_v39 = vpack.c.bf16 %v4599_v45, %v4598_v3  ;;  %v13231_v45 = vld [vmem:[%s16188_s17 + $0x8] sm:$0xff] }
 0x75d   : > { %5251 = vadd.xlane.f32.xlu0 %v5250_v13 }
 0x75e   : > { %v15085_v15 = vpop.eup %13039 }
 0x75f   : > { %v15087_v18 = vpop.eup %13041  ;;  %v5247_v19 = vsel %vm3531_vm7, %v15085_v15, 0.0 }
 0x760   : > { %5248 = vadd.xlane.f32.xlu1 %v5247_v19  ;;  %v5244_v54 = vsel %vm3531_vm7, %v15087_v18, 0.0  ;;  %v4600_v19 = vld [vmem:[#allocation3 + $0x1b0] sm:$0xff] }
 0x761   : > { %5245 = vadd.xlane.f32.xlu0 %v5244_v54 }
 0x762   : > { %v15093_v24 = vpop.eup %13043 }
 0x763   : > { %v15095_v52 = vpop.eup %13045  ;;  %v5259_v42 = vsel %vm3531_vm7, %v15093_v24, 0.0 }
 0x764   : > { %5260 = vadd.xlane.f32.xlu1 %v5259_v42  ;;  %v5256_v4 = vsel %vm3531_vm7, %v15095_v52, 0.0 }
 0x765   : > { %5257 = vadd.xlane.f32.xlu0 %v5256_v4  ;;  %v12473_v4 = vpack.c.bf16 %v4601_v40, %v4600_v19  ;;  %v6139_v40 = vld [vmem:[#allocation2 + $0x148] sm:$0xff] }
 0x7c4   : > { %v5219_v8 = vpop.xlane.xlu1 %5218 }
 0x7c5   : > { %13047 = vrcp.f32 %v5219_v8  ;;  %v5216_v7 = vpop.xlane.xlu0 %5215  ;;  %v4608_v8 = vld [vmem:[#allocation3 + $0x1f0] sm:$0xff] }
 0x7c6   : > { %13049 = vrcp.f32 %v5216_v7  ;;  %v4609_v7 = vld [vmem:[#allocation3 + $0x1f8] sm:$0xff] }
 0x7c8   : > { %v5231_v11 = vpop.xlane.xlu1 %5230 }
 0x7c9   : > { %13051 = vrcp.f32 %v5231_v11  ;;  %v5228_v17 = vpop.xlane.xlu0 %5227  ;;  %v12489_v11 = vpack.c.bf16 %v4609_v7, %v4608_v8 }
 0x7ca   : > { %13053 = vrcp.f32 %v5228_v17 }
 0x7cc   : > { %v5225_v31 = vpop.xlane.xlu1 %5224 }
 0x7cd   : > { %13055 = vrcp.f32 %v5225_v31  ;;  %v5222_v53 = vpop.xlane.xlu0 %5221 }
 0x7ce   : > { %13057 = vrcp.f32 %v5222_v53 }
 0x7cf   : > { %v13048_v35 = vpop.eup %13047 }
 0x7d0   : > { %v13050_v50 = vpop.eup %13049  ;;  %v5279_v55 = vmul.f32 %v13048_v35, %v15029_v23  ;;  %v5237_v63 = vpop.xlane.xlu1 %5236  ;;  %v4605_v23 = vld [vmem:[#allocation3 + $0x1d8] sm:$0xff] }
 0x7d1   : > { %13059 = vrcp.f32 %v5237_v63  ;;  %v5234_v41 = vpop.xlane.xlu0 %5233  ;;  %v5278_v1 = vmul.f32 %v13050_v50, %v15031_v20  ;;  %v12481_v13 = vpack.c.bf16 %v4605_v23, %v4604_v6  ;;  %v13232_v6 = vld [vmem:[%s16188_s17 + $0x18] sm:$0xff] }
 0x7d2   : > { %5295 = vst.msk [vmem:[%s13578_s18 + $0x8] sm:$0xff] %vm3531_vm7, %v5279_v55  ;;  %13061 = vrcp.f32 %v5234_v41 }
 0x7d3   : > { %v13052_v44 = vpop.eup %13051  ;;  %5294 = vst.msk [vmem:[%s13578_s18] sm:$0xff] %vm3531_vm7, %v5278_v1  ;;  %11653 = vmatprep.mubr.msk.f32.mxu0 %vm3531_vm7, %v5278_v1 }
 0x7d4   : > { %v13054_v46 = vpop.eup %13053  ;;  %v5283_v48 = vmul.f32 %v13052_v44, %v15037_v51  ;;  %11654 = vmatmul.mubr.msk.f32.vlgmr.msra.gmra.mrb[48].mxu0 %vm3531_vm7, %v5279_v55  ;;  %v4606_v51 = vld [vmem:[#allocation3 + $0x1e0] sm:$0xff] }
 0x7d5   : > { %v5282_v20 = vmul.f32 %v13054_v46, %v15039_v30  ;;  %12464 = vmatpush3.bf16.msra.mxu0 %v12461_v22  ;;  %v12485_v49 = vpack.c.bf16 %v4607_v21, %v4606_v51 }
 0x7d6   : > { %5299 = vst.msk [vmem:[%s13578_s18 + $0x28] sm:$0xff] %vm3531_vm7, %v5283_v48  ;;  %12466 = vmatprep.subr.bf16.mxu0 %v12465_v61 }
 0x7d7   : > { %v13056_v54 = vpop.eup %13055  ;;  %5298 = vst.msk [vmem:[%s13578_s18 + $0x20] sm:$0xff] %vm3531_vm7, %v5282_v20  ;;  %11675 = vmatprep.mubr.msk.f32.mxu1 %vm3531_vm7, %v5282_v20  ;;  %v6131_v20 = vld [vmem:[#allocation2 + $0x108] sm:$0xff] }
 0x7d8   : > { %v13058_v42 = vpop.eup %13057  ;;  %11676 = vmatmul.mubr.msk.f32.vlgmr.msra.gmra.mrb[48].mxu1 %vm3531_vm7, %v5283_v48  ;;  %v5281_v30 = vmul.f32 %v13056_v54, %v15045_v34  ;;  %v6130_v48 = vld [vmem:[#allocation2 + $0x100] sm:$0xff] }
 0x7d9   : > { %v5280_v22 = vmul.f32 %v13058_v42, %v15047_v33  ;;  %12468 = vmatpush3.bf16.msra.mxu0 %v12465_v61  ;;  %12480 = vmatpush3.bf16.msra.mxu1 %v12477_v56  ;;  %v13230_v61 = vld [vmem:[%s16188_s17 + $0x10] sm:$0xff]  ;;  %v12493_v19 = vpack.c.bf16 %v6131_v20, %v6130_v48  ;;  %v6138_v54 = vld [vmem:[#allocation2 + $0x140] sm:$0xff]  ;;  %v6115_v48 = vld [vmem:[#allocation4 + $0x88] sm:$0xff] }
 0x7da   : > { %5297 = vst.msk [vmem:[%s13578_s18 + $0x18] sm:$0xff] %vm3531_vm7, %v5281_v30  ;;  %12470 = vmatprep.subr.bf16.mxu0 %v12469_v39  ;;  %12482 = vmatprep.subr.bf16.mxu1 %v12481_v13  ;;  %v12517_v51 = vpack.c.bf16 %v6139_v40, %v6138_v54  ;;  %v6116_v20 = vld [vmem:[#allocation4 + $0x90] sm:$0xff]  ;;  %v6117_v54 = vld [vmem:[#allocation4 + $0x98] sm:$0xff] }
 0x7db   : > { %v13060_v9 = vpop.eup %13059  ;;  %5296 = vst.msk [vmem:[%s13578_s18 + $0x10] sm:$0xff] %vm3531_vm7, %v5280_v22  ;;  %11656 = vmatprep.mubr.msk.f32.mxu0 %vm3531_vm7, %v5280_v22 }
 0x7dc   : > { %v13062_v34 = vpop.eup %13061  ;;  %11657 = vmatmul.mubr.msk.f32.gmra.mrb[50].mxu0 %vm3531_vm7, %v5281_v30  ;;  %v5285_v33 = vmul.f32 %v13060_v9, %v15053_v36 }
 0x7dd   : > { %v5284_v56 = vmul.f32 %v13062_v34, %v15055_v47  ;;  %12472 = vmatpush3.bf16.msra.mxu0 %v12469_v39  ;;  %12484 = vmatpush3.bf16.msra.mxu1 %v12481_v13  ;;  %v6140_v34 = vld [vmem:[#allocation2 + $0x150] sm:$0xff] }
 0x7de   : > { %5301 = vst.msk [vmem:[%s13578_s18 + $0x38] sm:$0xff] %vm3531_vm7, %v5285_v33  ;;  %12474 = vmatprep.subr.bf16.mxu0 %v12473_v4  ;;  %12486 = vmatprep.subr.bf16.mxu1 %v12485_v49 }
 0x7df   : > { %5300 = vst.msk [vmem:[%s13578_s18 + $0x30] sm:$0xff] %vm3531_vm7, %v5284_v56  ;;  %11678 = vmatprep.mubr.msk.f32.mxu1 %vm3531_vm7, %v5284_v56 }
 0x7e0   : > { %11679 = vmatmul.mubr.msk.f32.gmra.mrb[50].mxu1 %vm3531_vm7, %v5285_v33  ;;  %v6141_v33 = vld [vmem:[#allocation2 + $0x158] sm:$0xff] }
 0x7e1   : > { %12476 = vmatpush3.bf16.msra.mxu0 %v12473_v4  ;;  %12488 = vmatpush3.bf16.msra.mxu1 %v12485_v49  ;;  %v6132_v4 = vld [vmem:[#allocation2 + $0x110] sm:$0xff]  ;;  %v6133_v49 = vld [vmem:[#allocation2 + $0x118] sm:$0xff] }
 0x7e2   : > { %12490 = vmatprep.subr.bf16.mxu1 %v12489_v11  ;;  %11725 = vmatprep.subr.mxu0 %v14770_v62  ;;  %v12499_v7 = vpack.c.bf16 %v6133_v49, %v6132_v4  ;;  %v6158_v4 = vld [vmem:[#allocation2 + $0x1e0] sm:$0xff]  ;;  %v6159_v49 = vld [vmem:[#allocation2 + $0x1e8] sm:$0xff] }
 0x7e4   : > { %v5243_v36 = vpop.xlane.xlu1 %5242 }
 0x7e5   : > { %13063 = vrcp.f32 %v5243_v36  ;;  %v5240_v47 = vpop.xlane.xlu0 %5239  ;;  %12492 = vmatpush3.bf16.msra.mxu1 %v12489_v11  ;;  %v12523_v36 = vpack.c.bf16 %v6141_v33, %v6140_v34  ;;  %v6160_v33 = vld [vmem:[#allocation2 + $0x1f0] sm:$0xff] }
 0x7e6   : > { %13065 = vrcp.f32 %v5240_v47  ;;  %11733 = vmatprep.subr.mxu1 %v14777_v0  ;;  %v6134_v47 = vld [vmem:[#allocation2 + $0x120] sm:$0xff] }
 0x7e9   : > { %v5255_v17 = vpop.xlane.xlu1 %5254 }
 0x7ea   : > { %13067 = vrcp.f32 %v5255_v17  ;;  %v5252_v31 = vpop.xlane.xlu0 %5251  ;;  %v6135_v17 = vld [vmem:[#allocation2 + $0x128] sm:$0xff] }
 0x7eb   : > { %13069 = vrcp.f32 %v5252_v31 }
 0x7ed   : > { %v5249_v53 = vpop.xlane.xlu1 %5248 }
 0x7ee   : > { %13071 = vrcp.f32 %v5249_v53  ;;  %v5246_v35 = vpop.xlane.xlu0 %5245 }
 0x7ef   : > { %v13064_v10 = vpop.eup %13063  ;;  %13073 = vrcp.f32 %v5246_v35  ;;  %v12505_v35 = vpack.c.bf16 %v6135_v17, %v6134_v47  ;;  %v6124_v47 = vld [vmem:[#allocation4 + $0xd0] sm:$0xff]  ;;  %v6125_v17 = vld [vmem:[#allocation4 + $0xd8] sm:$0xff] }
 0x7f0   : > { %v13066_v37 = vpop.eup %13065  ;;  %v5287_v62 = vmul.f32 %v13064_v10, %v15068_v26  ;;  %v6142_v10 = vld [vmem:[#allocation2 + $0x160] sm:$0xff] }
 0x7f1   : > { %v5261_v50 = vpop.xlane.xlu1 %5260  ;;  %v5286_v55 = vmul.f32 %v13066_v37, %v15071_v29  ;;  %v13229_v29 = vld [vmem:[%s16188_s17] sm:$0xff]  ;;  %v6143_v37 = vld [vmem:[#allocation2 + $0x168] sm:$0xff] }
 0x7f2   : > { %5303 = vst.msk [vmem:[%s13578_s18 + $0x48] sm:$0xff] %vm3531_vm7, %v5287_v62  ;;  %13075 = vrcp.f32 %v5261_v50  ;;  %v5258_v0 = vpop.xlane.xlu0 %5257 }
 0x7f3   : > { %13077 = vrcp.f32 %v5258_v0  ;;  %5302 = vst.msk [vmem:[%s13578_s18 + $0x40] sm:$0xff] %vm3531_vm7, %v5286_v55  ;;  %11697 = vmatprep.mubr.msk.f32.mxu0 %vm3531_vm7, %v5286_v55  ;;  %v12529_v0 = vpack.c.bf16 %v6143_v37, %v6142_v10 }
 0x7f4   : > { %v13068_v63 = vpop.eup %13067  ;;  %11698 = vmatmul.mubr.msk.f32.vlgmr.msra.gmra.mrb[52].mxu0 %vm3531_vm7, %v5287_v62  ;;  %v6114_v62 = vld [vmem:[#allocation4 + $0x80] sm:$0xff] }
 0x7f5   : > { %v13070_v41 = vpop.eup %13069  ;;  %v5291_v26 = vmul.f32 %v13068_v63, %v15077_v58  ;;  %11726 = vmatpush3.msra.mxu0 %v13229_v29  ;;  %v6136_v63 = vld [vmem:[#allocation2 + $0x130] sm:$0xff] }
 0x7f6   : > { %v5290_v1 = vmul.f32 %v13070_v41, %v15079_v12  ;;  %11741 = vmatprep.subr.mxu0 %v13230_v61  ;;  %v6137_v41 = vld [vmem:[#allocation2 + $0x138] sm:$0xff] }
 0x7f7   : > { %5307 = vst.msk [vmem:[%s13578_s18 + $0x68] sm:$0xff] %vm3531_vm7, %v5291_v26  ;;  %v12511_v29 = vpack.c.bf16 %v6137_v41, %v6136_v63 }
 0x7f8   : > { %v13072_v3 = vpop.eup %13071  ;;  %5306 = vst.msk [vmem:[%s13578_s18 + $0x60] sm:$0xff] %vm3531_vm7, %v5290_v1  ;;  %11719 = vmatprep.mubr.msk.f32.mxu1 %vm3531_vm7, %v5290_v1  ;;  %v6144_v1 = vld [vmem:[#allocation2 + $0x170] sm:$0xff] }
 0x7f9   : > { %v13074_v58 = vpop.eup %13073  ;;  %11720 = vmatmul.mubr.msk.f32.vlgmr.msra.gmra.mrb[52].mxu1 %vm3531_vm7, %v5291_v26  ;;  %v5289_v12 = vmul.f32 %v13072_v3, %v15085_v15  ;;  %v6118_v26 = vld [vmem:[#allocation4 + $0xa0] sm:$0xff] }
 0x7fa   : > { %v5288_v44 = vmul.f32 %v13074_v58, %v15087_v18  ;;  %11734 = vmatpush3.msra.mxu1 %v13231_v45  ;;  %v6146_v58 = vld [vmem:[#allocation2 + $0x180] sm:$0xff] }
 0x7fb   : > { %5305 = vst.msk [vmem:[%s13578_s18 + $0x58] sm:$0xff] %vm3531_vm7, %v5289_v12  ;;  %11749 = vmatprep.subr.mxu1 %v13232_v6  ;;  %v6154_v45 = vld [vmem:[#allocation2 + $0x1c0] sm:$0xff] }
 0x7fc   : > { %v13076_v23 = vpop.eup %13075  ;;  %5304 = vst.msk [vmem:[%s13578_s18 + $0x50] sm:$0xff] %vm3531_vm7, %v5288_v44  ;;  %11700 = vmatprep.mubr.msk.f32.mxu0 %vm3531_vm7, %v5288_v44 }
 0x7fd   : > { %v13078_v15 = vpop.eup %13077  ;;  %11701 = vmatmul.mubr.msk.f32.gmra.mrb[54].mxu0 %vm3531_vm7, %v5289_v12  ;;  %v5293_v18 = vmul.f32 %v13076_v23, %v15093_v24  ;;  %v6147_v12 = vld [vmem:[#allocation2 + $0x188] sm:$0xff] }
 0x7fe   : > { %v5292_v46 = vmul.f32 %v13078_v15, %v15095_v52  ;;  %v12541_v44 = vpack.c.bf16 %v6147_v12, %v6146_v58  ;;  %v6148_v15 = vld [vmem:[#allocation2 + $0x190] sm:$0xff] }
 0x7ff   : > { %5309 = vst.msk [vmem:[%s13578_s18 + $0x78] sm:$0xff] %vm3531_vm7, %v5293_v18 }
 0x800   : > { %5308 = vst.msk [vmem:[%s13578_s18 + $0x70] sm:$0xff] %vm3531_vm7, %v5292_v46  ;;  %11722 = vmatprep.mubr.msk.f32.mxu1 %vm3531_vm7, %v5292_v46 }
 0x801   : > { %11723 = vmatmul.mubr.msk.f32.gmra.mrb[54].mxu1 %vm3531_vm7, %v5293_v18  ;;  %v6149_v18 = vld [vmem:[#allocation2 + $0x198] sm:$0xff] }
 0x802   : > { %v12547_v46 = vpack.c.bf16 %v6149_v18, %v6148_v15 }
 0x8a7   : > { %v11655_v39 = vpop.f32.mrb[48].mxu0 }
 0x8a8   : > { %v5388_v13 = vpop.f32.mrb[49].mxu0 }
 0x8a9   : > { %11727 = vmatprep.mubr.msk.f32.mxu0 %vm2527_vm3, %v5388_v13  ;;  %v6157_v13 = vld [vmem:[#allocation2 + $0x1d8] sm:$0xff] }
 0x8aa   : > { %11728 = vmatmul.mubr.msk.f32.vlgmr.msra.gmra.mrb[56].mxu0 %vm2527_vm3, %v11655_v39  ;;  %v6156_v39 = vld [vmem:[#allocation2 + $0x1d0] sm:$0xff] }
 0x8ab   : > { %v11677_v24 = vpop.f32.mrb[48].mxu1  ;;  %11742 = vmatpush3.msra.mxu0 %v13230_v61  ;;  %v6145_v61 = vld [vmem:[#allocation2 + $0x178] sm:$0xff]  ;;  %v12571_v40 = vpack.c.bf16 %v6157_v13, %v6156_v39 }
 0x8ac   : > { %v5485_v52 = vpop.f32.mrb[49].mxu1  ;;  %12495 = vmatprep.subr.msk.bf16.mxu0 %vm14300_vm4, %v12493_v19  ;;  %v12535_v3 = vpack.c.bf16 %v6145_v61, %v6144_v1 }
 0x8ad   : > { %11735 = vmatprep.mubr.msk.f32.mxu1 %vm2527_vm3, %v5485_v52  ;;  %v6151_v52 = vld [vmem:[#allocation2 + $0x1a8] sm:$0xff] }
 0x8ae   : > { %11736 = vmatmul.mubr.msk.f32.vlgmr.msra.gmra.mrb[56].mxu1 %vm2527_vm3, %v11677_v24  ;;  %v6150_v24 = vld [vmem:[#allocation2 + $0x1a0] sm:$0xff] }
 0x8af   : > { %v11658_v21 = vpop.f32.mrb[50].mxu0  ;;  %11750 = vmatpush3.msra.mxu1 %v13232_v6  ;;  %v6155_v6 = vld [vmem:[#allocation2 + $0x1c8] sm:$0xff] }
 0x8b0   : > { %v5398_v42 = vpop.f32.mrb[51].mxu0  ;;  %12519 = vmatprep.subr.msk.bf16.mxu1 %vm14300_vm4, %v12517_v51  ;;  %v12565_v23 = vpack.c.bf16 %v6155_v6, %v6154_v45 }
 0x8b1   : > { %11730 = vmatprep.mubr.msk.f32.mxu0 %vm2527_vm3, %v5398_v42  ;;  %v12553_v42 = vpack.c.bf16 %v6151_v52, %v6150_v24 }
 0x8b2   : > { %11731 = vmatmul.mubr.msk.f32.gmra.mrb[58].mxu0 %vm2527_vm3, %v11658_v21  ;;  %v6122_v21 = vld [vmem:[#allocation4 + $0xc0] sm:$0xff] }
 0x8b3   : > { %v11680_v30 = vpop.f32.mrb[50].mxu1 }
 0x8b4   : > { %v5495_v22 = vpop.f32.mrb[51].mxu1 }
 0x8b5   : > { %11738 = vmatprep.mubr.msk.f32.mxu1 %vm2527_vm3, %v5495_v22  ;;  %v6126_v22 = vld [vmem:[#allocation4 + $0xe0] sm:$0xff] }
 0x8b6   : > { %11739 = vmatmul.mubr.msk.f32.gmra.mrb[58].mxu1 %vm2527_vm3, %v11680_v30  ;;  %v6121_v30 = vld [vmem:[#allocation4 + $0xb8] sm:$0xff] }
 0x8c7   : > { %v11699_v9 = vpop.f32.mrb[52].mxu0 }
 0x8c8   : > { %v5582_v8 = vpop.f32.mrb[53].mxu0 }
 0x8c9   : > { %11743 = vmatprep.mubr.msk.f32.mxu0 %vm2527_vm3, %v5582_v8  ;;  %v6152_v8 = vld [vmem:[#allocation2 + $0x1b0] sm:$0xff] }
 0x8ca   : > { %11744 = vmatmul.mubr.msk.f32.vlgmr.msra.gmra.mrb[60].mxu0 %vm2527_vm3, %v11699_v9  ;;  %v12577_v9 = vpack.c.bf16 %v6159_v49, %v6158_v4 }
 0x8cb   : > { %12498 = vmatpush3.bf16.xpose.msk.msra.mxu0 %vm14300_vm4, %v12493_v19  ;;  %v6119_v19 = vld [vmem:[#allocation4 + $0xa8] sm:$0xff] }
 0x8cc   : > { %v11721_v56 = vpop.f32.mrb[52].mxu1  ;;  %12501 = vmatprep.subr.msk.bf16.mxu0 %vm14300_vm4, %v12499_v7 }
 0x8cd   : > { %v5679_v11 = vpop.f32.mrb[53].mxu1 }
 0x8ce   : > { %11751 = vmatprep.mubr.msk.f32.mxu1 %vm2527_vm3, %v5679_v11 }
 0x8cf   : > { %11752 = vmatmul.mubr.msk.f32.vlgmr.msra.gmra.mrb[60].mxu1 %vm2527_vm3, %v11721_v56  ;;  %v6161_v56 = vld [vmem:[#allocation2 + $0x1f8] sm:$0xff] }
 0x8d0   : > { %12522 = vmatpush3.bf16.xpose.msk.msra.mxu1 %vm14300_vm4, %v12517_v51  ;;  %v11702_v31 = vpop.f32.mrb[54].mxu0  ;;  %v6120_v51 = vld [vmem:[#allocation4 + $0xb0] sm:$0xff]  ;;  %v12583_v11 = vpack.c.bf16 %v6161_v56, %v6160_v33 }
 0x8d1   : > { %v5592_v53 = vpop.f32.mrb[55].mxu0  ;;  %12525 = vmatprep.subr.msk.bf16.mxu1 %vm14300_vm4, %v12523_v36 }
 0x8d2   : > { %11746 = vmatprep.mubr.msk.f32.mxu0 %vm2527_vm3, %v5592_v53  ;;  %v6128_v53 = vld [vmem:[#allocation4 + $0xf0] sm:$0xff] }
 0x8d3   : > { %11747 = vmatmul.mubr.msk.f32.gmra.mrb[62].mxu0 %vm2527_vm3, %v11702_v31  ;;  %v6127_v31 = vld [vmem:[#allocation4 + $0xe8] sm:$0xff] }
 0x8d4   : > { %12504 = vmatpush3.bf16.xpose.msk.msra.mxu0 %vm14300_vm4, %v12499_v7  ;;  %v11724_v50 = vpop.f32.mrb[54].mxu1  ;;  %11773 = vmatprep.mubr.msk.f32.mxu0 %vm2527_vm3, %v6114_v62  ;;  %v6153_v7 = vld [vmem:[#allocation2 + $0x1b8] sm:$0xff] }
 0x8d5   : > { %v5689_v55 = vpop.f32.mrb[55].mxu1  ;;  %12507 = vmatprep.subr.msk.bf16.mxu0 %vm14300_vm4, %v12505_v35  ;;  %v12559_v34 = vpack.c.bf16 %v6153_v7, %v6152_v8 }
 0x8d6   : > { %11754 = vmatprep.mubr.msk.f32.mxu1 %vm2527_vm3, %v5689_v55 }
 0x8d7   : > { %11755 = vmatmul.mubr.msk.f32.gmra.mrb[62].mxu1 %vm2527_vm3, %v11724_v50 }
 0x8d8   : > { %12528 = vmatpush3.bf16.xpose.msk.msra.mxu1 %vm14300_vm4, %v12523_v36  ;;  %11795 = vmatprep.mubr.msk.f32.mxu1 %vm2527_vm3, %v6118_v26  ;;  %v6123_v36 = vld [vmem:[#allocation4 + $0xc8] sm:$0xff] }
 0x8d9   : > { %12531 = vmatprep.subr.msk.bf16.mxu1 %vm14300_vm4, %v12529_v0 }
 0x8dc   : > { %12510 = vmatpush3.bf16.xpose.msk.msra.mxu0 %vm14300_vm4, %v12505_v35  ;;  %v6129_v35 = vld [vmem:[#allocation4 + $0xf8] sm:$0xff] }
 0x8dd   : > { %12513 = vmatprep.subr.msk.bf16.mxu0 %vm14300_vm4, %v12511_v29 }
 0x8e0   : > { %12534 = vmatpush3.bf16.xpose.msk.msra.mxu1 %vm14300_vm4, %v12529_v0 }
 0x8e1   : > { %12537 = vmatprep.subr.msk.bf16.mxu1 %vm14300_vm4, %v12535_v3 }
 0x8e4   : > { %12516 = vmatpush3.bf16.xpose.msk.msra.mxu0 %vm14300_vm4, %v12511_v29 }
 0x8e5   : > { %12543 = vmatprep.subr.msk.bf16.mxu0 %vm14300_vm4, %v12541_v44 }
 0x8e8   : > { %12540 = vmatpush3.bf16.xpose.msk.msra.mxu1 %vm14300_vm4, %v12535_v3 }
 0x8e9   : > { %12567 = vmatprep.subr.msk.bf16.mxu1 %vm14300_vm4, %v12565_v23 }
 0x8eb   : > { %11774 = vmatmul.mubr.msk.f32.vlgmr.msra.gmra.mrb[64].mxu0 %vm2527_vm3, %v6115_v48 }
 0x8ec   : > { %11776 = vmatprep.mubr.msk.f32.mxu0 %vm2527_vm3, %v6116_v20  ;;  %12546 = vmatpush3.bf16.xpose.msk.msra.mxu0 %vm14300_vm4, %v12541_v44 }
 0x8ed   : > { %12549 = vmatprep.subr.msk.bf16.mxu0 %vm14300_vm4, %v12547_v46 }
 0x8ef   : > { %11777 = vmatmul.mubr.msk.f32.gmra.mrb[66].mxu0 %vm2527_vm3, %v6117_v54  ;;  %11796 = vmatmul.mubr.msk.f32.vlgmr.msra.gmra.mrb[64].mxu1 %vm2527_vm3, %v6119_v19 }
 0x8f0   : > { %11798 = vmatprep.mubr.msk.f32.mxu1 %vm2527_vm3, %v6120_v51  ;;  %11817 = vmatprep.mubr.msk.f32.mxu0 %vm2527_vm3, %v6122_v21  ;;  %v10420_v51 = vld [vmem:[%s16197_s2] ss:$0 sm:$0xff] }
 0x8f1   : > { %12570 = vmatpush3.bf16.xpose.msk.msra.mxu1 %vm14300_vm4, %v12565_v23 }
 0x8f2   : > { %12573 = vmatprep.subr.msk.bf16.mxu1 %vm14300_vm4, %v12571_v40 }
 0x8f3   : > { %11799 = vmatmul.mubr.msk.f32.gmra.mrb[66].mxu1 %vm2527_vm3, %v6121_v30 }
 0x8f4   : > { %12552 = vmatpush3.bf16.xpose.msk.msra.mxu0 %vm14300_vm4, %v12547_v46  ;;  %11839 = vmatprep.mubr.msk.f32.mxu1 %vm2527_vm3, %v6126_v22 }
 0x8f5   : > { %12555 = vmatprep.subr.msk.bf16.mxu0 %vm14300_vm4, %v12553_v42 }
 0x8f9   : > { %12576 = vmatpush3.bf16.xpose.msk.msra.mxu1 %vm14300_vm4, %v12571_v40 }
 0x8fa   : > { %12579 = vmatprep.subr.msk.bf16.mxu1 %vm14300_vm4, %v12577_v9 }
 0x8fc   : > { %12558 = vmatpush3.bf16.xpose.msk.msra.mxu0 %vm14300_vm4, %v12553_v42 }
 0x8fd   : > { %12561 = vmatprep.subr.msk.bf16.mxu0 %vm14300_vm4, %v12559_v34 }
 0x901   : > { %12582 = vmatpush3.bf16.xpose.msk.msra.mxu1 %vm14300_vm4, %v12577_v9 }
 0x902   : > { %12585 = vmatprep.subr.msk.bf16.mxu1 %vm14300_vm4, %v12583_v11 }
 0x904   : > { %12564 = vmatpush3.bf16.xpose.msk.msra.mxu0 %vm14300_vm4, %v12559_v34 }
 0x909   : > { %12588 = vmatpush3.bf16.xpose.msk.msra.mxu1 %vm14300_vm4, %v12583_v11 }
 0x90b   : > { %11818 = vmatmul.mubr.msk.f32.vlgmr.msra.gmra.mrb[68].mxu0 %vm2527_vm3, %v6123_v36 }
 0x90c   : > { %11820 = vmatprep.mubr.msk.f32.mxu0 %vm2527_vm3, %v6124_v47 }
 0x90f   : > { %11821 = vmatmul.mubr.msk.f32.gmra.mrb[70].mxu0 %vm2527_vm3, %v6125_v17 }
 0x910   : > { %11840 = vmatmul.mubr.msk.f32.vlgmr.msra.gmra.mrb[68].mxu1 %vm2527_vm3, %v6127_v31 }
 0x911   : > { %11842 = vmatprep.mubr.msk.f32.mxu1 %vm2527_vm3, %v6128_v53 }
 0x914   : > { %11843 = vmatmul.mubr.msk.f32.gmra.mrb[70].mxu1 %vm2527_vm3, %v6129_v35 }
 0x97d   : > { %v11729_v10 = vpop.f32.mrb[56].mxu0 }
 0x97e   : > { %v5776_v37 = vpop.f32.mrb[57].mxu0  ;;  %v6093_v50 = vsel %vm2394_vm2, %v11729_v10, 0.0  ;;  %v9274_v10 = vadd.f32 %v10420_v51, %v14895_v57 }
 0x97f   : > { %v6086_v63 = vsel %vm2394_vm2, %v5776_v37, 0.0 }
 0x981   : > { %v11737_v62 = vpop.f32.mrb[56].mxu1 }
 0x982   : > { %v6094_v55 = vsel %vm2394_vm2, %v11737_v62, 0.0  ;;  %v5873_v0 = vpop.f32.mrb[57].mxu1  ;;  %v9273_v62 = vadd.f32 %v10420_v51, %v14898_v27 }
 0x983   : > { %v6095_v41 = vadd.f32 %v6094_v55, %v6093_v50  ;;  %v6087_v26 = vsel %vm2394_vm2, %v5873_v0, 0.0 }
 0x984   : > { %v6088_v29 = vadd.f32 %v6087_v26, %v6086_v63  ;;  %v9276_v26 = vadd.f32 %v10420_v51, %v14903_v32 }
 0x985   : > { %v11732_v1 = vpop.f32.mrb[58].mxu0 }
 0x986   : > { %v5786_v61 = vpop.f32.mrb[59].mxu0  ;;  %v6107_v58 = vsel %vm2394_vm2, %v11732_v1, 0.0  ;;  %v9275_v1 = vadd.f32 %v10420_v51, %v14906_v38 }
 0x987   : > { %v6100_v45 = vsel %vm2394_vm2, %v5786_v61, 0.0 }
 0x989   : > { %v11740_v3 = vpop.f32.mrb[58].mxu1 }
 0x98a   : > { %v6108_v12 = vsel %vm2394_vm2, %v11740_v3, 0.0  ;;  %v5883_v44 = vpop.f32.mrb[59].mxu1 }
 0x98b   : > { %v6109_v6 = vadd.f32 %v6108_v12, %v6107_v58  ;;  %v6101_v23 = vsel %vm2394_vm2, %v5883_v44, 0.0 }
 0x98c   : > { %v6102_v15 = vadd.f32 %v6101_v23, %v6100_v45 }
 0x99d   : > { %v11745_v18 = vpop.f32.mrb[60].mxu0 }
 0x99e   : > { %v6096_v46 = vsel %vm2394_vm2, %v11745_v18, 0.0  ;;  %v5970_v48 = vpop.f32.mrb[61].mxu0 }
 0x99f   : > { %v6097_v20 = vadd.f32 %v6096_v46, %v6095_v41  ;;  %v6089_v39 = vsel %vm2394_vm2, %v5970_v48, 0.0 }
 0x9a0   : > { %v6090_v13 = vadd.f32 %v6089_v39, %v6088_v29 }
 0x9a2   : > { %v11753_v19 = vpop.f32.mrb[60].mxu1 }
 0x9a3   : > { %v6098_v54 = vsel %vm2394_vm2, %v11753_v19, 0.0  ;;  %v6067_v40 = vpop.f32.mrb[61].mxu1 }
 0x9a4   : > { %v6099_v24 = vadd.f32 %v6098_v54, %v6097_v20  ;;  %v6091_v52 = vsel %vm2394_vm2, %v6067_v40, 0.0 }
 0x9a5   : > { %v6092_v21 = vadd.f32 %v6091_v52, %v6090_v13 }
 0x9a6   : > { %v9278_v42 = vadd.f32 %v10420_v51, %v6099_v24  ;;  %v11748_v30 = vpop.f32.mrb[62].mxu0 }
 0x9a7   : > { %v9277_v22 = vadd.f32 %v10420_v51, %v6092_v21  ;;  %v6110_v4 = vsel %vm2394_vm2, %v11748_v30, 0.0  ;;  %v5980_v49 = vpop.f32.mrb[63].mxu0 }
 0x9a8   : > { %13079 = vtanh.f32 %v9278_v42  ;;  %v6111_v9 = vadd.f32 %v6110_v4, %v6109_v6  ;;  %v6103_v8 = vsel %vm2394_vm2, %v5980_v49, 0.0 }
 0x9a9   : > { %13081 = vtanh.f32 %v9277_v22  ;;  %v6104_v7 = vadd.f32 %v6103_v8, %v6102_v15 }
 0x9aa   : > { %v11756_v34 = vpop.f32.mrb[62].mxu1 }
 0x9ab   : > { %v6112_v33 = vsel %vm2394_vm2, %v11756_v34, 0.0  ;;  %v6077_v56 = vpop.f32.mrb[63].mxu1 }
 0x9ac   : > { %v6113_v11 = vadd.f32 %v6112_v33, %v6111_v9  ;;  %v6105_v36 = vsel %vm2394_vm2, %v6077_v56, 0.0 }
 0x9ad   : > { %v6106_v47 = vadd.f32 %v6105_v36, %v6104_v7 }
 0x9ae   : > { %v9280_v17 = vadd.f32 %v10420_v51, %v6113_v11 }
 0x9af   : > { %v9279_v31 = vadd.f32 %v10420_v51, %v6106_v47 }
 0x9b0   : > { %13083 = vtanh.f32 %v9280_v17 }
 0x9b1   : > { %13085 = vtanh.f32 %v9279_v31 }
 0x9b2   : > { %v13080_v53 = vpop.eup %13079 }
 0x9b3   : > { %v13082_v35 = vpop.eup %13081  ;;  %v9286_v37 = vmul.f32 0.1, %v13080_v53 }
 0x9b4   : > { %v9285_v50 = vmul.f32 0.1, %v13082_v35 }
 0x9b5   : > { %v9290_v55 = vadd.f32 %v9286_v37, %v9274_v10 }
 0x9b6   : > { %v9289_v0 = vadd.f32 %v9285_v50, %v9273_v62 }
 0x9b7   : > { %9294 = vst.msk [vmem:[%s13567_s10 + $0x8] sm:$0xff] %vm2394_vm2, %v9290_v55 }
 0x9b8   : > { %9293 = vst.msk [vmem:[%s13567_s10] sm:$0xff] %vm2394_vm2, %v9289_v0  ;;  %v6163_v0 = vld [vmem:[#allocation3 + $0x108] sm:$0xff] }
 0x9ba   : > { %v13084_v63 = vpop.eup %13083 }
 0x9bb   : > { %v13086_v41 = vpop.eup %13085  ;;  %v9288_v29 = vmul.f32 0.1, %v13084_v63  ;;  %v12589_v63 = vpack.c.bf16 %v6163_v0, %v6162_v25 }
 0x9bc   : > { %v9287_v57 = vmul.f32 0.1, %v13086_v41 }
 0x9bd   : > { %v9292_v61 = vadd.f32 %v9288_v29, %v9276_v26  ;;  %12590 = vmatprep.subr.bf16.mxu0 %v12589_v63 }
 0x9be   : > { %v9291_v3 = vadd.f32 %v9287_v57, %v9275_v1  ;;  %v11775_v58 = vpop.f32.mrb[64].mxu0  ;;  %12592 = vmatpush3.bf16.msra.mxu0 %v12589_v63 }
 0x9bf   : > { %9296 = vst.msk [vmem:[%s13567_s10 + $0x18] sm:$0xff] %vm2394_vm2, %v9292_v61  ;;  %v15306_v27 = vsel %vm14511_vm5, -3.4028235e+38, %v11775_v58  ;;  %v6296_v12 = vpop.f32.mrb[65].mxu0 }
 0x9c0   : > { %9295 = vst.msk [vmem:[%s13567_s10 + $0x10] sm:$0xff] %vm2394_vm2, %v9291_v3  ;;  %v15312_v44 = vsel %vm14515_vm6, -3.4028235e+38, %v6296_v12  ;;  %v6697_v32 = vsel %vm3531_vm7, %v15306_v27, -inf }
 0x9c1   : > { %6698 = vmax.xlane.f32.xlu1 %v6697_v32  ;;  %v6694_v38 = vsel %vm3531_vm7, %v15312_v44, -inf }
 0x9c2   : > { %6695 = vmax.xlane.f32.xlu0 %v6694_v38  ;;  %v11778_v45 = vpop.f32.mrb[66].mxu0  ;;  %v11797_v6 = vpop.f32.mrb[64].mxu1 }
 0x9c3   : > { %v15320_v23 = vsel %vm14511_vm5, -3.4028235e+38, %v11797_v6  ;;  %v6306_v15 = vpop.f32.mrb[67].mxu0  ;;  %v6417_v18 = vpop.f32.mrb[65].mxu1  ;;  %v15330_v20 = vsel %vm14529_vm8, -3.4028235e+38, %v11778_v45 }
 0x9c4   : > { %v15324_v46 = vsel %vm14515_vm6, -3.4028235e+38, %v6417_v18  ;;  %v6709_v48 = vsel %vm3531_vm7, %v15320_v23, -inf  ;;  %v15336_v13 = vsel %vm14539_vm9, -3.4028235e+38, %v6306_v15  ;;  %v6703_v40 = vsel %vm3531_vm7, %v15330_v20, -inf }
 0x9c5   : > { %6710 = vmax.xlane.f32.xlu1 %v6709_v48  ;;  %v6706_v39 = vsel %vm3531_vm7, %v15324_v46, -inf  ;;  %v6700_v52 = vsel %vm3531_vm7, %v15336_v13, -inf }
 0x9c6   : > { %6707 = vmax.xlane.f32.xlu0 %v6706_v39  ;;  %v11800_v19 = vpop.f32.mrb[66].mxu1 }
 0x9c7   : > { %v6427_v54 = vpop.f32.mrb[67].mxu1  ;;  %v15342_v24 = vsel %vm14529_vm8, -3.4028235e+38, %v11800_v19 }
 0x9c8   : > { %v15348_v51 = vsel %vm14539_vm9, -3.4028235e+38, %v6427_v54  ;;  %v6715_v21 = vsel %vm3531_vm7, %v15342_v24, -inf }
 0x9c9   : > { %6704 = vmax.xlane.f32.xlu1 %v6703_v40  ;;  %v6712_v42 = vsel %vm3531_vm7, %v15348_v51, -inf }
 0x9ca   : > { %6701 = vmax.xlane.f32.xlu0 %v6700_v52 }
 0x9cd   : > { %6716 = vmax.xlane.f32.xlu1 %v6715_v21 }
 0x9ce   : > { %6713 = vmax.xlane.f32.xlu0 %v6712_v42 }
 0x9de   : > { %v11819_v30 = vpop.f32.mrb[68].mxu0 }
 0x9df   : > { %v15356_v22 = vsel %vm14511_vm5, -3.4028235e+38, %v11819_v30  ;;  %v6538_v4 = vpop.f32.mrb[69].mxu0 }
 0x9e0   : > { %v15360_v49 = vsel %vm14515_vm6, -3.4028235e+38, %v6538_v4  ;;  %v6721_v9 = vsel %vm3531_vm7, %v15356_v22, -inf }
 0x9e1   : > { %6722 = vmax.xlane.f32.xlu1 %v6721_v9  ;;  %v6718_v8 = vsel %vm3531_vm7, %v15360_v49, -inf }
 0x9e2   : > { %v11822_v7 = vpop.f32.mrb[70].mxu0  ;;  %6719 = vmax.xlane.f32.xlu0 %v6718_v8 }
 0x9e3   : > { %v11841_v34 = vpop.f32.mrb[68].mxu1  ;;  %v6548_v33 = vpop.f32.mrb[71].mxu0  ;;  %v15378_v17 = vsel %vm14529_vm8, -3.4028235e+38, %v11822_v7 }
 0x9e4   : > { %v15368_v56 = vsel %vm14511_vm5, -3.4028235e+38, %v11841_v34  ;;  %v6659_v11 = vpop.f32.mrb[69].mxu1  ;;  %v15384_v14 = vsel %vm14539_vm9, -3.4028235e+38, %v6548_v33  ;;  %v6727_v35 = vsel %vm3531_vm7, %v15378_v17, -inf }
 0x9e5   : > { %v15372_v36 = vsel %vm14515_vm6, -3.4028235e+38, %v6659_v11  ;;  %v6733_v47 = vsel %vm3531_vm7, %v15368_v56, -inf  ;;  %v6724_v37 = vsel %vm3531_vm7, %v15384_v14, -inf }
 0x9e6   : > { %6734 = vmax.xlane.f32.xlu1 %v6733_v47  ;;  %v6730_v31 = vsel %vm3531_vm7, %v15372_v36, -inf }
 0x9e7   : > { %6731 = vmax.xlane.f32.xlu0 %v6730_v31  ;;  %v11844_v53 = vpop.f32.mrb[70].mxu1  ;;  %v6164_v31 = vld [vmem:[#allocation3 + $0x110] sm:$0xff] }
 0x9e8   : > { %v6669_v16 = vpop.f32.mrb[71].mxu1  ;;  %v15390_v10 = vsel %vm14529_vm8, -3.4028235e+38, %v11844_v53  ;;  %v6165_v53 = vld [vmem:[#allocation3 + $0x118] sm:$0xff] }
 0x9e9   : > { %v15396_v62 = vsel %vm14539_vm9, -3.4028235e+38, %v6669_v16  ;;  %v6739_v50 = vsel %vm3531_vm7, %v15390_v10, -inf  ;;  %v6170_v16 = vld [vmem:[#allocation3 + $0x140] sm:$0xff] }
 0x9ea   : > { %6728 = vmax.xlane.f32.xlu1 %v6727_v35  ;;  %v6736_v55 = vsel %vm3531_vm7, %v15396_v62, -inf }
 0x9eb   : > { %6725 = vmax.xlane.f32.xlu0 %v6724_v37 }
 0x9ee   : > { %6740 = vmax.xlane.f32.xlu1 %v6739_v50  ;;  %v12593_v50 = vpack.c.bf16 %v6165_v53, %v6164_v31 }
 0x9ef   : > { %6737 = vmax.xlane.f32.xlu0 %v6736_v55  ;;  %v6171_v55 = vld [vmem:[#allocation3 + $0x148] sm:$0xff] }
 0x9f0   : > { %v12605_v0 = vpack.c.bf16 %v6171_v55, %v6170_v16  ;;  %12594 = vmatprep.subr.bf16.mxu0 %v12593_v50  ;;  %v6179_v55 = vld [vmem:[#allocation3 + $0x188] sm:$0xff] }
 0x9f1   : > { %12596 = vmatpush3.bf16.msra.mxu0 %v12593_v50  ;;  %v6178_v50 = vld [vmem:[#allocation3 + $0x180] sm:$0xff] }
 0x9f2   : > { %12606 = vmatprep.subr.bf16.mxu1 %v12605_v0 }
 0x9f3   : > { %12608 = vmatpush3.bf16.msra.mxu1 %v12605_v0 }
 0xa4e   : > { %v6699_v41 = vpop.xlane.xlu1 %6698 }
 0xa4f   : > { %v6743_v26 = vsub.f32 %v15306_v27, %v6699_v41  ;;  %v6696_v28 = vpop.xlane.xlu0 %6695 }
 0xa50   : > { %v6742_v29 = vsub.f32 %v15312_v44, %v6696_v28  ;;  %v6167_v28 = vld [vmem:[#allocation3 + $0x128] sm:$0xff] }
 0xa51   : > { %v6760_v1 = vmul.f32 1.442695, %v6743_v26  ;;  %v6166_v26 = vld [vmem:[#allocation3 + $0x120] sm:$0xff] }
 0xa52   : > { %v6758_v57 = vmul.f32 1.442695, %v6742_v29  ;;  %v6711_v61 = vpop.xlane.xlu1 %6710  ;;  %v6172_v29 = vld [vmem:[#allocation3 + $0x150] sm:$0xff] }
 0xa53   : > { %13087 = vpow2.f32 %v6760_v1  ;;  %v6747_v3 = vsub.f32 %v15320_v23, %v6711_v61  ;;  %v6708_v58 = vpop.xlane.xlu0 %6707  ;;  %v6173_v61 = vld [vmem:[#allocation3 + $0x158] sm:$0xff] }
 0xa54   : > { %13089 = vpow2.f32 %v6758_v57  ;;  %v6746_v12 = vsub.f32 %v15324_v46, %v6708_v58  ;;  %v12597_v57 = vpack.c.bf16 %v6167_v28, %v6166_v26  ;;  %v12609_v58 = vpack.c.bf16 %v6173_v61, %v6172_v29  ;;  %v6186_v28 = vld [vmem:[#allocation3 + $0x1c0] sm:$0xff]  ;;  %v6187_v29 = vld [vmem:[#allocation3 + $0x1c8] sm:$0xff] }
 0xa55   : > { %v6768_v32 = vmul.f32 1.442695, %v6747_v3 }
 0xa56   : > { %v6766_v38 = vmul.f32 1.442695, %v6746_v12  ;;  %v6705_v45 = vpop.xlane.xlu1 %6704  ;;  %12598 = vmatprep.subr.bf16.mxu0 %v12597_v57  ;;  %12610 = vmatprep.subr.bf16.mxu1 %v12609_v58 }
 0xa57   : > { %13091 = vpow2.f32 %v6768_v32  ;;  %v6745_v6 = vsub.f32 %v15330_v20, %v6705_v45  ;;  %v6702_v27 = vpop.xlane.xlu0 %6701  ;;  %12600 = vmatpush3.bf16.msra.mxu0 %v12597_v57  ;;  %v6168_v32 = vld [vmem:[#allocation3 + $0x130] sm:$0xff]  ;;  %v6174_v45 = vld [vmem:[#allocation3 + $0x160] sm:$0xff]  ;;  %12612 = vmatpush3.bf16.msra.mxu1 %v12609_v58 }
 0xa58   : > { %13093 = vpow2.f32 %v6766_v38  ;;  %v6744_v44 = vsub.f32 %v15336_v13, %v6702_v27  ;;  %v6169_v38 = vld [vmem:[#allocation3 + $0x138] sm:$0xff] }
 0xa59   : > { %v6764_v15 = vmul.f32 1.442695, %v6745_v6 }
 0xa5a   : > { %v6762_v18 = vmul.f32 1.442695, %v6744_v44  ;;  %v6717_v48 = vpop.xlane.xlu1 %6716  ;;  %v12601_v44 = vpack.c.bf16 %v6169_v38, %v6168_v32  ;;  %v6180_v32 = vld [vmem:[#allocation3 + $0x190] sm:$0xff]  ;;  %v6181_v38 = vld [vmem:[#allocation3 + $0x198] sm:$0xff] }
 0xa5b   : > { %13095 = vpow2.f32 %v6764_v15  ;;  %v6749_v23 = vsub.f32 %v15342_v24, %v6717_v48  ;;  %v6714_v39 = vpop.xlane.xlu0 %6713  ;;  %v6175_v15 = vld [vmem:[#allocation3 + $0x168] sm:$0xff] }
 0xa5c   : > { %13097 = vpow2.f32 %v6762_v18  ;;  %v6748_v46 = vsub.f32 %v15348_v51, %v6714_v39  ;;  %v12613_v48 = vpack.c.bf16 %v6175_v15, %v6174_v45  ;;  %12602 = vmatprep.subr.bf16.mxu0 %v12601_v44  ;;  %v6176_v39 = vld [vmem:[#allocation3 + $0x170] sm:$0xff] }
 0xa5d   : > { %v15410_v19 = vpop.eup %13087  ;;  %v6772_v54 = vmul.f32 1.442695, %v6749_v23  ;;  %12604 = vmatpush3.bf16.msra.mxu0 %v12601_v44 }
 0xa5e   : > { %v15412_v40 = vpop.eup %13089  ;;  %v6770_v20 = vmul.f32 1.442695, %v6748_v46  ;;  %v6793_v52 = vsel %vm3531_vm7, %v15410_v19, 0.0  ;;  %12614 = vmatprep.subr.bf16.mxu1 %v12613_v48  ;;  %v6177_v46 = vld [vmem:[#allocation3 + $0x178] sm:$0xff] }
 0xa5f   : > { %13099 = vpow2.f32 %v6772_v54  ;;  %6794 = vadd.xlane.f32.xlu1 %v6793_v52  ;;  %v6790_v13 = vsel %vm3531_vm7, %v15412_v40, 0.0  ;;  %12616 = vmatpush3.bf16.msra.mxu1 %v12613_v48  ;;  %v12617_v52 = vpack.c.bf16 %v6177_v46, %v6176_v39 }
 0xa60   : > { %13101 = vpow2.f32 %v6770_v20  ;;  %6791 = vadd.xlane.f32.xlu0 %v6790_v13 }
 0xa61   : > { %v15418_v24 = vpop.eup %13091  ;;  %12618 = vmatprep.subr.bf16.mxu1 %v12617_v52 }
 0xa62   : > { %v15420_v21 = vpop.eup %13093  ;;  %v6805_v51 = vsel %vm3531_vm7, %v15418_v24, 0.0 }
 0xa63   : > { %6806 = vadd.xlane.f32.xlu1 %v6805_v51  ;;  %v6802_v42 = vsel %vm3531_vm7, %v15420_v21, 0.0  ;;  %12620 = vmatpush3.bf16.msra.mxu1 %v12617_v52  ;;  %v6184_v52 = vld [vmem:[#allocation3 + $0x1b0] sm:$0xff] }
 0xa64   : > { %6803 = vadd.xlane.f32.xlu0 %v6802_v42 }
 0xa65   : > { %v15426_v30 = vpop.eup %13095 }
 0xa66   : > { %v15428_v4 = vpop.eup %13097  ;;  %v6799_v9 = vsel %vm3531_vm7, %v15426_v30, 0.0 }
 0xa67   : > { %6800 = vadd.xlane.f32.xlu1 %v6799_v9  ;;  %v6796_v8 = vsel %vm3531_vm7, %v15428_v4, 0.0 }
 0xa68   : > { %6797 = vadd.xlane.f32.xlu0 %v6796_v8 }
 0xa69   : > { %v15434_v7 = vpop.eup %13099 }
 0xa6a   : > { %v15436_v34 = vpop.eup %13101  ;;  %v6811_v33 = vsel %vm3531_vm7, %v15434_v7, 0.0 }
 0xa6b   : > { %6812 = vadd.xlane.f32.xlu1 %v6811_v33  ;;  %v6808_v11 = vsel %vm3531_vm7, %v15436_v34, 0.0 }
 0xa6c   : > { %6809 = vadd.xlane.f32.xlu0 %v6808_v11 }
 0xa6e   : > { %v6723_v47 = vpop.xlane.xlu1 %6722 }
 0xa6f   : > { %v6751_v35 = vsub.f32 %v15356_v22, %v6723_v47  ;;  %v6720_v37 = vpop.xlane.xlu0 %6719 }
 0xa70   : > { %v6750_v25 = vsub.f32 %v15360_v49, %v6720_v37 }
 0xa71   : > { %v6776_v63 = vmul.f32 1.442695, %v6751_v35 }
 0xa72   : > { %v6774_v41 = vmul.f32 1.442695, %v6750_v25  ;;  %v12621_v25 = vpack.c.bf16 %v6179_v55, %v6178_v50 }
 0xa73   : > { %13103 = vpow2.f32 %v6776_v63  ;;  %v6735_v1 = vpop.xlane.xlu1 %6734 }
 0xa74   : > { %13105 = vpow2.f32 %v6774_v41  ;;  %v6755_v22 = vsub.f32 %v15368_v56, %v6735_v1  ;;  %v6732_v3 = vpop.xlane.xlu0 %6731  ;;  %12622 = vmatprep.subr.bf16.mxu0 %v12621_v25  ;;  %v12637_v1 = vpack.c.bf16 %v6187_v29, %v6186_v28 }
 0xa75   : > { %v6754_v49 = vsub.f32 %v15372_v36, %v6732_v3 }
 0xa76   : > { %v6784_v12 = vmul.f32 1.442695, %v6755_v22  ;;  %12638 = vmatprep.subr.bf16.mxu1 %v12637_v1 }
 0xa77   : > { %v6782_v6 = vmul.f32 1.442695, %v6754_v49  ;;  %v6729_v27 = vpop.xlane.xlu1 %6728 }
 0xa78   : > { %13107 = vpow2.f32 %v6784_v12  ;;  %v6753_v18 = vsub.f32 %v15378_v17, %v6729_v27  ;;  %v6726_v56 = vpop.xlane.xlu0 %6725 }
 0xa79   : > { %13109 = vpow2.f32 %v6782_v6  ;;  %v6752_v36 = vsub.f32 %v15384_v14, %v6726_v56  ;;  %v6182_v56 = vld [vmem:[#allocation3 + $0x1a0] sm:$0xff] }
 0xa7a   : > { %v6780_v23 = vmul.f32 1.442695, %v6753_v18  ;;  %v12625_v18 = vpack.c.bf16 %v6181_v38, %v6180_v32  ;;  %v13235_v32 = vld [vmem:[%s16188_s17 + $0x10] sm:$0xff] }
 0xa7b   : > { %v6778_v54 = vmul.f32 1.442695, %v6752_v36  ;;  %v6741_v20 = vpop.xlane.xlu1 %6740  ;;  %v6183_v36 = vld [vmem:[#allocation3 + $0x1a8] sm:$0xff] }
 0xa7c   : > { %13111 = vpow2.f32 %v6780_v23  ;;  %v6757_v13 = vsub.f32 %v15390_v10, %v6741_v20  ;;  %v6738_v51 = vpop.xlane.xlu0 %6737  ;;  %v6188_v23 = vld [vmem:[#allocation3 + $0x1d0] sm:$0xff] }
 0xa7d   : > { %v15449_v17 = vpop.eup %13103  ;;  %13113 = vpow2.f32 %v6778_v54  ;;  %v6756_v42 = vsub.f32 %v15396_v62, %v6738_v51  ;;  %v12629_v54 = vpack.c.bf16 %v6183_v36, %v6182_v56  ;;  %v6185_v51 = vld [vmem:[#allocation3 + $0x1b8] sm:$0xff] }
 0xa7e   : > { %v15452_v14 = vpop.eup %13105  ;;  %v6788_v9 = vmul.f32 1.442695, %v6757_v13  ;;  %v6817_v8 = vsel %vm3531_vm7, %v15449_v17, 0.0 }
 0xa7f   : > { %v6786_v33 = vmul.f32 1.442695, %v6756_v42  ;;  %6818 = vadd.xlane.f32.xlu1 %v6817_v8  ;;  %v6814_v11 = vsel %vm3531_vm7, %v15452_v14, 0.0  ;;  %v6191_v42 = vld [vmem:[#allocation3 + $0x1e8] sm:$0xff] }
 0xa80   : > { %13115 = vpow2.f32 %v6788_v9  ;;  %6815 = vadd.xlane.f32.xlu0 %v6814_v11 }
 0xa81   : > { %13117 = vpow2.f32 %v6786_v33  ;;  %v12633_v33 = vpack.c.bf16 %v6185_v51, %v6184_v52  ;;  %v7708_v52 = vld [vmem:[#allocation2 + $0x10] sm:$0xff] }
 0xa82   : > { %v15458_v10 = vpop.eup %13107 }
 0xa83   : > { %v15460_v47 = vpop.eup %13109  ;;  %v6829_v62 = vsel %vm3531_vm7, %v15458_v10, 0.0 }
 0xa84   : > { %6830 = vadd.xlane.f32.xlu1 %v6829_v62  ;;  %v6826_v31 = vsel %vm3531_vm7, %v15460_v47, 0.0 }
 0xa85   : > { %6827 = vadd.xlane.f32.xlu0 %v6826_v31  ;;  %v6192_v31 = vld [vmem:[#allocation3 + $0x1f0] sm:$0xff] }
 0xa86   : > { %v15466_v53 = vpop.eup %13111 }
 0xa87   : > { %v15468_v16 = vpop.eup %13113  ;;  %v6823_v35 = vsel %vm3531_vm7, %v15466_v53, 0.0 }
 0xa88   : > { %6824 = vadd.xlane.f32.xlu1 %v6823_v35  ;;  %v6820_v37 = vsel %vm3531_vm7, %v15468_v16, 0.0  ;;  %v6193_v35 = vld [vmem:[#allocation3 + $0x1f8] sm:$0xff] }
 0xa89   : > { %6821 = vadd.xlane.f32.xlu0 %v6820_v37  ;;  %v12649_v50 = vpack.c.bf16 %v6193_v35, %v6192_v31  ;;  %v7711_v31 = vld [vmem:[#allocation2 + $0x28] sm:$0xff] }
 0xa8a   : > { %v15474_v0 = vpop.eup %13115 }
 0xa8b   : > { %v15476_v63 = vpop.eup %13117  ;;  %v6835_v41 = vsel %vm3531_vm7, %v15474_v0, 0.0 }
 0xa8c   : > { %6836 = vadd.xlane.f32.xlu1 %v6835_v41  ;;  %v6832_v26 = vsel %vm3531_vm7, %v15476_v63, 0.0 }
 0xa8d   : > { %6833 = vadd.xlane.f32.xlu0 %v6832_v26 }
 0xaec   : > { %v6795_v57 = vpop.xlane.xlu1 %6794 }
 0xaed   : > { %13119 = vrcp.f32 %v6795_v57  ;;  %v6792_v61 = vpop.xlane.xlu0 %6791 }
 0xaee   : > { %13121 = vrcp.f32 %v6792_v61 }
 0xaf0   : > { %v6807_v22 = vpop.xlane.xlu1 %6806 }
 0xaf1   : > { %13123 = vrcp.f32 %v6807_v22  ;;  %v6804_v3 = vpop.xlane.xlu0 %6803 }
 0xaf2   : > { %13125 = vrcp.f32 %v6804_v3 }
 0xaf4   : > { %v6801_v58 = vpop.xlane.xlu1 %6800 }
 0xaf5   : > { %13127 = vrcp.f32 %v6801_v58  ;;  %v6798_v49 = vpop.xlane.xlu0 %6797 }
 0xaf6   : > { %13129 = vrcp.f32 %v6798_v49 }
 0xaf7   : > { %v13120_v12 = vpop.eup %13119 }
 0xaf8   : > { %v13122_v45 = vpop.eup %13121  ;;  %v6855_v6 = vmul.f32 %v13120_v12, %v15410_v19  ;;  %v6813_v27 = vpop.xlane.xlu1 %6812  ;;  %v6189_v19 = vld [vmem:[#allocation3 + $0x1d8] sm:$0xff] }
 0xaf9   : > { %13131 = vrcp.f32 %v6813_v27  ;;  %v6810_v44 = vpop.xlane.xlu0 %6809  ;;  %v6854_v15 = vmul.f32 %v13122_v45, %v15412_v40  ;;  %v12641_v20 = vpack.c.bf16 %v6189_v19, %v6188_v23  ;;  %v7714_v23 = vld [vmem:[#allocation2 + $0x40] sm:$0xff]  ;;  %v7715_v19 = vld [vmem:[#allocation2 + $0x48] sm:$0xff] }
 0xafa   : > { %6871 = vst.msk [vmem:[%s13580_s26 + $0x8] sm:$0xff] %vm3531_vm7, %v6855_v6  ;;  %13133 = vrcp.f32 %v6810_v44 }
 0xafb   : > { %v13124_v48 = vpop.eup %13123  ;;  %6870 = vst.msk [vmem:[%s13580_s26] sm:$0xff] %vm3531_vm7, %v6854_v15  ;;  %11861 = vmatprep.mubr.msk.f32.mxu0 %vm3531_vm7, %v6854_v15  ;;  %v7706_v15 = vld [vmem:[#allocation2] sm:$0xff] }
 0xafc   : > { %v13126_v39 = vpop.eup %13125  ;;  %v6859_v46 = vmul.f32 %v13124_v48, %v15418_v24  ;;  %11862 = vmatmul.mubr.msk.f32.vlgmr.msra.gmra.mrb[72].mxu0 %vm3531_vm7, %v6855_v6  ;;  %v6190_v24 = vld [vmem:[#allocation3 + $0x1e0] sm:$0xff]  ;;  %v13236_v6 = vld [vmem:[%s16188_s17 + $0x18] sm:$0xff] }
 0xafd   : > { %v6858_v40 = vmul.f32 %v13126_v39, %v15420_v21  ;;  %12624 = vmatpush3.bf16.msra.mxu0 %v12621_v25  ;;  %v12645_v11 = vpack.c.bf16 %v6191_v42, %v6190_v24  ;;  %v13234_v25 = vld [vmem:[%s16188_s17 + $0x8] sm:$0xff]  ;;  %v12677_v39 = vpack.c.bf16 %v7715_v19, %v7714_v23  ;;  %v7702_v23 = vld [vmem:[#allocation4 + $0xe0] sm:$0xff] }
 0xafe   : > { %6875 = vst.msk [vmem:[%s13580_s26 + $0x28] sm:$0xff] %vm3531_vm7, %v6859_v46  ;;  %12626 = vmatprep.subr.bf16.mxu0 %v12625_v18  ;;  %v7734_v19 = vld [vmem:[#allocation2 + $0xe0] sm:$0xff] }
 0xaff   : > { %v13128_v13 = vpop.eup %13127  ;;  %6874 = vst.msk [vmem:[%s13580_s26 + $0x20] sm:$0xff] %vm3531_vm7, %v6858_v40  ;;  %11883 = vmatprep.mubr.msk.f32.mxu1 %vm3531_vm7, %v6858_v40 }
 0xb00   : > { %v13130_v9 = vpop.eup %13129  ;;  %11884 = vmatmul.mubr.msk.f32.vlgmr.msra.gmra.mrb[72].mxu1 %vm3531_vm7, %v6859_v46  ;;  %v6857_v21 = vmul.f32 %v13128_v13, %v15426_v30  ;;  %v7709_v13 = vld [vmem:[#allocation2 + $0x18] sm:$0xff] }
 0xb01   : > { %v6856_v8 = vmul.f32 %v13130_v9, %v15428_v4  ;;  %12628 = vmatpush3.bf16.msra.mxu0 %v12625_v18  ;;  %12640 = vmatpush3.bf16.msra.mxu1 %v12637_v1  ;;  %v7707_v18 = vld [vmem:[#allocation2 + $0x8] sm:$0xff]  ;;  %v12659_v42 = vpack.c.bf16 %v7709_v13, %v7708_v52  ;;  %v7716_v9 = vld [vmem:[#allocation2 + $0x50] sm:$0xff] }
 0xb02   : > { %6873 = vst.msk [vmem:[%s13580_s26 + $0x18] sm:$0xff] %vm3531_vm7, %v6857_v21  ;;  %12630 = vmatprep.subr.bf16.mxu0 %v12629_v54  ;;  %12642 = vmatprep.subr.bf16.mxu1 %v12641_v20  ;;  %v12653_v36 = vpack.c.bf16 %v7707_v18, %v7706_v15  ;;  %v7727_v15 = vld [vmem:[#allocation2 + $0xa8] sm:$0xff]  ;;  %v7696_v18 = vld [vmem:[#allocation4 + $0xb0] sm:$0xff] }
 0xb03   : > { %v13132_v62 = vpop.eup %13131  ;;  %6872 = vst.msk [vmem:[%s13580_s26 + $0x10] sm:$0xff] %vm3531_vm7, %v6856_v8  ;;  %11864 = vmatprep.mubr.msk.f32.mxu0 %vm3531_vm7, %v6856_v8  ;;  %v7699_v13 = vld [vmem:[#allocation4 + $0xc8] sm:$0xff] }
 0xb04   : > { %v13134_v30 = vpop.eup %13133  ;;  %11865 = vmatmul.mubr.msk.f32.gmra.mrb[74].mxu0 %vm3531_vm7, %v6857_v21  ;;  %v6861_v4 = vmul.f32 %v13132_v62, %v15434_v7  ;;  %v13233_v7 = vld [vmem:[%s16188_s17] sm:$0xff]  ;;  %v7717_v21 = vld [vmem:[#allocation2 + $0x58] sm:$0xff] }
 0xb05   : > { %v6860_v37 = vmul.f32 %v13134_v30, %v15436_v34  ;;  %12632 = vmatpush3.bf16.msra.mxu0 %v12629_v54  ;;  %12644 = vmatpush3.bf16.msra.mxu1 %v12641_v20  ;;  %v7710_v62 = vld [vmem:[#allocation2 + $0x20] sm:$0xff] }
 0xb06   : > { %6877 = vst.msk [vmem:[%s13580_s26 + $0x38] sm:$0xff] %vm3531_vm7, %v6861_v4  ;;  %12634 = vmatprep.subr.bf16.mxu0 %v12633_v33  ;;  %12646 = vmatprep.subr.bf16.mxu1 %v12645_v11 }
 0xb07   : > { %6876 = vst.msk [vmem:[%s13580_s26 + $0x30] sm:$0xff] %vm3531_vm7, %v6860_v37  ;;  %11886 = vmatprep.mubr.msk.f32.mxu1 %vm3531_vm7, %v6860_v37  ;;  %v7718_v37 = vld [vmem:[#allocation2 + $0x60] sm:$0xff] }
 0xb08   : > { %11887 = vmatmul.mubr.msk.f32.gmra.mrb[74].mxu1 %vm3531_vm7, %v6861_v4  ;;  %v12665_v4 = vpack.c.bf16 %v7711_v31, %v7710_v62 }
 0xb09   : > { %12636 = vmatpush3.bf16.msra.mxu0 %v12633_v33  ;;  %12648 = vmatpush3.bf16.msra.mxu1 %v12645_v11  ;;  %v12683_v11 = vpack.c.bf16 %v7717_v21, %v7716_v9  ;;  %v7704_v9 = vld [vmem:[#allocation4 + $0xf0] sm:$0xff]  ;;  %v7705_v21 = vld [vmem:[#allocation4 + $0xf8] sm:$0xff] }
 0xb0a   : > { %12650 = vmatprep.subr.bf16.mxu1 %v12649_v50  ;;  %11933 = vmatprep.subr.mxu0 %v13233_v7 }
 0xb0c   : > { %v6819_v34 = vpop.xlane.xlu1 %6818 }
 0xb0d   : > { %13135 = vrcp.f32 %v6819_v34  ;;  %v6816_v55 = vpop.xlane.xlu0 %6815  ;;  %12652 = vmatpush3.bf16.msra.mxu1 %v12649_v50  ;;  %v7719_v50 = vld [vmem:[#allocation2 + $0x68] sm:$0xff] }
 0xb0e   : > { %13137 = vrcp.f32 %v6816_v55  ;;  %11941 = vmatprep.subr.mxu1 %v13234_v25 }
 0xb11   : > { %v6831_v41 = vpop.xlane.xlu1 %6830 }
 0xb12   : > { %13139 = vrcp.f32 %v6831_v41  ;;  %v6828_v26 = vpop.xlane.xlu0 %6827  ;;  %v7712_v41 = vld [vmem:[#allocation2 + $0x30] sm:$0xff] }
 0xb13   : > { %13141 = vrcp.f32 %v6828_v26  ;;  %v7713_v26 = vld [vmem:[#allocation2 + $0x38] sm:$0xff] }
 0xb15   : > { %v6825_v28 = vpop.xlane.xlu1 %6824 }
 0xb16   : > { %13143 = vrcp.f32 %v6825_v28  ;;  %v6822_v29 = vpop.xlane.xlu0 %6821  ;;  %v7694_v28 = vld [vmem:[#allocation4 + $0xa0] sm:$0xff] }
 0xb17   : > { %v13136_v1 = vpop.eup %13135  ;;  %13145 = vrcp.f32 %v6822_v29  ;;  %v12671_v29 = vpack.c.bf16 %v7713_v26, %v7712_v41 }
 0xb18   : > { %v13138_v57 = vpop.eup %13137  ;;  %v6863_v61 = vmul.f32 %v13136_v1, %v15449_v17  ;;  %v7720_v1 = vld [vmem:[#allocation2 + $0x70] sm:$0xff] }
 0xb19   : > { %v6837_v22 = vpop.xlane.xlu1 %6836  ;;  %v6862_v3 = vmul.f32 %v13138_v57, %v15452_v14  ;;  %v7721_v57 = vld [vmem:[#allocation2 + $0x78] sm:$0xff] }
 0xb1a   : > { %6879 = vst.msk [vmem:[%s13580_s26 + $0x48] sm:$0xff] %vm3531_vm7, %v6863_v61  ;;  %13147 = vrcp.f32 %v6837_v22  ;;  %v6834_v58 = vpop.xlane.xlu0 %6833  ;;  %v7722_v22 = vld [vmem:[#allocation2 + $0x80] sm:$0xff] }
 0xb1b   : > { %13149 = vrcp.f32 %v6834_v58  ;;  %6878 = vst.msk [vmem:[%s13580_s26 + $0x40] sm:$0xff] %vm3531_vm7, %v6862_v3  ;;  %11905 = vmatprep.mubr.msk.f32.mxu0 %vm3531_vm7, %v6862_v3  ;;  %v7723_v3 = vld [vmem:[#allocation2 + $0x88] sm:$0xff] }
 0xb1c   : > { %v13140_v49 = vpop.eup %13139  ;;  %11906 = vmatmul.mubr.msk.f32.vlgmr.msra.gmra.mrb[76].mxu0 %vm3531_vm7, %v6863_v61  ;;  %v12695_v61 = vpack.c.bf16 %v7721_v57, %v7720_v1  ;;  %v12701_v58 = vpack.c.bf16 %v7723_v3, %v7722_v22 }
 0xb1d   : > { %v13142_v12 = vpop.eup %13141  ;;  %v6867_v17 = vmul.f32 %v13140_v49, %v15458_v10  ;;  %11934 = vmatpush3.msra.mxu0 %v13233_v7  ;;  %v7690_v7 = vld [vmem:[#allocation4 + $0x80] sm:$0xff] }
 0xb1e   : > { %v6866_v14 = vmul.f32 %v13142_v12, %v15460_v47  ;;  %11949 = vmatprep.subr.mxu0 %v13235_v32  ;;  %v7730_v49 = vld [vmem:[#allocation2 + $0xc0] sm:$0xff]  ;;  %v7731_v12 = vld [vmem:[#allocation2 + $0xc8] sm:$0xff] }
 0xb1f   : > { %6883 = vst.msk [vmem:[%s13580_s26 + $0x68] sm:$0xff] %vm3531_vm7, %v6867_v17 }
 0xb20   : > { %v13144_v38 = vpop.eup %13143  ;;  %6882 = vst.msk [vmem:[%s13580_s26 + $0x60] sm:$0xff] %vm3531_vm7, %v6866_v14  ;;  %11927 = vmatprep.mubr.msk.f32.mxu1 %vm3531_vm7, %v6866_v14  ;;  %v7724_v14 = vld [vmem:[#allocation2 + $0x90] sm:$0xff] }
 0xb21   : > { %v13146_v45 = vpop.eup %13145  ;;  %11928 = vmatmul.mubr.msk.f32.vlgmr.msra.gmra.mrb[76].mxu1 %vm3531_vm7, %v6867_v17  ;;  %v6865_v10 = vmul.f32 %v13144_v38, %v15466_v53  ;;  %v12725_v17 = vpack.c.bf16 %v7731_v12, %v7730_v49 }
 0xb22   : > { %v6864_v47 = vmul.f32 %v13146_v45, %v15468_v16  ;;  %11942 = vmatpush3.msra.mxu1 %v13234_v25  ;;  %v12689_v25 = vpack.c.bf16 %v7719_v50, %v7718_v37  ;;  %v7691_v45 = vld [vmem:[#allocation4 + $0x88] sm:$0xff] }
 0xb23   : > { %6881 = vst.msk [vmem:[%s13580_s26 + $0x58] sm:$0xff] %vm3531_vm7, %v6865_v10  ;;  %11957 = vmatprep.subr.mxu1 %v13236_v6 }
 0xb24   : > { %v13148_v27 = vpop.eup %13147  ;;  %6880 = vst.msk [vmem:[%s13580_s26 + $0x50] sm:$0xff] %vm3531_vm7, %v6864_v47  ;;  %11908 = vmatprep.mubr.msk.f32.mxu0 %vm3531_vm7, %v6864_v47  ;;  %v7732_v47 = vld [vmem:[#allocation2 + $0xd0] sm:$0xff] }
 0xb25   : > { %v13150_v44 = vpop.eup %13149  ;;  %11909 = vmatmul.mubr.msk.f32.gmra.mrb[78].mxu0 %vm3531_vm7, %v6865_v10  ;;  %v6869_v53 = vmul.f32 %v13148_v27, %v15474_v0  ;;  %v7692_v10 = vld [vmem:[#allocation4 + $0x90] sm:$0xff]  ;;  %v7695_v27 = vld [vmem:[#allocation4 + $0xa8] sm:$0xff] }
 0xb26   : > { %v6868_v16 = vmul.f32 %v13150_v44, %v15476_v63  ;;  %v7693_v44 = vld [vmem:[#allocation4 + $0x98] sm:$0xff] }
 0xb27   : > { %6885 = vst.msk [vmem:[%s13580_s26 + $0x78] sm:$0xff] %vm3531_vm7, %v6869_v53 }
 0xb28   : > { %6884 = vst.msk [vmem:[%s13580_s26 + $0x70] sm:$0xff] %vm3531_vm7, %v6868_v16  ;;  %11930 = vmatprep.mubr.msk.f32.mxu1 %vm3531_vm7, %v6868_v16  ;;  %v7726_v16 = vld [vmem:[#allocation2 + $0xa0] sm:$0xff] }
 0xb29   : > { %11931 = vmatmul.mubr.msk.f32.gmra.mrb[78].mxu1 %vm3531_vm7, %v6869_v53 }
 0xbcf   : > { %v11863_v56 = vpop.f32.mrb[72].mxu0 }
 0xbd0   : > { %v6964_v48 = vpop.f32.mrb[73].mxu0 }
 0xbd1   : > { %11935 = vmatprep.mubr.msk.f32.mxu0 %vm2527_vm3, %v6964_v48  ;;  %v12713_v48 = vpack.c.bf16 %v7727_v15, %v7726_v16 }
 0xbd2   : > { %11936 = vmatmul.mubr.msk.f32.vlgmr.msra.gmra.mrb[80].mxu0 %vm2527_vm3, %v11863_v56  ;;  %v7698_v56 = vld [vmem:[#allocation4 + $0xc0] sm:$0xff] }
 0xbd3   : > { %v11885_v0 = vpop.f32.mrb[72].mxu1  ;;  %11950 = vmatpush3.msra.mxu0 %v13235_v32  ;;  %v7725_v32 = vld [vmem:[#allocation2 + $0x98] sm:$0xff] }
 0xbd4   : > { %v7061_v63 = vpop.f32.mrb[73].mxu1  ;;  %12655 = vmatprep.subr.msk.bf16.mxu0 %vm14300_vm4, %v12653_v36  ;;  %v12707_v38 = vpack.c.bf16 %v7725_v32, %v7724_v14 }
 0xbd5   : > { %11943 = vmatprep.mubr.msk.f32.mxu1 %vm2527_vm3, %v7061_v63 }
 0xbd6   : > { %11944 = vmatmul.mubr.msk.f32.vlgmr.msra.gmra.mrb[80].mxu1 %vm2527_vm3, %v11885_v0  ;;  %v7735_v0 = vld [vmem:[#allocation2 + $0xe8] sm:$0xff] }
 0xbd7   : > { %v11866_v46 = vpop.f32.mrb[74].mxu0  ;;  %11958 = vmatpush3.msra.mxu1 %v13236_v6  ;;  %v7733_v6 = vld [vmem:[#allocation2 + $0xd8] sm:$0xff]  ;;  %v12737_v63 = vpack.c.bf16 %v7735_v0, %v7734_v19 }
 0xbd8   : > { %v6974_v40 = vpop.f32.mrb[75].mxu0  ;;  %12679 = vmatprep.subr.msk.bf16.mxu1 %vm14300_vm4, %v12677_v39  ;;  %v12731_v53 = vpack.c.bf16 %v7733_v6, %v7732_v47 }
 0xbd9   : > { %11938 = vmatprep.mubr.msk.f32.mxu0 %vm2527_vm3, %v6974_v40 }
 0xbda   : > { %11939 = vmatmul.mubr.msk.f32.gmra.mrb[82].mxu0 %vm2527_vm3, %v11866_v46  ;;  %v7729_v46 = vld [vmem:[#allocation2 + $0xb8] sm:$0xff] }
 0xbdb   : > { %v11888_v54 = vpop.f32.mrb[74].mxu1 }
 0xbdc   : > { %v7071_v20 = vpop.f32.mrb[75].mxu1 }
 0xbdd   : > { %11946 = vmatprep.mubr.msk.f32.mxu1 %vm2527_vm3, %v7071_v20  ;;  %v7737_v20 = vld [vmem:[#allocation2 + $0xf8] sm:$0xff] }
 0xbde   : > { %11947 = vmatmul.mubr.msk.f32.gmra.mrb[82].mxu1 %vm2527_vm3, %v11888_v54  ;;  %v7736_v54 = vld [vmem:[#allocation2 + $0xf0] sm:$0xff] }
 0xbdf   : > { %v12743_v52 = vpack.c.bf16 %v7737_v20, %v7736_v54 }
 0xbef   : > { %v11907_v51 = vpop.f32.mrb[76].mxu0 }
 0xbf0   : > { %v7158_v24 = vpop.f32.mrb[77].mxu0 }
 0xbf1   : > { %11951 = vmatprep.mubr.msk.f32.mxu0 %vm2527_vm3, %v7158_v24  ;;  %v7701_v24 = vld [vmem:[#allocation4 + $0xd8] sm:$0xff] }
 0xbf2   : > { %11952 = vmatmul.mubr.msk.f32.vlgmr.msra.gmra.mrb[84].mxu0 %vm2527_vm3, %v11907_v51  ;;  %v7700_v51 = vld [vmem:[#allocation4 + $0xd0] sm:$0xff] }
 0xbf3   : > { %12658 = vmatpush3.bf16.xpose.msk.msra.mxu0 %vm14300_vm4, %v12653_v36  ;;  %v7697_v36 = vld [vmem:[#allocation4 + $0xb8] sm:$0xff] }
 0xbf4   : > { %v11929_v8 = vpop.f32.mrb[76].mxu1  ;;  %12661 = vmatprep.subr.msk.bf16.mxu0 %vm14300_vm4, %v12659_v42 }
 0xbf5   : > { %v7255_v33 = vpop.f32.mrb[77].mxu1 }
 0xbf6   : > { %11959 = vmatprep.mubr.msk.f32.mxu1 %vm2527_vm3, %v7255_v33 }
 0xbf7   : > { %11960 = vmatmul.mubr.msk.f32.vlgmr.msra.gmra.mrb[84].mxu1 %vm2527_vm3, %v11929_v8 }
 0xbf8   : > { %12682 = vmatpush3.bf16.xpose.msk.msra.mxu1 %vm14300_vm4, %v12677_v39  ;;  %v11910_v35 = vpop.f32.mrb[78].mxu0  ;;  %v7728_v39 = vld [vmem:[#allocation2 + $0xb0] sm:$0xff] }
 0xbf9   : > { %v7168_v30 = vpop.f32.mrb[79].mxu0  ;;  %12685 = vmatprep.subr.msk.bf16.mxu1 %vm14300_vm4, %v12683_v11  ;;  %v12719_v40 = vpack.c.bf16 %v7729_v46, %v7728_v39 }
 0xbfa   : > { %11954 = vmatprep.mubr.msk.f32.mxu0 %vm2527_vm3, %v7168_v30 }
 0xbfb   : > { %11955 = vmatmul.mubr.msk.f32.gmra.mrb[86].mxu0 %vm2527_vm3, %v11910_v35 }
 0xbfc   : > { %12664 = vmatpush3.bf16.xpose.msk.msra.mxu0 %vm14300_vm4, %v12659_v42  ;;  %v11932_v34 = vpop.f32.mrb[78].mxu1  ;;  %11981 = vmatprep.mubr.msk.f32.mxu0 %vm2527_vm3, %v7690_v7  ;;  %v7703_v42 = vld [vmem:[#allocation4 + $0xe8] sm:$0xff] }
 0xbfd   : > { %v7265_v55 = vpop.f32.mrb[79].mxu1  ;;  %12667 = vmatprep.subr.msk.bf16.mxu0 %vm14300_vm4, %v12665_v4 }
 0xbfe   : > { %11962 = vmatprep.mubr.msk.f32.mxu1 %vm2527_vm3, %v7265_v55 }
 0xbff   : > { %11963 = vmatmul.mubr.msk.f32.gmra.mrb[86].mxu1 %vm2527_vm3, %v11932_v34 }
 0xc00   : > { %12688 = vmatpush3.bf16.xpose.msk.msra.mxu1 %vm14300_vm4, %v12683_v11  ;;  %12003 = vmatprep.mubr.msk.f32.mxu1 %vm2527_vm3, %v7694_v28 }
 0xc01   : > { %12691 = vmatprep.subr.msk.bf16.mxu1 %vm14300_vm4, %v12689_v25 }
 0xc04   : > { %12670 = vmatpush3.bf16.xpose.msk.msra.mxu0 %vm14300_vm4, %v12665_v4 }
 0xc05   : > { %12673 = vmatprep.subr.msk.bf16.mxu0 %vm14300_vm4, %v12671_v29 }
 0xc08   : > { %12694 = vmatpush3.bf16.xpose.msk.msra.mxu1 %vm14300_vm4, %v12689_v25 }
 0xc09   : > { %12697 = vmatprep.subr.msk.bf16.mxu1 %vm14300_vm4, %v12695_v61 }
 0xc0c   : > { %12676 = vmatpush3.bf16.xpose.msk.msra.mxu0 %vm14300_vm4, %v12671_v29 }
 0xc0d   : > { %12703 = vmatprep.subr.msk.bf16.mxu0 %vm14300_vm4, %v12701_v58 }
 0xc10   : > { %12700 = vmatpush3.bf16.xpose.msk.msra.mxu1 %vm14300_vm4, %v12695_v61 }
 0xc11   : > { %12727 = vmatprep.subr.msk.bf16.mxu1 %vm14300_vm4, %v12725_v17 }
 0xc13   : > { %11982 = vmatmul.mubr.msk.f32.vlgmr.msra.gmra.mrb[88].mxu0 %vm2527_vm3, %v7691_v45 }
 0xc14   : > { %11984 = vmatprep.mubr.msk.f32.mxu0 %vm2527_vm3, %v7692_v10  ;;  %12706 = vmatpush3.bf16.xpose.msk.msra.mxu0 %vm14300_vm4, %v12701_v58 }
 0xc15   : > { %12709 = vmatprep.subr.msk.bf16.mxu0 %vm14300_vm4, %v12707_v38 }
 0xc17   : > { %11985 = vmatmul.mubr.msk.f32.gmra.mrb[90].mxu0 %vm2527_vm3, %v7693_v44  ;;  %12004 = vmatmul.mubr.msk.f32.vlgmr.msra.gmra.mrb[88].mxu1 %vm2527_vm3, %v7695_v27 }
 0xc18   : > { %12006 = vmatprep.mubr.msk.f32.mxu1 %vm2527_vm3, %v7696_v18  ;;  %12025 = vmatprep.mubr.msk.f32.mxu0 %vm2527_vm3, %v7698_v56 }
 0xc19   : > { %12730 = vmatpush3.bf16.xpose.msk.msra.mxu1 %vm14300_vm4, %v12725_v17 }
 0xc1a   : > { %12733 = vmatprep.subr.msk.bf16.mxu1 %vm14300_vm4, %v12731_v53 }
 0xc1b   : > { %12007 = vmatmul.mubr.msk.f32.gmra.mrb[90].mxu1 %vm2527_vm3, %v7697_v36 }
 0xc1c   : > { %12712 = vmatpush3.bf16.xpose.msk.msra.mxu0 %vm14300_vm4, %v12707_v38  ;;  %12047 = vmatprep.mubr.msk.f32.mxu1 %vm2527_vm3, %v7702_v23 }
 0xc1d   : > { %12715 = vmatprep.subr.msk.bf16.mxu0 %vm14300_vm4, %v12713_v48 }
 0xc21   : > { %12736 = vmatpush3.bf16.xpose.msk.msra.mxu1 %vm14300_vm4, %v12731_v53 }
 0xc22   : > { %12739 = vmatprep.subr.msk.bf16.mxu1 %vm14300_vm4, %v12737_v63 }
 0xc24   : > { %12718 = vmatpush3.bf16.xpose.msk.msra.mxu0 %vm14300_vm4, %v12713_v48 }
 0xc25   : > { %12721 = vmatprep.subr.msk.bf16.mxu0 %vm14300_vm4, %v12719_v40 }
 0xc29   : > { %12742 = vmatpush3.bf16.xpose.msk.msra.mxu1 %vm14300_vm4, %v12737_v63 }
 0xc2a   : > { %12745 = vmatprep.subr.msk.bf16.mxu1 %vm14300_vm4, %v12743_v52 }
 0xc2c   : > { %12724 = vmatpush3.bf16.xpose.msk.msra.mxu0 %vm14300_vm4, %v12719_v40 }
 0xc31   : > { %12748 = vmatpush3.bf16.xpose.msk.msra.mxu1 %vm14300_vm4, %v12743_v52 }
 0xc33   : > { %12026 = vmatmul.mubr.msk.f32.vlgmr.msra.gmra.mrb[92].mxu0 %vm2527_vm3, %v7699_v13 }
 0xc34   : > { %12028 = vmatprep.mubr.msk.f32.mxu0 %vm2527_vm3, %v7700_v51 }
 0xc37   : > { %12029 = vmatmul.mubr.msk.f32.gmra.mrb[94].mxu0 %vm2527_vm3, %v7701_v24 }
 0xc38   : > { %12048 = vmatmul.mubr.msk.f32.vlgmr.msra.gmra.mrb[92].mxu1 %vm2527_vm3, %v7703_v42 }
 0xc39   : > { %12050 = vmatprep.mubr.msk.f32.mxu1 %vm2527_vm3, %v7704_v9 }
 0xc3c   : > { %12051 = vmatmul.mubr.msk.f32.gmra.mrb[94].mxu1 %vm2527_vm3, %v7705_v21 }
 0xca5   : > { %v11937_v2 = vpop.f32.mrb[80].mxu0 }
 0xca6   : > { %v7352_v8 = vpop.f32.mrb[81].mxu0  ;;  %v7669_v11 = vsel %vm2394_vm2, %v11937_v2, 0.0 }
 0xca7   : > { %v7662_v35 = vsel %vm2394_vm2, %v7352_v8, 0.0 }
 0xca9   : > { %v11945_v33 = vpop.f32.mrb[80].mxu1 }
 0xcaa   : > { %v7670_v62 = vsel %vm2394_vm2, %v11945_v33, 0.0  ;;  %v7449_v31 = vpop.f32.mrb[81].mxu1 }
 0xcab   : > { %v7671_v30 = vadd.f32 %v7670_v62, %v7669_v11  ;;  %v7663_v4 = vsel %vm2394_vm2, %v7449_v31, 0.0 }
 0xcac   : > { %v7664_v37 = vadd.f32 %v7663_v4, %v7662_v35 }
 0xcad   : > { %v11940_v50 = vpop.f32.mrb[82].mxu0 }
 0xcae   : > { %v7362_v7 = vpop.f32.mrb[83].mxu0  ;;  %v7683_v55 = vsel %vm2394_vm2, %v11940_v50, 0.0 }
 0xcaf   : > { %v7676_v26 = vsel %vm2394_vm2, %v7362_v7, 0.0 }
 0xcb1   : > { %v11948_v34 = vpop.f32.mrb[82].mxu1 }
 0xcb2   : > { %v7684_v25 = vsel %vm2394_vm2, %v11948_v34, 0.0  ;;  %v7459_v41 = vpop.f32.mrb[83].mxu1 }
 0xcb3   : > { %v7685_v28 = vadd.f32 %v7684_v25, %v7683_v55  ;;  %v7677_v29 = vsel %vm2394_vm2, %v7459_v41, 0.0 }
 0xcb4   : > { %v7678_v1 = vadd.f32 %v7677_v29, %v7676_v26 }
 0xcc5   : > { %v11953_v57 = vpop.f32.mrb[84].mxu0 }
 0xcc6   : > { %v7672_v61 = vsel %vm2394_vm2, %v11953_v57, 0.0  ;;  %v7546_v22 = vpop.f32.mrb[85].mxu0 }
 0xcc7   : > { %v7673_v3 = vadd.f32 %v7672_v61, %v7671_v30  ;;  %v7665_v58 = vsel %vm2394_vm2, %v7546_v22, 0.0 }
 0xcc8   : > { %v7666_v49 = vadd.f32 %v7665_v58, %v7664_v37 }
 0xcca   : > { %v11961_v12 = vpop.f32.mrb[84].mxu1 }
 0xccb   : > { %v7674_v17 = vsel %vm2394_vm2, %v11961_v12, 0.0  ;;  %v7643_v14 = vpop.f32.mrb[85].mxu1 }
 0xccc   : > { %v15665_v32 = vadd.f32 %v7674_v17, %v7673_v3  ;;  %v7667_v38 = vsel %vm2394_vm2, %v7643_v14, 0.0 }
 0xccd   : > { %v15668_v45 = vadd.f32 %v7667_v38, %v7666_v49 }
 0xcce   : > { %v11956_v10 = vpop.f32.mrb[86].mxu0 }
 0xccf   : > { %v7686_v47 = vsel %vm2394_vm2, %v11956_v10, 0.0  ;;  %v7556_v6 = vpop.f32.mrb[87].mxu0  ;;  %v7738_v10 = vld [vmem:[#allocation3] sm:$0xff] }
 0xcd0   : > { %v7687_v27 = vadd.f32 %v7686_v47, %v7685_v28  ;;  %v7679_v44 = vsel %vm2394_vm2, %v7556_v6, 0.0  ;;  %v7739_v47 = vld [vmem:[#allocation3 + $0x8] sm:$0xff] }
 0xcd1   : > { %v7680_v53 = vadd.f32 %v7679_v44, %v7678_v1  ;;  %v12749_v6 = vpack.c.bf16 %v7739_v47, %v7738_v10 }
 0xcd2   : > { %v11964_v16 = vpop.f32.mrb[86].mxu1 }
 0xcd3   : > { %v7688_v15 = vsel %vm2394_vm2, %v11964_v16, 0.0  ;;  %v7653_v18 = vpop.f32.mrb[87].mxu1  ;;  %12750 = vmatprep.subr.bf16.mxu0 %v12749_v6 }
 0xcd4   : > { %v15673_v56 = vadd.f32 %v7688_v15, %v7687_v27  ;;  %v7681_v48 = vsel %vm2394_vm2, %v7653_v18, 0.0  ;;  %12752 = vmatpush3.bf16.msra.mxu0 %v12749_v6 }
 0xcd5   : > { %v15676_v36 = vadd.f32 %v7681_v48, %v7680_v53 }
 0xce6   : > { %v11983_v23 = vpop.f32.mrb[88].mxu0 }
 0xce7   : > { %v15680_v19 = vsel %vm14909_vm10, -3.4028235e+38, %v11983_v23  ;;  %v7872_v0 = vpop.f32.mrb[89].mxu0 }
 0xce8   : > { %v15684_v63 = vsel %vm14913_vm11, -3.4028235e+38, %v7872_v0  ;;  %v8273_v39 = vsel %vm3531_vm7, %v15680_v19, -inf }
 0xce9   : > { %8274 = vmax.xlane.f32.xlu1 %v8273_v39  ;;  %v8270_v46 = vsel %vm3531_vm7, %v15684_v63, -inf }
 0xcea   : > { %8271 = vmax.xlane.f32.xlu0 %v8270_v46  ;;  %v11986_v40 = vpop.f32.mrb[90].mxu0  ;;  %v12005_v54 = vpop.f32.mrb[88].mxu1 }
 0xceb   : > { %v15692_v20 = vsel %vm14909_vm10, -3.4028235e+38, %v12005_v54  ;;  %v7882_v52 = vpop.f32.mrb[91].mxu0  ;;  %v7993_v13 = vpop.f32.mrb[89].mxu1  ;;  %v15702_v42 = vsel %vm14929_vm12, -3.4028235e+38, %v11986_v40 }
 0xcec   : > { %v8285_v51 = vsel %vm3531_vm7, %v15692_v20, -inf  ;;  %v15698_v24 = vsel %vm14913_vm11, -3.4028235e+38, %v7993_v13  ;;  %v15708_v21 = vsel %vm14937_vm13, -3.4028235e+38, %v7882_v52  ;;  %v8279_v33 = vsel %vm3531_vm7, %v15702_v42, -inf }
 0xced   : > { %v8282_v9 = vsel %vm3531_vm7, %v15698_v24, -inf  ;;  %8286 = vmax.xlane.f32.xlu1 %v8285_v51  ;;  %v8276_v11 = vsel %vm3531_vm7, %v15708_v21, -inf }
 0xcee   : > { %8283 = vmax.xlane.f32.xlu0 %v8282_v9  ;;  %v12008_v2 = vpop.f32.mrb[90].mxu1 }
 0xcef   : > { %v8003_v8 = vpop.f32.mrb[91].mxu1  ;;  %v15716_v62 = vsel %vm14929_vm12, -3.4028235e+38, %v12008_v2 }
 0xcf0   : > { %v15720_v31 = vsel %vm14937_vm13, -3.4028235e+38, %v8003_v8  ;;  %v8291_v35 = vsel %vm3531_vm7, %v15716_v62, -inf }
 0xcf1   : > { %8280 = vmax.xlane.f32.xlu1 %v8279_v33  ;;  %v8288_v30 = vsel %vm3531_vm7, %v15720_v31, -inf }
 0xcf2   : > { %8277 = vmax.xlane.f32.xlu0 %v8276_v11 }
 0xcf5   : > { %8292 = vmax.xlane.f32.xlu1 %v8291_v35 }
 0xcf6   : > { %8289 = vmax.xlane.f32.xlu0 %v8288_v30 }
 0xd06   : > { %v12027_v4 = vpop.f32.mrb[92].mxu0 }
 0xd07   : > { %v15728_v37 = vsel %vm14909_vm10, -3.4028235e+38, %v12027_v4  ;;  %v8114_v50 = vpop.f32.mrb[93].mxu0 }
 0xd08   : > { %v8297_v7 = vsel %vm3531_vm7, %v15728_v37, -inf  ;;  %v15734_v34 = vsel %vm14913_vm11, -3.4028235e+38, %v8114_v50 }
 0xd09   : > { %v8294_v55 = vsel %vm3531_vm7, %v15734_v34, -inf  ;;  %8298 = vmax.xlane.f32.xlu1 %v8297_v7 }
 0xd0a   : > { %v12030_v25 = vpop.f32.mrb[94].mxu0  ;;  %8295 = vmax.xlane.f32.xlu0 %v8294_v55 }
 0xd0b   : > { %v12049_v41 = vpop.f32.mrb[92].mxu1  ;;  %v8124_v26 = vpop.f32.mrb[95].mxu0  ;;  %v15750_v61 = vsel %vm14929_vm12, -3.4028235e+38, %v12030_v25 }
 0xd0c   : > { %v15740_v28 = vsel %vm14909_vm10, -3.4028235e+38, %v12049_v41  ;;  %v8235_v29 = vpop.f32.mrb[93].mxu1  ;;  %v15756_v60 = vsel %vm14937_vm13, -3.4028235e+38, %v8124_v26  ;;  %v8303_v43 = vsel %vm3531_vm7, %v15750_v61, -inf }
 0xd0d   : > { %v8309_v1 = vsel %vm3531_vm7, %v15740_v28, -inf  ;;  %v15746_v57 = vsel %vm14913_vm11, -3.4028235e+38, %v8235_v29  ;;  %v8300_v49 = vsel %vm3531_vm7, %v15756_v60, -inf }
 0xd0e   : > { %v8306_v22 = vsel %vm3531_vm7, %v15746_v57, -inf  ;;  %8310 = vmax.xlane.f32.xlu1 %v8309_v1  ;;  %v7740_v1 = vld [vmem:[#allocation3 + $0x10] sm:$0xff] }
 0xd0f   : > { %8307 = vmax.xlane.f32.xlu0 %v8306_v22  ;;  %v12052_v3 = vpop.f32.mrb[94].mxu1  ;;  %v7741_v22 = vld [vmem:[#allocation3 + $0x18] sm:$0xff] }
 0xd10   : > { %v8245_v58 = vpop.f32.mrb[95].mxu1  ;;  %v15764_v12 = vsel %vm14929_vm12, -3.4028235e+38, %v12052_v3  ;;  %v7746_v3 = vld [vmem:[#allocation3 + $0x40] sm:$0xff] }
 0xd11   : > { %v15768_v17 = vsel %vm14937_vm13, -3.4028235e+38, %v8245_v58  ;;  %v8315_v14 = vsel %vm3531_vm7, %v15764_v12, -inf }
 0xd12   : > { %8304 = vmax.xlane.f32.xlu1 %v8303_v43  ;;  %v8312_v38 = vsel %vm3531_vm7, %v15768_v17, -inf }
 0xd13   : > { %8301 = vmax.xlane.f32.xlu0 %v8300_v49  ;;  %v12753_v49 = vpack.c.bf16 %v7741_v22, %v7740_v1 }
 0xd15   : > { %12754 = vmatprep.subr.bf16.mxu0 %v12753_v49 }
 0xd16   : > { %8316 = vmax.xlane.f32.xlu1 %v8315_v14  ;;  %v7747_v14 = vld [vmem:[#allocation3 + $0x48] sm:$0xff]  ;;  %12756 = vmatpush3.bf16.msra.mxu0 %v12753_v49 }
 0xd17   : > { %8313 = vmax.xlane.f32.xlu0 %v8312_v38  ;;  %v12765_v10 = vpack.c.bf16 %v7747_v14, %v7746_v3  ;;  %v7755_v49 = vld [vmem:[#allocation3 + $0x88] sm:$0xff] }
 0xd19   : > { %12766 = vmatprep.subr.bf16.mxu1 %v12765_v10 }
 0xd1a   : > { %12768 = vmatpush3.bf16.msra.mxu1 %v12765_v10 }
 0xd76   : > { %v8275_v59 = vpop.xlane.xlu1 %8274 }
 0xd77   : > { %v8319_v27 = vsub.f32 %v15680_v19, %v8275_v59  ;;  %v8272_v5 = vpop.xlane.xlu0 %8271  ;;  %v7742_v59 = vld [vmem:[#allocation3 + $0x20] sm:$0xff] }
 0xd78   : > { %v8318_v44 = vsub.f32 %v15684_v63, %v8272_v5  ;;  %v7748_v5 = vld [vmem:[#allocation3 + $0x50] sm:$0xff] }
 0xd79   : > { %v8336_v53 = vmul.f32 1.442695, %v8319_v27  ;;  %v7743_v27 = vld [vmem:[#allocation3 + $0x28] sm:$0xff] }
 0xd7a   : > { %v8334_v16 = vmul.f32 1.442695, %v8318_v44  ;;  %v8287_v15 = vpop.xlane.xlu1 %8286 }
 0xd7b   : > { %13151 = vpow2.f32 %v8336_v53  ;;  %v8323_v18 = vsub.f32 %v15692_v20, %v8287_v15  ;;  %v8284_v48 = vpop.xlane.xlu0 %8283  ;;  %v12757_v53 = vpack.c.bf16 %v7743_v27, %v7742_v59  ;;  %v7762_v59 = vld [vmem:[#allocation3 + $0xc0] sm:$0xff]  ;;  %v7763_v27 = vld [vmem:[#allocation3 + $0xc8] sm:$0xff] }
 0xd7c   : > { %13153 = vpow2.f32 %v8334_v16  ;;  %v8322_v23 = vsub.f32 %v15698_v24, %v8284_v48  ;;  %v7749_v16 = vld [vmem:[#allocation3 + $0x58] sm:$0xff] }
 0xd7d   : > { %v8344_v0 = vmul.f32 1.442695, %v8323_v18  ;;  %v12769_v18 = vpack.c.bf16 %v7749_v16, %v7748_v5  ;;  %12758 = vmatprep.subr.bf16.mxu0 %v12757_v53  ;;  %v12797_v5 = vpack.c.bf16 %v7763_v27, %v7762_v59 }
 0xd7e   : > { %v8342_v39 = vmul.f32 1.442695, %v8322_v23  ;;  %v8281_v46 = vpop.xlane.xlu1 %8280  ;;  %12760 = vmatpush3.bf16.msra.mxu0 %v12757_v53  ;;  %v7744_v23 = vld [vmem:[#allocation3 + $0x30] sm:$0xff] }
 0xd7f   : > { %13155 = vpow2.f32 %v8344_v0  ;;  %v8321_v40 = vsub.f32 %v15702_v42, %v8281_v46  ;;  %v8278_v19 = vpop.xlane.xlu0 %8277  ;;  %12770 = vmatprep.subr.bf16.mxu1 %v12769_v18  ;;  %v7745_v0 = vld [vmem:[#allocation3 + $0x38] sm:$0xff] }
 0xd80   : > { %13157 = vpow2.f32 %v8342_v39  ;;  %v8320_v63 = vsub.f32 %v15708_v21, %v8278_v19  ;;  %v7750_v39 = vld [vmem:[#allocation3 + $0x60] sm:$0xff]  ;;  %12772 = vmatpush3.bf16.msra.mxu1 %v12769_v18  ;;  %v12761_v19 = vpack.c.bf16 %v7745_v0, %v7744_v23  ;;  %v7757_v23 = vld [vmem:[#allocation3 + $0x98] sm:$0xff] }
 0xd81   : > { %v8340_v54 = vmul.f32 1.442695, %v8321_v40 }
 0xd82   : > { %v8338_v52 = vmul.f32 1.442695, %v8320_v63  ;;  %v8293_v13 = vpop.xlane.xlu1 %8292  ;;  %v7751_v63 = vld [vmem:[#allocation3 + $0x68] sm:$0xff]  ;;  %12762 = vmatprep.subr.bf16.mxu0 %v12761_v19 }
 0xd83   : > { %13159 = vpow2.f32 %v8340_v54  ;;  %v8325_v20 = vsub.f32 %v15716_v62, %v8293_v13  ;;  %v8290_v51 = vpop.xlane.xlu0 %8289  ;;  %12764 = vmatpush3.bf16.msra.mxu0 %v12761_v19 }
 0xd84   : > { %13161 = vpow2.f32 %v8338_v52  ;;  %v8324_v24 = vsub.f32 %v15720_v31, %v8290_v51  ;;  %v12773_v52 = vpack.c.bf16 %v7751_v63, %v7750_v39  ;;  %v7753_v51 = vld [vmem:[#allocation3 + $0x78] sm:$0xff] }
 0xd85   : > { %v15782_v9 = vpop.eup %13151  ;;  %v8348_v2 = vmul.f32 1.442695, %v8325_v20  ;;  %v7752_v20 = vld [vmem:[#allocation3 + $0x70] sm:$0xff] }
 0xd86   : > { %v15784_v8 = vpop.eup %13153  ;;  %v8346_v42 = vmul.f32 1.442695, %v8324_v24  ;;  %v8369_v33 = vsel %vm3531_vm7, %v15782_v9, 0.0  ;;  %12774 = vmatprep.subr.bf16.mxu1 %v12773_v52 }
 0xd87   : > { %13163 = vpow2.f32 %v8348_v2  ;;  %8370 = vadd.xlane.f32.xlu1 %v8369_v33  ;;  %v8366_v21 = vsel %vm3531_vm7, %v15784_v8, 0.0  ;;  %12776 = vmatpush3.bf16.msra.mxu1 %v12773_v52  ;;  %v7759_v52 = vld [vmem:[#allocation3 + $0xa8] sm:$0xff] }
 0xd88   : > { %13165 = vpow2.f32 %v8346_v42  ;;  %8367 = vadd.xlane.f32.xlu0 %v8366_v21  ;;  %v12777_v42 = vpack.c.bf16 %v7753_v51, %v7752_v20 }
 0xd89   : > { %v15790_v11 = vpop.eup %13155 }
 0xd8a   : > { %v15792_v62 = vpop.eup %13157  ;;  %v8381_v31 = vsel %vm3531_vm7, %v15790_v11, 0.0  ;;  %12778 = vmatprep.subr.bf16.mxu1 %v12777_v42 }
 0xd8b   : > { %8382 = vadd.xlane.f32.xlu1 %v8381_v31  ;;  %v8378_v35 = vsel %vm3531_vm7, %v15792_v62, 0.0  ;;  %12780 = vmatpush3.bf16.msra.mxu1 %v12777_v42 }
 0xd8c   : > { %8379 = vadd.xlane.f32.xlu0 %v8378_v35  ;;  %12798 = vmatprep.subr.bf16.mxu1 %v12797_v5 }
 0xd8d   : > { %v15798_v30 = vpop.eup %13159 }
 0xd8e   : > { %v15800_v4 = vpop.eup %13161  ;;  %v8375_v50 = vsel %vm3531_vm7, %v15798_v30, 0.0 }
 0xd8f   : > { %8376 = vadd.xlane.f32.xlu1 %v8375_v50  ;;  %v8372_v7 = vsel %vm3531_vm7, %v15800_v4, 0.0 }
 0xd90   : > { %8373 = vadd.xlane.f32.xlu0 %v8372_v7 }
 0xd91   : > { %v15806_v55 = vpop.eup %13163 }
 0xd92   : > { %v15808_v25 = vpop.eup %13165  ;;  %v8387_v41 = vsel %vm3531_vm7, %v15806_v55, 0.0 }
 0xd93   : > { %8388 = vadd.xlane.f32.xlu1 %v8387_v41  ;;  %v8384_v26 = vsel %vm3531_vm7, %v15808_v25, 0.0 }
 0xd94   : > { %8385 = vadd.xlane.f32.xlu0 %v8384_v26 }
 0xd96   : > { %v8299_v29 = vpop.xlane.xlu1 %8298 }
 0xd97   : > { %v8327_v58 = vsub.f32 %v15728_v37, %v8299_v29  ;;  %v8296_v43 = vpop.xlane.xlu0 %8295 }
 0xd98   : > { %v8326_v38 = vsub.f32 %v15734_v34, %v8296_v43  ;;  %v7754_v43 = vld [vmem:[#allocation3 + $0x80] sm:$0xff] }
 0xd99   : > { %v8352_v47 = vmul.f32 1.442695, %v8327_v58  ;;  %v12781_v14 = vpack.c.bf16 %v7755_v49, %v7754_v43  ;;  %v13238_v49 = vld [vmem:[%s16188_s17 + $0x8] sm:$0xff] }
 0xd9a   : > { %v8350_v6 = vmul.f32 1.442695, %v8326_v38 }
 0xd9b   : > { %13167 = vpow2.f32 %v8352_v47  ;;  %v8311_v44 = vpop.xlane.xlu1 %8310  ;;  %12782 = vmatprep.subr.bf16.mxu0 %v12781_v14 }
 0xd9c   : > { %13169 = vpow2.f32 %v8350_v6  ;;  %v8331_v37 = vsub.f32 %v15740_v28, %v8311_v44  ;;  %v8308_v15 = vpop.xlane.xlu0 %8307 }
 0xd9d   : > { %v8330_v34 = vsub.f32 %v15746_v57, %v8308_v15 }
 0xd9e   : > { %v8360_v48 = vmul.f32 1.442695, %v8331_v37 }
 0xd9f   : > { %v8358_v46 = vmul.f32 1.442695, %v8330_v34  ;;  %v8305_v40 = vpop.xlane.xlu1 %8304 }
 0xda0   : > { %13171 = vpow2.f32 %v8360_v48  ;;  %v8329_v54 = vsub.f32 %v15750_v61, %v8305_v40  ;;  %v8302_v28 = vpop.xlane.xlu0 %8301  ;;  %v7756_v48 = vld [vmem:[#allocation3 + $0x90] sm:$0xff] }
 0xda1   : > { %13173 = vpow2.f32 %v8358_v46  ;;  %v8328_v57 = vsub.f32 %v15756_v60, %v8302_v28  ;;  %v12785_v63 = vpack.c.bf16 %v7757_v23, %v7756_v48 }
 0xda2   : > { %v8356_v13 = vmul.f32 1.442695, %v8329_v54  ;;  %v7758_v54 = vld [vmem:[#allocation3 + $0xa0] sm:$0xff] }
 0xda3   : > { %v8354_v24 = vmul.f32 1.442695, %v8328_v57  ;;  %v8317_v2 = vpop.xlane.xlu1 %8316  ;;  %v7764_v57 = vld [vmem:[#allocation3 + $0xd0] sm:$0xff]  ;;  %v12789_v51 = vpack.c.bf16 %v7759_v52, %v7758_v54 }
 0xda4   : > { %13175 = vpow2.f32 %v8356_v13  ;;  %v8333_v33 = vsub.f32 %v15764_v12, %v8317_v2  ;;  %v8314_v21 = vpop.xlane.xlu0 %8313  ;;  %v7760_v2 = vld [vmem:[#allocation3 + $0xb0] sm:$0xff] }
 0xda5   : > { %v15821_v61 = vpop.eup %13167  ;;  %13177 = vpow2.f32 %v8354_v24  ;;  %v8332_v31 = vsub.f32 %v15768_v17, %v8314_v21  ;;  %v7767_v21 = vld [vmem:[#allocation3 + $0xe8] sm:$0xff] }
 0xda6   : > { %v15824_v60 = vpop.eup %13169  ;;  %v8364_v35 = vmul.f32 1.442695, %v8333_v33  ;;  %v8393_v50 = vsel %vm3531_vm7, %v15821_v61, 0.0  ;;  %v7761_v33 = vld [vmem:[#allocation3 + $0xb8] sm:$0xff] }
 0xda7   : > { %v8362_v7 = vmul.f32 1.442695, %v8332_v31  ;;  %8394 = vadd.xlane.f32.xlu1 %v8393_v50  ;;  %v8390_v41 = vsel %vm3531_vm7, %v15824_v60, 0.0  ;;  %v12793_v50 = vpack.c.bf16 %v7761_v33, %v7760_v2 }
 0xda8   : > { %13179 = vpow2.f32 %v8364_v35  ;;  %8391 = vadd.xlane.f32.xlu0 %v8390_v41 }
 0xda9   : > { %13181 = vpow2.f32 %v8362_v7 }
 0xdaa   : > { %v15830_v12 = vpop.eup %13171 }
 0xdab   : > { %v15832_v26 = vpop.eup %13173  ;;  %v8405_v17 = vsel %vm3531_vm7, %v15830_v12, 0.0 }
 0xdac   : > { %8406 = vadd.xlane.f32.xlu1 %v8405_v17  ;;  %v8402_v29 = vsel %vm3531_vm7, %v15832_v26, 0.0  ;;  %v7768_v17 = vld [vmem:[#allocation3 + $0xf0] sm:$0xff] }
 0xdad   : > { %8403 = vadd.xlane.f32.xlu0 %v8402_v29  ;;  %v7769_v29 = vld [vmem:[#allocation3 + $0xf8] sm:$0xff] }
 0xdae   : > { %v15838_v1 = vpop.eup %13175 }
 0xdaf   : > { %v15840_v22 = vpop.eup %13177  ;;  %v8399_v3 = vsel %vm3531_vm7, %v15838_v1, 0.0 }
 0xdb0   : > { %8400 = vadd.xlane.f32.xlu1 %v8399_v3  ;;  %v8396_v58 = vsel %vm3531_vm7, %v15840_v22, 0.0 }
 0xdb1   : > { %8397 = vadd.xlane.f32.xlu0 %v8396_v58  ;;  %v12809_v58 = vpack.c.bf16 %v7769_v29, %v7768_v17 }
 0xdb2   : > { %v15846_v38 = vpop.eup %13179 }
 0xdb3   : > { %v15848_v10 = vpop.eup %13181  ;;  %v8411_v47 = vsel %vm3531_vm7, %v15846_v38, 0.0 }
 0xdb4   : > { %8412 = vadd.xlane.f32.xlu1 %v8411_v47  ;;  %v8408_v6 = vsel %vm3531_vm7, %v15848_v10, 0.0 }
 0xdb5   : > { %8409 = vadd.xlane.f32.xlu0 %v8408_v6 }
 0xe14   : > { %v8371_v44 = vpop.xlane.xlu1 %8370 }
 0xe15   : > { %13183 = vrcp.f32 %v8371_v44  ;;  %v8368_v53 = vpop.xlane.xlu0 %8367 }
 0xe16   : > { %13185 = vrcp.f32 %v8368_v53 }
 0xe18   : > { %v8383_v16 = vpop.xlane.xlu1 %8382 }
 0xe19   : > { %13187 = vrcp.f32 %v8383_v16  ;;  %v8380_v37 = vpop.xlane.xlu0 %8379 }
 0xe1a   : > { %13189 = vrcp.f32 %v8380_v37 }
 0xe1c   : > { %v8377_v15 = vpop.xlane.xlu1 %8376 }
 0xe1d   : > { %13191 = vrcp.f32 %v8377_v15  ;;  %v8374_v18 = vpop.xlane.xlu0 %8373 }
 0xe1e   : > { %13193 = vrcp.f32 %v8374_v18 }
 0xe1f   : > { %v13184_v34 = vpop.eup %13183 }
 0xe20   : > { %v13186_v0 = vpop.eup %13185  ;;  %v8431_v39 = vmul.f32 %v13184_v34, %v15782_v9  ;;  %v8389_v46 = vpop.xlane.xlu1 %8388  ;;  %v7765_v9 = vld [vmem:[#allocation3 + $0xd8] sm:$0xff]  ;;  %v13239_v34 = vld [vmem:[%s16188_s17 + $0x10] sm:$0xff] }
 0xe21   : > { %13195 = vrcp.f32 %v8389_v46  ;;  %v8386_v40 = vpop.xlane.xlu0 %8385  ;;  %v8430_v19 = vmul.f32 %v13186_v0, %v15784_v8  ;;  %v12801_v24 = vpack.c.bf16 %v7765_v9, %v7764_v57  ;;  %v13240_v0 = vld [vmem:[%s16188_s17 + $0x18] sm:$0xff] }
 0xe22   : > { %8447 = vst.msk [vmem:[%s13582_s21 + $0x8] sm:$0xff] %vm3531_vm7, %v8431_v39  ;;  %13197 = vrcp.f32 %v8386_v40 }
 0xe23   : > { %v13188_v28 = vpop.eup %13187  ;;  %8446 = vst.msk [vmem:[%s13582_s21] sm:$0xff] %vm3531_vm7, %v8430_v19  ;;  %12069 = vmatprep.mubr.msk.f32.mxu0 %vm3531_vm7, %v8430_v19 }
 0xe24   : > { %v13190_v13 = vpop.eup %13189  ;;  %v8435_v20 = vmul.f32 %v13188_v28, %v15790_v11  ;;  %12070 = vmatmul.mubr.msk.f32.vlgmr.msra.gmra.mrb[96].mxu0 %vm3531_vm7, %v8431_v39  ;;  %v7766_v11 = vld [vmem:[#allocation3 + $0xe0] sm:$0xff] }
 0xe25   : > { %v8434_v8 = vmul.f32 %v13190_v13, %v15792_v62  ;;  %12784 = vmatpush3.bf16.msra.mxu0 %v12781_v14  ;;  %v12805_v7 = vpack.c.bf16 %v7767_v21, %v7766_v11 }
 0xe26   : > { %8451 = vst.msk [vmem:[%s13582_s21 + $0x28] sm:$0xff] %vm3531_vm7, %v8435_v20  ;;  %12786 = vmatprep.subr.bf16.mxu0 %v12785_v63 }
 0xe27   : > { %v13192_v42 = vpop.eup %13191  ;;  %8450 = vst.msk [vmem:[%s13582_s21 + $0x20] sm:$0xff] %vm3531_vm7, %v8434_v8  ;;  %12091 = vmatprep.mubr.msk.f32.mxu1 %vm3531_vm7, %v8434_v8 }
 0xe28   : > { %v13194_v31 = vpop.eup %13193  ;;  %12092 = vmatmul.mubr.msk.f32.vlgmr.msra.gmra.mrb[96].mxu1 %vm3531_vm7, %v8435_v20  ;;  %v8433_v62 = vmul.f32 %v13192_v42, %v15798_v30 }
 0xe29   : > { %v8432_v35 = vmul.f32 %v13194_v31, %v15800_v4  ;;  %12788 = vmatpush3.bf16.msra.mxu0 %v12785_v63  ;;  %12800 = vmatpush3.bf16.msra.mxu1 %v12797_v5 }
 0xe2a   : > { %8449 = vst.msk [vmem:[%s13582_s21 + $0x18] sm:$0xff] %vm3531_vm7, %v8433_v62  ;;  %12790 = vmatprep.subr.bf16.mxu0 %v12789_v51  ;;  %12802 = vmatprep.subr.bf16.mxu1 %v12801_v24 }
 0xe2b   : > { %v13196_v41 = vpop.eup %13195  ;;  %8448 = vst.msk [vmem:[%s13582_s21 + $0x10] sm:$0xff] %vm3531_vm7, %v8432_v35  ;;  %12072 = vmatprep.mubr.msk.f32.mxu0 %vm3531_vm7, %v8432_v35 }
 0xe2c   : > { %v13198_v30 = vpop.eup %13197  ;;  %12073 = vmatmul.mubr.msk.f32.gmra.mrb[98].mxu0 %vm3531_vm7, %v8433_v62  ;;  %v8437_v4 = vmul.f32 %v13196_v41, %v15806_v55  ;;  %v13237_v55 = vld [vmem:[%s16188_s17] sm:$0xff] }
 0xe2d   : > { %v8436_v3 = vmul.f32 %v13198_v30, %v15808_v25  ;;  %12792 = vmatpush3.bf16.msra.mxu0 %v12789_v51  ;;  %12804 = vmatpush3.bf16.msra.mxu1 %v12801_v24 }
 0xe2e   : > { %8453 = vst.msk [vmem:[%s13582_s21 + $0x38] sm:$0xff] %vm3531_vm7, %v8437_v4  ;;  %12794 = vmatprep.subr.bf16.mxu0 %v12793_v50  ;;  %12806 = vmatprep.subr.bf16.mxu1 %v12805_v7 }
 0xe2f   : > { %8452 = vst.msk [vmem:[%s13582_s21 + $0x30] sm:$0xff] %vm3531_vm7, %v8436_v3  ;;  %12094 = vmatprep.mubr.msk.f32.mxu1 %vm3531_vm7, %v8436_v3 }
 0xe30   : > { %12095 = vmatmul.mubr.msk.f32.gmra.mrb[98].mxu1 %vm3531_vm7, %v8437_v4 }
 0xe31   : > { %12796 = vmatpush3.bf16.msra.mxu0 %v12793_v50  ;;  %12808 = vmatpush3.bf16.msra.mxu1 %v12805_v7 }
 0xe32   : > { %12810 = vmatprep.subr.bf16.mxu1 %v12809_v58  ;;  %12141 = vmatprep.subr.mxu0 %v13237_v55 }
 0xe34   : > { %v8395_v25 = vpop.xlane.xlu1 %8394 }
 0xe35   : > { %13199 = vrcp.f32 %v8395_v25  ;;  %v8392_v43 = vpop.xlane.xlu0 %8391  ;;  %12812 = vmatpush3.bf16.msra.mxu1 %v12809_v58 }
 0xe36   : > { %13201 = vrcp.f32 %v8392_v43  ;;  %12149 = vmatprep.subr.mxu1 %v13238_v49 }
 0xe39   : > { %v8407_v14 = vpop.xlane.xlu1 %8406 }
 0xe3a   : > { %13203 = vrcp.f32 %v8407_v14  ;;  %v8404_v47 = vpop.xlane.xlu0 %8403 }
 0xe3b   : > { %13205 = vrcp.f32 %v8404_v47 }
 0xe3d   : > { %v8401_v6 = vpop.xlane.xlu1 %8400 }
 0xe3e   : > { %13207 = vrcp.f32 %v8401_v6  ;;  %v8398_v59 = vpop.xlane.xlu0 %8397 }
 0xe3f   : > { %v13200_v27 = vpop.eup %13199  ;;  %13209 = vrcp.f32 %v8398_v59 }
 0xe40   : > { %v13202_v5 = vpop.eup %13201  ;;  %v8439_v44 = vmul.f32 %v13200_v27, %v15821_v61 }
 0xe41   : > { %v8413_v53 = vpop.xlane.xlu1 %8412  ;;  %v8438_v16 = vmul.f32 %v13202_v5, %v15824_v60 }
 0xe42   : > { %8455 = vst.msk [vmem:[%s13582_s21 + $0x48] sm:$0xff] %vm3531_vm7, %v8439_v44  ;;  %13211 = vrcp.f32 %v8413_v53  ;;  %v8410_v37 = vpop.xlane.xlu0 %8409 }
 0xe43   : > { %13213 = vrcp.f32 %v8410_v37  ;;  %8454 = vst.msk [vmem:[%s13582_s21 + $0x40] sm:$0xff] %vm3531_vm7, %v8438_v16  ;;  %12113 = vmatprep.mubr.msk.f32.mxu0 %vm3531_vm7, %v8438_v16 }
 0xe44   : > { %v13204_v15 = vpop.eup %13203  ;;  %12114 = vmatmul.mubr.msk.f32.vlgmr.msra.gmra.mrb[100].mxu0 %vm3531_vm7, %v8439_v44 }
 0xe45   : > { %v13206_v18 = vpop.eup %13205  ;;  %v8443_v61 = vmul.f32 %v13204_v15, %v15830_v12  ;;  %12142 = vmatpush3.msra.mxu0 %v13237_v55 }
 0xe46   : > { %v8442_v60 = vmul.f32 %v13206_v18, %v15832_v26  ;;  %12157 = vmatprep.subr.mxu0 %v13239_v34 }
 0xe47   : > { %8459 = vst.msk [vmem:[%s13582_s21 + $0x68] sm:$0xff] %vm3531_vm7, %v8443_v61 }
 0xe48   : > { %v13208_v48 = vpop.eup %13207  ;;  %8458 = vst.msk [vmem:[%s13582_s21 + $0x60] sm:$0xff] %vm3531_vm7, %v8442_v60  ;;  %12135 = vmatprep.mubr.msk.f32.mxu1 %vm3531_vm7, %v8442_v60 }
 0xe49   : > { %v13210_v23 = vpop.eup %13209  ;;  %12136 = vmatmul.mubr.msk.f32.vlgmr.msra.gmra.mrb[100].mxu1 %vm3531_vm7, %v8443_v61  ;;  %v8441_v12 = vmul.f32 %v13208_v48, %v15838_v1  ;;  %v13241_v61 = vld [vmem:[%s16197_s2] ss:$0 sm:$0xff] }
 0xe4a   : > { %v8440_v26 = vmul.f32 %v13210_v23, %v15840_v22  ;;  %12150 = vmatpush3.msra.mxu1 %v13238_v49 }
 0xe4b   : > { %8457 = vst.msk [vmem:[%s13582_s21 + $0x58] sm:$0xff] %vm3531_vm7, %v8441_v12  ;;  %12165 = vmatprep.subr.mxu1 %v13240_v0 }
 0xe4c   : > { %v13212_v39 = vpop.eup %13211  ;;  %8456 = vst.msk [vmem:[%s13582_s21 + $0x50] sm:$0xff] %vm3531_vm7, %v8440_v26  ;;  %12116 = vmatprep.mubr.msk.f32.mxu0 %vm3531_vm7, %v8440_v26 }
 0xe4d   : > { %v13214_v46 = vpop.eup %13213  ;;  %12117 = vmatmul.mubr.msk.f32.gmra.mrb[102].mxu0 %vm3531_vm7, %v8441_v12  ;;  %v8445_v1 = vmul.f32 %v13212_v39, %v15846_v38 }
 0xe4e   : > { %v8444_v22 = vmul.f32 %v13214_v46, %v15848_v10 }
 0xe4f   : > { %8461 = vst.msk [vmem:[%s13582_s21 + $0x78] sm:$0xff] %vm3531_vm7, %v8445_v1 }
 0xe50   : > { %8460 = vst.msk [vmem:[%s13582_s21 + $0x70] sm:$0xff] %vm3531_vm7, %v8444_v22  ;;  %12138 = vmatprep.mubr.msk.f32.mxu1 %vm3531_vm7, %v8444_v22 }
 0xe51   : > { %12139 = vmatmul.mubr.msk.f32.gmra.mrb[102].mxu1 %vm3531_vm7, %v8445_v1 }
 0xef7   : > { %v12071_v40 = vpop.f32.mrb[96].mxu0 }
 0xef8   : > { %v8540_v19 = vpop.f32.mrb[97].mxu0 }
 0xef9   : > { %12143 = vmatprep.mubr.msk.f32.mxu0 %vm2527_vm3, %v8540_v19 }
 0xefa   : > { %12144 = vmatmul.mubr.msk.f32.vlgmr.msra.gmra.mrb[104].mxu0 %vm2527_vm3, %v12071_v40 }
 0xefb   : > { %v12093_v63 = vpop.f32.mrb[96].mxu1  ;;  %12158 = vmatpush3.msra.mxu0 %v13239_v34 }
 0xefc   : > { %v8637_v54 = vpop.f32.mrb[97].mxu1 }
 0xefd   : > { %12151 = vmatprep.mubr.msk.f32.mxu1 %vm2527_vm3, %v8637_v54 }
 0xefe   : > { %12152 = vmatmul.mubr.msk.f32.vlgmr.msra.gmra.mrb[104].mxu1 %vm2527_vm3, %v12093_v63 }
 0xeff   : > { %v12074_v38 = vpop.f32.mrb[98].mxu0  ;;  %12166 = vmatpush3.msra.mxu1 %v13240_v0 }
 0xf00   : > { %v8550_v10 = vpop.f32.mrb[99].mxu0 }
 0xf01   : > { %12146 = vmatprep.mubr.msk.f32.mxu0 %vm2527_vm3, %v8550_v10 }
 0xf02   : > { %12147 = vmatmul.mubr.msk.f32.gmra.mrb[106].mxu0 %vm2527_vm3, %v12074_v38 }
 0xf03   : > { %v12096_v28 = vpop.f32.mrb[98].mxu1 }
 0xf04   : > { %v8647_v52 = vpop.f32.mrb[99].mxu1 }
 0xf05   : > { %12154 = vmatprep.mubr.msk.f32.mxu1 %vm2527_vm3, %v8647_v52  ;;  %v9298_v52 = vadd.f32 %v13241_v61, %v15665_v32 }
 0xf06   : > { %12155 = vmatmul.mubr.msk.f32.gmra.mrb[106].mxu1 %vm2527_vm3, %v12096_v28 }
 0xf17   : > { %v12115_v57 = vpop.f32.mrb[100].mxu0 }
 0xf18   : > { %v8734_v9 = vpop.f32.mrb[101].mxu0 }
 0xf19   : > { %12159 = vmatprep.mubr.msk.f32.mxu0 %vm2527_vm3, %v8734_v9  ;;  %v9297_v9 = vadd.f32 %v13241_v61, %v15668_v45 }
 0xf1a   : > { %12160 = vmatmul.mubr.msk.f32.vlgmr.msra.gmra.mrb[108].mxu0 %vm2527_vm3, %v12115_v57 }
 0xf1c   : > { %v12137_v13 = vpop.f32.mrb[100].mxu1 }
 0xf1d   : > { %v8831_v20 = vpop.f32.mrb[101].mxu1 }
 0xf1e   : > { %12167 = vmatprep.mubr.msk.f32.mxu1 %vm2527_vm3, %v8831_v20 }
 0xf1f   : > { %12168 = vmatmul.mubr.msk.f32.vlgmr.msra.gmra.mrb[108].mxu1 %vm2527_vm3, %v12137_v13 }
 0xf20   : > { %v12118_v8 = vpop.f32.mrb[102].mxu0 }
 0xf21   : > { %v8744_v51 = vpop.f32.mrb[103].mxu0 }
 0xf22   : > { %12162 = vmatprep.mubr.msk.f32.mxu0 %vm2527_vm3, %v8744_v51 }
 0xf23   : > { %12163 = vmatmul.mubr.msk.f32.gmra.mrb[110].mxu0 %vm2527_vm3, %v12118_v8 }
 0xf24   : > { %v12140_v24 = vpop.f32.mrb[102].mxu1 }
 0xf25   : > { %v8841_v2 = vpop.f32.mrb[103].mxu1 }
 0xf26   : > { %12170 = vmatprep.mubr.msk.f32.mxu1 %vm2527_vm3, %v8841_v2  ;;  %v9300_v2 = vadd.f32 %v13241_v61, %v15673_v56 }
 0xf27   : > { %12171 = vmatmul.mubr.msk.f32.gmra.mrb[110].mxu1 %vm2527_vm3, %v12140_v24 }
 0xfcd   : > { %v12145_v42 = vpop.f32.mrb[104].mxu0 }
 0xfce   : > { %v8928_v33 = vpop.f32.mrb[105].mxu0  ;;  %v9245_v21 = vsel %vm2394_vm2, %v12145_v42, 0.0  ;;  %v9299_v42 = vadd.f32 %v13241_v61, %v15676_v36 }
 0xfcf   : > { %v9238_v35 = vsel %vm2394_vm2, %v8928_v33, 0.0 }
 0xfd1   : > { %v12153_v11 = vpop.f32.mrb[104].mxu1 }
 0xfd2   : > { %v9246_v31 = vsel %vm2394_vm2, %v12153_v11, 0.0  ;;  %v9025_v62 = vpop.f32.mrb[105].mxu1 }
 0xfd3   : > { %v9247_v50 = vadd.f32 %v9246_v31, %v9245_v21  ;;  %v9239_v7 = vsel %vm2394_vm2, %v9025_v62, 0.0 }
 0xfd4   : > { %v9240_v41 = vadd.f32 %v9239_v7, %v9238_v35 }
 0xfd5   : > { %v12148_v17 = vpop.f32.mrb[106].mxu0 }
 0xfd6   : > { %v8938_v29 = vpop.f32.mrb[107].mxu0  ;;  %v9259_v4 = vsel %vm2394_vm2, %v12148_v17, 0.0 }
 0xfd7   : > { %v9252_v55 = vsel %vm2394_vm2, %v8938_v29, 0.0 }
 0xfd9   : > { %v12156_v30 = vpop.f32.mrb[106].mxu1 }
 0xfda   : > { %v9260_v3 = vsel %vm2394_vm2, %v12156_v30, 0.0  ;;  %v9035_v58 = vpop.f32.mrb[107].mxu1 }
 0xfdb   : > { %v9261_v25 = vadd.f32 %v9260_v3, %v9259_v4  ;;  %v9253_v43 = vsel %vm2394_vm2, %v9035_v58, 0.0 }
 0xfdc   : > { %v9254_v49 = vadd.f32 %v9253_v43, %v9252_v55 }
 0xfed   : > { %v12161_v14 = vpop.f32.mrb[108].mxu0 }
 0xfee   : > { %v9248_v47 = vsel %vm2394_vm2, %v12161_v14, 0.0  ;;  %v9122_v6 = vpop.f32.mrb[109].mxu0 }
 0xfef   : > { %v9249_v59 = vadd.f32 %v9248_v47, %v9247_v50  ;;  %v9241_v27 = vsel %vm2394_vm2, %v9122_v6, 0.0 }
 0xff0   : > { %v9242_v5 = vadd.f32 %v9241_v27, %v9240_v41 }
 0xff2   : > { %v12169_v44 = vpop.f32.mrb[108].mxu1 }
 0xff3   : > { %v9250_v53 = vsel %vm2394_vm2, %v12169_v44, 0.0  ;;  %v9219_v16 = vpop.f32.mrb[109].mxu1 }
 0xff4   : > { %v9251_v37 = vadd.f32 %v9250_v53, %v9249_v59  ;;  %v9243_v15 = vsel %vm2394_vm2, %v9219_v16, 0.0 }
 0xff5   : > { %v9244_v18 = vadd.f32 %v9243_v15, %v9242_v5 }
 0xff6   : > { %v9302_v60 = vadd.f32 %v13241_v61, %v9251_v37  ;;  %v12164_v34 = vpop.f32.mrb[110].mxu0 }
 0xff7   : > { %v9301_v48 = vadd.f32 %v13241_v61, %v9244_v18  ;;  %v9262_v23 = vsel %vm2394_vm2, %v12164_v34, 0.0  ;;  %v9132_v12 = vpop.f32.mrb[111].mxu0 }
 0xff8   : > { %13215 = vtanh.f32 %v9302_v60  ;;  %v9263_v26 = vadd.f32 %v9262_v23, %v9261_v25  ;;  %v9255_v0 = vsel %vm2394_vm2, %v9132_v12, 0.0 }
 0xff9   : > { %13217 = vtanh.f32 %v9301_v48  ;;  %v9256_v39 = vadd.f32 %v9255_v0, %v9254_v49 }
 0xffa   : > { %v12172_v46 = vpop.f32.mrb[110].mxu1 }
 0xffb   : > { %v9264_v1 = vsel %vm2394_vm2, %v12172_v46, 0.0  ;;  %v9229_v22 = vpop.f32.mrb[111].mxu1 }
 0xffc   : > { %v9265_v40 = vadd.f32 %v9264_v1, %v9263_v26  ;;  %v9257_v19 = vsel %vm2394_vm2, %v9229_v22, 0.0 }
 0xffd   : > { %v9258_v63 = vadd.f32 %v9257_v19, %v9256_v39 }
 0xffe   : > { %v9304_v54 = vadd.f32 %v13241_v61, %v9265_v40 }
 0xfff   : > { %v9303_v38 = vadd.f32 %v13241_v61, %v9258_v63 }
0x1000   : > { %13219 = vtanh.f32 %v9304_v54 }
0x1001   : > { %13221 = vtanh.f32 %v9303_v38 }
0x1002   : > { %v13216_v10 = vpop.eup %13215 }
0x1003   : > { %v13218_v28 = vpop.eup %13217  ;;  %v9310_v57 = vmul.f32 0.1, %v13216_v10 }
0x1004   : > { %v9309_v13 = vmul.f32 0.1, %v13218_v28 }
0x1005   : > { %v9314_v20 = vadd.f32 %v9310_v57, %v9298_v52 }
0x1006   : > { %v9313_v8 = vadd.f32 %v9309_v13, %v9297_v9 }
0x1007   : > { %9318 = vst.msk [vmem:[%s13572_s12 + $0x8] sm:$0xff] %vm2394_vm2, %v9314_v20 }
0x1008   : > { %9317 = vst.msk [vmem:[%s13572_s12] sm:$0xff] %vm2394_vm2, %v9313_v8 }
0x100a   : > { %v13220_v51 = vpop.eup %13219 }
0x100b   : > { %v13222_v24 = vpop.eup %13221  ;;  %v9312_v32 = vmul.f32 0.1, %v13220_v51 }
0x100c   : > { %v9311_v33 = vmul.f32 0.1, %v13222_v24 }
0x100d   : > { %v9316_v11 = vadd.f32 %v9312_v32, %v9300_v2 }
0x100e   : > { %v9315_v45 = vadd.f32 %v9311_v33, %v9299_v42 }
0x100f   : > { %9320 = vst.msk [vmem:[%s13572_s12 + $0x18] sm:$0xff] %vm2394_vm2, %v9316_v11 }
0x1010   : > { %9319 = vst.msk [vmem:[%s13572_s12 + $0x10] sm:$0xff] %vm2394_vm2, %v9315_v45 }
0x1011   : > { %s16201_s28 = sld [smem:[#allocation27_spill]]  ;;  %s9394_s10 = sshll.u32 %s13576_s3, 4  ;;  %s9395_s10 = int_to_ptr.vmem [resolvable:$true] %s9394_s10 }
0x1012   : > { %s16203_s27 = sld [smem:[#allocation45_spill]]  ;;  %s13318_s16 = smov 512  }
0x1013   : > { %12813 = sst [smem:[#allocation14]] (%p13505_p8), %s13318_s16  ;;  %s13319_s11 = smov 1024  }
0x1014   : > { %12814 = sst [smem:[#allocation14 + $0x1]] (%p13505_p8), %s13319_s11  ;;  %s13320_s2 = smov 4  }
0x1015   : > { %12815 = sst [smem:[#allocation14 + $0x2]] (%p13505_p8), %s13320_s2  ;;  %s13321_s3 = smov 128  }
0x1016   : > { %12816 = sst [smem:[#allocation14 + $0x3]] (%p13505_p8), %s13321_s3 }
0x1017   : > { %s10426_s0 = sshll.u32 %s16201_s28, 5  ;;  %12817 = sst [smem:[#allocation14 + $0x4]] (%p13505_p8), %s13321_s3 }
0x1018   : > { %s9375_s1 = sadd.s32 %s10426_s0, %s13550_s20  ;;  %s13322_s20 = smov 8  }
0x1019   : > { %s15987_s15 = sshll.u32 %s9375_s1, 7  ;;  %12818 = sst [smem:[#allocation14 + $0x5]] (%p13505_p8), %s13322_s20 }
0x101a   : > { %s9377_s19 = scalar_lea.hbm %s16203_s27, %s15987_s15  ;;  %s13323_s28 = smov [#allocation13]  }
0x101b   : > { %s13324_s0 = smov 0  }
0x101c   : > { %12819 = dma.general (%p13505_p8), %s9395_s10, 2048, %s9377_s19, %s9340_s25, %s13323_s28, [#allocation14], %s13324_s0, 0  }
0x101d   : > { %s16204_s12 = sld [smem:[#allocation46_spill]]  ;;  %s9441_s11 = sshll.u32 %s13578_s18, 4  ;;  %s9442_s11 = int_to_ptr.vmem [resolvable:$true] %s9441_s11 }
0x101e   : > { %s13325_s30 = smov 512   ;;  %s13326_s25 = smov 1024  }
0x101f   : > { %12820 = sst [smem:[#allocation16]] (%p13505_p8), %s13325_s30  ;;  %s13327_s10 = smov 4  }
0x1020   : > { %12821 = sst [smem:[#allocation16 + $0x1]] (%p13505_p8), %s13326_s25  ;;  %s13328_s27 = smov 128  }
0x1021   : > { %12822 = sst [smem:[#allocation16 + $0x2]] (%p13505_p8), %s13327_s10  ;;  %s13329_s19 = smov 8  }
0x1022   : > { %12823 = sst [smem:[#allocation16 + $0x3]] (%p13505_p8), %s13328_s27  ;;  %s13330_s3 = smov [#allocation15]  }
0x1023   : > { %s9424_s2 = scalar_lea.hbm %s16204_s12, %s15987_s15  ;;  %12824 = sst [smem:[#allocation16 + $0x4]] (%p13505_p8), %s13328_s27 }
0x1024   : > { %12825 = sst [smem:[#allocation16 + $0x5]] (%p13505_p8), %s13329_s19  ;;  %s13331_s18 = smov 0  }
0x1025   : > { %s16205_s20 = scalar_lea.sflag [#allocation9], %s15948_s24 }
0x1026   : > { %12826 = dma.general (%p13505_p8), %s9442_s11, 2048, %s9424_s2, %s16205_s20, %s13330_s3, [#allocation16], %s13331_s18, 0  }
0x1027   : > { %s16206_s16 = sld [smem:[#allocation47_spill]]  ;;  %s9488_s12 = sshll.u32 %s13580_s26, 4  ;;  %s9489_s12 = int_to_ptr.vmem [resolvable:$true] %s9488_s12 }
0x1028   : > { %s13332_s30 = smov 512   ;;  %s13333_s2 = smov 1024  }
0x1029   : > { %12827 = sst [smem:[#allocation18]] (%p13505_p8), %s13332_s30  ;;  %s13334_s11 = smov 4  }
0x102a   : > { %12828 = sst [smem:[#allocation18 + $0x1]] (%p13505_p8), %s13333_s2  ;;  %s13335_s25 = smov 128  }
0x102b   : > { %12829 = sst [smem:[#allocation18 + $0x2]] (%p13505_p8), %s13334_s11  ;;  %s13336_s10 = smov 8  }
0x102c   : > { %12830 = sst [smem:[#allocation18 + $0x3]] (%p13505_p8), %s13335_s25  ;;  %s13337_s27 = smov [#allocation17]  }
0x102d   : > { %s9471_s1 = scalar_lea.hbm %s16206_s16, %s15987_s15  ;;  %12831 = sst [smem:[#allocation18 + $0x4]] (%p13505_p8), %s13335_s25 }
0x102e   : > { %12832 = sst [smem:[#allocation18 + $0x5]] (%p13505_p8), %s13336_s10  ;;  %s13338_s26 = smov 0  }
0x102f   : > { %s16207_s19 = smov %s16205_s20 }
0x1030   : > { %12833 = dma.general (%p13505_p8), %s9489_s12, 2048, %s9471_s1, %s16207_s19, %s13337_s27, [#allocation18], %s13338_s26, 0  }
0x1031   : > { %s16208_s20 = sld [smem:[#allocation48_spill]]  ;;  %s9535_s0 = sshll.u32 %s13582_s21, 4  ;;  %s9536_s0 = int_to_ptr.vmem [resolvable:$true] %s9535_s0 }
0x1032   : > { %s13339_s16 = smov 512   ;;  %s13340_s24 = smov 1024  }
0x1033   : > { %12834 = sst [smem:[#allocation20]] (%p13505_p8), %s13339_s16  ;;  %s13341_s1 = smov 4  }
0x1034   : > { %12835 = sst [smem:[#allocation20 + $0x1]] (%p13505_p8), %s13340_s24  ;;  %s13342_s12 = smov 128  }
0x1035   : > { %12836 = sst [smem:[#allocation20 + $0x2]] (%p13505_p8), %s13341_s1  ;;  %s13343_s30 = smov 8  }
0x1036   : > { %12837 = sst [smem:[#allocation20 + $0x3]] (%p13505_p8), %s13342_s12  ;;  %s13345_s21 = smov 0  }
0x1037   : > { %s9518_s28 = scalar_lea.hbm %s16208_s20, %s15987_s15  ;;  %12838 = sst [smem:[#allocation20 + $0x4]] (%p13505_p8), %s13342_s12 }
0x1038   : > { %12839 = sst [smem:[#allocation20 + $0x5]] (%p13505_p8), %s13343_s30  ;;  %s13344_s15 = smov [#allocation19]  }
0x1039   : > { %s16209_s2 = scalar_lea.sflag [#allocation12], %s16200_s22 }
0x103a   : > { %12840 = dma.general (%p13505_p8), %s9536_s0, 2048, %s9518_s28, %s16209_s2, %s13344_s15, [#allocation20], %s13345_s21, 0  }
0x103b PF: > { %s16210_s11 = sld [smem:[#allocation30_spill]]  ;;  %s16211_s25 = sld [smem:[#allocation24_spill]] }
0x1041   : > { %p12858_p5 = scmp.ge.s32.totalorder %s16210_s11, 2  ;;  %s9587_s27 = sand.u32 1, %s16211_s25  }
0x1042   : > { %s9588_s26 = scalar_lea.sflag [#allocation7], %s9587_s27 }
0x1043   : > { %p12846_p6 = pnand %p12858_p5, %p13509_p9 }
0x1045   : > { %13275 = dma.done.wait (!%p12846_p6), %s9588_s26, 2048  }
0x1046   : > { %13277 = vsyncadd (!%p12846_p6), %s9588_s26, 4294965248  ;;  %s16213_s19 = sadd.s32 4294967294, %s16210_s11  }
0x1047   : > { %s9596_s3 = sand.u32 1, %s16213_s19  }
0x1048   : > { %s9597_s18 = scalar_lea.sflag [#allocation9], %s9596_s3 }
0x1049   : > { %13279 = dma.done.wait (!%p12846_p6), %s9597_s18, 4096  }
0x104a   : > { %13281 = vsyncadd (!%p12846_p6), %s9597_s18, 4294963200  ;;  %s9615_s29 = scalar_lea.sflag [#allocation12], %s9587_s27 }
0x104b   : > { %13283 = dma.done.wait (!%p12846_p6), %s9615_s29, 2048  }
0x104c   : > { %13285 = vsyncadd (!%p12846_p6), %s9615_s29, 4294965248  ;;  %s38_s20 = sadd.s32 1, %s16210_s11   ;;  %s16214_s27 = sld [smem:[#allocation25_spill]] }
0x104d   : > { %p35_p7 = scmp.ge.s32.totalorder %s38_s20, 6   ;;  %s16215_s28 = sld [smem:[#allocation26_spill]] }
0x104e   : > { %s16216_s29 = sld [smem:[#allocation35_spill]]  ;;  %s16217_s30 = sld [smem:[#allocation28_spill]] }
0x104f   : > { %s16218_s0 = sld [smem:[#allocation29_spill]]  ;;  %s16219_s19 = sld [smem:[#allocation31_spill]] }
0x1050   : > { %s16220_s1 = sld [smem:[#allocation32_spill]]  ;;  %37 = sbr.rel (!%p35_p7) target bundleno = 22 (0x16), region = 300 }
0x1057   :  { %9620 = vsyncpa [#allocation7], 1 }
0x1058   :  { %9622 = vsyncpa [#allocation7 + $0x1], 1 }
0x1059   :  { %9623 = vsyncpa [#allocation9], 1 }
0x105a   :  { %9625 = vsyncpa [#allocation9 + $0x1], 1 }
0x105b   :  { %9626 = vsyncpa [#allocation12], 1 }
0x105c   :  { %9628 = vsyncpa [#allocation12 + $0x1], 1 }

</bundles_post_ra>
